<compile_context>
chip_gen: v5e
topology: v5e:2x2
jax: 0.10.0
libtpu: 0.0.40
codegen_flags: <defaults>
</compile_context>

<pallas_src>
import math
from functools import partial

import jax
import jax.numpy as jnp
from jax.experimental import pallas as pl
from jax.experimental.pallas import tpu as pltpu

# ----------------------------- model config ---------------------------------
POS_DIM = 3
KERNEL_DIM = 32          # feats_dim
M_DIM = 32
N_KERNELS = 5
N_MLP = 3
MLP_DIM = 256
N_OUTPUTS = 1
FOURIER = 32
INPUT_DIM = 9                               # properties = 'yyyyyyyyy'
EDGE_IN_DIM = FOURIER * 2 + 1 + KERNEL_DIM * 2   # 129 (logical)
EIN_PAD = 256                               # padded K for the edge MLP matmul
EDGE_HID = EDGE_IN_DIM * 2                  # 258 (kept exact, as in reference)
EATTR_PAD = EIN_PAD - 2 * KERNEL_DIM        # 192 (fourier(65) + zero pad)
FEAT_CAT = KERNEL_DIM * (N_KERNELS + 1)     # 192
EPS = 1e-5

F32 = jnp.float32
BF16 = jnp.bfloat16


# ----------------------------- in-kernel helpers ----------------------------
def _silu(x):
    # x * sigmoid(x); the divide goes to the EUP via approx reciprocal.
    return x * pl.reciprocal(1.0 + jnp.exp(-x), approx=True)


def _layernorm(x, g, b):
    mu = jnp.mean(x, axis=-1, keepdims=True)
    var = jnp.mean((x - mu) ** 2, axis=-1, keepdims=True)
    return (x - mu) * jax.lax.rsqrt(var + EPS) * g + b


# ----------------------------- fused Pallas kernel --------------------------
def fused_kernel(props_ref, nodew_ref, eattr_ref, src_ref, tgt_ref,
                 tgt_row_ref, batch_ref,
                 emb_w_ref, emb_b_ref,
                 ew1_ref, eb1_ref, ew2_ref, eb2_ref, en1g_ref, en1b_ref,
                 nn1g_ref, nn1b_ref, nw1_ref, nb1_ref, nw2_ref, nb2_ref,
                 nn2g_ref, nn2b_ref,
                 fw0_ref, fb0_ref, fw1_ref, fb1_ref, fw2_ref, fb2_ref,
                 fw3_ref, fb3_ref,
                 out_ref):
    E = eattr_ref.shape[0]
    N = props_ref.shape[0]
    B = out_ref.shape[0]

    # ---- layer-invariant structures: built once, reused by all 5 layers ----
    col_en = jax.lax.broadcasted_iota(jnp.int32, (E, N), 1)
    sel_src = (col_en == src_ref[...]).astype(F32)        # (E,N) gathers x_j
    sel_tgt = (col_en == tgt_ref[...]).astype(F32)        # (E,N) gathers x_i
    row_ne = jax.lax.broadcasted_iota(jnp.int32, (N, E), 0)
    sel_agg = (row_ne == tgt_row_ref[...]).astype(F32)    # (N,E) scatter to i
    inv_cnt = 1.0 / jnp.maximum(jnp.sum(sel_agg, axis=1, keepdims=True), 1.0)
    eattr = eattr_ref[...]                                # (E, 192) fourier+pad

    # ---- embedding: (node_props @ W + b) * node_weights ---------------------
    feats = (jnp.dot(props_ref[...], emb_w_ref[...],
                     preferred_element_type=F32)
             + emb_b_ref[...]) * nodew_ref[...]           # (N, 32) f32
    feat_list = [feats]

    # ---- EGNN message-passing layers (statically unrolled) ------------------
    for l in range(N_KERNELS):
        # gathers as one-hot matmuls on the MXU (exact: 0/1 selection in f32)
        x_i = jnp.dot(sel_tgt, feats, preferred_element_type=F32)   # (E,32)
        x_j = jnp.dot(sel_src, feats, preferred_element_type=F32)   # (E,32)
        ein = jnp.concatenate([x_i, x_j, eattr], axis=-1).astype(BF16)  # (E,256)

        # edge_mlp: Linear -> (dropout=id) -> SiLU -> Linear -> SiLU
        h = _silu(jnp.dot(ein, ew1_ref[l],
                          preferred_element_type=F32) + eb1_ref[l])     # (E,258)
        m_ij = _silu(jnp.dot(h.astype(BF16), ew2_ref[l],
                             preferred_element_type=F32) + eb2_ref[l])  # (E,32)
        m_ij = _layernorm(m_ij, en1g_ref[l], en1b_ref[l])               # edge_norm1

        # scatter-mean over target node, then edge_norm1 again (reference)
        m_i = jnp.dot(sel_agg, m_ij, preferred_element_type=F32) * inv_cnt
        m_i = _layernorm(m_i, en1g_ref[l], en1b_ref[l])

        # node update: LN -> concat -> Linear -> SiLU -> Linear -> LN -> resid
        hf = _layernorm(feats, nn1g_ref[l], nn1b_ref[l])                # node_norm1
        hcat = jnp.concatenate([hf, m_i], axis=-1).astype(BF16)         # (N,64)
        hn = _silu(jnp.dot(hcat, nw1_ref[l],
                           preferred_element_type=F32) + nb1_ref[l])
        hn = jnp.dot(hn.astype(BF16), nw2_ref[l],
                     preferred_element_type=F32) + nb2_ref[l]
        hn = _layernorm(hn, nn2g_ref[l], nn2b_ref[l])                   # node_norm2
        feats = feats + hn                                              # residual
        feat_list.append(feats)

    # ---- readout FNN + per-graph mean pooling + output head -----------------
    hg = _silu(jnp.concatenate(feat_list, axis=-1))                     # (N,192)
    hg = _silu(jnp.dot(hg.astype(BF16), fw0_ref[...],
                       preferred_element_type=F32) + fb0_ref[...])
    hg = _silu(jnp.dot(hg.astype(BF16), fw1_ref[...],
                       preferred_element_type=F32) + fb1_ref[...])
    hg = _silu(jnp.dot(hg.astype(BF16), fw2_ref[...],
                       preferred_element_type=F32) + fb2_ref[...])      # (N,256)

    row_bn = jax.lax.broadcasted_iota(jnp.int32, (B, N), 0)
    sel_pool = (row_bn == batch_ref[...]).astype(F32)                   # (B,N)
    inv_pool = 1.0 / jnp.maximum(jnp.sum(sel_pool, axis=1, keepdims=True), 1.0)
    pooled = jnp.dot(sel_pool, hg, preferred_element_type=F32) * inv_pool
    out_ref[...] = jnp.dot(pooled.astype(BF16), fw3_ref[...],
                           preferred_element_type=F32) + fb3_ref[...]


# ----------------------------- parameter init -------------------------------
def _xavier(key, fan_in, fan_out):
    limit = math.sqrt(6.0 / (fan_in + fan_out))
    return jax.random.uniform(key, (fan_in, fan_out), F32, -limit, limit)


def init_params(key):
    keys = iter(jax.random.split(key, 32))
    p = {}
    # Embed.prop_embedding: Linear(INPUT_DIM, KERNEL_DIM)
    p["emb_w"] = _xavier(next(keys), INPUT_DIM, KERNEL_DIM)
    p["emb_b"] = jnp.zeros((1, KERNEL_DIM), F32)

    # EGNN_sparse kernels (stacked along a leading layer axis, matmul weights
    # stored bf16; edge-MLP W1 K-dim zero-padded 129 -> 256).
    ew1, ew2, nw1, nw2 = [], [], [], []
    for _ in range(N_KERNELS):
        w1 = _xavier(next(keys), EDGE_IN_DIM, EDGE_HID)
        ew1.append(jnp.pad(w1, ((0, EIN_PAD - EDGE_IN_DIM), (0, 0))))
        ew2.append(_xavier(next(keys), EDGE_HID, M_DIM))
        nw1.append(_xavier(next(keys), KERNEL_DIM + M_DIM, KERNEL_DIM * 2))
        nw2.append(_xavier(next(keys), KERNEL_DIM * 2, KERNEL_DIM))
    p["k_ew1"] = jnp.stack(ew1).astype(BF16)
    p["k_eb1"] = jnp.zeros((N_KERNELS, 1, EDGE_HID), F32)
    p["k_ew2"] = jnp.stack(ew2).astype(BF16)
    p["k_eb2"] = jnp.zeros((N_KERNELS, 1, M_DIM), F32)
    p["k_en1_g"] = jnp.ones((N_KERNELS, 1, M_DIM), F32)     # edge_norm1
    p["k_en1_b"] = jnp.zeros((N_KERNELS, 1, M_DIM), F32)
    p["k_nn1_g"] = jnp.ones((N_KERNELS, 1, KERNEL_DIM), F32)  # node_norm1
    p["k_nn1_b"] = jnp.zeros((N_KERNELS, 1, KERNEL_DIM), F32)
    p["k_nw1"] = jnp.stack(nw1).astype(BF16)
    p["k_nb1"] = jnp.zeros((N_KERNELS, 1, KERNEL_DIM * 2), F32)
    p["k_nw2"] = jnp.stack(nw2).astype(BF16)
    p["k_nb2"] = jnp.zeros((N_KERNELS, 1, KERNEL_DIM), F32)
    p["k_nn2_g"] = jnp.ones((N_KERNELS, 1, KERNEL_DIM), F32)  # node_norm2
    p["k_nn2_b"] = jnp.zeros((N_KERNELS, 1, KERNEL_DIM), F32)

    # final FNN: Linear(192,256), Linear(256,256), Linear(256,256), Linear(256,1)
    p["fnn_w0"] = _xavier(next(keys), FEAT_CAT, MLP_DIM).astype(BF16)
    p["fnn_b0"] = jnp.zeros((1, MLP_DIM), F32)
    p["fnn_w1"] = _xavier(next(keys), MLP_DIM, MLP_DIM).astype(BF16)
    p["fnn_b1"] = jnp.zeros((1, MLP_DIM), F32)
    p["fnn_w2"] = _xavier(next(keys), MLP_DIM, MLP_DIM).astype(BF16)
    p["fnn_b2"] = jnp.zeros((1, MLP_DIM), F32)
    p["fnn_w3"] = _xavier(next(keys), MLP_DIM, N_OUTPUTS).astype(BF16)
    p["fnn_b3"] = jnp.zeros((1, N_OUTPUTS), F32)
    return p


# ----------------------------- forward pass ---------------------------------
def egnn_intgrads_forward(params, node_weights, node_props, node_coords,
                          edge_index, batch, num_graphs):
    N = node_props.shape[0]
    E = edge_index.shape[1]
    src = edge_index[0].astype(jnp.int32)   # j (source)
    tgt = edge_index[1].astype(jnp.int32)   # i (target, aggregation index)

    # Layer-invariant Fourier distance encoding (coordinates are never updated
    # by this EGNN variant) -- computed ONCE here, consumed 5x inside the
    # fused kernel.  sin/cos kept outside the kernel on purpose.
    rel = node_coords[src] - node_coords[tgt]                       # (E, 3)
    rel_dist = jnp.sum(rel * rel, axis=-1, keepdims=True)           # (E, 1)
    inv_scales = 2.0 ** (-jnp.arange(FOURIER, dtype=F32))           # exact
    xs = rel_dist * inv_scales                                      # (E, 32)
    eattr = jnp.concatenate([jnp.sin(xs), jnp.cos(xs), rel_dist], axis=-1)
    eattr = jnp.pad(eattr, ((0, 0), (0, EATTR_PAD - eattr.shape[1])))  # (E,192)

    # advisory cost estimate so XLA can schedule the small glue ops around it
    flops = 2 * N_KERNELS * (2 * E * N * KERNEL_DIM
                             + E * EIN_PAD * EDGE_HID
                             + E * EDGE_HID * M_DIM
                             + N * E * M_DIM
                             + N * (KERNEL_DIM + M_DIM) * 2 * KERNEL_DIM
                             + N * 2 * KERNEL_DIM * KERNEL_DIM)
    flops += 2 * (N * INPUT_DIM * KERNEL_DIM + N * FEAT_CAT * MLP_DIM
                  + 2 * N * MLP_DIM * MLP_DIM + num_graphs * N * MLP_DIM
                  + num_graphs * MLP_DIM)
    transcendentals = (N_KERNELS * E * (EDGE_HID + M_DIM)
                       + N * (FEAT_CAT + 3 * MLP_DIM))
    param_bytes = sum(int(v.size) * v.dtype.itemsize
                      for v in jax.tree_util.tree_leaves(params))
    bytes_accessed = int(param_bytes
                         + 4 * (N * (INPUT_DIM + 1 + 1) + E * EATTR_PAD
                                + 3 * E + num_graphs))

    vmem = pl.BlockSpec(memory_space=pltpu.MemorySpace.VMEM)
    args = (node_props, node_weights, eattr,
            src.reshape(E, 1), tgt.reshape(E, 1), tgt.reshape(1, E),
            batch.reshape(1, N).astype(jnp.int32),
            params["emb_w"], params["emb_b"],
            params["k_ew1"], params["k_eb1"], params["k_ew2"], params["k_eb2"],
            params["k_en1_g"], params["k_en1_b"],
            params["k_nn1_g"], params["k_nn1_b"],
            params["k_nw1"], params["k_nb1"], params["k_nw2"], params["k_nb2"],
            params["k_nn2_g"], params["k_nn2_b"],
            params["fnn_w0"], params["fnn_b0"],
            params["fnn_w1"], params["fnn_b1"],
            params["fnn_w2"], params["fnn_b2"],
            params["fnn_w3"], params["fnn_b3"])

    return pl.pallas_call(
        fused_kernel,
        out_shape=jax.ShapeDtypeStruct((num_graphs, N_OUTPUTS), F32),
        in_specs=[vmem] * len(args),
        out_specs=vmem,
        cost_estimate=pl.CostEstimate(flops=int(flops),
                                      transcendentals=int(transcendentals),
                                      bytes_accessed=int(bytes_accessed)),
    )(*args)                                                    # (num_graphs, 1)


# ----------------------------- main ------------------------------------------
if __name__ == "__main__":
    key = jax.random.PRNGKey(0)
    k_par, k_props, k_coords, k_edges, k_w = jax.random.split(key, 5)

    params = init_params(k_par)

    N_NODES = 16
    N_EDGES = 48
    N_GRAPHS = 2

    node_props = jax.random.normal(k_props, (N_NODES, INPUT_DIM), F32)
    node_coords = jax.random.normal(k_coords, (N_NODES, POS_DIM), F32)
    node_weights = jax.random.uniform(k_w, (N_NODES, 1), F32, 0.5, 1.5)
    edge_index = jax.random.randint(k_edges, (2, N_EDGES), 0, N_NODES,
                                    dtype=jnp.int32)
    batch = jnp.concatenate([jnp.zeros((N_NODES // 2,), jnp.int32),
                             jnp.ones((N_NODES - N_NODES // 2,), jnp.int32)])

    fwd = jax.jit(partial(egnn_intgrads_forward, num_graphs=N_GRAPHS))
    out = fwd(params, node_weights, node_props, node_coords, edge_index, batch)
    out = jax.block_until_ready(out)

    assert out.shape == (N_GRAPHS, N_OUTPUTS)
    assert jnp.all(jnp.isfinite(out))
    print("KERNEL_OK")
</pallas_src>

<mosaic_0001>
module attributes {stable_mosaic.version = 11 : i64} {
  func.func @fused_kernel(%arg0: memref<16x9xf32, #tpu.memory_space<vmem>>, %arg1: memref<16x1xf32, #tpu.memory_space<vmem>>, %arg2: memref<48x192xf32, #tpu.memory_space<vmem>>, %arg3: memref<48x1xi32, #tpu.memory_space<vmem>>, %arg4: memref<48x1xi32, #tpu.memory_space<vmem>>, %arg5: memref<1x48xi32, #tpu.memory_space<vmem>>, %arg6: memref<1x16xi32, #tpu.memory_space<vmem>>, %arg7: memref<9x32xf32, #tpu.memory_space<vmem>>, %arg8: memref<1x32xf32, #tpu.memory_space<vmem>>, %arg9: memref<5x256x258xbf16, #tpu.memory_space<vmem>>, %arg10: memref<5x1x258xf32, #tpu.memory_space<vmem>>, %arg11: memref<5x258x32xbf16, #tpu.memory_space<vmem>>, %arg12: memref<5x1x32xf32, #tpu.memory_space<vmem>>, %arg13: memref<5x1x32xf32, #tpu.memory_space<vmem>>, %arg14: memref<5x1x32xf32, #tpu.memory_space<vmem>>, %arg15: memref<5x1x32xf32, #tpu.memory_space<vmem>>, %arg16: memref<5x1x32xf32, #tpu.memory_space<vmem>>, %arg17: memref<5x64x64xbf16, #tpu.memory_space<vmem>>, %arg18: memref<5x1x64xf32, #tpu.memory_space<vmem>>, %arg19: memref<5x64x32xbf16, #tpu.memory_space<vmem>>, %arg20: memref<5x1x32xf32, #tpu.memory_space<vmem>>, %arg21: memref<5x1x32xf32, #tpu.memory_space<vmem>>, %arg22: memref<5x1x32xf32, #tpu.memory_space<vmem>>, %arg23: memref<192x256xbf16, #tpu.memory_space<vmem>>, %arg24: memref<1x256xf32, #tpu.memory_space<vmem>>, %arg25: memref<256x256xbf16, #tpu.memory_space<vmem>>, %arg26: memref<1x256xf32, #tpu.memory_space<vmem>>, %arg27: memref<256x256xbf16, #tpu.memory_space<vmem>>, %arg28: memref<1x256xf32, #tpu.memory_space<vmem>>, %arg29: memref<256x1xbf16, #tpu.memory_space<vmem>>, %arg30: memref<1x1xf32, #tpu.memory_space<vmem>>, %arg31: memref<2x1xf32, #tpu.memory_space<vmem>>) attributes {dimension_semantics = [], scalar_prefetch = 0 : i64, scratch_operands = 0 : i64, tpu.core_type = #tpu.core_type<tc>} {
    %0 = tpu.iota {dimensions = array<i32: 1>} : vector<48x16xi32>
    %c0 = arith.constant 0 : index
    %c0_0 = arith.constant 0 : index
    %1 = vector.load %arg3[%c0, %c0_0] : memref<48x1xi32, #tpu.memory_space<vmem>>, vector<48x1xi32>
    %2 = vector.broadcast %1 : vector<48x1xi32> to vector<48x16xi32>
    %3 = arith.cmpi eq, %0, %2 : vector<48x16xi32>
    %4 = arith.extui %3 : vector<48x16xi1> to vector<48x16xi32>
    %5 = arith.sitofp %4 : vector<48x16xi32> to vector<48x16xf32>
    %c0_1 = arith.constant 0 : index
    %c0_2 = arith.constant 0 : index
    %6 = vector.load %arg4[%c0_1, %c0_2] : memref<48x1xi32, #tpu.memory_space<vmem>>, vector<48x1xi32>
    %7 = vector.broadcast %6 : vector<48x1xi32> to vector<48x16xi32>
    %8 = arith.cmpi eq, %0, %7 : vector<48x16xi32>
    %9 = arith.extui %8 : vector<48x16xi1> to vector<48x16xi32>
    %10 = arith.sitofp %9 : vector<48x16xi32> to vector<48x16xf32>
    %11 = tpu.iota {dimensions = array<i32: 0>} : vector<16x48xi32>
    %c0_3 = arith.constant 0 : index
    %c0_4 = arith.constant 0 : index
    %12 = vector.load %arg5[%c0_3, %c0_4] : memref<1x48xi32, #tpu.memory_space<vmem>>, vector<1x48xi32>
    %13 = vector.broadcast %12 : vector<1x48xi32> to vector<16x48xi32>
    %14 = arith.cmpi eq, %11, %13 : vector<16x48xi32>
    %15 = arith.extui %14 : vector<16x48xi1> to vector<16x48xi32>
    %16 = arith.sitofp %15 : vector<16x48xi32> to vector<16x48xf32>
    %cst = arith.constant dense<0.000000e+00> : vector<16xf32>
    %17 = vector.multi_reduction <add>, %16, %cst [1] : vector<16x48xf32> to vector<16xf32>
    %18 = vector.shape_cast %17 : vector<16xf32> to vector<16x1xf32>
    %cst_5 = arith.constant 1.000000e+00 : f32
    %19 = vector.broadcast %cst_5 : f32 to vector<16x1xf32>
    %20 = arith.maximumf %18, %19 : vector<16x1xf32>
    %cst_6 = arith.constant 1.000000e+00 : f32
    %21 = vector.broadcast %cst_6 : f32 to vector<16x1xf32>
    %22 = arith.divf %21, %20 : vector<16x1xf32>
    %c0_7 = arith.constant 0 : index
    %c0_8 = arith.constant 0 : index
    %23 = vector.load %arg2[%c0_7, %c0_8] : memref<48x192xf32, #tpu.memory_space<vmem>>, vector<48x192xf32>
    %c0_9 = arith.constant 0 : index
    %c0_10 = arith.constant 0 : index
    %24 = vector.load %arg0[%c0_9, %c0_10] : memref<16x9xf32, #tpu.memory_space<vmem>>, vector<16x9xf32>
    %c0_11 = arith.constant 0 : index
    %c0_12 = arith.constant 0 : index
    %25 = vector.load %arg7[%c0_11, %c0_12] : memref<9x32xf32, #tpu.memory_space<vmem>>, vector<9x32xf32>
    %cst_13 = arith.constant dense<0.000000e+00> : vector<16x32xf32>
    %26 = tpu.matmul %24, %25, %cst_13 {dimension_numbers = #tpu.dot_dimension_numbers<[1], [0], [0], [1], [0, 0, 1, 1], [], []>} : vector<16x9xf32>, vector<9x32xf32>, vector<16x32xf32> -> vector<16x32xf32>
    %c0_14 = arith.constant 0 : index
    %c0_15 = arith.constant 0 : index
    %27 = vector.load %arg8[%c0_14, %c0_15] : memref<1x32xf32, #tpu.memory_space<vmem>>, vector<1x32xf32>
    %28 = vector.broadcast %27 : vector<1x32xf32> to vector<16x32xf32>
    %29 = arith.addf %26, %28 : vector<16x32xf32>
    %c0_16 = arith.constant 0 : index
    %c0_17 = arith.constant 0 : index
    %30 = vector.load %arg1[%c0_16, %c0_17] : memref<16x1xf32, #tpu.memory_space<vmem>>, vector<16x1xf32>
    %31 = vector.broadcast %30 : vector<16x1xf32> to vector<16x32xf32>
    %32 = arith.mulf %29, %31 : vector<16x32xf32>
    %cst_18 = arith.constant dense<0.000000e+00> : vector<48x32xf32>
    %33 = tpu.matmul %10, %32, %cst_18 {dimension_numbers = #tpu.dot_dimension_numbers<[1], [0], [0], [1], [0, 0, 1, 1], [], []>} : vector<48x16xf32>, vector<16x32xf32>, vector<48x32xf32> -> vector<48x32xf32>
    %cst_19 = arith.constant dense<0.000000e+00> : vector<48x32xf32>
    %34 = tpu.matmul %5, %32, %cst_19 {dimension_numbers = #tpu.dot_dimension_numbers<[1], [0], [0], [1], [0, 0, 1, 1], [], []>} : vector<48x16xf32>, vector<16x32xf32>, vector<48x32xf32> -> vector<48x32xf32>
    %35 = tpu.concatenate %33, %34, %23 in 1 : vector<48x32xf32>, vector<48x32xf32>, vector<48x192xf32> -> vector<48x256xf32>
    %36 = arith.truncf %35 : vector<48x256xf32> to vector<48x256xbf16>
    %c0_20 = arith.constant 0 : index
    %c0_21 = arith.constant 0 : index
    %c0_22 = arith.constant 0 : index
    %37 = vector.load %arg9[%c0_20, %c0_21, %c0_22] : memref<5x256x258xbf16, #tpu.memory_space<vmem>>, vector<1x256x258xbf16>
    %38 = vector.shape_cast %37 : vector<1x256x258xbf16> to vector<256x258xbf16>
    %cst_23 = arith.constant dense<0.000000e+00> : vector<48x258xf32>
    %39 = tpu.matmul %36, %38, %cst_23 {dimension_numbers = #tpu.dot_dimension_numbers<[1], [0], [0], [1], [0, 0, 1, 1], [], []>} : vector<48x256xbf16>, vector<256x258xbf16>, vector<48x258xf32> -> vector<48x258xf32>
    %c0_24 = arith.constant 0 : index
    %c0_25 = arith.constant 0 : index
    %c0_26 = arith.constant 0 : index
    %40 = vector.load %arg10[%c0_24, %c0_25, %c0_26] : memref<5x1x258xf32, #tpu.memory_space<vmem>>, vector<1x1x258xf32>
    %41 = vector.shape_cast %40 : vector<1x1x258xf32> to vector<1x258xf32>
    %42 = vector.broadcast %41 : vector<1x258xf32> to vector<48x258xf32>
    %43 = arith.addf %39, %42 : vector<48x258xf32>
    %cst_27 = arith.constant 0.000000e+00 : f32
    %44 = vector.broadcast %cst_27 : f32 to vector<48x258xf32>
    %45 = arith.subf %44, %43 : vector<48x258xf32>
    %46 = math.exp %45 : vector<48x258xf32>
    %cst_28 = arith.constant 1.000000e+00 : f32
    %47 = vector.broadcast %cst_28 : f32 to vector<48x258xf32>
    %48 = arith.addf %47, %46 : vector<48x258xf32>
    %49 = tpu.reciprocal %48 {approx = true} : vector<48x258xf32> -> vector<48x258xf32>
    %50 = arith.mulf %43, %49 : vector<48x258xf32>
    %51 = arith.truncf %50 : vector<48x258xf32> to vector<48x258xbf16>
    %c0_29 = arith.constant 0 : index
    %c0_30 = arith.constant 0 : index
    %c0_31 = arith.constant 0 : index
    %52 = vector.load %arg11[%c0_29, %c0_30, %c0_31] : memref<5x258x32xbf16, #tpu.memory_space<vmem>>, vector<1x258x32xbf16>
    %53 = vector.shape_cast %52 : vector<1x258x32xbf16> to vector<258x32xbf16>
    %cst_32 = arith.constant dense<0.000000e+00> : vector<48x32xf32>
    %54 = tpu.matmul %51, %53, %cst_32 {dimension_numbers = #tpu.dot_dimension_numbers<[1], [0], [0], [1], [0, 0, 1, 1], [], []>} : vector<48x258xbf16>, vector<258x32xbf16>, vector<48x32xf32> -> vector<48x32xf32>
    %c0_33 = arith.constant 0 : index
    %c0_34 = arith.constant 0 : index
    %c0_35 = arith.constant 0 : index
    %55 = vector.load %arg12[%c0_33, %c0_34, %c0_35] : memref<5x1x32xf32, #tpu.memory_space<vmem>>, vector<1x1x32xf32>
    %56 = vector.shape_cast %55 : vector<1x1x32xf32> to vector<1x32xf32>
    %57 = vector.broadcast %56 : vector<1x32xf32> to vector<48x32xf32>
    %58 = arith.addf %54, %57 : vector<48x32xf32>
    %cst_36 = arith.constant 0.000000e+00 : f32
    %59 = vector.broadcast %cst_36 : f32 to vector<48x32xf32>
    %60 = arith.subf %59, %58 : vector<48x32xf32>
    %61 = math.exp %60 : vector<48x32xf32>
    %cst_37 = arith.constant 1.000000e+00 : f32
    %62 = vector.broadcast %cst_37 : f32 to vector<48x32xf32>
    %63 = arith.addf %62, %61 : vector<48x32xf32>
    %64 = tpu.reciprocal %63 {approx = true} : vector<48x32xf32> -> vector<48x32xf32>
    %65 = arith.mulf %58, %64 : vector<48x32xf32>
    %c0_38 = arith.constant 0 : index
    %c0_39 = arith.constant 0 : index
    %c0_40 = arith.constant 0 : index
    %66 = vector.load %arg13[%c0_38, %c0_39, %c0_40] : memref<5x1x32xf32, #tpu.memory_space<vmem>>, vector<1x1x32xf32>
    %67 = vector.shape_cast %66 : vector<1x1x32xf32> to vector<1x32xf32>
    %c0_41 = arith.constant 0 : index
    %c0_42 = arith.constant 0 : index
    %c0_43 = arith.constant 0 : index
    %68 = vector.load %arg14[%c0_41, %c0_42, %c0_43] : memref<5x1x32xf32, #tpu.memory_space<vmem>>, vector<1x1x32xf32>
    %69 = vector.shape_cast %68 : vector<1x1x32xf32> to vector<1x32xf32>
    %cst_44 = arith.constant dense<0.000000e+00> : vector<48xf32>
    %70 = vector.multi_reduction <add>, %65, %cst_44 [1] : vector<48x32xf32> to vector<48xf32>
    %71 = vector.shape_cast %70 : vector<48xf32> to vector<48x1xf32>
    %cst_45 = arith.constant 3.200000e+01 : f32
    %72 = vector.broadcast %cst_45 : f32 to vector<48x1xf32>
    %73 = arith.divf %71, %72 : vector<48x1xf32>
    %74 = vector.broadcast %73 : vector<48x1xf32> to vector<48x32xf32>
    %75 = arith.subf %65, %74 : vector<48x32xf32>
    %76 = arith.mulf %75, %75 : vector<48x32xf32>
    %cst_46 = arith.constant dense<0.000000e+00> : vector<48xf32>
    %77 = vector.multi_reduction <add>, %76, %cst_46 [1] : vector<48x32xf32> to vector<48xf32>
    %78 = vector.shape_cast %77 : vector<48xf32> to vector<48x1xf32>
    %cst_47 = arith.constant 3.200000e+01 : f32
    %79 = vector.broadcast %cst_47 : f32 to vector<48x1xf32>
    %80 = arith.divf %78, %79 : vector<48x1xf32>
    %81 = vector.broadcast %73 : vector<48x1xf32> to vector<48x32xf32>
    %82 = arith.subf %65, %81 : vector<48x32xf32>
    %cst_48 = arith.constant 9.99999974E-6 : f32
    %83 = vector.broadcast %cst_48 : f32 to vector<48x1xf32>
    %84 = arith.addf %80, %83 : vector<48x1xf32>
    %85 = math.rsqrt %84 : vector<48x1xf32>
    %86 = vector.broadcast %85 : vector<48x1xf32> to vector<48x32xf32>
    %87 = arith.mulf %82, %86 : vector<48x32xf32>
    %88 = vector.broadcast %67 : vector<1x32xf32> to vector<48x32xf32>
    %89 = arith.mulf %87, %88 : vector<48x32xf32>
    %90 = vector.broadcast %69 : vector<1x32xf32> to vector<48x32xf32>
    %91 = arith.addf %89, %90 : vector<48x32xf32>
    %cst_49 = arith.constant dense<0.000000e+00> : vector<16x32xf32>
    %92 = tpu.matmul %16, %91, %cst_49 {dimension_numbers = #tpu.dot_dimension_numbers<[1], [0], [0], [1], [0, 0, 1, 1], [], []>} : vector<16x48xf32>, vector<48x32xf32>, vector<16x32xf32> -> vector<16x32xf32>
    %93 = vector.broadcast %22 : vector<16x1xf32> to vector<16x32xf32>
    %94 = arith.mulf %92, %93 : vector<16x32xf32>
    %c0_50 = arith.constant 0 : index
    %c0_51 = arith.constant 0 : index
    %c0_52 = arith.constant 0 : index
    %95 = vector.load %arg13[%c0_50, %c0_51, %c0_52] : memref<5x1x32xf32, #tpu.memory_space<vmem>>, vector<1x1x32xf32>
    %96 = vector.shape_cast %95 : vector<1x1x32xf32> to vector<1x32xf32>
    %c0_53 = arith.constant 0 : index
    %c0_54 = arith.constant 0 : index
    %c0_55 = arith.constant 0 : index
    %97 = vector.load %arg14[%c0_53, %c0_54, %c0_55] : memref<5x1x32xf32, #tpu.memory_space<vmem>>, vector<1x1x32xf32>
    %98 = vector.shape_cast %97 : vector<1x1x32xf32> to vector<1x32xf32>
    %cst_56 = arith.constant dense<0.000000e+00> : vector<16xf32>
    %99 = vector.multi_reduction <add>, %94, %cst_56 [1] : vector<16x32xf32> to vector<16xf32>
    %100 = vector.shape_cast %99 : vector<16xf32> to vector<16x1xf32>
    %cst_57 = arith.constant 3.200000e+01 : f32
    %101 = vector.broadcast %cst_57 : f32 to vector<16x1xf32>
    %102 = arith.divf %100, %101 : vector<16x1xf32>
    %103 = vector.broadcast %102 : vector<16x1xf32> to vector<16x32xf32>
    %104 = arith.subf %94, %103 : vector<16x32xf32>
    %105 = arith.mulf %104, %104 : vector<16x32xf32>
    %cst_58 = arith.constant dense<0.000000e+00> : vector<16xf32>
    %106 = vector.multi_reduction <add>, %105, %cst_58 [1] : vector<16x32xf32> to vector<16xf32>
    %107 = vector.shape_cast %106 : vector<16xf32> to vector<16x1xf32>
    %cst_59 = arith.constant 3.200000e+01 : f32
    %108 = vector.broadcast %cst_59 : f32 to vector<16x1xf32>
    %109 = arith.divf %107, %108 : vector<16x1xf32>
    %110 = vector.broadcast %102 : vector<16x1xf32> to vector<16x32xf32>
    %111 = arith.subf %94, %110 : vector<16x32xf32>
    %cst_60 = arith.constant 9.99999974E-6 : f32
    %112 = vector.broadcast %cst_60 : f32 to vector<16x1xf32>
    %113 = arith.addf %109, %112 : vector<16x1xf32>
    %114 = math.rsqrt %113 : vector<16x1xf32>
    %115 = vector.broadcast %114 : vector<16x1xf32> to vector<16x32xf32>
    %116 = arith.mulf %111, %115 : vector<16x32xf32>
    %117 = vector.broadcast %96 : vector<1x32xf32> to vector<16x32xf32>
    %118 = arith.mulf %116, %117 : vector<16x32xf32>
    %119 = vector.broadcast %98 : vector<1x32xf32> to vector<16x32xf32>
    %120 = arith.addf %118, %119 : vector<16x32xf32>
    %c0_61 = arith.constant 0 : index
    %c0_62 = arith.constant 0 : index
    %c0_63 = arith.constant 0 : index
    %121 = vector.load %arg15[%c0_61, %c0_62, %c0_63] : memref<5x1x32xf32, #tpu.memory_space<vmem>>, vector<1x1x32xf32>
    %122 = vector.shape_cast %121 : vector<1x1x32xf32> to vector<1x32xf32>
    %c0_64 = arith.constant 0 : index
    %c0_65 = arith.constant 0 : index
    %c0_66 = arith.constant 0 : index
    %123 = vector.load %arg16[%c0_64, %c0_65, %c0_66] : memref<5x1x32xf32, #tpu.memory_space<vmem>>, vector<1x1x32xf32>
    %124 = vector.shape_cast %123 : vector<1x1x32xf32> to vector<1x32xf32>
    %cst_67 = arith.constant dense<0.000000e+00> : vector<16xf32>
    %125 = vector.multi_reduction <add>, %32, %cst_67 [1] : vector<16x32xf32> to vector<16xf32>
    %126 = vector.shape_cast %125 : vector<16xf32> to vector<16x1xf32>
    %cst_68 = arith.constant 3.200000e+01 : f32
    %127 = vector.broadcast %cst_68 : f32 to vector<16x1xf32>
    %128 = arith.divf %126, %127 : vector<16x1xf32>
    %129 = vector.broadcast %128 : vector<16x1xf32> to vector<16x32xf32>
    %130 = arith.subf %32, %129 : vector<16x32xf32>
    %131 = arith.mulf %130, %130 : vector<16x32xf32>
    %cst_69 = arith.constant dense<0.000000e+00> : vector<16xf32>
    %132 = vector.multi_reduction <add>, %131, %cst_69 [1] : vector<16x32xf32> to vector<16xf32>
    %133 = vector.shape_cast %132 : vector<16xf32> to vector<16x1xf32>
    %cst_70 = arith.constant 3.200000e+01 : f32
    %134 = vector.broadcast %cst_70 : f32 to vector<16x1xf32>
    %135 = arith.divf %133, %134 : vector<16x1xf32>
    %136 = vector.broadcast %128 : vector<16x1xf32> to vector<16x32xf32>
    %137 = arith.subf %32, %136 : vector<16x32xf32>
    %cst_71 = arith.constant 9.99999974E-6 : f32
    %138 = vector.broadcast %cst_71 : f32 to vector<16x1xf32>
    %139 = arith.addf %135, %138 : vector<16x1xf32>
    %140 = math.rsqrt %139 : vector<16x1xf32>
    %141 = vector.broadcast %140 : vector<16x1xf32> to vector<16x32xf32>
    %142 = arith.mulf %137, %141 : vector<16x32xf32>
    %143 = vector.broadcast %122 : vector<1x32xf32> to vector<16x32xf32>
    %144 = arith.mulf %142, %143 : vector<16x32xf32>
    %145 = vector.broadcast %124 : vector<1x32xf32> to vector<16x32xf32>
    %146 = arith.addf %144, %145 : vector<16x32xf32>
    %147 = tpu.concatenate %146, %120 in 1 : vector<16x32xf32>, vector<16x32xf32> -> vector<16x64xf32>
    %148 = arith.truncf %147 : vector<16x64xf32> to vector<16x64xbf16>
    %c0_72 = arith.constant 0 : index
    %c0_73 = arith.constant 0 : index
    %c0_74 = arith.constant 0 : index
    %149 = vector.load %arg17[%c0_72, %c0_73, %c0_74] : memref<5x64x64xbf16, #tpu.memory_space<vmem>>, vector<1x64x64xbf16>
    %150 = vector.shape_cast %149 : vector<1x64x64xbf16> to vector<64x64xbf16>
    %cst_75 = arith.constant dense<0.000000e+00> : vector<16x64xf32>
    %151 = tpu.matmul %148, %150, %cst_75 {dimension_numbers = #tpu.dot_dimension_numbers<[1], [0], [0], [1], [0, 0, 1, 1], [], []>} : vector<16x64xbf16>, vector<64x64xbf16>, vector<16x64xf32> -> vector<16x64xf32>
    %c0_76 = arith.constant 0 : index
    %c0_77 = arith.constant 0 : index
    %c0_78 = arith.constant 0 : index
    %152 = vector.load %arg18[%c0_76, %c0_77, %c0_78] : memref<5x1x64xf32, #tpu.memory_space<vmem>>, vector<1x1x64xf32>
    %153 = vector.shape_cast %152 : vector<1x1x64xf32> to vector<1x64xf32>
    %154 = vector.broadcast %153 : vector<1x64xf32> to vector<16x64xf32>
    %155 = arith.addf %151, %154 : vector<16x64xf32>
    %cst_79 = arith.constant 0.000000e+00 : f32
    %156 = vector.broadcast %cst_79 : f32 to vector<16x64xf32>
    %157 = arith.subf %156, %155 : vector<16x64xf32>
    %158 = math.exp %157 : vector<16x64xf32>
    %cst_80 = arith.constant 1.000000e+00 : f32
    %159 = vector.broadcast %cst_80 : f32 to vector<16x64xf32>
    %160 = arith.addf %159, %158 : vector<16x64xf32>
    %161 = tpu.reciprocal %160 {approx = true} : vector<16x64xf32> -> vector<16x64xf32>
    %162 = arith.mulf %155, %161 : vector<16x64xf32>
    %163 = arith.truncf %162 : vector<16x64xf32> to vector<16x64xbf16>
    %c0_81 = arith.constant 0 : index
    %c0_82 = arith.constant 0 : index
    %c0_83 = arith.constant 0 : index
    %164 = vector.load %arg19[%c0_81, %c0_82, %c0_83] : memref<5x64x32xbf16, #tpu.memory_space<vmem>>, vector<1x64x32xbf16>
    %165 = vector.shape_cast %164 : vector<1x64x32xbf16> to vector<64x32xbf16>
    %cst_84 = arith.constant dense<0.000000e+00> : vector<16x32xf32>
    %166 = tpu.matmul %163, %165, %cst_84 {dimension_numbers = #tpu.dot_dimension_numbers<[1], [0], [0], [1], [0, 0, 1, 1], [], []>} : vector<16x64xbf16>, vector<64x32xbf16>, vector<16x32xf32> -> vector<16x32xf32>
    %c0_85 = arith.constant 0 : index
    %c0_86 = arith.constant 0 : index
    %c0_87 = arith.constant 0 : index
    %167 = vector.load %arg20[%c0_85, %c0_86, %c0_87] : memref<5x1x32xf32, #tpu.memory_space<vmem>>, vector<1x1x32xf32>
    %168 = vector.shape_cast %167 : vector<1x1x32xf32> to vector<1x32xf32>
    %169 = vector.broadcast %168 : vector<1x32xf32> to vector<16x32xf32>
    %170 = arith.addf %166, %169 : vector<16x32xf32>
    %c0_88 = arith.constant 0 : index
    %c0_89 = arith.constant 0 : index
    %c0_90 = arith.constant 0 : index
    %171 = vector.load %arg21[%c0_88, %c0_89, %c0_90] : memref<5x1x32xf32, #tpu.memory_space<vmem>>, vector<1x1x32xf32>
    %172 = vector.shape_cast %171 : vector<1x1x32xf32> to vector<1x32xf32>
    %c0_91 = arith.constant 0 : index
    %c0_92 = arith.constant 0 : index
    %c0_93 = arith.constant 0 : index
    %173 = vector.load %arg22[%c0_91, %c0_92, %c0_93] : memref<5x1x32xf32, #tpu.memory_space<vmem>>, vector<1x1x32xf32>
    %174 = vector.shape_cast %173 : vector<1x1x32xf32> to vector<1x32xf32>
    %cst_94 = arith.constant dense<0.000000e+00> : vector<16xf32>
    %175 = vector.multi_reduction <add>, %170, %cst_94 [1] : vector<16x32xf32> to vector<16xf32>
    %176 = vector.shape_cast %175 : vector<16xf32> to vector<16x1xf32>
    %cst_95 = arith.constant 3.200000e+01 : f32
    %177 = vector.broadcast %cst_95 : f32 to vector<16x1xf32>
    %178 = arith.divf %176, %177 : vector<16x1xf32>
    %179 = vector.broadcast %178 : vector<16x1xf32> to vector<16x32xf32>
    %180 = arith.subf %170, %179 : vector<16x32xf32>
    %181 = arith.mulf %180, %180 : vector<16x32xf32>
    %cst_96 = arith.constant dense<0.000000e+00> : vector<16xf32>
    %182 = vector.multi_reduction <add>, %181, %cst_96 [1] : vector<16x32xf32> to vector<16xf32>
    %183 = vector.shape_cast %182 : vector<16xf32> to vector<16x1xf32>
    %cst_97 = arith.constant 3.200000e+01 : f32
    %184 = vector.broadcast %cst_97 : f32 to vector<16x1xf32>
    %185 = arith.divf %183, %184 : vector<16x1xf32>
    %186 = vector.broadcast %178 : vector<16x1xf32> to vector<16x32xf32>
    %187 = arith.subf %170, %186 : vector<16x32xf32>
    %cst_98 = arith.constant 9.99999974E-6 : f32
    %188 = vector.broadcast %cst_98 : f32 to vector<16x1xf32>
    %189 = arith.addf %185, %188 : vector<16x1xf32>
    %190 = math.rsqrt %189 : vector<16x1xf32>
    %191 = vector.broadcast %190 : vector<16x1xf32> to vector<16x32xf32>
    %192 = arith.mulf %187, %191 : vector<16x32xf32>
    %193 = vector.broadcast %172 : vector<1x32xf32> to vector<16x32xf32>
    %194 = arith.mulf %192, %193 : vector<16x32xf32>
    %195 = vector.broadcast %174 : vector<1x32xf32> to vector<16x32xf32>
    %196 = arith.addf %194, %195 : vector<16x32xf32>
    %197 = arith.addf %32, %196 : vector<16x32xf32>
    %cst_99 = arith.constant dense<0.000000e+00> : vector<48x32xf32>
    %198 = tpu.matmul %10, %197, %cst_99 {dimension_numbers = #tpu.dot_dimension_numbers<[1], [0], [0], [1], [0, 0, 1, 1], [], []>} : vector<48x16xf32>, vector<16x32xf32>, vector<48x32xf32> -> vector<48x32xf32>
    %cst_100 = arith.constant dense<0.000000e+00> : vector<48x32xf32>
    %199 = tpu.matmul %5, %197, %cst_100 {dimension_numbers = #tpu.dot_dimension_numbers<[1], [0], [0], [1], [0, 0, 1, 1], [], []>} : vector<48x16xf32>, vector<16x32xf32>, vector<48x32xf32> -> vector<48x32xf32>
    %200 = tpu.concatenate %198, %199, %23 in 1 : vector<48x32xf32>, vector<48x32xf32>, vector<48x192xf32> -> vector<48x256xf32>
    %201 = arith.truncf %200 : vector<48x256xf32> to vector<48x256xbf16>
    %c1 = arith.constant 1 : index
    %c0_101 = arith.constant 0 : index
    %c0_102 = arith.constant 0 : index
    %202 = vector.load %arg9[%c1, %c0_101, %c0_102] : memref<5x256x258xbf16, #tpu.memory_space<vmem>>, vector<1x256x258xbf16>
    %203 = vector.shape_cast %202 : vector<1x256x258xbf16> to vector<256x258xbf16>
    %cst_103 = arith.constant dense<0.000000e+00> : vector<48x258xf32>
    %204 = tpu.matmul %201, %203, %cst_103 {dimension_numbers = #tpu.dot_dimension_numbers<[1], [0], [0], [1], [0, 0, 1, 1], [], []>} : vector<48x256xbf16>, vector<256x258xbf16>, vector<48x258xf32> -> vector<48x258xf32>
    %c1_104 = arith.constant 1 : index
    %c0_105 = arith.constant 0 : index
    %c0_106 = arith.constant 0 : index
    %205 = vector.load %arg10[%c1_104, %c0_105, %c0_106] : memref<5x1x258xf32, #tpu.memory_space<vmem>>, vector<1x1x258xf32>
    %206 = vector.shape_cast %205 : vector<1x1x258xf32> to vector<1x258xf32>
    %207 = vector.broadcast %206 : vector<1x258xf32> to vector<48x258xf32>
    %208 = arith.addf %204, %207 : vector<48x258xf32>
    %cst_107 = arith.constant 0.000000e+00 : f32
    %209 = vector.broadcast %cst_107 : f32 to vector<48x258xf32>
    %210 = arith.subf %209, %208 : vector<48x258xf32>
    %211 = math.exp %210 : vector<48x258xf32>
    %cst_108 = arith.constant 1.000000e+00 : f32
    %212 = vector.broadcast %cst_108 : f32 to vector<48x258xf32>
    %213 = arith.addf %212, %211 : vector<48x258xf32>
    %214 = tpu.reciprocal %213 {approx = true} : vector<48x258xf32> -> vector<48x258xf32>
    %215 = arith.mulf %208, %214 : vector<48x258xf32>
    %216 = arith.truncf %215 : vector<48x258xf32> to vector<48x258xbf16>
    %c1_109 = arith.constant 1 : index
    %c0_110 = arith.constant 0 : index
    %c0_111 = arith.constant 0 : index
    %217 = vector.load %arg11[%c1_109, %c0_110, %c0_111] : memref<5x258x32xbf16, #tpu.memory_space<vmem>>, vector<1x258x32xbf16>
    %218 = vector.shape_cast %217 : vector<1x258x32xbf16> to vector<258x32xbf16>
    %cst_112 = arith.constant dense<0.000000e+00> : vector<48x32xf32>
    %219 = tpu.matmul %216, %218, %cst_112 {dimension_numbers = #tpu.dot_dimension_numbers<[1], [0], [0], [1], [0, 0, 1, 1], [], []>} : vector<48x258xbf16>, vector<258x32xbf16>, vector<48x32xf32> -> vector<48x32xf32>
    %c1_113 = arith.constant 1 : index
    %c0_114 = arith.constant 0 : index
    %c0_115 = arith.constant 0 : index
    %220 = vector.load %arg12[%c1_113, %c0_114, %c0_115] : memref<5x1x32xf32, #tpu.memory_space<vmem>>, vector<1x1x32xf32>
    %221 = vector.shape_cast %220 : vector<1x1x32xf32> to vector<1x32xf32>
    %222 = vector.broadcast %221 : vector<1x32xf32> to vector<48x32xf32>
    %223 = arith.addf %219, %222 : vector<48x32xf32>
    %cst_116 = arith.constant 0.000000e+00 : f32
    %224 = vector.broadcast %cst_116 : f32 to vector<48x32xf32>
    %225 = arith.subf %224, %223 : vector<48x32xf32>
    %226 = math.exp %225 : vector<48x32xf32>
    %cst_117 = arith.constant 1.000000e+00 : f32
    %227 = vector.broadcast %cst_117 : f32 to vector<48x32xf32>
    %228 = arith.addf %227, %226 : vector<48x32xf32>
    %229 = tpu.reciprocal %228 {approx = true} : vector<48x32xf32> -> vector<48x32xf32>
    %230 = arith.mulf %223, %229 : vector<48x32xf32>
    %c1_118 = arith.constant 1 : index
    %c0_119 = arith.constant 0 : index
    %c0_120 = arith.constant 0 : index
    %231 = vector.load %arg13[%c1_118, %c0_119, %c0_120] : memref<5x1x32xf32, #tpu.memory_space<vmem>>, vector<1x1x32xf32>
    %232 = vector.shape_cast %231 : vector<1x1x32xf32> to vector<1x32xf32>
    %c1_121 = arith.constant 1 : index
    %c0_122 = arith.constant 0 : index
    %c0_123 = arith.constant 0 : index
    %233 = vector.load %arg14[%c1_121, %c0_122, %c0_123] : memref<5x1x32xf32, #tpu.memory_space<vmem>>, vector<1x1x32xf32>
    %234 = vector.shape_cast %233 : vector<1x1x32xf32> to vector<1x32xf32>
    %cst_124 = arith.constant dense<0.000000e+00> : vector<48xf32>
    %235 = vector.multi_reduction <add>, %230, %cst_124 [1] : vector<48x32xf32> to vector<48xf32>
    %236 = vector.shape_cast %235 : vector<48xf32> to vector<48x1xf32>
    %cst_125 = arith.constant 3.200000e+01 : f32
    %237 = vector.broadcast %cst_125 : f32 to vector<48x1xf32>
    %238 = arith.divf %236, %237 : vector<48x1xf32>
    %239 = vector.broadcast %238 : vector<48x1xf32> to vector<48x32xf32>
    %240 = arith.subf %230, %239 : vector<48x32xf32>
    %241 = arith.mulf %240, %240 : vector<48x32xf32>
    %cst_126 = arith.constant dense<0.000000e+00> : vector<48xf32>
    %242 = vector.multi_reduction <add>, %241, %cst_126 [1] : vector<48x32xf32> to vector<48xf32>
    %243 = vector.shape_cast %242 : vector<48xf32> to vector<48x1xf32>
    %cst_127 = arith.constant 3.200000e+01 : f32
    %244 = vector.broadcast %cst_127 : f32 to vector<48x1xf32>
    %245 = arith.divf %243, %244 : vector<48x1xf32>
    %246 = vector.broadcast %238 : vector<48x1xf32> to vector<48x32xf32>
    %247 = arith.subf %230, %246 : vector<48x32xf32>
    %cst_128 = arith.constant 9.99999974E-6 : f32
    %248 = vector.broadcast %cst_128 : f32 to vector<48x1xf32>
    %249 = arith.addf %245, %248 : vector<48x1xf32>
    %250 = math.rsqrt %249 : vector<48x1xf32>
    %251 = vector.broadcast %250 : vector<48x1xf32> to vector<48x32xf32>
    %252 = arith.mulf %247, %251 : vector<48x32xf32>
    %253 = vector.broadcast %232 : vector<1x32xf32> to vector<48x32xf32>
    %254 = arith.mulf %252, %253 : vector<48x32xf32>
    %255 = vector.broadcast %234 : vector<1x32xf32> to vector<48x32xf32>
    %256 = arith.addf %254, %255 : vector<48x32xf32>
    %cst_129 = arith.constant dense<0.000000e+00> : vector<16x32xf32>
    %257 = tpu.matmul %16, %256, %cst_129 {dimension_numbers = #tpu.dot_dimension_numbers<[1], [0], [0], [1], [0, 0, 1, 1], [], []>} : vector<16x48xf32>, vector<48x32xf32>, vector<16x32xf32> -> vector<16x32xf32>
    %258 = vector.broadcast %22 : vector<16x1xf32> to vector<16x32xf32>
    %259 = arith.mulf %257, %258 : vector<16x32xf32>
    %c1_130 = arith.constant 1 : index
    %c0_131 = arith.constant 0 : index
    %c0_132 = arith.constant 0 : index
    %260 = vector.load %arg13[%c1_130, %c0_131, %c0_132] : memref<5x1x32xf32, #tpu.memory_space<vmem>>, vector<1x1x32xf32>
    %261 = vector.shape_cast %260 : vector<1x1x32xf32> to vector<1x32xf32>
    %c1_133 = arith.constant 1 : index
    %c0_134 = arith.constant 0 : index
    %c0_135 = arith.constant 0 : index
    %262 = vector.load %arg14[%c1_133, %c0_134, %c0_135] : memref<5x1x32xf32, #tpu.memory_space<vmem>>, vector<1x1x32xf32>
    %263 = vector.shape_cast %262 : vector<1x1x32xf32> to vector<1x32xf32>
    %cst_136 = arith.constant dense<0.000000e+00> : vector<16xf32>
    %264 = vector.multi_reduction <add>, %259, %cst_136 [1] : vector<16x32xf32> to vector<16xf32>
    %265 = vector.shape_cast %264 : vector<16xf32> to vector<16x1xf32>
    %cst_137 = arith.constant 3.200000e+01 : f32
    %266 = vector.broadcast %cst_137 : f32 to vector<16x1xf32>
    %267 = arith.divf %265, %266 : vector<16x1xf32>
    %268 = vector.broadcast %267 : vector<16x1xf32> to vector<16x32xf32>
    %269 = arith.subf %259, %268 : vector<16x32xf32>
    %270 = arith.mulf %269, %269 : vector<16x32xf32>
    %cst_138 = arith.constant dense<0.000000e+00> : vector<16xf32>
    %271 = vector.multi_reduction <add>, %270, %cst_138 [1] : vector<16x32xf32> to vector<16xf32>
    %272 = vector.shape_cast %271 : vector<16xf32> to vector<16x1xf32>
    %cst_139 = arith.constant 3.200000e+01 : f32
    %273 = vector.broadcast %cst_139 : f32 to vector<16x1xf32>
    %274 = arith.divf %272, %273 : vector<16x1xf32>
    %275 = vector.broadcast %267 : vector<16x1xf32> to vector<16x32xf32>
    %276 = arith.subf %259, %275 : vector<16x32xf32>
    %cst_140 = arith.constant 9.99999974E-6 : f32
    %277 = vector.broadcast %cst_140 : f32 to vector<16x1xf32>
    %278 = arith.addf %274, %277 : vector<16x1xf32>
    %279 = math.rsqrt %278 : vector<16x1xf32>
    %280 = vector.broadcast %279 : vector<16x1xf32> to vector<16x32xf32>
    %281 = arith.mulf %276, %280 : vector<16x32xf32>
    %282 = vector.broadcast %261 : vector<1x32xf32> to vector<16x32xf32>
    %283 = arith.mulf %281, %282 : vector<16x32xf32>
    %284 = vector.broadcast %263 : vector<1x32xf32> to vector<16x32xf32>
    %285 = arith.addf %283, %284 : vector<16x32xf32>
    %c1_141 = arith.constant 1 : index
    %c0_142 = arith.constant 0 : index
    %c0_143 = arith.constant 0 : index
    %286 = vector.load %arg15[%c1_141, %c0_142, %c0_143] : memref<5x1x32xf32, #tpu.memory_space<vmem>>, vector<1x1x32xf32>
    %287 = vector.shape_cast %286 : vector<1x1x32xf32> to vector<1x32xf32>
    %c1_144 = arith.constant 1 : index
    %c0_145 = arith.constant 0 : index
    %c0_146 = arith.constant 0 : index
    %288 = vector.load %arg16[%c1_144, %c0_145, %c0_146] : memref<5x1x32xf32, #tpu.memory_space<vmem>>, vector<1x1x32xf32>
    %289 = vector.shape_cast %288 : vector<1x1x32xf32> to vector<1x32xf32>
    %cst_147 = arith.constant dense<0.000000e+00> : vector<16xf32>
    %290 = vector.multi_reduction <add>, %197, %cst_147 [1] : vector<16x32xf32> to vector<16xf32>
    %291 = vector.shape_cast %290 : vector<16xf32> to vector<16x1xf32>
    %cst_148 = arith.constant 3.200000e+01 : f32
    %292 = vector.broadcast %cst_148 : f32 to vector<16x1xf32>
    %293 = arith.divf %291, %292 : vector<16x1xf32>
    %294 = vector.broadcast %293 : vector<16x1xf32> to vector<16x32xf32>
    %295 = arith.subf %197, %294 : vector<16x32xf32>
    %296 = arith.mulf %295, %295 : vector<16x32xf32>
    %cst_149 = arith.constant dense<0.000000e+00> : vector<16xf32>
    %297 = vector.multi_reduction <add>, %296, %cst_149 [1] : vector<16x32xf32> to vector<16xf32>
    %298 = vector.shape_cast %297 : vector<16xf32> to vector<16x1xf32>
    %cst_150 = arith.constant 3.200000e+01 : f32
    %299 = vector.broadcast %cst_150 : f32 to vector<16x1xf32>
    %300 = arith.divf %298, %299 : vector<16x1xf32>
    %301 = vector.broadcast %293 : vector<16x1xf32> to vector<16x32xf32>
    %302 = arith.subf %197, %301 : vector<16x32xf32>
    %cst_151 = arith.constant 9.99999974E-6 : f32
    %303 = vector.broadcast %cst_151 : f32 to vector<16x1xf32>
    %304 = arith.addf %300, %303 : vector<16x1xf32>
    %305 = math.rsqrt %304 : vector<16x1xf32>
    %306 = vector.broadcast %305 : vector<16x1xf32> to vector<16x32xf32>
    %307 = arith.mulf %302, %306 : vector<16x32xf32>
    %308 = vector.broadcast %287 : vector<1x32xf32> to vector<16x32xf32>
    %309 = arith.mulf %307, %308 : vector<16x32xf32>
    %310 = vector.broadcast %289 : vector<1x32xf32> to vector<16x32xf32>
    %311 = arith.addf %309, %310 : vector<16x32xf32>
    %312 = tpu.concatenate %311, %285 in 1 : vector<16x32xf32>, vector<16x32xf32> -> vector<16x64xf32>
    %313 = arith.truncf %312 : vector<16x64xf32> to vector<16x64xbf16>
    %c1_152 = arith.constant 1 : index
    %c0_153 = arith.constant 0 : index
    %c0_154 = arith.constant 0 : index
    %314 = vector.load %arg17[%c1_152, %c0_153, %c0_154] : memref<5x64x64xbf16, #tpu.memory_space<vmem>>, vector<1x64x64xbf16>
    %315 = vector.shape_cast %314 : vector<1x64x64xbf16> to vector<64x64xbf16>
    %cst_155 = arith.constant dense<0.000000e+00> : vector<16x64xf32>
    %316 = tpu.matmul %313, %315, %cst_155 {dimension_numbers = #tpu.dot_dimension_numbers<[1], [0], [0], [1], [0, 0, 1, 1], [], []>} : vector<16x64xbf16>, vector<64x64xbf16>, vector<16x64xf32> -> vector<16x64xf32>
    %c1_156 = arith.constant 1 : index
    %c0_157 = arith.constant 0 : index
    %c0_158 = arith.constant 0 : index
    %317 = vector.load %arg18[%c1_156, %c0_157, %c0_158] : memref<5x1x64xf32, #tpu.memory_space<vmem>>, vector<1x1x64xf32>
    %318 = vector.shape_cast %317 : vector<1x1x64xf32> to vector<1x64xf32>
    %319 = vector.broadcast %318 : vector<1x64xf32> to vector<16x64xf32>
    %320 = arith.addf %316, %319 : vector<16x64xf32>
    %cst_159 = arith.constant 0.000000e+00 : f32
    %321 = vector.broadcast %cst_159 : f32 to vector<16x64xf32>
    %322 = arith.subf %321, %320 : vector<16x64xf32>
    %323 = math.exp %322 : vector<16x64xf32>
    %cst_160 = arith.constant 1.000000e+00 : f32
    %324 = vector.broadcast %cst_160 : f32 to vector<16x64xf32>
    %325 = arith.addf %324, %323 : vector<16x64xf32>
    %326 = tpu.reciprocal %325 {approx = true} : vector<16x64xf32> -> vector<16x64xf32>
    %327 = arith.mulf %320, %326 : vector<16x64xf32>
    %328 = arith.truncf %327 : vector<16x64xf32> to vector<16x64xbf16>
    %c1_161 = arith.constant 1 : index
    %c0_162 = arith.constant 0 : index
    %c0_163 = arith.constant 0 : index
    %329 = vector.load %arg19[%c1_161, %c0_162, %c0_163] : memref<5x64x32xbf16, #tpu.memory_space<vmem>>, vector<1x64x32xbf16>
    %330 = vector.shape_cast %329 : vector<1x64x32xbf16> to vector<64x32xbf16>
    %cst_164 = arith.constant dense<0.000000e+00> : vector<16x32xf32>
    %331 = tpu.matmul %328, %330, %cst_164 {dimension_numbers = #tpu.dot_dimension_numbers<[1], [0], [0], [1], [0, 0, 1, 1], [], []>} : vector<16x64xbf16>, vector<64x32xbf16>, vector<16x32xf32> -> vector<16x32xf32>
    %c1_165 = arith.constant 1 : index
    %c0_166 = arith.constant 0 : index
    %c0_167 = arith.constant 0 : index
    %332 = vector.load %arg20[%c1_165, %c0_166, %c0_167] : memref<5x1x32xf32, #tpu.memory_space<vmem>>, vector<1x1x32xf32>
    %333 = vector.shape_cast %332 : vector<1x1x32xf32> to vector<1x32xf32>
    %334 = vector.broadcast %333 : vector<1x32xf32> to vector<16x32xf32>
    %335 = arith.addf %331, %334 : vector<16x32xf32>
    %c1_168 = arith.constant 1 : index
    %c0_169 = arith.constant 0 : index
    %c0_170 = arith.constant 0 : index
    %336 = vector.load %arg21[%c1_168, %c0_169, %c0_170] : memref<5x1x32xf32, #tpu.memory_space<vmem>>, vector<1x1x32xf32>
    %337 = vector.shape_cast %336 : vector<1x1x32xf32> to vector<1x32xf32>
    %c1_171 = arith.constant 1 : index
    %c0_172 = arith.constant 0 : index
    %c0_173 = arith.constant 0 : index
    %338 = vector.load %arg22[%c1_171, %c0_172, %c0_173] : memref<5x1x32xf32, #tpu.memory_space<vmem>>, vector<1x1x32xf32>
    %339 = vector.shape_cast %338 : vector<1x1x32xf32> to vector<1x32xf32>
    %cst_174 = arith.constant dense<0.000000e+00> : vector<16xf32>
    %340 = vector.multi_reduction <add>, %335, %cst_174 [1] : vector<16x32xf32> to vector<16xf32>
    %341 = vector.shape_cast %340 : vector<16xf32> to vector<16x1xf32>
    %cst_175 = arith.constant 3.200000e+01 : f32
    %342 = vector.broadcast %cst_175 : f32 to vector<16x1xf32>
    %343 = arith.divf %341, %342 : vector<16x1xf32>
    %344 = vector.broadcast %343 : vector<16x1xf32> to vector<16x32xf32>
    %345 = arith.subf %335, %344 : vector<16x32xf32>
    %346 = arith.mulf %345, %345 : vector<16x32xf32>
    %cst_176 = arith.constant dense<0.000000e+00> : vector<16xf32>
    %347 = vector.multi_reduction <add>, %346, %cst_176 [1] : vector<16x32xf32> to vector<16xf32>
    %348 = vector.shape_cast %347 : vector<16xf32> to vector<16x1xf32>
    %cst_177 = arith.constant 3.200000e+01 : f32
    %349 = vector.broadcast %cst_177 : f32 to vector<16x1xf32>
    %350 = arith.divf %348, %349 : vector<16x1xf32>
    %351 = vector.broadcast %343 : vector<16x1xf32> to vector<16x32xf32>
    %352 = arith.subf %335, %351 : vector<16x32xf32>
    %cst_178 = arith.constant 9.99999974E-6 : f32
    %353 = vector.broadcast %cst_178 : f32 to vector<16x1xf32>
    %354 = arith.addf %350, %353 : vector<16x1xf32>
    %355 = math.rsqrt %354 : vector<16x1xf32>
    %356 = vector.broadcast %355 : vector<16x1xf32> to vector<16x32xf32>
    %357 = arith.mulf %352, %356 : vector<16x32xf32>
    %358 = vector.broadcast %337 : vector<1x32xf32> to vector<16x32xf32>
    %359 = arith.mulf %357, %358 : vector<16x32xf32>
    %360 = vector.broadcast %339 : vector<1x32xf32> to vector<16x32xf32>
    %361 = arith.addf %359, %360 : vector<16x32xf32>
    %362 = arith.addf %197, %361 : vector<16x32xf32>
    %cst_179 = arith.constant dense<0.000000e+00> : vector<48x32xf32>
    %363 = tpu.matmul %10, %362, %cst_179 {dimension_numbers = #tpu.dot_dimension_numbers<[1], [0], [0], [1], [0, 0, 1, 1], [], []>} : vector<48x16xf32>, vector<16x32xf32>, vector<48x32xf32> -> vector<48x32xf32>
    %cst_180 = arith.constant dense<0.000000e+00> : vector<48x32xf32>
    %364 = tpu.matmul %5, %362, %cst_180 {dimension_numbers = #tpu.dot_dimension_numbers<[1], [0], [0], [1], [0, 0, 1, 1], [], []>} : vector<48x16xf32>, vector<16x32xf32>, vector<48x32xf32> -> vector<48x32xf32>
    %365 = tpu.concatenate %363, %364, %23 in 1 : vector<48x32xf32>, vector<48x32xf32>, vector<48x192xf32> -> vector<48x256xf32>
    %366 = arith.truncf %365 : vector<48x256xf32> to vector<48x256xbf16>
    %c2 = arith.constant 2 : index
    %c0_181 = arith.constant 0 : index
    %c0_182 = arith.constant 0 : index
    %367 = vector.load %arg9[%c2, %c0_181, %c0_182] : memref<5x256x258xbf16, #tpu.memory_space<vmem>>, vector<1x256x258xbf16>
    %368 = vector.shape_cast %367 : vector<1x256x258xbf16> to vector<256x258xbf16>
    %cst_183 = arith.constant dense<0.000000e+00> : vector<48x258xf32>
    %369 = tpu.matmul %366, %368, %cst_183 {dimension_numbers = #tpu.dot_dimension_numbers<[1], [0], [0], [1], [0, 0, 1, 1], [], []>} : vector<48x256xbf16>, vector<256x258xbf16>, vector<48x258xf32> -> vector<48x258xf32>
    %c2_184 = arith.constant 2 : index
    %c0_185 = arith.constant 0 : index
    %c0_186 = arith.constant 0 : index
    %370 = vector.load %arg10[%c2_184, %c0_185, %c0_186] : memref<5x1x258xf32, #tpu.memory_space<vmem>>, vector<1x1x258xf32>
    %371 = vector.shape_cast %370 : vector<1x1x258xf32> to vector<1x258xf32>
    %372 = vector.broadcast %371 : vector<1x258xf32> to vector<48x258xf32>
    %373 = arith.addf %369, %372 : vector<48x258xf32>
    %cst_187 = arith.constant 0.000000e+00 : f32
    %374 = vector.broadcast %cst_187 : f32 to vector<48x258xf32>
    %375 = arith.subf %374, %373 : vector<48x258xf32>
    %376 = math.exp %375 : vector<48x258xf32>
    %cst_188 = arith.constant 1.000000e+00 : f32
    %377 = vector.broadcast %cst_188 : f32 to vector<48x258xf32>
    %378 = arith.addf %377, %376 : vector<48x258xf32>
    %379 = tpu.reciprocal %378 {approx = true} : vector<48x258xf32> -> vector<48x258xf32>
    %380 = arith.mulf %373, %379 : vector<48x258xf32>
    %381 = arith.truncf %380 : vector<48x258xf32> to vector<48x258xbf16>
    %c2_189 = arith.constant 2 : index
    %c0_190 = arith.constant 0 : index
    %c0_191 = arith.constant 0 : index
    %382 = vector.load %arg11[%c2_189, %c0_190, %c0_191] : memref<5x258x32xbf16, #tpu.memory_space<vmem>>, vector<1x258x32xbf16>
    %383 = vector.shape_cast %382 : vector<1x258x32xbf16> to vector<258x32xbf16>
    %cst_192 = arith.constant dense<0.000000e+00> : vector<48x32xf32>
    %384 = tpu.matmul %381, %383, %cst_192 {dimension_numbers = #tpu.dot_dimension_numbers<[1], [0], [0], [1], [0, 0, 1, 1], [], []>} : vector<48x258xbf16>, vector<258x32xbf16>, vector<48x32xf32> -> vector<48x32xf32>
    %c2_193 = arith.constant 2 : index
    %c0_194 = arith.constant 0 : index
    %c0_195 = arith.constant 0 : index
    %385 = vector.load %arg12[%c2_193, %c0_194, %c0_195] : memref<5x1x32xf32, #tpu.memory_space<vmem>>, vector<1x1x32xf32>
    %386 = vector.shape_cast %385 : vector<1x1x32xf32> to vector<1x32xf32>
    %387 = vector.broadcast %386 : vector<1x32xf32> to vector<48x32xf32>
    %388 = arith.addf %384, %387 : vector<48x32xf32>
    %cst_196 = arith.constant 0.000000e+00 : f32
    %389 = vector.broadcast %cst_196 : f32 to vector<48x32xf32>
    %390 = arith.subf %389, %388 : vector<48x32xf32>
    %391 = math.exp %390 : vector<48x32xf32>
    %cst_197 = arith.constant 1.000000e+00 : f32
    %392 = vector.broadcast %cst_197 : f32 to vector<48x32xf32>
    %393 = arith.addf %392, %391 : vector<48x32xf32>
    %394 = tpu.reciprocal %393 {approx = true} : vector<48x32xf32> -> vector<48x32xf32>
    %395 = arith.mulf %388, %394 : vector<48x32xf32>
    %c2_198 = arith.constant 2 : index
    %c0_199 = arith.constant 0 : index
    %c0_200 = arith.constant 0 : index
    %396 = vector.load %arg13[%c2_198, %c0_199, %c0_200] : memref<5x1x32xf32, #tpu.memory_space<vmem>>, vector<1x1x32xf32>
    %397 = vector.shape_cast %396 : vector<1x1x32xf32> to vector<1x32xf32>
    %c2_201 = arith.constant 2 : index
    %c0_202 = arith.constant 0 : index
    %c0_203 = arith.constant 0 : index
    %398 = vector.load %arg14[%c2_201, %c0_202, %c0_203] : memref<5x1x32xf32, #tpu.memory_space<vmem>>, vector<1x1x32xf32>
    %399 = vector.shape_cast %398 : vector<1x1x32xf32> to vector<1x32xf32>
    %cst_204 = arith.constant dense<0.000000e+00> : vector<48xf32>
    %400 = vector.multi_reduction <add>, %395, %cst_204 [1] : vector<48x32xf32> to vector<48xf32>
    %401 = vector.shape_cast %400 : vector<48xf32> to vector<48x1xf32>
    %cst_205 = arith.constant 3.200000e+01 : f32
    %402 = vector.broadcast %cst_205 : f32 to vector<48x1xf32>
    %403 = arith.divf %401, %402 : vector<48x1xf32>
    %404 = vector.broadcast %403 : vector<48x1xf32> to vector<48x32xf32>
    %405 = arith.subf %395, %404 : vector<48x32xf32>
    %406 = arith.mulf %405, %405 : vector<48x32xf32>
    %cst_206 = arith.constant dense<0.000000e+00> : vector<48xf32>
    %407 = vector.multi_reduction <add>, %406, %cst_206 [1] : vector<48x32xf32> to vector<48xf32>
    %408 = vector.shape_cast %407 : vector<48xf32> to vector<48x1xf32>
    %cst_207 = arith.constant 3.200000e+01 : f32
    %409 = vector.broadcast %cst_207 : f32 to vector<48x1xf32>
    %410 = arith.divf %408, %409 : vector<48x1xf32>
    %411 = vector.broadcast %403 : vector<48x1xf32> to vector<48x32xf32>
    %412 = arith.subf %395, %411 : vector<48x32xf32>
    %cst_208 = arith.constant 9.99999974E-6 : f32
    %413 = vector.broadcast %cst_208 : f32 to vector<48x1xf32>
    %414 = arith.addf %410, %413 : vector<48x1xf32>
    %415 = math.rsqrt %414 : vector<48x1xf32>
    %416 = vector.broadcast %415 : vector<48x1xf32> to vector<48x32xf32>
    %417 = arith.mulf %412, %416 : vector<48x32xf32>
    %418 = vector.broadcast %397 : vector<1x32xf32> to vector<48x32xf32>
    %419 = arith.mulf %417, %418 : vector<48x32xf32>
    %420 = vector.broadcast %399 : vector<1x32xf32> to vector<48x32xf32>
    %421 = arith.addf %419, %420 : vector<48x32xf32>
    %cst_209 = arith.constant dense<0.000000e+00> : vector<16x32xf32>
    %422 = tpu.matmul %16, %421, %cst_209 {dimension_numbers = #tpu.dot_dimension_numbers<[1], [0], [0], [1], [0, 0, 1, 1], [], []>} : vector<16x48xf32>, vector<48x32xf32>, vector<16x32xf32> -> vector<16x32xf32>
    %423 = vector.broadcast %22 : vector<16x1xf32> to vector<16x32xf32>
    %424 = arith.mulf %422, %423 : vector<16x32xf32>
    %c2_210 = arith.constant 2 : index
    %c0_211 = arith.constant 0 : index
    %c0_212 = arith.constant 0 : index
    %425 = vector.load %arg13[%c2_210, %c0_211, %c0_212] : memref<5x1x32xf32, #tpu.memory_space<vmem>>, vector<1x1x32xf32>
    %426 = vector.shape_cast %425 : vector<1x1x32xf32> to vector<1x32xf32>
    %c2_213 = arith.constant 2 : index
    %c0_214 = arith.constant 0 : index
    %c0_215 = arith.constant 0 : index
    %427 = vector.load %arg14[%c2_213, %c0_214, %c0_215] : memref<5x1x32xf32, #tpu.memory_space<vmem>>, vector<1x1x32xf32>
    %428 = vector.shape_cast %427 : vector<1x1x32xf32> to vector<1x32xf32>
    %cst_216 = arith.constant dense<0.000000e+00> : vector<16xf32>
    %429 = vector.multi_reduction <add>, %424, %cst_216 [1] : vector<16x32xf32> to vector<16xf32>
    %430 = vector.shape_cast %429 : vector<16xf32> to vector<16x1xf32>
    %cst_217 = arith.constant 3.200000e+01 : f32
    %431 = vector.broadcast %cst_217 : f32 to vector<16x1xf32>
    %432 = arith.divf %430, %431 : vector<16x1xf32>
    %433 = vector.broadcast %432 : vector<16x1xf32> to vector<16x32xf32>
    %434 = arith.subf %424, %433 : vector<16x32xf32>
    %435 = arith.mulf %434, %434 : vector<16x32xf32>
    %cst_218 = arith.constant dense<0.000000e+00> : vector<16xf32>
    %436 = vector.multi_reduction <add>, %435, %cst_218 [1] : vector<16x32xf32> to vector<16xf32>
    %437 = vector.shape_cast %436 : vector<16xf32> to vector<16x1xf32>
    %cst_219 = arith.constant 3.200000e+01 : f32
    %438 = vector.broadcast %cst_219 : f32 to vector<16x1xf32>
    %439 = arith.divf %437, %438 : vector<16x1xf32>
    %440 = vector.broadcast %432 : vector<16x1xf32> to vector<16x32xf32>
    %441 = arith.subf %424, %440 : vector<16x32xf32>
    %cst_220 = arith.constant 9.99999974E-6 : f32
    %442 = vector.broadcast %cst_220 : f32 to vector<16x1xf32>
    %443 = arith.addf %439, %442 : vector<16x1xf32>
    %444 = math.rsqrt %443 : vector<16x1xf32>
    %445 = vector.broadcast %444 : vector<16x1xf32> to vector<16x32xf32>
    %446 = arith.mulf %441, %445 : vector<16x32xf32>
    %447 = vector.broadcast %426 : vector<1x32xf32> to vector<16x32xf32>
    %448 = arith.mulf %446, %447 : vector<16x32xf32>
    %449 = vector.broadcast %428 : vector<1x32xf32> to vector<16x32xf32>
    %450 = arith.addf %448, %449 : vector<16x32xf32>
    %c2_221 = arith.constant 2 : index
    %c0_222 = arith.constant 0 : index
    %c0_223 = arith.constant 0 : index
    %451 = vector.load %arg15[%c2_221, %c0_222, %c0_223] : memref<5x1x32xf32, #tpu.memory_space<vmem>>, vector<1x1x32xf32>
    %452 = vector.shape_cast %451 : vector<1x1x32xf32> to vector<1x32xf32>
    %c2_224 = arith.constant 2 : index
    %c0_225 = arith.constant 0 : index
    %c0_226 = arith.constant 0 : index
    %453 = vector.load %arg16[%c2_224, %c0_225, %c0_226] : memref<5x1x32xf32, #tpu.memory_space<vmem>>, vector<1x1x32xf32>
    %454 = vector.shape_cast %453 : vector<1x1x32xf32> to vector<1x32xf32>
    %cst_227 = arith.constant dense<0.000000e+00> : vector<16xf32>
    %455 = vector.multi_reduction <add>, %362, %cst_227 [1] : vector<16x32xf32> to vector<16xf32>
    %456 = vector.shape_cast %455 : vector<16xf32> to vector<16x1xf32>
    %cst_228 = arith.constant 3.200000e+01 : f32
    %457 = vector.broadcast %cst_228 : f32 to vector<16x1xf32>
    %458 = arith.divf %456, %457 : vector<16x1xf32>
    %459 = vector.broadcast %458 : vector<16x1xf32> to vector<16x32xf32>
    %460 = arith.subf %362, %459 : vector<16x32xf32>
    %461 = arith.mulf %460, %460 : vector<16x32xf32>
    %cst_229 = arith.constant dense<0.000000e+00> : vector<16xf32>
    %462 = vector.multi_reduction <add>, %461, %cst_229 [1] : vector<16x32xf32> to vector<16xf32>
    %463 = vector.shape_cast %462 : vector<16xf32> to vector<16x1xf32>
    %cst_230 = arith.constant 3.200000e+01 : f32
    %464 = vector.broadcast %cst_230 : f32 to vector<16x1xf32>
    %465 = arith.divf %463, %464 : vector<16x1xf32>
    %466 = vector.broadcast %458 : vector<16x1xf32> to vector<16x32xf32>
    %467 = arith.subf %362, %466 : vector<16x32xf32>
    %cst_231 = arith.constant 9.99999974E-6 : f32
    %468 = vector.broadcast %cst_231 : f32 to vector<16x1xf32>
    %469 = arith.addf %465, %468 : vector<16x1xf32>
    %470 = math.rsqrt %469 : vector<16x1xf32>
    %471 = vector.broadcast %470 : vector<16x1xf32> to vector<16x32xf32>
    %472 = arith.mulf %467, %471 : vector<16x32xf32>
    %473 = vector.broadcast %452 : vector<1x32xf32> to vector<16x32xf32>
    %474 = arith.mulf %472, %473 : vector<16x32xf32>
    %475 = vector.broadcast %454 : vector<1x32xf32> to vector<16x32xf32>
    %476 = arith.addf %474, %475 : vector<16x32xf32>
    %477 = tpu.concatenate %476, %450 in 1 : vector<16x32xf32>, vector<16x32xf32> -> vector<16x64xf32>
    %478 = arith.truncf %477 : vector<16x64xf32> to vector<16x64xbf16>
    %c2_232 = arith.constant 2 : index
    %c0_233 = arith.constant 0 : index
    %c0_234 = arith.constant 0 : index
    %479 = vector.load %arg17[%c2_232, %c0_233, %c0_234] : memref<5x64x64xbf16, #tpu.memory_space<vmem>>, vector<1x64x64xbf16>
    %480 = vector.shape_cast %479 : vector<1x64x64xbf16> to vector<64x64xbf16>
    %cst_235 = arith.constant dense<0.000000e+00> : vector<16x64xf32>
    %481 = tpu.matmul %478, %480, %cst_235 {dimension_numbers = #tpu.dot_dimension_numbers<[1], [0], [0], [1], [0, 0, 1, 1], [], []>} : vector<16x64xbf16>, vector<64x64xbf16>, vector<16x64xf32> -> vector<16x64xf32>
    %c2_236 = arith.constant 2 : index
    %c0_237 = arith.constant 0 : index
    %c0_238 = arith.constant 0 : index
    %482 = vector.load %arg18[%c2_236, %c0_237, %c0_238] : memref<5x1x64xf32, #tpu.memory_space<vmem>>, vector<1x1x64xf32>
    %483 = vector.shape_cast %482 : vector<1x1x64xf32> to vector<1x64xf32>
    %484 = vector.broadcast %483 : vector<1x64xf32> to vector<16x64xf32>
    %485 = arith.addf %481, %484 : vector<16x64xf32>
    %cst_239 = arith.constant 0.000000e+00 : f32
    %486 = vector.broadcast %cst_239 : f32 to vector<16x64xf32>
    %487 = arith.subf %486, %485 : vector<16x64xf32>
    %488 = math.exp %487 : vector<16x64xf32>
    %cst_240 = arith.constant 1.000000e+00 : f32
    %489 = vector.broadcast %cst_240 : f32 to vector<16x64xf32>
    %490 = arith.addf %489, %488 : vector<16x64xf32>
    %491 = tpu.reciprocal %490 {approx = true} : vector<16x64xf32> -> vector<16x64xf32>
    %492 = arith.mulf %485, %491 : vector<16x64xf32>
    %493 = arith.truncf %492 : vector<16x64xf32> to vector<16x64xbf16>
    %c2_241 = arith.constant 2 : index
    %c0_242 = arith.constant 0 : index
    %c0_243 = arith.constant 0 : index
    %494 = vector.load %arg19[%c2_241, %c0_242, %c0_243] : memref<5x64x32xbf16, #tpu.memory_space<vmem>>, vector<1x64x32xbf16>
    %495 = vector.shape_cast %494 : vector<1x64x32xbf16> to vector<64x32xbf16>
    %cst_244 = arith.constant dense<0.000000e+00> : vector<16x32xf32>
    %496 = tpu.matmul %493, %495, %cst_244 {dimension_numbers = #tpu.dot_dimension_numbers<[1], [0], [0], [1], [0, 0, 1, 1], [], []>} : vector<16x64xbf16>, vector<64x32xbf16>, vector<16x32xf32> -> vector<16x32xf32>
    %c2_245 = arith.constant 2 : index
    %c0_246 = arith.constant 0 : index
    %c0_247 = arith.constant 0 : index
    %497 = vector.load %arg20[%c2_245, %c0_246, %c0_247] : memref<5x1x32xf32, #tpu.memory_space<vmem>>, vector<1x1x32xf32>
    %498 = vector.shape_cast %497 : vector<1x1x32xf32> to vector<1x32xf32>
    %499 = vector.broadcast %498 : vector<1x32xf32> to vector<16x32xf32>
    %500 = arith.addf %496, %499 : vector<16x32xf32>
    %c2_248 = arith.constant 2 : index
    %c0_249 = arith.constant 0 : index
    %c0_250 = arith.constant 0 : index
    %501 = vector.load %arg21[%c2_248, %c0_249, %c0_250] : memref<5x1x32xf32, #tpu.memory_space<vmem>>, vector<1x1x32xf32>
    %502 = vector.shape_cast %501 : vector<1x1x32xf32> to vector<1x32xf32>
    %c2_251 = arith.constant 2 : index
    %c0_252 = arith.constant 0 : index
    %c0_253 = arith.constant 0 : index
    %503 = vector.load %arg22[%c2_251, %c0_252, %c0_253] : memref<5x1x32xf32, #tpu.memory_space<vmem>>, vector<1x1x32xf32>
    %504 = vector.shape_cast %503 : vector<1x1x32xf32> to vector<1x32xf32>
    %cst_254 = arith.constant dense<0.000000e+00> : vector<16xf32>
    %505 = vector.multi_reduction <add>, %500, %cst_254 [1] : vector<16x32xf32> to vector<16xf32>
    %506 = vector.shape_cast %505 : vector<16xf32> to vector<16x1xf32>
    %cst_255 = arith.constant 3.200000e+01 : f32
    %507 = vector.broadcast %cst_255 : f32 to vector<16x1xf32>
    %508 = arith.divf %506, %507 : vector<16x1xf32>
    %509 = vector.broadcast %508 : vector<16x1xf32> to vector<16x32xf32>
    %510 = arith.subf %500, %509 : vector<16x32xf32>
    %511 = arith.mulf %510, %510 : vector<16x32xf32>
    %cst_256 = arith.constant dense<0.000000e+00> : vector<16xf32>
    %512 = vector.multi_reduction <add>, %511, %cst_256 [1] : vector<16x32xf32> to vector<16xf32>
    %513 = vector.shape_cast %512 : vector<16xf32> to vector<16x1xf32>
    %cst_257 = arith.constant 3.200000e+01 : f32
    %514 = vector.broadcast %cst_257 : f32 to vector<16x1xf32>
    %515 = arith.divf %513, %514 : vector<16x1xf32>
    %516 = vector.broadcast %508 : vector<16x1xf32> to vector<16x32xf32>
    %517 = arith.subf %500, %516 : vector<16x32xf32>
    %cst_258 = arith.constant 9.99999974E-6 : f32
    %518 = vector.broadcast %cst_258 : f32 to vector<16x1xf32>
    %519 = arith.addf %515, %518 : vector<16x1xf32>
    %520 = math.rsqrt %519 : vector<16x1xf32>
    %521 = vector.broadcast %520 : vector<16x1xf32> to vector<16x32xf32>
    %522 = arith.mulf %517, %521 : vector<16x32xf32>
    %523 = vector.broadcast %502 : vector<1x32xf32> to vector<16x32xf32>
    %524 = arith.mulf %522, %523 : vector<16x32xf32>
    %525 = vector.broadcast %504 : vector<1x32xf32> to vector<16x32xf32>
    %526 = arith.addf %524, %525 : vector<16x32xf32>
    %527 = arith.addf %362, %526 : vector<16x32xf32>
    %cst_259 = arith.constant dense<0.000000e+00> : vector<48x32xf32>
    %528 = tpu.matmul %10, %527, %cst_259 {dimension_numbers = #tpu.dot_dimension_numbers<[1], [0], [0], [1], [0, 0, 1, 1], [], []>} : vector<48x16xf32>, vector<16x32xf32>, vector<48x32xf32> -> vector<48x32xf32>
    %cst_260 = arith.constant dense<0.000000e+00> : vector<48x32xf32>
    %529 = tpu.matmul %5, %527, %cst_260 {dimension_numbers = #tpu.dot_dimension_numbers<[1], [0], [0], [1], [0, 0, 1, 1], [], []>} : vector<48x16xf32>, vector<16x32xf32>, vector<48x32xf32> -> vector<48x32xf32>
    %530 = tpu.concatenate %528, %529, %23 in 1 : vector<48x32xf32>, vector<48x32xf32>, vector<48x192xf32> -> vector<48x256xf32>
    %531 = arith.truncf %530 : vector<48x256xf32> to vector<48x256xbf16>
    %c3 = arith.constant 3 : index
    %c0_261 = arith.constant 0 : index
    %c0_262 = arith.constant 0 : index
    %532 = vector.load %arg9[%c3, %c0_261, %c0_262] : memref<5x256x258xbf16, #tpu.memory_space<vmem>>, vector<1x256x258xbf16>
    %533 = vector.shape_cast %532 : vector<1x256x258xbf16> to vector<256x258xbf16>
    %cst_263 = arith.constant dense<0.000000e+00> : vector<48x258xf32>
    %534 = tpu.matmul %531, %533, %cst_263 {dimension_numbers = #tpu.dot_dimension_numbers<[1], [0], [0], [1], [0, 0, 1, 1], [], []>} : vector<48x256xbf16>, vector<256x258xbf16>, vector<48x258xf32> -> vector<48x258xf32>
    %c3_264 = arith.constant 3 : index
    %c0_265 = arith.constant 0 : index
    %c0_266 = arith.constant 0 : index
    %535 = vector.load %arg10[%c3_264, %c0_265, %c0_266] : memref<5x1x258xf32, #tpu.memory_space<vmem>>, vector<1x1x258xf32>
    %536 = vector.shape_cast %535 : vector<1x1x258xf32> to vector<1x258xf32>
    %537 = vector.broadcast %536 : vector<1x258xf32> to vector<48x258xf32>
    %538 = arith.addf %534, %537 : vector<48x258xf32>
    %cst_267 = arith.constant 0.000000e+00 : f32
    %539 = vector.broadcast %cst_267 : f32 to vector<48x258xf32>
    %540 = arith.subf %539, %538 : vector<48x258xf32>
    %541 = math.exp %540 : vector<48x258xf32>
    %cst_268 = arith.constant 1.000000e+00 : f32
    %542 = vector.broadcast %cst_268 : f32 to vector<48x258xf32>
    %543 = arith.addf %542, %541 : vector<48x258xf32>
    %544 = tpu.reciprocal %543 {approx = true} : vector<48x258xf32> -> vector<48x258xf32>
    %545 = arith.mulf %538, %544 : vector<48x258xf32>
    %546 = arith.truncf %545 : vector<48x258xf32> to vector<48x258xbf16>
    %c3_269 = arith.constant 3 : index
    %c0_270 = arith.constant 0 : index
    %c0_271 = arith.constant 0 : index
    %547 = vector.load %arg11[%c3_269, %c0_270, %c0_271] : memref<5x258x32xbf16, #tpu.memory_space<vmem>>, vector<1x258x32xbf16>
    %548 = vector.shape_cast %547 : vector<1x258x32xbf16> to vector<258x32xbf16>
    %cst_272 = arith.constant dense<0.000000e+00> : vector<48x32xf32>
    %549 = tpu.matmul %546, %548, %cst_272 {dimension_numbers = #tpu.dot_dimension_numbers<[1], [0], [0], [1], [0, 0, 1, 1], [], []>} : vector<48x258xbf16>, vector<258x32xbf16>, vector<48x32xf32> -> vector<48x32xf32>
    %c3_273 = arith.constant 3 : index
    %c0_274 = arith.constant 0 : index
    %c0_275 = arith.constant 0 : index
    %550 = vector.load %arg12[%c3_273, %c0_274, %c0_275] : memref<5x1x32xf32, #tpu.memory_space<vmem>>, vector<1x1x32xf32>
    %551 = vector.shape_cast %550 : vector<1x1x32xf32> to vector<1x32xf32>
    %552 = vector.broadcast %551 : vector<1x32xf32> to vector<48x32xf32>
    %553 = arith.addf %549, %552 : vector<48x32xf32>
    %cst_276 = arith.constant 0.000000e+00 : f32
    %554 = vector.broadcast %cst_276 : f32 to vector<48x32xf32>
    %555 = arith.subf %554, %553 : vector<48x32xf32>
    %556 = math.exp %555 : vector<48x32xf32>
    %cst_277 = arith.constant 1.000000e+00 : f32
    %557 = vector.broadcast %cst_277 : f32 to vector<48x32xf32>
    %558 = arith.addf %557, %556 : vector<48x32xf32>
    %559 = tpu.reciprocal %558 {approx = true} : vector<48x32xf32> -> vector<48x32xf32>
    %560 = arith.mulf %553, %559 : vector<48x32xf32>
    %c3_278 = arith.constant 3 : index
    %c0_279 = arith.constant 0 : index
    %c0_280 = arith.constant 0 : index
    %561 = vector.load %arg13[%c3_278, %c0_279, %c0_280] : memref<5x1x32xf32, #tpu.memory_space<vmem>>, vector<1x1x32xf32>
    %562 = vector.shape_cast %561 : vector<1x1x32xf32> to vector<1x32xf32>
    %c3_281 = arith.constant 3 : index
    %c0_282 = arith.constant 0 : index
    %c0_283 = arith.constant 0 : index
    %563 = vector.load %arg14[%c3_281, %c0_282, %c0_283] : memref<5x1x32xf32, #tpu.memory_space<vmem>>, vector<1x1x32xf32>
    %564 = vector.shape_cast %563 : vector<1x1x32xf32> to vector<1x32xf32>
    %cst_284 = arith.constant dense<0.000000e+00> : vector<48xf32>
    %565 = vector.multi_reduction <add>, %560, %cst_284 [1] : vector<48x32xf32> to vector<48xf32>
    %566 = vector.shape_cast %565 : vector<48xf32> to vector<48x1xf32>
    %cst_285 = arith.constant 3.200000e+01 : f32
    %567 = vector.broadcast %cst_285 : f32 to vector<48x1xf32>
    %568 = arith.divf %566, %567 : vector<48x1xf32>
    %569 = vector.broadcast %568 : vector<48x1xf32> to vector<48x32xf32>
    %570 = arith.subf %560, %569 : vector<48x32xf32>
    %571 = arith.mulf %570, %570 : vector<48x32xf32>
    %cst_286 = arith.constant dense<0.000000e+00> : vector<48xf32>
    %572 = vector.multi_reduction <add>, %571, %cst_286 [1] : vector<48x32xf32> to vector<48xf32>
    %573 = vector.shape_cast %572 : vector<48xf32> to vector<48x1xf32>
    %cst_287 = arith.constant 3.200000e+01 : f32
    %574 = vector.broadcast %cst_287 : f32 to vector<48x1xf32>
    %575 = arith.divf %573, %574 : vector<48x1xf32>
    %576 = vector.broadcast %568 : vector<48x1xf32> to vector<48x32xf32>
    %577 = arith.subf %560, %576 : vector<48x32xf32>
    %cst_288 = arith.constant 9.99999974E-6 : f32
    %578 = vector.broadcast %cst_288 : f32 to vector<48x1xf32>
    %579 = arith.addf %575, %578 : vector<48x1xf32>
    %580 = math.rsqrt %579 : vector<48x1xf32>
    %581 = vector.broadcast %580 : vector<48x1xf32> to vector<48x32xf32>
    %582 = arith.mulf %577, %581 : vector<48x32xf32>
    %583 = vector.broadcast %562 : vector<1x32xf32> to vector<48x32xf32>
    %584 = arith.mulf %582, %583 : vector<48x32xf32>
    %585 = vector.broadcast %564 : vector<1x32xf32> to vector<48x32xf32>
    %586 = arith.addf %584, %585 : vector<48x32xf32>
    %cst_289 = arith.constant dense<0.000000e+00> : vector<16x32xf32>
    %587 = tpu.matmul %16, %586, %cst_289 {dimension_numbers = #tpu.dot_dimension_numbers<[1], [0], [0], [1], [0, 0, 1, 1], [], []>} : vector<16x48xf32>, vector<48x32xf32>, vector<16x32xf32> -> vector<16x32xf32>
    %588 = vector.broadcast %22 : vector<16x1xf32> to vector<16x32xf32>
    %589 = arith.mulf %587, %588 : vector<16x32xf32>
    %c3_290 = arith.constant 3 : index
    %c0_291 = arith.constant 0 : index
    %c0_292 = arith.constant 0 : index
    %590 = vector.load %arg13[%c3_290, %c0_291, %c0_292] : memref<5x1x32xf32, #tpu.memory_space<vmem>>, vector<1x1x32xf32>
    %591 = vector.shape_cast %590 : vector<1x1x32xf32> to vector<1x32xf32>
    %c3_293 = arith.constant 3 : index
    %c0_294 = arith.constant 0 : index
    %c0_295 = arith.constant 0 : index
    %592 = vector.load %arg14[%c3_293, %c0_294, %c0_295] : memref<5x1x32xf32, #tpu.memory_space<vmem>>, vector<1x1x32xf32>
    %593 = vector.shape_cast %592 : vector<1x1x32xf32> to vector<1x32xf32>
    %cst_296 = arith.constant dense<0.000000e+00> : vector<16xf32>
    %594 = vector.multi_reduction <add>, %589, %cst_296 [1] : vector<16x32xf32> to vector<16xf32>
    %595 = vector.shape_cast %594 : vector<16xf32> to vector<16x1xf32>
    %cst_297 = arith.constant 3.200000e+01 : f32
    %596 = vector.broadcast %cst_297 : f32 to vector<16x1xf32>
    %597 = arith.divf %595, %596 : vector<16x1xf32>
    %598 = vector.broadcast %597 : vector<16x1xf32> to vector<16x32xf32>
    %599 = arith.subf %589, %598 : vector<16x32xf32>
    %600 = arith.mulf %599, %599 : vector<16x32xf32>
    %cst_298 = arith.constant dense<0.000000e+00> : vector<16xf32>
    %601 = vector.multi_reduction <add>, %600, %cst_298 [1] : vector<16x32xf32> to vector<16xf32>
    %602 = vector.shape_cast %601 : vector<16xf32> to vector<16x1xf32>
    %cst_299 = arith.constant 3.200000e+01 : f32
    %603 = vector.broadcast %cst_299 : f32 to vector<16x1xf32>
    %604 = arith.divf %602, %603 : vector<16x1xf32>
    %605 = vector.broadcast %597 : vector<16x1xf32> to vector<16x32xf32>
    %606 = arith.subf %589, %605 : vector<16x32xf32>
    %cst_300 = arith.constant 9.99999974E-6 : f32
    %607 = vector.broadcast %cst_300 : f32 to vector<16x1xf32>
    %608 = arith.addf %604, %607 : vector<16x1xf32>
    %609 = math.rsqrt %608 : vector<16x1xf32>
    %610 = vector.broadcast %609 : vector<16x1xf32> to vector<16x32xf32>
    %611 = arith.mulf %606, %610 : vector<16x32xf32>
    %612 = vector.broadcast %591 : vector<1x32xf32> to vector<16x32xf32>
    %613 = arith.mulf %611, %612 : vector<16x32xf32>
    %614 = vector.broadcast %593 : vector<1x32xf32> to vector<16x32xf32>
    %615 = arith.addf %613, %614 : vector<16x32xf32>
    %c3_301 = arith.constant 3 : index
    %c0_302 = arith.constant 0 : index
    %c0_303 = arith.constant 0 : index
    %616 = vector.load %arg15[%c3_301, %c0_302, %c0_303] : memref<5x1x32xf32, #tpu.memory_space<vmem>>, vector<1x1x32xf32>
    %617 = vector.shape_cast %616 : vector<1x1x32xf32> to vector<1x32xf32>
    %c3_304 = arith.constant 3 : index
    %c0_305 = arith.constant 0 : index
    %c0_306 = arith.constant 0 : index
    %618 = vector.load %arg16[%c3_304, %c0_305, %c0_306] : memref<5x1x32xf32, #tpu.memory_space<vmem>>, vector<1x1x32xf32>
    %619 = vector.shape_cast %618 : vector<1x1x32xf32> to vector<1x32xf32>
    %cst_307 = arith.constant dense<0.000000e+00> : vector<16xf32>
    %620 = vector.multi_reduction <add>, %527, %cst_307 [1] : vector<16x32xf32> to vector<16xf32>
    %621 = vector.shape_cast %620 : vector<16xf32> to vector<16x1xf32>
    %cst_308 = arith.constant 3.200000e+01 : f32
    %622 = vector.broadcast %cst_308 : f32 to vector<16x1xf32>
    %623 = arith.divf %621, %622 : vector<16x1xf32>
    %624 = vector.broadcast %623 : vector<16x1xf32> to vector<16x32xf32>
    %625 = arith.subf %527, %624 : vector<16x32xf32>
    %626 = arith.mulf %625, %625 : vector<16x32xf32>
    %cst_309 = arith.constant dense<0.000000e+00> : vector<16xf32>
    %627 = vector.multi_reduction <add>, %626, %cst_309 [1] : vector<16x32xf32> to vector<16xf32>
    %628 = vector.shape_cast %627 : vector<16xf32> to vector<16x1xf32>
    %cst_310 = arith.constant 3.200000e+01 : f32
    %629 = vector.broadcast %cst_310 : f32 to vector<16x1xf32>
    %630 = arith.divf %628, %629 : vector<16x1xf32>
    %631 = vector.broadcast %623 : vector<16x1xf32> to vector<16x32xf32>
    %632 = arith.subf %527, %631 : vector<16x32xf32>
    %cst_311 = arith.constant 9.99999974E-6 : f32
    %633 = vector.broadcast %cst_311 : f32 to vector<16x1xf32>
    %634 = arith.addf %630, %633 : vector<16x1xf32>
    %635 = math.rsqrt %634 : vector<16x1xf32>
    %636 = vector.broadcast %635 : vector<16x1xf32> to vector<16x32xf32>
    %637 = arith.mulf %632, %636 : vector<16x32xf32>
    %638 = vector.broadcast %617 : vector<1x32xf32> to vector<16x32xf32>
    %639 = arith.mulf %637, %638 : vector<16x32xf32>
    %640 = vector.broadcast %619 : vector<1x32xf32> to vector<16x32xf32>
    %641 = arith.addf %639, %640 : vector<16x32xf32>
    %642 = tpu.concatenate %641, %615 in 1 : vector<16x32xf32>, vector<16x32xf32> -> vector<16x64xf32>
    %643 = arith.truncf %642 : vector<16x64xf32> to vector<16x64xbf16>
    %c3_312 = arith.constant 3 : index
    %c0_313 = arith.constant 0 : index
    %c0_314 = arith.constant 0 : index
    %644 = vector.load %arg17[%c3_312, %c0_313, %c0_314] : memref<5x64x64xbf16, #tpu.memory_space<vmem>>, vector<1x64x64xbf16>
    %645 = vector.shape_cast %644 : vector<1x64x64xbf16> to vector<64x64xbf16>
    %cst_315 = arith.constant dense<0.000000e+00> : vector<16x64xf32>
    %646 = tpu.matmul %643, %645, %cst_315 {dimension_numbers = #tpu.dot_dimension_numbers<[1], [0], [0], [1], [0, 0, 1, 1], [], []>} : vector<16x64xbf16>, vector<64x64xbf16>, vector<16x64xf32> -> vector<16x64xf32>
    %c3_316 = arith.constant 3 : index
    %c0_317 = arith.constant 0 : index
    %c0_318 = arith.constant 0 : index
    %647 = vector.load %arg18[%c3_316, %c0_317, %c0_318] : memref<5x1x64xf32, #tpu.memory_space<vmem>>, vector<1x1x64xf32>
    %648 = vector.shape_cast %647 : vector<1x1x64xf32> to vector<1x64xf32>
    %649 = vector.broadcast %648 : vector<1x64xf32> to vector<16x64xf32>
    %650 = arith.addf %646, %649 : vector<16x64xf32>
    %cst_319 = arith.constant 0.000000e+00 : f32
    %651 = vector.broadcast %cst_319 : f32 to vector<16x64xf32>
    %652 = arith.subf %651, %650 : vector<16x64xf32>
    %653 = math.exp %652 : vector<16x64xf32>
    %cst_320 = arith.constant 1.000000e+00 : f32
    %654 = vector.broadcast %cst_320 : f32 to vector<16x64xf32>
    %655 = arith.addf %654, %653 : vector<16x64xf32>
    %656 = tpu.reciprocal %655 {approx = true} : vector<16x64xf32> -> vector<16x64xf32>
    %657 = arith.mulf %650, %656 : vector<16x64xf32>
    %658 = arith.truncf %657 : vector<16x64xf32> to vector<16x64xbf16>
    %c3_321 = arith.constant 3 : index
    %c0_322 = arith.constant 0 : index
    %c0_323 = arith.constant 0 : index
    %659 = vector.load %arg19[%c3_321, %c0_322, %c0_323] : memref<5x64x32xbf16, #tpu.memory_space<vmem>>, vector<1x64x32xbf16>
    %660 = vector.shape_cast %659 : vector<1x64x32xbf16> to vector<64x32xbf16>
    %cst_324 = arith.constant dense<0.000000e+00> : vector<16x32xf32>
    %661 = tpu.matmul %658, %660, %cst_324 {dimension_numbers = #tpu.dot_dimension_numbers<[1], [0], [0], [1], [0, 0, 1, 1], [], []>} : vector<16x64xbf16>, vector<64x32xbf16>, vector<16x32xf32> -> vector<16x32xf32>
    %c3_325 = arith.constant 3 : index
    %c0_326 = arith.constant 0 : index
    %c0_327 = arith.constant 0 : index
    %662 = vector.load %arg20[%c3_325, %c0_326, %c0_327] : memref<5x1x32xf32, #tpu.memory_space<vmem>>, vector<1x1x32xf32>
    %663 = vector.shape_cast %662 : vector<1x1x32xf32> to vector<1x32xf32>
    %664 = vector.broadcast %663 : vector<1x32xf32> to vector<16x32xf32>
    %665 = arith.addf %661, %664 : vector<16x32xf32>
    %c3_328 = arith.constant 3 : index
    %c0_329 = arith.constant 0 : index
    %c0_330 = arith.constant 0 : index
    %666 = vector.load %arg21[%c3_328, %c0_329, %c0_330] : memref<5x1x32xf32, #tpu.memory_space<vmem>>, vector<1x1x32xf32>
    %667 = vector.shape_cast %666 : vector<1x1x32xf32> to vector<1x32xf32>
    %c3_331 = arith.constant 3 : index
    %c0_332 = arith.constant 0 : index
    %c0_333 = arith.constant 0 : index
    %668 = vector.load %arg22[%c3_331, %c0_332, %c0_333] : memref<5x1x32xf32, #tpu.memory_space<vmem>>, vector<1x1x32xf32>
    %669 = vector.shape_cast %668 : vector<1x1x32xf32> to vector<1x32xf32>
    %cst_334 = arith.constant dense<0.000000e+00> : vector<16xf32>
    %670 = vector.multi_reduction <add>, %665, %cst_334 [1] : vector<16x32xf32> to vector<16xf32>
    %671 = vector.shape_cast %670 : vector<16xf32> to vector<16x1xf32>
    %cst_335 = arith.constant 3.200000e+01 : f32
    %672 = vector.broadcast %cst_335 : f32 to vector<16x1xf32>
    %673 = arith.divf %671, %672 : vector<16x1xf32>
    %674 = vector.broadcast %673 : vector<16x1xf32> to vector<16x32xf32>
    %675 = arith.subf %665, %674 : vector<16x32xf32>
    %676 = arith.mulf %675, %675 : vector<16x32xf32>
    %cst_336 = arith.constant dense<0.000000e+00> : vector<16xf32>
    %677 = vector.multi_reduction <add>, %676, %cst_336 [1] : vector<16x32xf32> to vector<16xf32>
    %678 = vector.shape_cast %677 : vector<16xf32> to vector<16x1xf32>
    %cst_337 = arith.constant 3.200000e+01 : f32
    %679 = vector.broadcast %cst_337 : f32 to vector<16x1xf32>
    %680 = arith.divf %678, %679 : vector<16x1xf32>
    %681 = vector.broadcast %673 : vector<16x1xf32> to vector<16x32xf32>
    %682 = arith.subf %665, %681 : vector<16x32xf32>
    %cst_338 = arith.constant 9.99999974E-6 : f32
    %683 = vector.broadcast %cst_338 : f32 to vector<16x1xf32>
    %684 = arith.addf %680, %683 : vector<16x1xf32>
    %685 = math.rsqrt %684 : vector<16x1xf32>
    %686 = vector.broadcast %685 : vector<16x1xf32> to vector<16x32xf32>
    %687 = arith.mulf %682, %686 : vector<16x32xf32>
    %688 = vector.broadcast %667 : vector<1x32xf32> to vector<16x32xf32>
    %689 = arith.mulf %687, %688 : vector<16x32xf32>
    %690 = vector.broadcast %669 : vector<1x32xf32> to vector<16x32xf32>
    %691 = arith.addf %689, %690 : vector<16x32xf32>
    %692 = arith.addf %527, %691 : vector<16x32xf32>
    %cst_339 = arith.constant dense<0.000000e+00> : vector<48x32xf32>
    %693 = tpu.matmul %10, %692, %cst_339 {dimension_numbers = #tpu.dot_dimension_numbers<[1], [0], [0], [1], [0, 0, 1, 1], [], []>} : vector<48x16xf32>, vector<16x32xf32>, vector<48x32xf32> -> vector<48x32xf32>
    %cst_340 = arith.constant dense<0.000000e+00> : vector<48x32xf32>
    %694 = tpu.matmul %5, %692, %cst_340 {dimension_numbers = #tpu.dot_dimension_numbers<[1], [0], [0], [1], [0, 0, 1, 1], [], []>} : vector<48x16xf32>, vector<16x32xf32>, vector<48x32xf32> -> vector<48x32xf32>
    %695 = tpu.concatenate %693, %694, %23 in 1 : vector<48x32xf32>, vector<48x32xf32>, vector<48x192xf32> -> vector<48x256xf32>
    %696 = arith.truncf %695 : vector<48x256xf32> to vector<48x256xbf16>
    %c4 = arith.constant 4 : index
    %c0_341 = arith.constant 0 : index
    %c0_342 = arith.constant 0 : index
    %697 = vector.load %arg9[%c4, %c0_341, %c0_342] : memref<5x256x258xbf16, #tpu.memory_space<vmem>>, vector<1x256x258xbf16>
    %698 = vector.shape_cast %697 : vector<1x256x258xbf16> to vector<256x258xbf16>
    %cst_343 = arith.constant dense<0.000000e+00> : vector<48x258xf32>
    %699 = tpu.matmul %696, %698, %cst_343 {dimension_numbers = #tpu.dot_dimension_numbers<[1], [0], [0], [1], [0, 0, 1, 1], [], []>} : vector<48x256xbf16>, vector<256x258xbf16>, vector<48x258xf32> -> vector<48x258xf32>
    %c4_344 = arith.constant 4 : index
    %c0_345 = arith.constant 0 : index
    %c0_346 = arith.constant 0 : index
    %700 = vector.load %arg10[%c4_344, %c0_345, %c0_346] : memref<5x1x258xf32, #tpu.memory_space<vmem>>, vector<1x1x258xf32>
    %701 = vector.shape_cast %700 : vector<1x1x258xf32> to vector<1x258xf32>
    %702 = vector.broadcast %701 : vector<1x258xf32> to vector<48x258xf32>
    %703 = arith.addf %699, %702 : vector<48x258xf32>
    %cst_347 = arith.constant 0.000000e+00 : f32
    %704 = vector.broadcast %cst_347 : f32 to vector<48x258xf32>
    %705 = arith.subf %704, %703 : vector<48x258xf32>
    %706 = math.exp %705 : vector<48x258xf32>
    %cst_348 = arith.constant 1.000000e+00 : f32
    %707 = vector.broadcast %cst_348 : f32 to vector<48x258xf32>
    %708 = arith.addf %707, %706 : vector<48x258xf32>
    %709 = tpu.reciprocal %708 {approx = true} : vector<48x258xf32> -> vector<48x258xf32>
    %710 = arith.mulf %703, %709 : vector<48x258xf32>
    %711 = arith.truncf %710 : vector<48x258xf32> to vector<48x258xbf16>
    %c4_349 = arith.constant 4 : index
    %c0_350 = arith.constant 0 : index
    %c0_351 = arith.constant 0 : index
    %712 = vector.load %arg11[%c4_349, %c0_350, %c0_351] : memref<5x258x32xbf16, #tpu.memory_space<vmem>>, vector<1x258x32xbf16>
    %713 = vector.shape_cast %712 : vector<1x258x32xbf16> to vector<258x32xbf16>
    %cst_352 = arith.constant dense<0.000000e+00> : vector<48x32xf32>
    %714 = tpu.matmul %711, %713, %cst_352 {dimension_numbers = #tpu.dot_dimension_numbers<[1], [0], [0], [1], [0, 0, 1, 1], [], []>} : vector<48x258xbf16>, vector<258x32xbf16>, vector<48x32xf32> -> vector<48x32xf32>
    %c4_353 = arith.constant 4 : index
    %c0_354 = arith.constant 0 : index
    %c0_355 = arith.constant 0 : index
    %715 = vector.load %arg12[%c4_353, %c0_354, %c0_355] : memref<5x1x32xf32, #tpu.memory_space<vmem>>, vector<1x1x32xf32>
    %716 = vector.shape_cast %715 : vector<1x1x32xf32> to vector<1x32xf32>
    %717 = vector.broadcast %716 : vector<1x32xf32> to vector<48x32xf32>
    %718 = arith.addf %714, %717 : vector<48x32xf32>
    %cst_356 = arith.constant 0.000000e+00 : f32
    %719 = vector.broadcast %cst_356 : f32 to vector<48x32xf32>
    %720 = arith.subf %719, %718 : vector<48x32xf32>
    %721 = math.exp %720 : vector<48x32xf32>
    %cst_357 = arith.constant 1.000000e+00 : f32
    %722 = vector.broadcast %cst_357 : f32 to vector<48x32xf32>
    %723 = arith.addf %722, %721 : vector<48x32xf32>
    %724 = tpu.reciprocal %723 {approx = true} : vector<48x32xf32> -> vector<48x32xf32>
    %725 = arith.mulf %718, %724 : vector<48x32xf32>
    %c4_358 = arith.constant 4 : index
    %c0_359 = arith.constant 0 : index
    %c0_360 = arith.constant 0 : index
    %726 = vector.load %arg13[%c4_358, %c0_359, %c0_360] : memref<5x1x32xf32, #tpu.memory_space<vmem>>, vector<1x1x32xf32>
    %727 = vector.shape_cast %726 : vector<1x1x32xf32> to vector<1x32xf32>
    %c4_361 = arith.constant 4 : index
    %c0_362 = arith.constant 0 : index
    %c0_363 = arith.constant 0 : index
    %728 = vector.load %arg14[%c4_361, %c0_362, %c0_363] : memref<5x1x32xf32, #tpu.memory_space<vmem>>, vector<1x1x32xf32>
    %729 = vector.shape_cast %728 : vector<1x1x32xf32> to vector<1x32xf32>
    %cst_364 = arith.constant dense<0.000000e+00> : vector<48xf32>
    %730 = vector.multi_reduction <add>, %725, %cst_364 [1] : vector<48x32xf32> to vector<48xf32>
    %731 = vector.shape_cast %730 : vector<48xf32> to vector<48x1xf32>
    %cst_365 = arith.constant 3.200000e+01 : f32
    %732 = vector.broadcast %cst_365 : f32 to vector<48x1xf32>
    %733 = arith.divf %731, %732 : vector<48x1xf32>
    %734 = vector.broadcast %733 : vector<48x1xf32> to vector<48x32xf32>
    %735 = arith.subf %725, %734 : vector<48x32xf32>
    %736 = arith.mulf %735, %735 : vector<48x32xf32>
    %cst_366 = arith.constant dense<0.000000e+00> : vector<48xf32>
    %737 = vector.multi_reduction <add>, %736, %cst_366 [1] : vector<48x32xf32> to vector<48xf32>
    %738 = vector.shape_cast %737 : vector<48xf32> to vector<48x1xf32>
    %cst_367 = arith.constant 3.200000e+01 : f32
    %739 = vector.broadcast %cst_367 : f32 to vector<48x1xf32>
    %740 = arith.divf %738, %739 : vector<48x1xf32>
    %741 = vector.broadcast %733 : vector<48x1xf32> to vector<48x32xf32>
    %742 = arith.subf %725, %741 : vector<48x32xf32>
    %cst_368 = arith.constant 9.99999974E-6 : f32
    %743 = vector.broadcast %cst_368 : f32 to vector<48x1xf32>
    %744 = arith.addf %740, %743 : vector<48x1xf32>
    %745 = math.rsqrt %744 : vector<48x1xf32>
    %746 = vector.broadcast %745 : vector<48x1xf32> to vector<48x32xf32>
    %747 = arith.mulf %742, %746 : vector<48x32xf32>
    %748 = vector.broadcast %727 : vector<1x32xf32> to vector<48x32xf32>
    %749 = arith.mulf %747, %748 : vector<48x32xf32>
    %750 = vector.broadcast %729 : vector<1x32xf32> to vector<48x32xf32>
    %751 = arith.addf %749, %750 : vector<48x32xf32>
    %cst_369 = arith.constant dense<0.000000e+00> : vector<16x32xf32>
    %752 = tpu.matmul %16, %751, %cst_369 {dimension_numbers = #tpu.dot_dimension_numbers<[1], [0], [0], [1], [0, 0, 1, 1], [], []>} : vector<16x48xf32>, vector<48x32xf32>, vector<16x32xf32> -> vector<16x32xf32>
    %753 = vector.broadcast %22 : vector<16x1xf32> to vector<16x32xf32>
    %754 = arith.mulf %752, %753 : vector<16x32xf32>
    %c4_370 = arith.constant 4 : index
    %c0_371 = arith.constant 0 : index
    %c0_372 = arith.constant 0 : index
    %755 = vector.load %arg13[%c4_370, %c0_371, %c0_372] : memref<5x1x32xf32, #tpu.memory_space<vmem>>, vector<1x1x32xf32>
    %756 = vector.shape_cast %755 : vector<1x1x32xf32> to vector<1x32xf32>
    %c4_373 = arith.constant 4 : index
    %c0_374 = arith.constant 0 : index
    %c0_375 = arith.constant 0 : index
    %757 = vector.load %arg14[%c4_373, %c0_374, %c0_375] : memref<5x1x32xf32, #tpu.memory_space<vmem>>, vector<1x1x32xf32>
    %758 = vector.shape_cast %757 : vector<1x1x32xf32> to vector<1x32xf32>
    %cst_376 = arith.constant dense<0.000000e+00> : vector<16xf32>
    %759 = vector.multi_reduction <add>, %754, %cst_376 [1] : vector<16x32xf32> to vector<16xf32>
    %760 = vector.shape_cast %759 : vector<16xf32> to vector<16x1xf32>
    %cst_377 = arith.constant 3.200000e+01 : f32
    %761 = vector.broadcast %cst_377 : f32 to vector<16x1xf32>
    %762 = arith.divf %760, %761 : vector<16x1xf32>
    %763 = vector.broadcast %762 : vector<16x1xf32> to vector<16x32xf32>
    %764 = arith.subf %754, %763 : vector<16x32xf32>
    %765 = arith.mulf %764, %764 : vector<16x32xf32>
    %cst_378 = arith.constant dense<0.000000e+00> : vector<16xf32>
    %766 = vector.multi_reduction <add>, %765, %cst_378 [1] : vector<16x32xf32> to vector<16xf32>
    %767 = vector.shape_cast %766 : vector<16xf32> to vector<16x1xf32>
    %cst_379 = arith.constant 3.200000e+01 : f32
    %768 = vector.broadcast %cst_379 : f32 to vector<16x1xf32>
    %769 = arith.divf %767, %768 : vector<16x1xf32>
    %770 = vector.broadcast %762 : vector<16x1xf32> to vector<16x32xf32>
    %771 = arith.subf %754, %770 : vector<16x32xf32>
    %cst_380 = arith.constant 9.99999974E-6 : f32
    %772 = vector.broadcast %cst_380 : f32 to vector<16x1xf32>
    %773 = arith.addf %769, %772 : vector<16x1xf32>
    %774 = math.rsqrt %773 : vector<16x1xf32>
    %775 = vector.broadcast %774 : vector<16x1xf32> to vector<16x32xf32>
    %776 = arith.mulf %771, %775 : vector<16x32xf32>
    %777 = vector.broadcast %756 : vector<1x32xf32> to vector<16x32xf32>
    %778 = arith.mulf %776, %777 : vector<16x32xf32>
    %779 = vector.broadcast %758 : vector<1x32xf32> to vector<16x32xf32>
    %780 = arith.addf %778, %779 : vector<16x32xf32>
    %c4_381 = arith.constant 4 : index
    %c0_382 = arith.constant 0 : index
    %c0_383 = arith.constant 0 : index
    %781 = vector.load %arg15[%c4_381, %c0_382, %c0_383] : memref<5x1x32xf32, #tpu.memory_space<vmem>>, vector<1x1x32xf32>
    %782 = vector.shape_cast %781 : vector<1x1x32xf32> to vector<1x32xf32>
    %c4_384 = arith.constant 4 : index
    %c0_385 = arith.constant 0 : index
    %c0_386 = arith.constant 0 : index
    %783 = vector.load %arg16[%c4_384, %c0_385, %c0_386] : memref<5x1x32xf32, #tpu.memory_space<vmem>>, vector<1x1x32xf32>
    %784 = vector.shape_cast %783 : vector<1x1x32xf32> to vector<1x32xf32>
    %cst_387 = arith.constant dense<0.000000e+00> : vector<16xf32>
    %785 = vector.multi_reduction <add>, %692, %cst_387 [1] : vector<16x32xf32> to vector<16xf32>
    %786 = vector.shape_cast %785 : vector<16xf32> to vector<16x1xf32>
    %cst_388 = arith.constant 3.200000e+01 : f32
    %787 = vector.broadcast %cst_388 : f32 to vector<16x1xf32>
    %788 = arith.divf %786, %787 : vector<16x1xf32>
    %789 = vector.broadcast %788 : vector<16x1xf32> to vector<16x32xf32>
    %790 = arith.subf %692, %789 : vector<16x32xf32>
    %791 = arith.mulf %790, %790 : vector<16x32xf32>
    %cst_389 = arith.constant dense<0.000000e+00> : vector<16xf32>
    %792 = vector.multi_reduction <add>, %791, %cst_389 [1] : vector<16x32xf32> to vector<16xf32>
    %793 = vector.shape_cast %792 : vector<16xf32> to vector<16x1xf32>
    %cst_390 = arith.constant 3.200000e+01 : f32
    %794 = vector.broadcast %cst_390 : f32 to vector<16x1xf32>
    %795 = arith.divf %793, %794 : vector<16x1xf32>
    %796 = vector.broadcast %788 : vector<16x1xf32> to vector<16x32xf32>
    %797 = arith.subf %692, %796 : vector<16x32xf32>
    %cst_391 = arith.constant 9.99999974E-6 : f32
    %798 = vector.broadcast %cst_391 : f32 to vector<16x1xf32>
    %799 = arith.addf %795, %798 : vector<16x1xf32>
    %800 = math.rsqrt %799 : vector<16x1xf32>
    %801 = vector.broadcast %800 : vector<16x1xf32> to vector<16x32xf32>
    %802 = arith.mulf %797, %801 : vector<16x32xf32>
    %803 = vector.broadcast %782 : vector<1x32xf32> to vector<16x32xf32>
    %804 = arith.mulf %802, %803 : vector<16x32xf32>
    %805 = vector.broadcast %784 : vector<1x32xf32> to vector<16x32xf32>
    %806 = arith.addf %804, %805 : vector<16x32xf32>
    %807 = tpu.concatenate %806, %780 in 1 : vector<16x32xf32>, vector<16x32xf32> -> vector<16x64xf32>
    %808 = arith.truncf %807 : vector<16x64xf32> to vector<16x64xbf16>
    %c4_392 = arith.constant 4 : index
    %c0_393 = arith.constant 0 : index
    %c0_394 = arith.constant 0 : index
    %809 = vector.load %arg17[%c4_392, %c0_393, %c0_394] : memref<5x64x64xbf16, #tpu.memory_space<vmem>>, vector<1x64x64xbf16>
    %810 = vector.shape_cast %809 : vector<1x64x64xbf16> to vector<64x64xbf16>
    %cst_395 = arith.constant dense<0.000000e+00> : vector<16x64xf32>
    %811 = tpu.matmul %808, %810, %cst_395 {dimension_numbers = #tpu.dot_dimension_numbers<[1], [0], [0], [1], [0, 0, 1, 1], [], []>} : vector<16x64xbf16>, vector<64x64xbf16>, vector<16x64xf32> -> vector<16x64xf32>
    %c4_396 = arith.constant 4 : index
    %c0_397 = arith.constant 0 : index
    %c0_398 = arith.constant 0 : index
    %812 = vector.load %arg18[%c4_396, %c0_397, %c0_398] : memref<5x1x64xf32, #tpu.memory_space<vmem>>, vector<1x1x64xf32>
    %813 = vector.shape_cast %812 : vector<1x1x64xf32> to vector<1x64xf32>
    %814 = vector.broadcast %813 : vector<1x64xf32> to vector<16x64xf32>
    %815 = arith.addf %811, %814 : vector<16x64xf32>
    %cst_399 = arith.constant 0.000000e+00 : f32
    %816 = vector.broadcast %cst_399 : f32 to vector<16x64xf32>
    %817 = arith.subf %816, %815 : vector<16x64xf32>
    %818 = math.exp %817 : vector<16x64xf32>
    %cst_400 = arith.constant 1.000000e+00 : f32
    %819 = vector.broadcast %cst_400 : f32 to vector<16x64xf32>
    %820 = arith.addf %819, %818 : vector<16x64xf32>
    %821 = tpu.reciprocal %820 {approx = true} : vector<16x64xf32> -> vector<16x64xf32>
    %822 = arith.mulf %815, %821 : vector<16x64xf32>
    %823 = arith.truncf %822 : vector<16x64xf32> to vector<16x64xbf16>
    %c4_401 = arith.constant 4 : index
    %c0_402 = arith.constant 0 : index
    %c0_403 = arith.constant 0 : index
    %824 = vector.load %arg19[%c4_401, %c0_402, %c0_403] : memref<5x64x32xbf16, #tpu.memory_space<vmem>>, vector<1x64x32xbf16>
    %825 = vector.shape_cast %824 : vector<1x64x32xbf16> to vector<64x32xbf16>
    %cst_404 = arith.constant dense<0.000000e+00> : vector<16x32xf32>
    %826 = tpu.matmul %823, %825, %cst_404 {dimension_numbers = #tpu.dot_dimension_numbers<[1], [0], [0], [1], [0, 0, 1, 1], [], []>} : vector<16x64xbf16>, vector<64x32xbf16>, vector<16x32xf32> -> vector<16x32xf32>
    %c4_405 = arith.constant 4 : index
    %c0_406 = arith.constant 0 : index
    %c0_407 = arith.constant 0 : index
    %827 = vector.load %arg20[%c4_405, %c0_406, %c0_407] : memref<5x1x32xf32, #tpu.memory_space<vmem>>, vector<1x1x32xf32>
    %828 = vector.shape_cast %827 : vector<1x1x32xf32> to vector<1x32xf32>
    %829 = vector.broadcast %828 : vector<1x32xf32> to vector<16x32xf32>
    %830 = arith.addf %826, %829 : vector<16x32xf32>
    %c4_408 = arith.constant 4 : index
    %c0_409 = arith.constant 0 : index
    %c0_410 = arith.constant 0 : index
    %831 = vector.load %arg21[%c4_408, %c0_409, %c0_410] : memref<5x1x32xf32, #tpu.memory_space<vmem>>, vector<1x1x32xf32>
    %832 = vector.shape_cast %831 : vector<1x1x32xf32> to vector<1x32xf32>
    %c4_411 = arith.constant 4 : index
    %c0_412 = arith.constant 0 : index
    %c0_413 = arith.constant 0 : index
    %833 = vector.load %arg22[%c4_411, %c0_412, %c0_413] : memref<5x1x32xf32, #tpu.memory_space<vmem>>, vector<1x1x32xf32>
    %834 = vector.shape_cast %833 : vector<1x1x32xf32> to vector<1x32xf32>
    %cst_414 = arith.constant dense<0.000000e+00> : vector<16xf32>
    %835 = vector.multi_reduction <add>, %830, %cst_414 [1] : vector<16x32xf32> to vector<16xf32>
    %836 = vector.shape_cast %835 : vector<16xf32> to vector<16x1xf32>
    %cst_415 = arith.constant 3.200000e+01 : f32
    %837 = vector.broadcast %cst_415 : f32 to vector<16x1xf32>
    %838 = arith.divf %836, %837 : vector<16x1xf32>
    %839 = vector.broadcast %838 : vector<16x1xf32> to vector<16x32xf32>
    %840 = arith.subf %830, %839 : vector<16x32xf32>
    %841 = arith.mulf %840, %840 : vector<16x32xf32>
    %cst_416 = arith.constant dense<0.000000e+00> : vector<16xf32>
    %842 = vector.multi_reduction <add>, %841, %cst_416 [1] : vector<16x32xf32> to vector<16xf32>
    %843 = vector.shape_cast %842 : vector<16xf32> to vector<16x1xf32>
    %cst_417 = arith.constant 3.200000e+01 : f32
    %844 = vector.broadcast %cst_417 : f32 to vector<16x1xf32>
    %845 = arith.divf %843, %844 : vector<16x1xf32>
    %846 = vector.broadcast %838 : vector<16x1xf32> to vector<16x32xf32>
    %847 = arith.subf %830, %846 : vector<16x32xf32>
    %cst_418 = arith.constant 9.99999974E-6 : f32
    %848 = vector.broadcast %cst_418 : f32 to vector<16x1xf32>
    %849 = arith.addf %845, %848 : vector<16x1xf32>
    %850 = math.rsqrt %849 : vector<16x1xf32>
    %851 = vector.broadcast %850 : vector<16x1xf32> to vector<16x32xf32>
    %852 = arith.mulf %847, %851 : vector<16x32xf32>
    %853 = vector.broadcast %832 : vector<1x32xf32> to vector<16x32xf32>
    %854 = arith.mulf %852, %853 : vector<16x32xf32>
    %855 = vector.broadcast %834 : vector<1x32xf32> to vector<16x32xf32>
    %856 = arith.addf %854, %855 : vector<16x32xf32>
    %857 = arith.addf %692, %856 : vector<16x32xf32>
    %858 = tpu.concatenate %32, %197, %362, %527, %692, %857 in 1 : vector<16x32xf32>, vector<16x32xf32>, vector<16x32xf32>, vector<16x32xf32>, vector<16x32xf32>, vector<16x32xf32> -> vector<16x192xf32>
    %cst_419 = arith.constant 0.000000e+00 : f32
    %859 = vector.broadcast %cst_419 : f32 to vector<16x192xf32>
    %860 = arith.subf %859, %858 : vector<16x192xf32>
    %861 = math.exp %860 : vector<16x192xf32>
    %cst_420 = arith.constant 1.000000e+00 : f32
    %862 = vector.broadcast %cst_420 : f32 to vector<16x192xf32>
    %863 = arith.addf %862, %861 : vector<16x192xf32>
    %864 = tpu.reciprocal %863 {approx = true} : vector<16x192xf32> -> vector<16x192xf32>
    %865 = arith.mulf %858, %864 : vector<16x192xf32>
    %866 = arith.truncf %865 : vector<16x192xf32> to vector<16x192xbf16>
    %c0_421 = arith.constant 0 : index
    %c0_422 = arith.constant 0 : index
    %867 = vector.load %arg23[%c0_421, %c0_422] : memref<192x256xbf16, #tpu.memory_space<vmem>>, vector<192x256xbf16>
    %cst_423 = arith.constant dense<0.000000e+00> : vector<16x256xf32>
    %868 = tpu.matmul %866, %867, %cst_423 {dimension_numbers = #tpu.dot_dimension_numbers<[1], [0], [0], [1], [0, 0, 1, 1], [], []>} : vector<16x192xbf16>, vector<192x256xbf16>, vector<16x256xf32> -> vector<16x256xf32>
    %c0_424 = arith.constant 0 : index
    %c0_425 = arith.constant 0 : index
    %869 = vector.load %arg24[%c0_424, %c0_425] : memref<1x256xf32, #tpu.memory_space<vmem>>, vector<1x256xf32>
    %870 = vector.broadcast %869 : vector<1x256xf32> to vector<16x256xf32>
    %871 = arith.addf %868, %870 : vector<16x256xf32>
    %cst_426 = arith.constant 0.000000e+00 : f32
    %872 = vector.broadcast %cst_426 : f32 to vector<16x256xf32>
    %873 = arith.subf %872, %871 : vector<16x256xf32>
    %874 = math.exp %873 : vector<16x256xf32>
    %cst_427 = arith.constant 1.000000e+00 : f32
    %875 = vector.broadcast %cst_427 : f32 to vector<16x256xf32>
    %876 = arith.addf %875, %874 : vector<16x256xf32>
    %877 = tpu.reciprocal %876 {approx = true} : vector<16x256xf32> -> vector<16x256xf32>
    %878 = arith.mulf %871, %877 : vector<16x256xf32>
    %879 = arith.truncf %878 : vector<16x256xf32> to vector<16x256xbf16>
    %c0_428 = arith.constant 0 : index
    %c0_429 = arith.constant 0 : index
    %880 = vector.load %arg25[%c0_428, %c0_429] : memref<256x256xbf16, #tpu.memory_space<vmem>>, vector<256x256xbf16>
    %cst_430 = arith.constant dense<0.000000e+00> : vector<16x256xf32>
    %881 = tpu.matmul %879, %880, %cst_430 {dimension_numbers = #tpu.dot_dimension_numbers<[1], [0], [0], [1], [0, 0, 1, 1], [], []>} : vector<16x256xbf16>, vector<256x256xbf16>, vector<16x256xf32> -> vector<16x256xf32>
    %c0_431 = arith.constant 0 : index
    %c0_432 = arith.constant 0 : index
    %882 = vector.load %arg26[%c0_431, %c0_432] : memref<1x256xf32, #tpu.memory_space<vmem>>, vector<1x256xf32>
    %883 = vector.broadcast %882 : vector<1x256xf32> to vector<16x256xf32>
    %884 = arith.addf %881, %883 : vector<16x256xf32>
    %cst_433 = arith.constant 0.000000e+00 : f32
    %885 = vector.broadcast %cst_433 : f32 to vector<16x256xf32>
    %886 = arith.subf %885, %884 : vector<16x256xf32>
    %887 = math.exp %886 : vector<16x256xf32>
    %cst_434 = arith.constant 1.000000e+00 : f32
    %888 = vector.broadcast %cst_434 : f32 to vector<16x256xf32>
    %889 = arith.addf %888, %887 : vector<16x256xf32>
    %890 = tpu.reciprocal %889 {approx = true} : vector<16x256xf32> -> vector<16x256xf32>
    %891 = arith.mulf %884, %890 : vector<16x256xf32>
    %892 = arith.truncf %891 : vector<16x256xf32> to vector<16x256xbf16>
    %c0_435 = arith.constant 0 : index
    %c0_436 = arith.constant 0 : index
    %893 = vector.load %arg27[%c0_435, %c0_436] : memref<256x256xbf16, #tpu.memory_space<vmem>>, vector<256x256xbf16>
    %cst_437 = arith.constant dense<0.000000e+00> : vector<16x256xf32>
    %894 = tpu.matmul %892, %893, %cst_437 {dimension_numbers = #tpu.dot_dimension_numbers<[1], [0], [0], [1], [0, 0, 1, 1], [], []>} : vector<16x256xbf16>, vector<256x256xbf16>, vector<16x256xf32> -> vector<16x256xf32>
    %c0_438 = arith.constant 0 : index
    %c0_439 = arith.constant 0 : index
    %895 = vector.load %arg28[%c0_438, %c0_439] : memref<1x256xf32, #tpu.memory_space<vmem>>, vector<1x256xf32>
    %896 = vector.broadcast %895 : vector<1x256xf32> to vector<16x256xf32>
    %897 = arith.addf %894, %896 : vector<16x256xf32>
    %cst_440 = arith.constant 0.000000e+00 : f32
    %898 = vector.broadcast %cst_440 : f32 to vector<16x256xf32>
    %899 = arith.subf %898, %897 : vector<16x256xf32>
    %900 = math.exp %899 : vector<16x256xf32>
    %cst_441 = arith.constant 1.000000e+00 : f32
    %901 = vector.broadcast %cst_441 : f32 to vector<16x256xf32>
    %902 = arith.addf %901, %900 : vector<16x256xf32>
    %903 = tpu.reciprocal %902 {approx = true} : vector<16x256xf32> -> vector<16x256xf32>
    %904 = arith.mulf %897, %903 : vector<16x256xf32>
    %905 = tpu.iota {dimensions = array<i32: 0>} : vector<2x16xi32>
    %c0_442 = arith.constant 0 : index
    %c0_443 = arith.constant 0 : index
    %906 = vector.load %arg6[%c0_442, %c0_443] : memref<1x16xi32, #tpu.memory_space<vmem>>, vector<1x16xi32>
    %907 = vector.broadcast %906 : vector<1x16xi32> to vector<2x16xi32>
    %908 = arith.cmpi eq, %905, %907 : vector<2x16xi32>
    %909 = arith.extui %908 : vector<2x16xi1> to vector<2x16xi32>
    %910 = arith.sitofp %909 : vector<2x16xi32> to vector<2x16xf32>
    %cst_444 = arith.constant dense<0.000000e+00> : vector<2xf32>
    %911 = vector.multi_reduction <add>, %910, %cst_444 [1] : vector<2x16xf32> to vector<2xf32>
    %912 = vector.shape_cast %911 : vector<2xf32> to vector<2x1xf32>
    %cst_445 = arith.constant 1.000000e+00 : f32
    %913 = vector.broadcast %cst_445 : f32 to vector<2x1xf32>
    %914 = arith.maximumf %912, %913 : vector<2x1xf32>
    %cst_446 = arith.constant 1.000000e+00 : f32
    %915 = vector.broadcast %cst_446 : f32 to vector<2x1xf32>
    %916 = arith.divf %915, %914 : vector<2x1xf32>
    %cst_447 = arith.constant dense<0.000000e+00> : vector<2x256xf32>
    %917 = tpu.matmul %910, %904, %cst_447 {dimension_numbers = #tpu.dot_dimension_numbers<[1], [0], [0], [1], [0, 0, 1, 1], [], []>} : vector<2x16xf32>, vector<16x256xf32>, vector<2x256xf32> -> vector<2x256xf32>
    %918 = vector.broadcast %916 : vector<2x1xf32> to vector<2x256xf32>
    %919 = arith.mulf %917, %918 : vector<2x256xf32>
    %920 = arith.truncf %919 : vector<2x256xf32> to vector<2x256xbf16>
    %c0_448 = arith.constant 0 : index
    %c0_449 = arith.constant 0 : index
    %921 = vector.load %arg29[%c0_448, %c0_449] : memref<256x1xbf16, #tpu.memory_space<vmem>>, vector<256x1xbf16>
    %cst_450 = arith.constant dense<0.000000e+00> : vector<2x1xf32>
    %922 = tpu.matmul %920, %921, %cst_450 {dimension_numbers = #tpu.dot_dimension_numbers<[1], [0], [0], [1], [0, 0, 1, 1], [], []>} : vector<2x256xbf16>, vector<256x1xbf16>, vector<2x1xf32> -> vector<2x1xf32>
    %c0_451 = arith.constant 0 : index
    %c0_452 = arith.constant 0 : index
    %923 = vector.load %arg30[%c0_451, %c0_452] : memref<1x1xf32, #tpu.memory_space<vmem>>, vector<1x1xf32>
    %924 = vector.broadcast %923 : vector<1x1xf32> to vector<2x1xf32>
    %925 = arith.addf %922, %924 : vector<2x1xf32>
    %c0_453 = arith.constant 0 : index
    %c0_454 = arith.constant 0 : index
    %926 = vector.load %arg31[%c0_453, %c0_454] : memref<2x1xf32, #tpu.memory_space<vmem>>, vector<2x1xf32>
    tpu.vector_store %arg31[%c0_453, %c0_454], %925 {strides = array<i32>} : memref<2x1xf32, #tpu.memory_space<vmem>>, vector<2x1xf32>,
    return
  }
}

</mosaic_0001>

<bundles_post_ra>
// kernel: egnn_intgrads_forward.1
= control target key start
LH: loop header
LB: loop body
LE: loop exit
PB: predicated region body
PF: predicated region fallthrough
CT: control target
= control target key end

     0   :  { %v12606_v0 = vmov 0   ;;  %s12607_s3 = smov 7   ;;  %s12608_s7 = smov 3   ;;  %vm296_vm0 = vcmask 1040384   ;;  %vm289_vm1 = vcmask 72704   ;;  %v133_v25 = vlaneseq  ;;  %s15271_s0 = inlined_call_operand.smem [shape: u32[32], index: -1, kind: input, shape index: {}] }
   0x1   :  { %11713 = vset.pattern.permute.xlu1 %v12606_v0  ;;  %11712 = vset.pattern.permute.xlu0 %v12606_v0  ;;  %s8720_s6 = sld [smem:[%s15271_s0 + %s12607_s3]]   ;;  %s12609_s11 = smov 1   ;;  %v15272_v35 = vmov 0.0   ;;  %vm337_vm4 = vcmask 130048   ;;  %vm504_vm15 = vcmask 523264  }
   0x2   :  { %s12654_s10 = sld [smem:[%s15271_s0 + %s12608_s7]]   ;;  %11714 = vset.pattern.permute.xlu2 %v12606_v0  ;;  %s12610_s18 = smov 8   ;;  %v12685_v30 = vand.u32 127, %v133_v25 }
   0x3   :  { %s8714_s14 = sld [smem:[%s15271_s0 + %s12609_s11]]   ;;  %s12611_s22 = smov 4  }
   0x4   :  { %s1_s17 = sld [smem:[%s15271_s0]]   ;;  %s12613_s26 = smov 2  }
   0x5   :  { %s12665_s21 = sld [smem:[%s15271_s0 + %s12610_s18]]   ;;  %s12614_s30 = smov 64  }
   0x6   :  { %s8717_s25 = sld [smem:[%s15271_s0 + %s12611_s22]]   ;;  %s12615_s1 = smov 9  }
   0x7   :  { %v284_v1 = vld [vmem:[%s8720_s6 + $0x8] sm:$0x1]  ;;  %v283_v2 = vld [vmem:[%s8720_s6] sm:$0xff]  ;;  %s12710_s29 = sld [smem:[%s15271_s0 + %s12613_s26]]   ;;  %s12616_s5 = smov 32  }
   0x8   :  { %8759 = vmatpush.msk.msra.mxu0 %vm296_vm0, %v284_v1  ;;  %v135_v3 = vld [vmem:[%s12654_s10] sm:$0xff]  ;;  %v137_v6 = vld [vmem:[%s12654_s10 + $0x10] sm:$0xff]  ;;  %v136_v7 = vld [vmem:[%s12654_s10 + $0x8] sm:$0xff]  ;;  %s12795_s4 = sld [smem:[%s15271_s0 + %s12615_s1]]   ;;  %s12617_s6 = smov 11  }
   0x9   :  { %142 = vperm.xlu1 %11713, %v135_v3   ;;  %v324_v4 = vld [vmem:[%s8714_s14 + $0x8] sm:$0xff]  ;;  %148 = vperm.xlu2 %11714, %v137_v6   ;;  %v323_v8 = vld [vmem:[%s8714_s14] sm:$0xff]  ;;  %v138_v10 = vld [vmem:[%s12654_s10 + $0x18] sm:$0xff]  ;;  %s12956_s9 = sld [smem:[%s15271_s0 + %s12617_s6]]   ;;  %s12619_s14 = smov 12  }
   0xa   :  { %332 = vperm.xlu0 %11712, %v324_v4   ;;  %315 = vmatpush.msra.mxu0 %v283_v2  ;;  %v281_v5 = vld [vmem:[%s1_s17] sm:$0xff]  ;;  %v282_v9 = vld [vmem:[%s1_s17 + $0x8] sm:$0xff]  ;;  %s12980_s17 = sld [smem:[%s15271_s0 + %s12619_s14]]   ;;  %s12620_s18 = smov 5  }
   0xb   :  { %8760 = vmatmul.msk.f32.vlgmr.msra.gmra.mxu0 %vm289_vm1, %v281_v5  ;;  %v140_v11 = vld [vmem:[%s12654_s10 + $0x28] sm:$0xff]  ;;  %v139_v12 = vld [vmem:[%s12654_s10 + $0x20] sm:$0xff]  ;;  %s12618_s10 = smov 10   ;;  %s12622_s22 = smov 13  }
   0xc   :  { %v177_v13 = vld [vmem:[%s8717_s25] sm:$0xff]  ;;  %v179_v14 = vld [vmem:[%s8717_s25 + $0x10] sm:$0xff]  ;;  %v178_v15 = vld [vmem:[%s8717_s25 + $0x8] sm:$0xff]  ;;  %s12966_s13 = sld [smem:[%s15271_s0 + %s12618_s10]]   ;;  %s12623_s26 = smov 14  }
   0xd   :  { %v180_v16 = vld [vmem:[%s8717_s25 + $0x18] sm:$0xff]  ;;  %v182_v17 = vld [vmem:[%s8717_s25 + $0x28] sm:$0xff]  ;;  %v181_v18 = vld [vmem:[%s8717_s25 + $0x20] sm:$0xff]  ;;  %s13082_s25 = sld [smem:[%s15271_s0 + %s12622_s22]]   ;;  %s12624_s1 = smov 15  }
   0xe   :  { %v11845_v26 = vld [vmem:[%s12665_s21] ss:$0 sm:$0xff]  ;;  %v270_v43 = vld [vmem:[%s12710_s29 + $0x8] sm:$0xff]  ;;  %v272_v44 = vld [vmem:[%s12710_s29 + $0x18] sm:$0xff]  ;;  %s13063_s21 = sld [smem:[%s15271_s0 + %s12620_s18]]   ;;  %s12625_s7 = smov 16  }
   0xf   :  { %v269_v45 = vld [vmem:[%s12710_s29] sm:$0xff]  ;;  %v11725_v46 = vpack.i.bf16 %v272_v44, %v270_v43  ;;  %v271_v47 = vld [vmem:[%s12710_s29 + $0x10] sm:$0xff]  ;;  %v274_v50 = vld [vmem:[%s12710_s29 + $0x28] sm:$0xff]  ;;  %s13210_s6 = sld [smem:[%s15271_s0 + %s12624_s1]]   ;;  %s12626_s12 = smov 17  }
  0x10   :  { %v11720_v48 = vpack.i.bf16 %v271_v47, %v269_v45  ;;  %v276_v51 = vld [vmem:[%s12710_s29 + $0x38] sm:$0xff]  ;;  %v273_v53 = vld [vmem:[%s12710_s29 + $0x20] sm:$0xff]  ;;  %v275_v54 = vld [vmem:[%s12710_s29 + $0x30] sm:$0xff]  ;;  %s13228_s11 = sld [smem:[%s15271_s0 + %s12625_s7]]   ;;  %s12627_s18 = smov 18  }
  0x11   :  { %145 = vperm.xlu1 %11713, %v136_v7   ;;  %151 = vperm.xlu2 %11714, %v138_v10   ;;  %v11740_v56 = vpack.i.bf16 %v276_v51, %v274_v50  ;;  %v11735_v57 = vpack.i.bf16 %v275_v54, %v273_v53  ;;  %v278_v59 = vld [vmem:[%s12710_s29 + $0x48] sm:$0xff]  ;;  %v280_v60 = vld [vmem:[%s12710_s29 + $0x58] sm:$0xff]  ;;  %v277_v61 = vld [vmem:[%s12710_s29 + $0x40] sm:$0xff]  ;;  %s13244_s16 = sld [smem:[%s15271_s0 + %s12626_s12]]   ;;  %s12628_s22 = smov 19  }
  0x12   :  { %327 = vperm.xlu0 %11712, %v323_v8   ;;  %v279_v62 = vld [vmem:[%s12710_s29 + $0x50] sm:$0xff]  ;;  %v11755_v1 = vpack.i.bf16 %v280_v60, %v278_v59  ;;  %v11235_v47 = vld [vmem:[%s12795_s4 + $0xc8] sm:$0xf0]  ;;  %v8958_v50 = vld [vmem:[%s12795_s4 + $0x174] sm:$0xf0]  ;;  %s13088_s29 = sld [smem:[%s15271_s0 + %s12623_s26]]   ;;  %s12629_s27 = smov 20  }
  0x13   :  { %8761 = vmatmul.msk.f32.gmra.mxu0 %vm289_vm1, %v282_v9  ;;  %v11750_v2 = vpack.i.bf16 %v279_v62, %v277_v61  ;;  %v8956_v9 = vld [vmem:[%s12795_s4 + $0x168] sm:$0xf]  ;;  %v11256_v10 = vld [vmem:[%s12795_s4 + $0x170] sm:$0xf0]  ;;  %v8964_v51 = vld [vmem:[%s12795_s4 + $0x170] sm:$0xf]  ;;  %s13274_s26 = sld [smem:[%s15271_s0 + %s12628_s22]]  }
  0x14   :  { %v11257_v53 = vld [vmem:[%s12795_s4 + $0x178] sm:$0xf0]  ;;  %v8860_v61 = vld [vmem:[%s12795_s4 + $0xa8] sm:$0xf]  ;;  %v11232_v62 = vld [vmem:[%s12795_s4 + $0xb0] sm:$0xf0]  ;;  %s13296_s2 = sld [smem:[%s15271_s0 + %s12629_s27]]  }
  0x15   :  { %vm523_vm1 = vcmask 261120   ;;  %s12630_s3 = smov 21   ;;  %s12631_s12 = smov 22  }
  0x16   :  { %s13330_s10 = sld [smem:[%s15271_s0 + %s12630_s3]]  }
  0x19   :  { %157 = vperm.xlu1 %11713, %v140_v11   ;;  %184 = vperm.xlu2 %11714, %v177_v13   ;;  %v8957_v11 = vor.u32 %v11256_v10, %v8956_v9  ;;  %v11253_v13 = vld [vmem:[%s12795_s4 + $0x158] sm:$0xf0]  ;;  %v8861_v9 = vor.u32 %v11232_v62, %v8860_v61  ;;  %v11231_v10 = vld [vmem:[%s12795_s4 + $0xac] sm:$0xf] }
  0x1a   :  { %154 = vperm.xlu0 %11712, %v139_v12   ;;  %v8944_v12 = vld [vmem:[%s12795_s4 + $0x150] sm:$0xf] }
  0x1b   :  { %894 = vmatpush.bf16.msrb.mxu0 %v8957_v11  ;;  %v8862_v11 = vld [vmem:[%s12795_s4 + $0xb4] sm:$0xf0]  ;;  %870 = vmatpush.bf16.msra.mxu3 %v8861_v9  ;;  %v8812_v9 = vld [vmem:[%s12795_s4 + $0x48] sm:$0xf] }
  0x21   :  { %190 = vperm.xlu1 %11713, %v179_v14   ;;  %193 = vperm.xlu2 %11714, %v180_v16   ;;  %v8945_v14 = vor.u32 %v11253_v13, %v8944_v12  ;;  %v11250_v16 = vld [vmem:[%s12795_s4 + $0x140] sm:$0xf0]  ;;  %v8865_v13 = vor.u32 %v11231_v10, %v8862_v11  ;;  %v11220_v10 = vld [vmem:[%s12795_s4 + $0x50] sm:$0xf0] }
  0x22   :  { %187 = vperm.xlu0 %11712, %v178_v15   ;;  %v8932_v15 = vld [vmem:[%s12795_s4 + $0x138] sm:$0xf]  ;;  %v11254_v12 = vld [vmem:[%s12795_s4 + $0x160] sm:$0xf0] }
  0x23   :  { %895 = vmatpush.bf16.msrb.mxu0 %v8945_v14  ;;  %v11249_v14 = vld [vmem:[%s12795_s4 + $0x13c] sm:$0xf] }
  0x29   :  { %199 = vperm.xlu1 %11713, %v182_v17   ;;  %v8933_v17 = vor.u32 %v11250_v16, %v8932_v15  ;;  %v8934_v15 = vld [vmem:[%s12795_s4 + $0x144] sm:$0xf0] }
  0x2a   :  { %196 = vperm.xlu0 %11712, %v181_v18  }
  0x2b   :  { %896 = vmatpush.bf16.msrb.mxu0 %v8933_v17  ;;  %v8848_v17 = vld [vmem:[%s12795_s4 + $0x90] sm:$0xf] }
  0x31   :  { %11726 = vrot.lane.b32.xlu1 %v11725_v46, %s12614_s30  ;;  %v8872_v46 = vld [vmem:[%s12795_s4 + $0xc0] sm:$0xf] }
  0x32   :  { %11721 = vrot.lane.b32.xlu0 %v11720_v48, %s12614_s30  ;;  %v11255_v48 = vld [vmem:[%s12795_s4 + $0x16c] sm:$0xf]  ;;  %v8873_v60 = vor.u32 %v11235_v47, %v8872_v46 }
  0x33   :  { %v8961_v54 = vor.u32 %v11255_v48, %v8958_v50 }
  0x39   :  { %11741 = vrot.lane.b32.xlu1 %v11740_v56, %s12614_s30  ;;  %v11252_v56 = vld [vmem:[%s12795_s4 + $0x154] sm:$0xf] }
  0x3a   :  { %11736 = vrot.lane.b32.xlu0 %v11735_v57, %s12614_s30  ;;  %v8946_v57 = vld [vmem:[%s12795_s4 + $0x15c] sm:$0xf0] }
  0x41   :  { %11756 = vrot.lane.b32.xlu1 %v11755_v1, %s12614_s30 }
  0x42   :  { %11751 = vrot.lane.b32.xlu0 %v11750_v2, %s12614_s30  ;;  %v8965_v2 = vor.u32 %v11257_v53, %v8964_v51  ;;  %v11243_v53 = vld [vmem:[%s12795_s4 + $0x10c] sm:$0xf] }
  0x63   :  { %v149_v19 = vpop.permute.xlu2 %148 }
  0x64   :  { %vm161_vm7 = vcmp.eq.s32.totalorder %v12685_v30, %v149_v19  ;;  %v8920_v19 = vld [vmem:[%s12795_s4 + $0x120] sm:$0xf] }
  0x65   :  { %v12735_v52 = vsel %vm161_vm7, 1.0, %v15272_v35 }
  0x6b   :  { %v12679_v21 = vpop.permute.xlu2 %151 }
  0x6c   :  { %vm162_vm9 = vcmp.eq.s32.totalorder %v12685_v30, %v12679_v21 }
  0x6d   :  { %v12756_v63 = vsel %vm162_vm9, 1.0, %v15272_v35 }
  0x73   :  { %v185_v27 = vpop.permute.xlu2 %184 }
  0x74   :  { %vm201_vm3 = vcmp.eq.s32.totalorder %v12685_v30, %v185_v27  ;;  %v8896_v27 = vld [vmem:[%s12795_s4 + $0xf0] sm:$0xf] }
  0x75   :  { %v12697_v38 = vsel %vm201_vm3, 1.0, %v15272_v35 }
  0x7b   :  { %v143_v22 = vpop.permute.xlu1 %142  ;;  %v194_v58 = vpop.permute.xlu2 %193 }
  0x7c   :  { %v333_v20 = vpop.permute.xlu0 %332  ;;  %vm159_vm2 = vcmp.eq.s32.totalorder %v12685_v30, %v143_v22  ;;  %vm204_vm10 = vcmp.eq.s32.totalorder %v12685_v30, %v194_v58  ;;  %v8908_v22 = vld [vmem:[%s12795_s4 + $0x108] sm:$0xf] }
  0x7d   :  { %v12692_v36 = vsel %vm159_vm2, 1.0, %v15272_v35  ;;  %v12759_v0 = vsel %vm204_vm10, 1.0, %v15272_v35  ;;  %vm1267_vm2 = vcmask 15360  }
  0x83   :  { %v146_v28 = vpop.permute.xlu1 %145 }
  0x84   :  { %v328_v23 = vpop.permute.xlu0 %327  ;;  %vm160_vm5 = vcmp.eq.s32.totalorder %v12685_v30, %v146_v28  ;;  %v11241_v28 = vld [vmem:[%s12795_s4 + $0xf8] sm:$0xf0] }
  0x85   :  { %v12715_v41 = vsel %vm160_vm5, 1.0, %v15272_v35 }
  0x88   :  { %v317_v24 = vpop.f32.mrf.mxu0 }
  0x89   :  { %v318_v32 = vadd.f32 %v11845_v26, %v317_v24 }
  0x8b   :  { %v12694_v37 = vmul.f32 %v328_v23, %v318_v32  ;;  %v158_v39 = vpop.permute.xlu1 %157  ;;  %v11244_v23 = vld [vmem:[%s12795_s4 + $0x110] sm:$0xf0]  ;;  %v11238_v32 = vld [vmem:[%s12795_s4 + $0xe0] sm:$0xf0] }
  0x8c   :  { %v12682_v29 = vpop.permute.xlu0 %154  ;;  %vm164_vm13 = vcmp.eq.s32.totalorder %v12685_v30, %v158_v39  ;;  %v8909_v24 = vor.u32 %v11244_v23, %v8908_v22  ;;  %v8937_v23 = vor.u32 %v11249_v14, %v8934_v15  ;;  %v11219_v14 = vld [vmem:[%s12795_s4 + $0x4c] sm:$0xf]  ;;  %v8814_v15 = vld [vmem:[%s12795_s4 + $0x54] sm:$0xf0] }
  0x8d   :  { %15277 = vst [vmem:[#allocation4_spill] sm:$0xff] %v12694_v37  ;;  %vm163_vm11 = vcmp.eq.s32.totalorder %v12685_v30, %v12682_v29  ;;  %v12783_v7 = vsel %vm164_vm13, 1.0, %v15272_v35 }
  0x8e   :  { %v12771_v4 = vsel %vm163_vm11, 1.0, %v15272_v35 }
  0x90   :  { %v320_v31 = vpop.f32.mrf.mxu0 }
  0x91   :  { %v321_v33 = vadd.f32 %v11845_v26, %v320_v31  ;;  %v8884_v31 = vld [vmem:[%s12795_s4 + $0xd8] sm:$0xf] }
  0x93   :  { %v12689_v34 = vmul.f32 %v333_v20, %v321_v33  ;;  %v191_v49 = vpop.permute.xlu1 %190  ;;  %v11247_v20 = vld [vmem:[%s12795_s4 + $0x128] sm:$0xf0] }
  0x94   :  { %v188_v40 = vpop.permute.xlu0 %187  ;;  %vm203_vm8 = vcmp.eq.s32.totalorder %v12685_v30, %v191_v49  ;;  %v8921_v21 = vor.u32 %v11247_v20, %v8920_v19  ;;  %v11228_v19 = vld [vmem:[%s12795_s4 + $0x94] sm:$0xf] }
  0x95   :  { %15276 = vst [vmem:[#allocation3_spill] sm:$0xff] %v12689_v34  ;;  %370 = vmatpush.msra.mxu1 %v12689_v34  ;;  %423 = vmatpush.msra.mxu2 %v12689_v34  ;;  %vm202_vm6 = vcmp.eq.s32.totalorder %v12685_v30, %v188_v40  ;;  %v12740_v55 = vsel %vm203_vm8, 1.0, %v15272_v35  ;;  %v8885_v40 = vor.u32 %v11238_v32, %v8884_v31  ;;  %v11226_v31 = vld [vmem:[%s12795_s4 + $0x80] sm:$0xf0]  ;;  %v11225_v32 = vld [vmem:[%s12795_s4 + $0x7c] sm:$0xf] }
  0x96   :  { %v12718_v42 = vsel %vm202_vm6, 1.0, %v15272_v35  ;;  %897 = vmatpush.bf16.msrb.mxu0 %v8921_v21  ;;  %v8850_v21 = vld [vmem:[%s12795_s4 + $0x9c] sm:$0xf0]  ;;  %vm230_vm6 = vcmask 392192  }
  0x97   :  { %371 = vmatpush.msra.mxu1 %v12694_v37  ;;  %424 = vmatpush.msra.mxu2 %v12694_v37 }
  0x98   :  { %8762 = vmatmul.msk.f32.vlgmr.msra.gmra.mxu1 %vm337_vm4, %v12697_v38  ;;  %8768 = vmatmul.msk.f32.vlgmr.msra.gmra.mxu2 %vm337_vm4, %v12692_v36 }
  0x99   :  { %942 = vmatpush.bf16.msrb.mxu2 %v8961_v54  ;;  %918 = vmatpush.bf16.msrb.mxu1 %v8865_v13  ;;  %v8910_v54 = vld [vmem:[%s12795_s4 + $0x114] sm:$0xf0]  ;;  %v8916_v13 = vld [vmem:[%s12795_s4 + $0x110] sm:$0xf] }
  0x9a   :  { %898 = vmatpush.bf16.msrb.mxu0 %v8909_v24  ;;  %v8940_v24 = vld [vmem:[%s12795_s4 + $0x140] sm:$0xf] }
  0x9b   :  { %v200_v6 = vpop.permute.xlu1 %199 }
  0x9c   :  { %v197_v3 = vpop.permute.xlu0 %196  ;;  %vm206_vm14 = vcmp.eq.s32.totalorder %v12685_v30, %v200_v6  ;;  %v8952_v6 = vld [vmem:[%s12795_s4 + $0x158] sm:$0xf] }
  0x9d   :  { %vm205_vm12 = vcmp.eq.s32.totalorder %v12685_v30, %v197_v3  ;;  %v12786_v8 = vsel %vm206_vm14, 1.0, %v15272_v35  ;;  %v8897_v30 = vor.u32 %v11241_v28, %v8896_v27  ;;  %v8949_v3 = vor.u32 %v11252_v56, %v8946_v57  ;;  %v11246_v28 = vld [vmem:[%s12795_s4 + $0x124] sm:$0xf]  ;;  %v8824_v56 = vld [vmem:[%s12795_s4 + $0x60] sm:$0xf] }
  0x9e   :  { %v12774_v5 = vsel %vm205_vm12, 1.0, %v15272_v35  ;;  %v8953_v22 = vor.u32 %v11254_v12, %v8952_v6  ;;  %v8853_v27 = vor.u32 %v11228_v19, %v8850_v21  ;;  %v8913_v12 = vor.u32 %v11243_v53, %v8910_v54  ;;  %v8898_v19 = vld [vmem:[%s12795_s4 + $0xfc] sm:$0xf0]  ;;  %v11234_v53 = vld [vmem:[%s12795_s4 + $0xc4] sm:$0xf] }
  0x9f   :  { %899 = vmatpush.bf16.msrb.mxu0 %v8897_v30  ;;  %943 = vmatpush.bf16.msrb.mxu2 %v8949_v3  ;;  %v8836_v30 = vld [vmem:[%s12795_s4 + $0x78] sm:$0xf]  ;;  %v8874_v54 = vld [vmem:[%s12795_s4 + $0xcc] sm:$0xf0] }
  0xa0   :  { %8763 = vmatmul.msk.f32.gmra.mxu1 %vm337_vm4, %v12718_v42  ;;  %8769 = vmatmul.msk.f32.gmra.mxu2 %vm337_vm4, %v12715_v41 }
  0xa1   :  { %919 = vmatpush.bf16.msrb.mxu1 %v8853_v27 }
  0xa3   :  { %v11727_v33 = vpop.permute.xlu1 %11726  ;;  %900 = vmatpush.bf16.msrb.mxu0 %v8885_v40  ;;  %v11248_v40 = vld [vmem:[%s12795_s4 + $0x130] sm:$0xf0]  ;;  %944 = vmatpush.bf16.msrb.mxu2 %v8937_v23  ;;  %v8817_v23 = vor.u32 %v11219_v14, %v8814_v15 }
  0xa4   :  { %v11722_v39 = vpop.permute.xlu0 %11721  ;;  %v11729_v43 = vunpack.i.h.bf16 %v11727_v33  ;;  %v11728_v44 = vunpack.i.l.bf16 %v11727_v33 }
  0xa5   :  { %v12812_v45 = vunpack.i.h.bf16 %v11722_v39  ;;  %v12817_v49 = vunpack.i.l.bf16 %v11722_v39  ;;  %v8928_v39 = vld [vmem:[%s12795_s4 + $0x128] sm:$0xf] }
  0xa6   :  { %v8929_v11 = vor.u32 %v11248_v40, %v8928_v39  ;;  %v11237_v39 = vld [vmem:[%s12795_s4 + $0xdc] sm:$0xf]  ;;  %v8886_v40 = vld [vmem:[%s12795_s4 + $0xe4] sm:$0xf0] }
  0xa7   :  { %v506_v58 = vsel %vm504_vm15, %v12812_v45, %v11729_v43  ;;  %v505_v59 = vsel %vm504_vm15, %v12817_v49, %v11728_v44  ;;  %901 = vmatpush.bf16.msrb.mxu0 %v8873_v60  ;;  %v8837_v43 = vor.u32 %v11226_v31, %v8836_v30  ;;  %v8838_v44 = vld [vmem:[%s12795_s4 + $0x84] sm:$0xf0]  ;;  %v8826_v60 = vld [vmem:[%s12795_s4 + $0x6c] sm:$0xf0]  ;;  %v8904_v30 = vld [vmem:[%s12795_s4 + $0xf8] sm:$0xf] }
  0xa8   :  { %8764 = vmatmul.msk.f32.gmra.mxu1 %vm337_vm4, %v12740_v55  ;;  %8770 = vmatmul.msk.f32.gmra.mxu2 %vm337_vm4, %v12735_v52  ;;  %v12836_v16 = vpack.c.bf16 %v506_v58, %v505_v59  ;;  %v8841_v51 = vor.u32 %v11225_v32, %v8838_v44  ;;  %v11223_v58 = vld [vmem:[%s12795_s4 + $0x68] sm:$0xf0]  ;;  %v11222_v59 = vld [vmem:[%s12795_s4 + $0x64] sm:$0xf]  ;;  %v11216_v31 = vld [vmem:[%s12795_s4 + $0x34] sm:$0xf] }
  0xa9   :  { %v8825_v62 = vor.u32 %v11223_v58, %v8824_v56  ;;  %v8802_v32 = vld [vmem:[%s12795_s4 + $0x3c] sm:$0xf0]  ;;  %v8788_v56 = vld [vmem:[%s12795_s4 + $0x18] sm:$0xf] }
  0xaa   :  { %902 = vmatmul.bf16.vlgmr.msrb.gmra.mxu0 %v12836_v16  ;;  %920 = vmatpush.bf16.msrb.mxu1 %v8841_v51  ;;  %v11239_v51 = vld [vmem:[%s12795_s4 + $0xe8] sm:$0xf0] }
  0xab   :  { %990 = vmatpush.bf16.msra.mxu0 %v8965_v2  ;;  %v11742_v33 = vpop.permute.xlu1 %11741 }
  0xac   :  { %v11737_v47 = vpop.permute.xlu0 %11736  ;;  %v11744_v61 = vunpack.i.h.bf16 %v11742_v33  ;;  %v11743_v2 = vunpack.i.l.bf16 %v11742_v33  ;;  %v11242_v33 = vld [vmem:[%s12795_s4 + $0x100] sm:$0xf0] }
  0xad   :  { %v12860_v3 = vunpack.i.h.bf16 %v11737_v47  ;;  %v12862_v6 = vunpack.i.l.bf16 %v11737_v47  ;;  %v8905_v47 = vor.u32 %v11242_v33, %v8904_v30  ;;  %v8856_v33 = vld [vmem:[%s12795_s4 + $0x98] sm:$0xf] }
  0xaf   :  { %991 = vmatpush.bf16.msra.mxu0 %v8953_v22  ;;  %v508_v21 = vsel %vm504_vm15, %v12860_v3, %v11744_v61  ;;  %v507_v22 = vsel %vm504_vm15, %v12862_v6, %v11743_v2  ;;  %v8877_v2 = vor.u32 %v11234_v53, %v8874_v54 }
  0xb0   :  { %8765 = vmatmul.msk.f32.gmra.mxu1 %vm337_vm4, %v12759_v0  ;;  %8771 = vmatmul.msk.f32.gmra.mxu2 %vm337_vm4, %v12756_v63 }
  0xb3   :  { %v11757_v58 = vpop.permute.xlu1 %11756 }
  0xb4   :  { %v11752_v61 = vpop.permute.xlu0 %11751 }
  0xb5   :  { %v12898_v14 = vunpack.i.l.bf16 %v11752_v61 }
  0xb8   :  { %8766 = vmatmul.msk.f32.gmra.mxu1 %vm337_vm4, %v12774_v5  ;;  %8772 = vmatmul.msk.f32.gmra.mxu2 %vm337_vm4, %v12771_v4 }
  0xc0   :  { %8767 = vmatmul.msk.f32.gmra.mxu1 %vm337_vm4, %v12786_v8  ;;  %8773 = vmatmul.msk.f32.gmra.mxu2 %vm337_vm4, %v12783_v7 }
 0x115   :  { %v373_v30 = vpop.f32.mrf.mxu1 }
 0x11b   :  { %v426_v18 = vpop.f32.mrf.mxu2 }
 0x123   :  { %v429_v26 = vpop.f32.mrf.mxu2 }
 0x124   :  { %v11715_v29 = vpack.i.bf16 %v429_v26, %v426_v18  ;;  %v11229_v18 = vld [vmem:[%s12795_s4 + $0x98] sm:$0xf0]  ;;  %v11251_v26 = vld [vmem:[%s12795_s4 + $0x148] sm:$0xf0] }
 0x125   :  { %v8849_v20 = vor.u32 %v11229_v18, %v8848_v17  ;;  %v8941_v48 = vor.u32 %v11251_v26, %v8940_v24  ;;  %v11245_v17 = vld [vmem:[%s12795_s4 + $0x118] sm:$0xf0]  ;;  %v11240_v18 = vld [vmem:[%s12795_s4 + $0xf4] sm:$0xf]  ;;  %v8800_v24 = vld [vmem:[%s12795_s4 + $0x30] sm:$0xf] }
 0x126   :  { %11716 = vrot.lane.b32.xlu2 %v11715_v29, %s12616_s5  ;;  %v8922_v29 = vld [vmem:[%s12795_s4 + $0x12c] sm:$0xf0]  ;;  %v11217_v26 = vld [vmem:[%s12795_s4 + $0x38] sm:$0xf0] }
 0x127   :  { %871 = vmatpush.bf16.msra.mxu3 %v8849_v20  ;;  %v8925_v50 = vor.u32 %v11246_v28, %v8922_v29  ;;  %992 = vmatpush.bf16.msra.mxu0 %v8941_v48  ;;  %v8813_v20 = vor.u32 %v11220_v10, %v8812_v9  ;;  %v8917_v28 = vor.u32 %v11245_v17, %v8916_v13  ;;  %v8880_v9 = vld [vmem:[%s12795_s4 + $0xc8] sm:$0xf]  ;;  %v11236_v10 = vld [vmem:[%s12795_s4 + $0xd0] sm:$0xf0]  ;;  %v12896_v13 = vunpack.i.h.bf16 %v11752_v61 }
 0x128   :  { %v8901_v29 = vor.u32 %v11240_v18, %v8898_v19  ;;  %v8801_v44 = vor.u32 %v11217_v26, %v8800_v24  ;;  %v8889_v48 = vor.u32 %v11237_v39, %v8886_v40  ;;  %v8881_v15 = vor.u32 %v11236_v10, %v8880_v9  ;;  %v11211_v24 = vld [vmem:[%s12795_s4 + $0x8] sm:$0xf0]  ;;  %v11210_v26 = vld [vmem:[%s12795_s4 + $0x4] sm:$0xf]  ;;  %v8820_v9 = vld [vmem:[%s12795_s4 + $0x50] sm:$0xf] }
 0x129   :  { %945 = vmatpush.bf16.msrb.mxu2 %v8925_v50  ;;  %v8892_v50 = vld [vmem:[%s12795_s4 + $0xe0] sm:$0xf]  ;;  %v11230_v40 = vld [vmem:[%s12795_s4 + $0xa0] sm:$0xf0]  ;;  %v11221_v10 = vld [vmem:[%s12795_s4 + $0x58] sm:$0xf0] }
 0x12b   :  { %v432_v1 = vpop.f32.mrf.mxu2  ;;  %872 = vmatpush.bf16.msra.mxu3 %v8837_v43  ;;  %993 = vmatpush.bf16.msra.mxu0 %v8929_v11  ;;  %v12884_v43 = vpack.c.bf16 %v508_v21, %v507_v22  ;;  %v11759_v11 = vunpack.i.h.bf16 %v11757_v58  ;;  %v8790_v21 = vld [vmem:[%s12795_s4 + $0x24] sm:$0xf0] }
 0x12d   :  { %946 = vmatpush.bf16.msrb.mxu2 %v8913_v12  ;;  %907 = vmatmul.bf16.gmra.mxu0 %v12884_v43  ;;  %v11758_v12 = vunpack.i.l.bf16 %v11757_v58  ;;  %v510_v17 = vsel %vm504_vm15, %v12896_v13, %v11759_v11  ;;  %v8808_v11 = vld [vmem:[%s12795_s4 + $0x38] sm:$0xf] }
 0x12f   :  { %873 = vmatpush.bf16.msra.mxu3 %v8825_v62  ;;  %994 = vmatpush.bf16.msra.mxu0 %v8917_v28  ;;  %v8893_v62 = vor.u32 %v11239_v51, %v8892_v50  ;;  %v509_v18 = vsel %vm504_vm15, %v12898_v14, %v11758_v12  ;;  %v8778_v28 = vld [vmem:[%s12795_s4 + $0xc] sm:$0xf0]  ;;  %v8821_v12 = vor.u32 %v11221_v10, %v8820_v9  ;;  %v11269_v9 = vld [vmem:[%s12956_s9 + $0x58] sm:$0xff] }
 0x130   :  { %v12905_v19 = vpack.c.bf16 %v510_v17, %v509_v18  ;;  %v8796_v18 = vld [vmem:[%s12795_s4 + $0x20] sm:$0xf] }
 0x131   :  { %947 = vmatpush.bf16.msrb.mxu2 %v8901_v29  ;;  %v8781_v29 = vor.u32 %v11210_v26, %v8778_v28 }
 0x133   :  { %v435_v46 = vpop.f32.mrf.mxu2  ;;  %874 = vmatpush.bf16.msra.mxu3 %v8813_v20  ;;  %995 = vmatpush.bf16.msra.mxu0 %v8905_v47  ;;  %v11213_v20 = vld [vmem:[%s12795_s4 + $0x1c] sm:$0xf]  ;;  %v8844_v47 = vld [vmem:[%s12795_s4 + $0x80] sm:$0xf] }
 0x134   :  { %v11730_v57 = vpack.i.bf16 %v435_v46, %v432_v1  ;;  %v8829_v1 = vor.u32 %v11222_v59, %v8826_v60  ;;  %v8805_v46 = vor.u32 %v11216_v31, %v8802_v32  ;;  %v8793_v22 = vor.u32 %v11213_v20, %v8790_v21  ;;  %v8868_v31 = vld [vmem:[%s12795_s4 + $0xb0] sm:$0xf]  ;;  %v11233_v32 = vld [vmem:[%s12795_s4 + $0xb8] sm:$0xf0]  ;;  %v11215_v20 = vld [vmem:[%s12795_s4 + $0x28] sm:$0xf0] }
 0x135   :  { %948 = vmatpush.bf16.msrb.mxu2 %v8889_v48  ;;  %v8869_v39 = vor.u32 %v11233_v32, %v8868_v31  ;;  %v11227_v48 = vld [vmem:[%s12795_s4 + $0x88] sm:$0xf0] }
 0x136   :  { %11731 = vrot.lane.b32.xlu2 %v11730_v57, %s12616_s5  ;;  %921 = vmatpush.bf16.msrb.mxu1 %v8829_v1  ;;  %v11214_v57 = vld [vmem:[%s12795_s4 + $0x20] sm:$0xf0]  ;;  %v8845_v50 = vor.u32 %v11227_v48, %v8844_v47 }
 0x137   :  { %875 = vmatpush.bf16.msra.mxu3 %v8801_v44  ;;  %v8789_v59 = vor.u32 %v11214_v57, %v8788_v56  ;;  %996 = vmatpush.bf16.msra.mxu0 %v8893_v62  ;;  %v376_v44 = vpop.f32.mrf.mxu1  ;;  %v8832_v56 = vld [vmem:[%s12795_s4 + $0x68] sm:$0xf]  ;;  %v11224_v57 = vld [vmem:[%s12795_s4 + $0x70] sm:$0xf0] }
 0x138   :  { %v8833_v58 = vor.u32 %v11224_v57, %v8832_v56  ;;  %v11273_v57 = vld [vmem:[%s12956_s9 + $0x78] sm:$0xff] }
 0x139   :  { %949 = vmatpush.bf16.msrb.mxu2 %v8877_v2 }
 0x13a   :  { %922 = vmatpush.bf16.msrb.mxu1 %v8817_v23  ;;  %v8776_v23 = vld [vmem:[%s12795_s4] sm:$0xf] }
 0x13b   :  { %v438_v27 = vpop.f32.mrf.mxu2  ;;  %876 = vmatpush.bf16.msra.mxu3 %v8789_v59  ;;  %997 = vmatpush.bf16.msra.mxu0 %v8881_v15  ;;  %v11218_v15 = vld [vmem:[%s12795_s4 + $0x40] sm:$0xf0] }
 0x13c   :  { %950 = vmatmul.bf16.vlgmr.msrb.gmra.mxu2 %v12836_v16  ;;  %v8809_v17 = vor.u32 %v11218_v15, %v8808_v11  ;;  %v11262_v11 = vld [vmem:[%s12956_s9 + $0x20] sm:$0xff]  ;;  %v11268_v15 = vld [vmem:[%s12956_s9 + $0x50] sm:$0xff] }
 0x13d   :  { %912 = vmatmul.bf16.gmra.mxu0 %v12905_v19  ;;  %1304 = vmatpush.bf16.msra.mxu2 %v11273_v57 }
 0x13e   :  { %923 = vmatpush.bf16.msrb.mxu1 %v8805_v46  ;;  %v8857_v46 = vor.u32 %v11230_v40, %v8856_v33 }
 0x13f   :  { %v379_v61 = vpop.f32.mrf.mxu1 }
 0x142   :  { %924 = vmatpush.bf16.msrb.mxu1 %v8793_v22  ;;  %v8797_v22 = vor.u32 %v11215_v20, %v8796_v18  ;;  %v11261_v18 = vld [vmem:[%s12956_s9 + $0x18] sm:$0xff] }
 0x143   :  { %v441_v60 = vpop.f32.mrf.mxu2 }
 0x144   :  { %v11745_v1 = vpack.i.bf16 %v441_v60, %v438_v27  ;;  %v8777_v27 = vor.u32 %v11211_v24, %v8776_v23  ;;  %v8784_v23 = vld [vmem:[%s12795_s4 + $0x8] sm:$0xf]  ;;  %v11212_v24 = vld [vmem:[%s12795_s4 + $0x10] sm:$0xf0] }
 0x146   :  { %11746 = vrot.lane.b32.xlu2 %v11745_v1, %s12616_s5  ;;  %877 = vmatpush.bf16.msra.mxu3 %v8777_v27 }
 0x147   :  { %925 = vmatpush.bf16.msrb.mxu1 %v8781_v29  ;;  %v382_v21 = vpop.f32.mrf.mxu1  ;;  %v8785_v29 = vor.u32 %v11212_v24, %v8784_v23  ;;  %v11260_v23 = vld [vmem:[%s12956_s9 + $0x10] sm:$0xff] }
 0x14a   :  { %966 = vmatpush.bf16.msrb.mxu3 %v8869_v39 }
 0x14c   :  { %955 = vmatmul.bf16.gmra.mxu2 %v12884_v43 }
 0x14d   :  { %998 = vmatmul.bf16.vlgmr.msra.gmra.mxu0 %v12836_v16 }
 0x14e   :  { %967 = vmatpush.bf16.msrb.mxu3 %v8857_v46 }
 0x14f   :  { %v385_v40 = vpop.f32.mrf.mxu1 }
 0x152   :  { %968 = vmatpush.bf16.msrb.mxu3 %v8845_v50 }
 0x156   :  { %969 = vmatpush.bf16.msrb.mxu3 %v8833_v58  ;;  %v11272_v58 = vld [vmem:[%s12956_s9 + $0x70] sm:$0xff] }
 0x157   :  { %v388_v48 = vpop.f32.mrf.mxu1  ;;  %1305 = vmatpush.bf16.msra.mxu2 %v11272_v58 }
 0x15a   :  { %970 = vmatpush.bf16.msrb.mxu3 %v8821_v12  ;;  %v12973_v12 = vld [vmem:[%s12966_s13] sm:$0x7] }
 0x15b   :  { %v12983_v20 = vperm.slane %v12973_v12, 1 }
 0x15c   :  { %960 = vmatmul.bf16.gmra.mxu2 %v12905_v19 }
 0x15d   :  { %1003 = vmatmul.bf16.gmra.mxu0 %v12884_v43 }
 0x15e   :  { %971 = vmatpush.bf16.msrb.mxu3 %v8809_v17 }
 0x162   :  { %972 = vmatpush.bf16.msrb.mxu3 %v8797_v22 }
 0x166   :  { %973 = vmatpush.bf16.msrb.mxu3 %v8785_v29 }
 0x16d   :  { %1008 = vmatmul.bf16.gmra.mxu0 %v12905_v19 }
 0x180   :  { %v11717_v51 = vpop.permute.xlu2 %11716 }
 0x181   :  { %v11719_v53 = vunpack.i.h.bf16 %v11717_v51  ;;  %v11718_v54 = vunpack.i.l.bf16 %v11717_v51 }
 0x183   :  { %v524_v59 = vsel %vm523_vm1, %v373_v30, %v11718_v54  ;;  %v525_v60 = vsel %vm523_vm1, %v376_v44, %v11719_v53 }
 0x184   :  { %v530_v62 = vsel %vm504_vm15, %v524_v59, %v12817_v49  ;;  %v531_v2 = vsel %vm504_vm15, %v525_v60, %v12812_v45  ;;  %v11265_v59 = vld [vmem:[%s12956_s9 + $0x38] sm:$0xff]  ;;  %v11271_v60 = vld [vmem:[%s12956_s9 + $0x68] sm:$0xff] }
 0x185   :  { %v536_v1 = vpack.c.bf16 %v531_v2, %v530_v62  ;;  %1280 = vmatpush.bf16.msra.mxu1 %v11265_v59  ;;  %1306 = vmatpush.bf16.msra.mxu2 %v11271_v60  ;;  %v903_v62 = vpop.f32.mrf.mxu0  ;;  %v11270_v2 = vld [vmem:[%s12956_s9 + $0x60] sm:$0xff] }
 0x187   :  { %878 = vmatmul.bf16.vlgmr.msra.gmra.mxu3 %v536_v1  ;;  %926 = vmatmul.bf16.vlgmr.msrb.gmra.mxu1 %v536_v1 }
 0x189   :  { %1307 = vmatpush.bf16.msra.mxu2 %v11270_v2 }
 0x18d   :  { %1308 = vmatpush.bf16.msra.mxu2 %v11269_v9  ;;  %v905_v17 = vpop.f32.mrf.mxu0 }
 0x190   :  { %v11732_v26 = vpop.permute.xlu2 %11731 }
 0x191   :  { %v11734_v27 = vunpack.i.h.bf16 %v11732_v26  ;;  %v11733_v28 = vunpack.i.l.bf16 %v11732_v26  ;;  %1309 = vmatpush.bf16.msra.mxu2 %v11268_v15  ;;  %v12989_v26 = vperm.slane %v12973_v12, 0 }
 0x193   :  { %v526_v30 = vsel %vm523_vm1, %v379_v61, %v11733_v28  ;;  %v527_v31 = vsel %vm523_vm1, %v382_v21, %v11734_v27  ;;  %v11264_v61 = vld [vmem:[%s12956_s9 + $0x30] sm:$0xff]  ;;  %v11267_v21 = vld [vmem:[%s12956_s9 + $0x48] sm:$0xff]  ;;  %v11266_v28 = vld [vmem:[%s12956_s9 + $0x40] sm:$0xff] }
 0x194   :  { %v532_v32 = vsel %vm504_vm15, %v526_v30, %v12862_v6  ;;  %v533_v33 = vsel %vm504_vm15, %v527_v31, %v12860_v3  ;;  %1281 = vmatpush.bf16.msra.mxu1 %v11264_v61  ;;  %v11259_v30 = vld [vmem:[%s12956_s9 + $0x8] sm:$0xff] }
 0x195   :  { %v538_v39 = vpack.c.bf16 %v533_v33, %v532_v32  ;;  %1310 = vmatpush.bf16.msra.mxu2 %v11267_v21 }
 0x197   :  { %883 = vmatmul.bf16.gmra.mxu3 %v538_v39  ;;  %931 = vmatmul.bf16.gmra.mxu1 %v538_v39 }
 0x199   :  { %1311 = vmatpush.bf16.msra.mxu2 %v11266_v28 }
 0x1a0   :  { %v11747_v44 = vpop.permute.xlu2 %11746 }
 0x1a1   :  { %v11749_v46 = vunpack.i.h.bf16 %v11747_v44  ;;  %v11748_v47 = vunpack.i.l.bf16 %v11747_v44 }
 0x1a3   :  { %v528_v50 = vsel %vm523_vm1, %v385_v40, %v11748_v47  ;;  %v529_v51 = vsel %vm523_vm1, %v388_v48, %v11749_v46  ;;  %v11258_v46 = vld [vmem:[%s12956_s9] sm:$0xff] }
 0x1a4   :  { %v534_v53 = vsel %vm504_vm15, %v528_v50, %v12898_v14  ;;  %v535_v54 = vsel %vm504_vm15, %v529_v51, %v12896_v13 }
 0x1a5   :  { %v540_v56 = vpack.c.bf16 %v535_v54, %v534_v53 }
 0x1a7   :  { %888 = vmatmul.bf16.gmra.mxu3 %v540_v56  ;;  %936 = vmatmul.bf16.gmra.mxu1 %v540_v56 }
 0x1aa   :  { %v908_v32 = vpop.f32.mrf.mxu0 }
 0x1b2   :  { %v910_v61 = vpop.f32.mrf.mxu0 }
 0x1b7   :  { %974 = vmatmul.bf16.vlgmr.msrb.gmra.mxu3 %v536_v1  ;;  %v11263_v1 = vld [vmem:[%s12956_s9 + $0x28] sm:$0xff] }
 0x1b8   :  { %1282 = vmatpush.bf16.msra.mxu1 %v11263_v1 }
 0x1bc   :  { %1283 = vmatpush.bf16.msra.mxu1 %v11262_v11 }
 0x1bf   :  { %v951_v10 = vpop.f32.mrf.mxu2 }
 0x1c0   :  { %1284 = vmatpush.bf16.msra.mxu1 %v11261_v18 }
 0x1c4   :  { %1285 = vmatpush.bf16.msra.mxu1 %v11260_v23 }
 0x1c7   :  { %979 = vmatmul.bf16.gmra.mxu3 %v538_v39  ;;  %v953_v27 = vpop.f32.mrf.mxu2 }
 0x1c8   :  { %1286 = vmatpush.bf16.msra.mxu1 %v11259_v30 }
 0x1cc   :  { %1287 = vmatpush.bf16.msra.mxu1 %v11258_v46 }
 0x1cf   :  { %v956_v53 = vpop.f32.mrf.mxu2 }
 0x1d7   :  { %984 = vmatmul.bf16.gmra.mxu3 %v540_v56  ;;  %v958_v23 = vpop.f32.mrf.mxu2 }
 0x204   :  { %v927_v22 = vpop.f32.mrf.mxu1 }
 0x205   :  { %v928_v24 = vadd.f32 %v927_v22, %v12983_v20 }
 0x207   :  { %v12992_v29 = vadd.f32 %v951_v10, %v928_v24 }
 0x209   :  { %v1015_v31 = vsub.f32 0.0, %v12992_v29 }
 0x20a   :  { %v879_v33 = vpop.f32.mrf.mxu3 }
 0x20b   :  { %v1034_v39 = vmul.f32 1.442695, %v1015_v31  ;;  %v880_v40 = vadd.f32 %v879_v33, %v12989_v26 }
 0x20c   :  { %v929_v44 = vpop.f32.mrf.mxu1 }
 0x20d   :  { %11894 = vpow2.f32 %v1034_v39  ;;  %v12998_v47 = vadd.f32 %v903_v62, %v880_v40  ;;  %v930_v48 = vadd.f32 %v929_v44, %v12983_v20  ;;  %v913_v40 = vpop.f32.mrf.mxu0 }
 0x20f   :  { %v1014_v50 = vsub.f32 0.0, %v12998_v47  ;;  %v954_v51 = vadd.f32 %v953_v27, %v930_v48 }
 0x211   :  { %v1032_v54 = vmul.f32 1.442695, %v1014_v50  ;;  %v1018_v56 = vsub.f32 0.0, %v954_v51 }
 0x212   :  { %v881_v57 = vpop.f32.mrf.mxu3 }
 0x213   :  { %v11895_v58 = vpop.eup %11894  ;;  %v1040_v59 = vmul.f32 1.442695, %v1018_v56  ;;  %v882_v60 = vadd.f32 %v881_v57, %v12989_v26  ;;  %11896 = vpow2.f32 %v1032_v54 }
 0x214   :  { %v932_v2 = vpop.f32.mrf.mxu1  ;;  %v1069_v9 = vadd.f32 1.0, %v11895_v58 }
 0x215   :  { %11898 = vpow2.f32 %v1040_v59  ;;  %v906_v62 = vadd.f32 %v905_v17, %v882_v60  ;;  %v933_v1 = vadd.f32 %v932_v2, %v12983_v20  ;;  %v961_v2 = vpop.f32.mrf.mxu2 }
 0x216   :  { %11900 = vrcp.f32 %v1069_v9 }
 0x217   :  { %v1017_v10 = vsub.f32 0.0, %v906_v62  ;;  %v13004_v11 = vadd.f32 %v956_v53, %v933_v1 }
 0x219   :  { %v1038_v15 = vmul.f32 1.442695, %v1017_v10  ;;  %v1021_v18 = vsub.f32 0.0, %v13004_v11  ;;  %v11897_v21 = vpop.eup %11896 }
 0x21a   :  { %v884_v22 = vpop.f32.mrf.mxu3  ;;  %v1068_v31 = vadd.f32 1.0, %v11897_v21 }
 0x21b   :  { %v11899_v24 = vpop.eup %11898  ;;  %11902 = vpow2.f32 %v1038_v15  ;;  %v1046_v27 = vmul.f32 1.442695, %v1021_v18  ;;  %v885_v28 = vadd.f32 %v884_v22, %v12989_v26 }
 0x21c   :  { %v1072_v30 = vadd.f32 1.0, %v11899_v24  ;;  %v934_v17 = vpop.f32.mrf.mxu1  ;;  %v11901_v48 = vpop.eup %11900 }
 0x21d   :  { %v13008_v33 = vadd.f32 %v908_v32, %v885_v28  ;;  %v935_v39 = vadd.f32 %v934_v17, %v12983_v20  ;;  %v1105_v60 = vmul.f32 %v11901_v48, %v12992_v29 }
 0x21e   :  { %11904 = vrcp.f32 %v1072_v30 }
 0x21f   :  { %11906 = vpow2.f32 %v1046_v27  ;;  %v1020_v44 = vsub.f32 0.0, %v13008_v33  ;;  %v13012_v46 = vadd.f32 %v958_v23, %v935_v39  ;;  %v915_v27 = vpop.f32.mrf.mxu0 }
 0x220   :  { %11908 = vrcp.f32 %v1068_v31 }
 0x221   :  { %v11903_v50 = vpop.eup %11902  ;;  %v1044_v53 = vmul.f32 1.442695, %v1020_v44  ;;  %v1024_v54 = vsub.f32 0.0, %v13012_v46 }
 0x222   :  { %v1071_v56 = vadd.f32 1.0, %v11903_v50  ;;  %v886_v57 = vpop.f32.mrf.mxu3 }
 0x223   :  { %11910 = vpow2.f32 %v1044_v53  ;;  %v1052_v32 = vmul.f32 1.442695, %v1024_v54  ;;  %v887_v58 = vadd.f32 %v886_v57, %v12989_v26 }
 0x224   :  { %v11905_v59 = vpop.eup %11904  ;;  %11912 = vrcp.f32 %v1071_v56  ;;  %v937_v1 = vpop.f32.mrf.mxu1 }
 0x225   :  { %v11907_v9 = vpop.eup %11906  ;;  %v1108_v10 = vmul.f32 %v11905_v59, %v954_v51  ;;  %11914 = vpow2.f32 %v1052_v32  ;;  %v13017_v15 = vadd.f32 %v910_v61, %v887_v58  ;;  %v938_v18 = vadd.f32 %v937_v1, %v12983_v20  ;;  %v963_v59 = vpop.f32.mrf.mxu2 }
 0x226   :  { %v11909_v21 = vpop.eup %11908  ;;  %v1075_v28 = vadd.f32 1.0, %v11907_v9 }
 0x227   :  { %v1023_v22 = vsub.f32 0.0, %v13017_v15  ;;  %v13021_v23 = vadd.f32 %v961_v2, %v938_v18  ;;  %v1123_v24 = vpack.c.bf16 %v1108_v10, %v1105_v60  ;;  %v1104_v51 = vmul.f32 %v11909_v21, %v12998_v47  ;;  %v999_v10 = vpop.f32.mrf.mxu0 }
 0x229   :  { %v11911_v30 = vpop.eup %11910  ;;  %v1050_v29 = vmul.f32 1.442695, %v1023_v22  ;;  %v1027_v17 = vsub.f32 0.0, %v13021_v23  ;;  %1312 = vmatmul.bf16.vlgmr.msra.gmra.mxu2 %v1123_v24 }
 0x22a   :  { %v11913_v31 = vpop.eup %11912  ;;  %v889_v61 = vpop.f32.mrf.mxu3  ;;  %v1074_v56 = vadd.f32 1.0, %v11911_v30 }
 0x22b   :  { %v11915_v39 = vpop.eup %11914  ;;  %v1107_v44 = vmul.f32 %v11913_v31, %v906_v62  ;;  %11916 = vpow2.f32 %v1050_v29  ;;  %v1058_v48 = vmul.f32 1.442695, %v1027_v17  ;;  %v890_v50 = vadd.f32 %v889_v61, %v12989_v26 }
 0x22c   :  { %11918 = vrcp.f32 %v1075_v28  ;;  %v1078_v53 = vadd.f32 1.0, %v11915_v39  ;;  %v939_v54 = vpop.f32.mrf.mxu1  ;;  %v13034_v61 = vperm.slane %v12973_v12, 2 }
 0x22d   :  { %v13026_v57 = vadd.f32 %v913_v40, %v890_v50  ;;  %v940_v32 = vadd.f32 %v939_v54, %v12983_v20  ;;  %v1122_v58 = vpack.c.bf16 %v1107_v44, %v1104_v51  ;;  %v1163_v44 = vld [vmem:[%s12956_s9 + $0x80] sm:$0x1] }
 0x22e   :  { %11920 = vrcp.f32 %v1078_v53 }
 0x22f   :  { %11922 = vpow2.f32 %v1058_v48  ;;  %v1026_v47 = vsub.f32 0.0, %v13026_v57  ;;  %v964_v60 = vadd.f32 %v963_v59, %v940_v32  ;;  %1288 = vmatmul.bf16.vlgmr.msra.gmra.mxu1 %v1122_v58  ;;  %v1001_v58 = vpop.f32.mrf.mxu0 }
 0x230   :  { %11924 = vrcp.f32 %v1074_v56 }
 0x231   :  { %v11917_v62 = vpop.eup %11916  ;;  %v1056_v2 = vmul.f32 1.442695, %v1026_v47  ;;  %v1030_v1 = vsub.f32 0.0, %v964_v60 }
 0x232   :  { %v11919_v9 = vpop.eup %11918  ;;  %v1077_v18 = vadd.f32 1.0, %v11917_v62  ;;  %v891_v21 = vpop.f32.mrf.mxu3 }
 0x233   :  { %11926 = vpow2.f32 %v1056_v2  ;;  %v1064_v40 = vmul.f32 1.442695, %v1030_v1  ;;  %v892_v20 = vadd.f32 %v891_v21, %v12989_v26  ;;  %v1111_v30 = vmul.f32 %v11919_v9, %v13004_v11 }
 0x234   :  { %v11921_v22 = vpop.eup %11920  ;;  %11928 = vrcp.f32 %v1077_v18  ;;  %v1233_v26 = vunpack.c.l.b16 %v1163_v44 }
 0x235   :  { %v11923_v24 = vpop.eup %11922  ;;  %11930 = vpow2.f32 %v1064_v40  ;;  %v916_v28 = vadd.f32 %v915_v27, %v892_v20  ;;  %v1114_v29 = vmul.f32 %v11921_v22, %v13012_v46 }
 0x236   :  { %v11925_v17 = vpop.eup %11924  ;;  %v1081_v39 = vadd.f32 1.0, %v11923_v24  ;;  %v1250_v32 = vpack.c.b16 %v1233_v26, %v1233_v26 }
 0x237   :  { %v1029_v31 = vsub.f32 0.0, %v916_v28  ;;  %v1126_v51 = vpack.c.bf16 %v1114_v29, %v1111_v30  ;;  %v1110_v27 = vmul.f32 %v11925_v17, %v13008_v33  ;;  %v1004_v30 = vpop.f32.mrf.mxu0 }
 0x238   :  { %v1278_v62 = vsel %vm296_vm0, %v1250_v32, 0 }
 0x239   :  { %v11927_v48 = vpop.eup %11926  ;;  %v1062_v50 = vmul.f32 1.442695, %v1029_v31  ;;  %1317 = vmatmul.bf16.gmra.mxu2 %v1126_v51  ;;  %1335 = vmatpush.bf16.msrb.mxu1 %v1278_v62 }
 0x23a   :  { %v11929_v53 = vpop.eup %11928  ;;  %v975_v54 = vpop.f32.mrf.mxu3  ;;  %v1080_v2 = vadd.f32 1.0, %v11927_v48  ;;  %11674 = vmatpush.bf16.msra.mxu3 %v1278_v62 }
 0x23b   :  { %v11931_v56 = vpop.eup %11930  ;;  %11932 = vpow2.f32 %v1062_v50  ;;  %v976_v11 = vadd.f32 %v975_v54, %v13034_v61  ;;  %v1113_v46 = vmul.f32 %v11929_v53, %v13017_v15 }
 0x23c   :  { %11934 = vrcp.f32 %v1081_v39  ;;  %v1084_v12 = vadd.f32 1.0, %v11931_v56 }
 0x23d   :  { %v1000_v59 = vadd.f32 %v999_v10, %v976_v11  ;;  %v1125_v47 = vpack.c.bf16 %v1113_v46, %v1110_v27 }
 0x23e   :  { %11936 = vrcp.f32 %v1084_v12 }
 0x23f   :  { %v1016_v1 = vsub.f32 0.0, %v1000_v59  ;;  %1293 = vmatmul.bf16.gmra.mxu1 %v1125_v47  ;;  %11938 = vrcp.f32 %v1080_v2 }
 0x241   :  { %v11933_v33 = vpop.eup %11932  ;;  %v1036_v9 = vmul.f32 1.442695, %v1016_v1 }
 0x242   :  { %v11935_v18 = vpop.eup %11934  ;;  %v1083_v21 = vadd.f32 1.0, %v11933_v33  ;;  %v977_v15 = vpop.f32.mrf.mxu3 }
 0x243   :  { %v978_v40 = vadd.f32 %v977_v15, %v13034_v61  ;;  %v1117_v22 = vmul.f32 %v11935_v18, %v13021_v23 }
 0x244   :  { %v11937_v20 = vpop.eup %11936  ;;  %11940 = vrcp.f32 %v1083_v21 }
 0x245   :  { %11942 = vpow2.f32 %v1036_v9  ;;  %v1002_v10 = vadd.f32 %v1001_v58, %v978_v40  ;;  %v1120_v24 = vmul.f32 %v11937_v20, %v964_v60  ;;  %v11939_v31 = vpop.eup %11938  ;;  %v1006_v60 = vpop.f32.mrf.mxu0 }
 0x246   :  { %v1116_v26 = vmul.f32 %v11939_v31, %v13026_v57 }
 0x247   :  { %v1019_v29 = vsub.f32 0.0, %v1002_v10  ;;  %v1129_v17 = vpack.c.bf16 %v1120_v24, %v1117_v22 }
 0x249   :  { %v1042_v51 = vmul.f32 1.442695, %v1019_v29  ;;  %1322 = vmatmul.bf16.gmra.mxu2 %v1129_v17 }
 0x24a   :  { %v11941_v39 = vpop.eup %11940  ;;  %v980_v44 = vpop.f32.mrf.mxu3 }
 0x24b   :  { %v11943_v48 = vpop.eup %11942  ;;  %11944 = vpow2.f32 %v1042_v51  ;;  %v981_v50 = vadd.f32 %v980_v44, %v13034_v61  ;;  %v1119_v53 = vmul.f32 %v11941_v39, %v916_v28 }
 0x24c   :  { %v1070_v56 = vadd.f32 1.0, %v11943_v48 }
 0x24d   :  { %v1005_v54 = vadd.f32 %v1004_v30, %v981_v50  ;;  %v1128_v27 = vpack.c.bf16 %v1119_v53, %v1116_v26  ;;  %v1009_v1 = vpop.f32.mrf.mxu0 }
 0x24e   :  { %11946 = vrcp.f32 %v1070_v56 }
 0x24f   :  { %v1022_v23 = vsub.f32 0.0, %v1005_v54  ;;  %1298 = vmatmul.bf16.gmra.mxu1 %v1128_v27 }
 0x251   :  { %v11945_v11 = vpop.eup %11944  ;;  %v1048_v46 = vmul.f32 1.442695, %v1022_v23 }
 0x252   :  { %v1073_v32 = vadd.f32 1.0, %v11945_v11  ;;  %v982_v58 = vpop.f32.mrf.mxu3 }
 0x253   :  { %v983_v12 = vadd.f32 %v982_v58, %v13034_v61 }
 0x254   :  { %11948 = vrcp.f32 %v1073_v32  ;;  %v11947_v2 = vpop.eup %11946 }
 0x255   :  { %11950 = vpow2.f32 %v1048_v46  ;;  %v1007_v47 = vadd.f32 %v1006_v60, %v983_v12  ;;  %v1106_v18 = vmul.f32 %v11947_v2, %v1000_v59  ;;  %v1011_v39 = vpop.f32.mrf.mxu0 }
 0x257   :  { %v1025_v62 = vsub.f32 0.0, %v1007_v47 }
 0x259   :  { %v1054_v57 = vmul.f32 1.442695, %v1025_v62 }
 0x25a   :  { %v11949_v28 = vpop.eup %11948  ;;  %v985_v33 = vpop.f32.mrf.mxu3 }
 0x25b   :  { %v11951_v9 = vpop.eup %11950  ;;  %v1109_v21 = vmul.f32 %v11949_v28, %v1002_v10  ;;  %11952 = vpow2.f32 %v1054_v57  ;;  %v986_v15 = vadd.f32 %v985_v33, %v13034_v61 }
 0x25c   :  { %v1076_v22 = vadd.f32 1.0, %v11951_v9  ;;  %v11846_v9 = vld [vmem:[%s12980_s17] ss:$0 sm:$0xff] }
 0x25d   :  { %v1124_v40 = vpack.c.bf16 %v1109_v21, %v1106_v18  ;;  %v1010_v20 = vadd.f32 %v1009_v1, %v986_v15 }
 0x25e   :  { %11954 = vrcp.f32 %v1076_v22 }
 0x25f   :  { %v1028_v24 = vsub.f32 0.0, %v1010_v20  ;;  %9030 = vmatmul.msk.bf16.vlgmr.msrb.gmra.mxu1 %vm1267_vm2, %v1124_v40 }
 0x261   :  { %v11953_v30 = vpop.eup %11952  ;;  %v1060_v29 = vmul.f32 1.442695, %v1028_v24 }
 0x262   :  { %v1079_v17 = vadd.f32 1.0, %v11953_v30  ;;  %v987_v31 = vpop.f32.mrf.mxu3 }
 0x263   :  { %v988_v51 = vadd.f32 %v987_v31, %v13034_v61 }
 0x264   :  { %11956 = vrcp.f32 %v1079_v17  ;;  %v11955_v44 = vpop.eup %11954 }
 0x265   :  { %11958 = vpow2.f32 %v1060_v29  ;;  %v1012_v59 = vadd.f32 %v1011_v39, %v988_v51  ;;  %v1112_v53 = vmul.f32 %v11955_v44, %v1005_v54 }
 0x267   :  { %v1031_v10 = vsub.f32 0.0, %v1012_v59 }
 0x269   :  { %v1066_v48 = vmul.f32 1.442695, %v1031_v10 }
 0x26a   :  { %v11957_v50 = vpop.eup %11956 }
 0x26b   :  { %v11959_v26 = vpop.eup %11958  ;;  %v1115_v27 = vmul.f32 %v11957_v50, %v1007_v47  ;;  %11960 = vpow2.f32 %v1066_v48 }
 0x26c   :  { %v1082_v23 = vadd.f32 1.0, %v11959_v26 }
 0x26d   :  { %v1127_v56 = vpack.c.bf16 %v1115_v27, %v1112_v53 }
 0x26e   :  { %11962 = vrcp.f32 %v1082_v23 }
 0x26f   :  { %9031 = vmatmul.msk.bf16.vlgmr.msra.gmra.mxu3 %vm1267_vm2, %v1127_v56 }
 0x271   :  { %v11961_v60 = vpop.eup %11960 }
 0x272   :  { %v1085_v11 = vadd.f32 1.0, %v11961_v60 }
 0x274   :  { %11964 = vrcp.f32 %v1085_v11  ;;  %v11963_v61 = vpop.eup %11962 }
 0x275   :  { %v1118_v32 = vmul.f32 %v11963_v61, %v1010_v20 }
 0x27a   :  { %v11965_v46 = vpop.eup %11964 }
 0x27b   :  { %v1121_v58 = vmul.f32 %v11965_v46, %v1012_v59 }
 0x27d   :  { %v1130_v12 = vpack.c.bf16 %v1121_v58, %v1118_v32 }
 0x27f   :  { %9032 = vmatmul.msk.bf16.gmra.mxu3 %vm1267_vm2, %v1130_v12 }
 0x2ac   :  { %v1289_v62 = vpop.f32.mrf.mxu1  ;;  %v1313_v2 = vpop.f32.mrf.mxu2 }
 0x2ad   :  { %v1290_v29 = vadd.f32 %v11846_v9, %v1289_v62 }
 0x2af   :  { %v1314_v39 = vadd.f32 %v1313_v2, %v1290_v29 }
 0x2b4   :  { %v1291_v54 = vpop.f32.mrf.mxu1  ;;  %v1315_v28 = vpop.f32.mrf.mxu2 }
 0x2b5   :  { %v1292_v26 = vadd.f32 %v11846_v9, %v1291_v54 }
 0x2b7   :  { %v1316_v46 = vadd.f32 %v1315_v28, %v1292_v26 }
 0x2bc   :  { %v1294_v47 = vpop.f32.mrf.mxu1  ;;  %v1318_v33 = vpop.f32.mrf.mxu2 }
 0x2bd   :  { %v1295_v18 = vadd.f32 %v11846_v9, %v1294_v47 }
 0x2bf   :  { %v1319_v15 = vadd.f32 %v1318_v33, %v1295_v18 }
 0x2c4   :  { %v1296_v57 = vpop.f32.mrf.mxu1  ;;  %v1320_v24 = vpop.f32.mrf.mxu2 }
 0x2c5   :  { %v1297_v20 = vadd.f32 %v11846_v9, %v1296_v57 }
 0x2c7   :  { %v1321_v51 = vadd.f32 %v1320_v24, %v1297_v20 }
 0x2cc   :  { %v1299_v1 = vpop.f32.mrf.mxu1  ;;  %v1323_v53 = vpop.f32.mrf.mxu2 }
 0x2cd   :  { %v1300_v48 = vadd.f32 %v11846_v9, %v1299_v1 }
 0x2cf   :  { %v1324_v11 = vadd.f32 %v1323_v53, %v1300_v48 }
 0x2d4   :  { %v1301_v21 = vpop.f32.mrf.mxu1  ;;  %v1325_v54 = vpop.f32.mrf.mxu2 }
 0x2d5   :  { %v1302_v47 = vadd.f32 %v11846_v9, %v1301_v21 }
 0x2dc   :  { %v1337_v17 = vpop.f32.mrf.mxu1 }
 0x2dd   :  { %v1338_v44 = vadd.f32 %v1337_v17, %v1314_v39 }
 0x2df   :  { %v1352_v23 = vsub.f32 0.0, %v1338_v44 }
 0x2e1   :  { %v1358_v12 = vmul.f32 1.442695, %v1352_v23 }
 0x2e4   :  { %v1339_v61 = vpop.f32.mrf.mxu1 }
 0x2e5   :  { %v1340_v62 = vadd.f32 %v1339_v61, %v1316_v46 }
 0x2e7   :  { %v1353_v18 = vsub.f32 0.0, %v1340_v62 }
 0x2e9   :  { %v1360_v29 = vmul.f32 1.442695, %v1353_v18 }
 0x2f2   :  { %v1342_v40 = vpop.f32.mrf.mxu3 }
 0x2f3   :  { %v1343_v22 = vadd.f32 %v1342_v40, %v1319_v15  ;;  %v1326_v40 = vadd.f32 %v1325_v54, %v1302_v47 }
 0x2f5   :  { %v1354_v30 = vsub.f32 0.0, %v1343_v22 }
 0x2f7   :  { %v1362_v31 = vmul.f32 1.442695, %v1354_v30 }
 0x2f9   :  { %11966 = vpow2.f32 %v1362_v31 }
 0x2fa   :  { %v1344_v59 = vpop.f32.mrf.mxu3 }
 0x2fb   :  { %v1345_v10 = vadd.f32 %v1344_v59, %v1321_v51 }
 0x2fd   :  { %v1355_v50 = vsub.f32 0.0, %v1345_v10 }
 0x2ff   :  { %v11967_v27 = vpop.eup %11966  ;;  %v1364_v56 = vmul.f32 1.442695, %v1355_v50 }
 0x300   :  { %v1372_v60 = vadd.f32 1.0, %v11967_v27 }
 0x301   :  { %11968 = vpow2.f32 %v1364_v56 }
 0x302   :  { %11970 = vrcp.f32 %v1372_v60  ;;  %v1347_v32 = vpop.f32.mrf.mxu3 }
 0x303   :  { %v1348_v58 = vadd.f32 %v1347_v32, %v1324_v11  ;;  %11972 = vpow2.f32 %v1358_v12 }
 0x305   :  { %v1356_v2 = vsub.f32 0.0, %v1348_v58 }
 0x307   :  { %v11969_v57 = vpop.eup %11968  ;;  %v1366_v1 = vmul.f32 1.442695, %v1356_v2 }
 0x308   :  { %v11971_v33 = vpop.eup %11970  ;;  %v1373_v15 = vadd.f32 1.0, %v11969_v57 }
 0x309   :  { %11974 = vpow2.f32 %v1366_v1  ;;  %v13052_v24 = vmul.f32 %v11971_v33, %v1343_v22  ;;  %v11973_v21 = vpop.eup %11972 }
 0x30a   :  { %11976 = vrcp.f32 %v1373_v15  ;;  %v1349_v28 = vpop.f32.mrf.mxu3  ;;  %v1370_v48 = vadd.f32 1.0, %v11973_v21 }
 0x30b   :  { %v1350_v20 = vadd.f32 %v1349_v28, %v1326_v40  ;;  %v1396_v30 = vsel %vm523_vm1, %v13052_v24, 0.0  ;;  %11978 = vpow2.f32 %v1360_v29 }
 0x30c   :  { %1397 = vadd.xlane.f32.xlu2 %v1396_v30 }
 0x30d   :  { %v1357_v9 = vsub.f32 0.0, %v1350_v20 }
 0x30f   :  { %v11975_v17 = vpop.eup %11974  ;;  %v1368_v31 = vmul.f32 1.442695, %v1357_v9 }
 0x310   :  { %v11977_v51 = vpop.eup %11976  ;;  %v1374_v39 = vadd.f32 1.0, %v11975_v17 }
 0x311   :  { %11980 = vpow2.f32 %v1368_v31  ;;  %v1385_v59 = vmul.f32 %v11977_v51, %v1345_v10  ;;  %v11979_v50 = vpop.eup %11978 }
 0x312   :  { %11982 = vrcp.f32 %v1374_v39  ;;  %v1371_v23 = vadd.f32 1.0, %v11979_v50 }
 0x313   :  { %v1399_v22 = vsel %vm523_vm1, %v1385_v59, 0.0  ;;  %11984 = vrcp.f32 %v1370_v48 }
 0x314   :  { %1400 = vadd.xlane.f32.xlu1 %v1399_v22 }
 0x317   :  { %v11981_v26 = vpop.eup %11980 }
 0x318   :  { %v11983_v53 = vpop.eup %11982  ;;  %v1375_v27 = vadd.f32 1.0, %v11981_v26 }
 0x319   :  { %v1386_v56 = vmul.f32 %v11983_v53, %v1348_v58  ;;  %v11985_v11 = vpop.eup %11984 }
 0x31a   :  { %11986 = vrcp.f32 %v1375_v27  ;;  %v1382_v61 = vmul.f32 %v11985_v11, %v1338_v44  ;;  %v12621_v44 = vmov 32.0  }
 0x31b   :  { %v1402_v60 = vsel %vm523_vm1, %v1386_v56, 0.0  ;;  %11988 = vrcp.f32 %v1371_v23  ;;  %v13102_v23 = vshrl.u32 %v133_v25, 7 }
 0x31c   :  { %1403 = vadd.xlane.f32.xlu0 %v1402_v60  ;;  %v1390_v12 = vsel %vm523_vm1, %v1382_v61, 0.0  ;;  %11990 = vrcp.f32 %v12621_v44 }
 0x31d   :  { %15278 = vst [vmem:[#allocation5_spill] sm:$0xff] %v13102_v23  ;;  %v221_v25 = vadd.s32 8, %v13102_v23 }
 0x320   :  { %v11987_v10 = vpop.eup %11986 }
 0x321   :  { %v1387_v46 = vmul.f32 %v11987_v10, %v1350_v20  ;;  %v11989_v47 = vpop.eup %11988 }
 0x322   :  { %v1383_v58 = vmul.f32 %v11989_v47, %v1340_v62  ;;  %v11991_v57 = vpop.eup %11990  ;;  %v11847_v47 = vld [vmem:[%s13063_s21] ss:$0 sm:$0xff]  ;;  %s13251_s21 = sld [smem:[%s15271_s0 + %s12627_s18]]  }
 0x323   :  { %v1405_v32 = vsel %vm523_vm1, %v1387_v46, 0.0  ;;  %v1409_v1 = vmul.f32 32.0, %v11991_v57  ;;  %vm1413_vm3 = vweird.f32 %v11991_v57  ;;  %vm225_vm5 = vcmp.eq.s32.totalorder %v221_v25, %v11847_v47  ;;  %s13335_s18 = sld [smem:[%s15271_s0 + %s12631_s12]]  }
 0x324   :  { %1406 = vadd.xlane.f32.xlu2 %v1405_v32  ;;  %1391 = vadd.xlane.f32.xlu0 %v1390_v12  ;;  %v1393_v2 = vsel %vm523_vm1, %v1383_v58, 0.0  ;;  %vm224_vm7 = vcmp.eq.s32.totalorder %v13102_v23, %v11847_v47 }
 0x325   :  { %v1410_v33 = vsub.f32 1.0, %v1409_v1  ;;  %v1628_v1 = vsel %vm523_vm1, %v12694_v37, 0.0 }
 0x327   :  { %v1411_v54 = vmul.f32 %v11991_v57, %v1410_v33 }
 0x329   :  { %v1412_v18 = vadd.f32 %v11991_v57, %v1411_v54 }
 0x32b   :  { %v13066_v15 = vsel %vm1413_vm3, %v11991_v57, %v1412_v18  ;;  %v13121_v57 = vsel %vm225_vm5, 1.0, %v15272_v35 }
 0x32c   :  { %1394 = vadd.xlane.f32.xlu2 %v1393_v2 }
 0x37f   :  { %v1398_v29 = vpop.xlane.xlu2 %1397 }
 0x380   :  { %v1417_v50 = vmul.f32 %v13066_v15, %v1398_v29 }
 0x382   :  { %v13105_v60 = vsub.f32 %v13052_v24, %v1417_v50 }
 0x384   :  { %v1429_v12 = vmul.f32 %v13105_v60, %v13105_v60 }
 0x386   :  { %v1439_v2 = vsel %vm523_vm1, %v1429_v12, 0.0 }
 0x387   :  { %v1401_v40 = vpop.xlane.xlu1 %1400 }
 0x388   :  { %v1418_v28 = vmul.f32 %v13066_v15, %v1401_v40 }
 0x38a   :  { %v13069_v20 = vsub.f32 %v1385_v59, %v1418_v28 }
 0x38c   :  { %v1430_v62 = vmul.f32 %v13069_v20, %v13069_v20 }
 0x38e   :  { %v1442_v30 = vsel %vm523_vm1, %v1430_v62, 0.0 }
 0x38f   :  { %1443 = vadd.xlane.f32.xlu0 %v1442_v30  ;;  %v1404_v9 = vpop.xlane.xlu0 %1403  ;;  %v13131_v30 = vsel %vm224_vm7, 1.0, %v15272_v35 }
 0x390   :  { %v1419_v21 = vmul.f32 %v13066_v15, %v1404_v9  ;;  %v231_v9 = vsel %vm230_vm6, %v13131_v30, 0.0 }
 0x392   :  { %v13075_v17 = vsub.f32 %v1386_v56, %v1419_v21 }
 0x394   :  { %v1431_v31 = vmul.f32 %v13075_v17, %v13075_v17 }
 0x396   :  { %v1445_v51 = vsel %vm523_vm1, %v1431_v31, 0.0 }
 0x397   :  { %v1407_v39 = vpop.xlane.xlu2 %1406  ;;  %1446 = vadd.xlane.f32.xlu2 %v1445_v51  ;;  %v1392_v59 = vpop.xlane.xlu0 %1391 }
 0x398   :  { %v1420_v48 = vmul.f32 %v13066_v15, %v1407_v39  ;;  %v1415_v22 = vmul.f32 %v13066_v15, %v1392_v59 }
 0x39a   :  { %v13093_v26 = vsub.f32 %v1387_v46, %v1420_v48  ;;  %v13095_v53 = vsub.f32 %v1382_v61, %v1415_v22 }
 0x39c   :  { %v1432_v27 = vmul.f32 %v13093_v26, %v13093_v26  ;;  %v1427_v56 = vmul.f32 %v13095_v53, %v13095_v53 }
 0x39e   :  { %v1448_v11 = vsel %vm523_vm1, %v1432_v27, 0.0  ;;  %v1433_v10 = vsel %vm523_vm1, %v1427_v56, 0.0 }
 0x39f   :  { %1449 = vadd.xlane.f32.xlu1 %v1448_v11  ;;  %v1395_v46 = vpop.xlane.xlu2 %1394  ;;  %1434 = vadd.xlane.f32.xlu0 %v1433_v10 }
 0x3a0   :  { %v1416_v61 = vmul.f32 %v13066_v15, %v1395_v46 }
 0x3a2   :  { %v13110_v32 = vsub.f32 %v1383_v58, %v1416_v61  ;;  %v234_v58 = vsel %vm230_vm6, %v13121_v57, 0.0 }
 0x3a4   :  { %v1428_v24 = vmul.f32 %v13110_v32, %v13110_v32 }
 0x3a6   :  { %v1436_v44 = vsel %vm523_vm1, %v1428_v24, 0.0 }
 0x3a7   :  { %1440 = vadd.xlane.f32.xlu1 %v1439_v2  ;;  %1437 = vadd.xlane.f32.xlu2 %v1436_v44 }
 0x3af   :  { %235 = vadd.xlane.f32.xlu2 %v234_v58  ;;  %232 = vadd.xlane.f32.xlu1 %v231_v9 }
 0x3b7   :  { %1629 = vadd.xlane.f32.xlu2 %v1628_v1 }
 0x402   :  { %v1444_v33 = vpop.xlane.xlu0 %1443 }
 0x403   :  { %v1454_v54 = vmul.f32 %v1444_v33, %v13066_v15 }
 0x405   :  { %v1460_v18 = vadd.f32 1e-05, %v1454_v54 }
 0x407   :  { %11992 = vrsqrt.f32 %v1460_v18  ;;  %vm1499_vm12 = vweird.f32 %v1460_v18 }
 0x40a   :  { %v1447_v40 = vpop.xlane.xlu2 %1446 }
 0x40b   :  { %v1455_v28 = vmul.f32 %v1447_v40, %v13066_v15 }
 0x40d   :  { %v1461_v62 = vadd.f32 1e-05, %v1455_v28  ;;  %v13133_v29 = vpop.eup %11992 }
 0x40e   :  { %v1494_v21 = vmul.f32 %v13133_v29, %v1460_v18  ;;  %vm1500_vm9 = vweird.f32 %v13133_v29 }
 0x40f   :  { %11994 = vrsqrt.f32 %v1461_v62  ;;  %vm1509_vm10 = vweird.f32 %v1461_v62  ;;  %vm1501_vm14 = vmor %vm1499_vm12, %vm1500_vm9 }
 0x410   :  { %v1495_v27 = vmul.f32 %v13133_v29, %v1494_v21 }
 0x412   :  { %v1450_v31 = vpop.xlane.xlu1 %1449  ;;  %v1435_v51 = vpop.xlane.xlu0 %1434  ;;  %v1496_v10 = vmul.f32 0.5, %v1495_v27 }
 0x413   :  { %v1456_v39 = vmul.f32 %v1450_v31, %v13066_v15  ;;  %v1451_v59 = vmul.f32 %v1435_v51, %v13066_v15 }
 0x414   :  { %v1497_v33 = vsub.f32 1.5, %v1496_v10 }
 0x415   :  { %v11995_v48 = vpop.eup %11994  ;;  %v1462_v22 = vadd.f32 1e-05, %v1456_v39  ;;  %v13140_v50 = vadd.f32 1e-05, %v1451_v59 }
 0x416   :  { %v1504_v56 = vmul.f32 %v11995_v48, %v1461_v62  ;;  %vm1510_vm8 = vweird.f32 %v11995_v48  ;;  %v1498_v31 = vmul.f32 %v13133_v29, %v1497_v33 }
 0x417   :  { %11996 = vrsqrt.f32 %v1462_v22  ;;  %vm13156_vm11 = vmor %vm1509_vm10, %vm1510_vm8  ;;  %vm1519_vm3 = vweird.f32 %v1462_v22  ;;  %vm1469_vm8 = vweird.f32 %v13140_v50 }
 0x418   :  { %v1505_v11 = vmul.f32 %v11995_v48, %v1504_v56  ;;  %11998 = vrsqrt.f32 %v13140_v50 }
 0x41a   :  { %v1506_v46 = vmul.f32 0.5, %v1505_v11  ;;  %v1441_v61 = vpop.xlane.xlu1 %1440  ;;  %v1438_v12 = vpop.xlane.xlu2 %1437 }
 0x41b   :  { %v1453_v25 = vmul.f32 %v1441_v61, %v13066_v15  ;;  %v1452_v47 = vmul.f32 %v1438_v12, %v13066_v15 }
 0x41c   :  { %v1507_v24 = vsub.f32 1.5, %v1506_v46  ;;  %v1502_v46 = vsel %vm1501_vm14, %v13133_v29, %v1498_v31 }
 0x41d   :  { %v11997_v2 = vpop.eup %11996  ;;  %v1459_v44 = vadd.f32 1e-05, %v1453_v25  ;;  %v13146_v58 = vadd.f32 1e-05, %v1452_v47 }
 0x41e   :  { %v13148_v1 = vpop.eup %11998  ;;  %v1514_v54 = vmul.f32 %v11997_v2, %v1462_v22  ;;  %v1508_v28 = vmul.f32 %v11995_v48, %v1507_v24  ;;  %vm1520_vm13 = vweird.f32 %v11997_v2  ;;  %v1526_v22 = vmul.f32 %v1502_v46, %v13069_v20 }
 0x41f   :  { %v1464_v40 = vmul.f32 %v13148_v1, %v13140_v50  ;;  %12000 = vrsqrt.f32 %v1459_v44  ;;  %vm1521_vm5 = vmor %vm1519_vm3, %vm1520_vm13  ;;  %vm1470_vm7 = vweird.f32 %v13148_v1  ;;  %vm1489_vm12 = vweird.f32 %v1459_v44 }
 0x420   :  { %v1515_v9 = vmul.f32 %v11997_v2, %v1514_v54  ;;  %12002 = vrsqrt.f32 %v13146_v58  ;;  %v1512_v27 = vsel %vm13156_vm11, %v11995_v48, %v1508_v28  ;;  %v13167_v54 = vld [vmem:[%s13082_s25] ss:$0 sm:$0xff]  ;;  %vm13178_vm10 = vmor %vm1469_vm8, %vm1470_vm7  ;;  %vm1479_vm14 = vweird.f32 %v13146_v58 }
 0x421   :  { %v1465_v21 = vmul.f32 %v13148_v1, %v1464_v40  ;;  %v1527_v18 = vmul.f32 %v1512_v27, %v13075_v17 }
 0x422   :  { %v1516_v51 = vmul.f32 0.5, %v1515_v9 }
 0x423   :  { %v1466_v59 = vmul.f32 0.5, %v1465_v21  ;;  %v13174_v21 = vld [vmem:[%s13088_s29] ss:$0 sm:$0xff]  ;;  %v1536_v17 = vmul.f32 %v13167_v54, %v1527_v18 }
 0x424   :  { %v1517_v56 = vsub.f32 1.5, %v1516_v51  ;;  %v1535_v51 = vmul.f32 %v13167_v54, %v1526_v22 }
 0x425   :  { %v12001_v11 = vpop.eup %12000  ;;  %v1467_v61 = vsub.f32 1.5, %v1466_v59  ;;  %v1545_v27 = vadd.f32 %v13174_v21, %v1536_v17 }
 0x426   :  { %v12003_v10 = vpop.eup %12002  ;;  %v1518_v62 = vmul.f32 %v11997_v2, %v1517_v56  ;;  %v1484_v12 = vmul.f32 %v12001_v11, %v1459_v44  ;;  %vm1490_vm9 = vweird.f32 %v12001_v11 }
 0x427   :  { %v1474_v25 = vmul.f32 %v12003_v10, %v13146_v58  ;;  %v1468_v29 = vmul.f32 %v13148_v1, %v1467_v61  ;;  %vm1480_vm11 = vweird.f32 %v12003_v10  ;;  %vm1491_vm13 = vmor %vm1489_vm12, %vm1490_vm9 }
 0x428   :  { %v1522_v47 = vsel %vm1521_vm5, %v11997_v2, %v1518_v62  ;;  %v1485_v48 = vmul.f32 %v12001_v11, %v1484_v12  ;;  %vm1481_vm3 = vmor %vm1479_vm14, %vm1480_vm11  ;;  %v1544_v62 = vadd.f32 %v13174_v21, %v1535_v51 }
 0x429   :  { %v1528_v24 = vmul.f32 %v1522_v47, %v13093_v26  ;;  %v1475_v33 = vmul.f32 %v12003_v10, %v1474_v25  ;;  %v1472_v39 = vsel %vm13178_vm10, %v13148_v1, %v1468_v29 }
 0x42a   :  { %v1486_v40 = vmul.f32 0.5, %v1485_v48  ;;  %v1523_v12 = vmul.f32 %v1472_v39, %v13095_v53  ;;  %v233_v53 = vpop.xlane.xlu1 %232 }
 0x42b   :  { %v1476_v28 = vmul.f32 0.5, %v1475_v33  ;;  %v1537_v9 = vmul.f32 %v13167_v54, %v1528_v24 }
 0x42c   :  { %v1487_v26 = vsub.f32 1.5, %v1486_v40 }
 0x42d   :  { %v1477_v20 = vsub.f32 1.5, %v1476_v28  ;;  %v1546_v31 = vadd.f32 %v13174_v21, %v1537_v9 }
 0x42e   :  { %v1488_v59 = vmul.f32 %v12001_v11, %v1487_v26 }
 0x42f   :  { %v1478_v50 = vmul.f32 %v12003_v10, %v1477_v20  ;;  %1563 = vmatpush.msrb.mxu0 %v1546_v31 }
 0x430   :  { %v1492_v56 = vsel %vm1491_vm13, %v12001_v11, %v1488_v59  ;;  %v1532_v11 = vmul.f32 %v13167_v54, %v1523_v12 }
 0x431   :  { %v1482_v46 = vsel %vm1481_vm3, %v12003_v10, %v1478_v50  ;;  %1564 = vmatpush.msrb.mxu0 %v1545_v27  ;;  %v1525_v61 = vmul.f32 %v1492_v56, %v13105_v60  ;;  %v237_v60 = vmax.f32 %v233_v53, 1.0 }
 0x432   :  { %v1524_v1 = vmul.f32 %v1482_v46, %v13110_v32  ;;  %v1541_v18 = vadd.f32 %v13174_v21, %v1532_v11  ;;  %v236_v32 = vpop.xlane.xlu2 %235 }
 0x433   :  { %1565 = vmatpush.msrb.mxu0 %v1544_v62  ;;  %v1534_v44 = vmul.f32 %v13167_v54, %v1525_v61  ;;  %12004 = vrcp.f32 %v237_v60  ;;  %v238_v47 = vmax.f32 %v236_v32, 1.0  ;;  %vm244_vm5 = vweird.f32 %v237_v60 }
 0x434   :  { %v1533_v58 = vmul.f32 %v13167_v54, %v1524_v1  ;;  %v250_v28 = vand.u32 2147483648, %v237_v60  ;;  %v248_v26 = vand.u32 2147483647, %v237_v60 }
 0x435   :  { %v1543_v25 = vadd.f32 %v13174_v21, %v1534_v44  ;;  %12006 = vrcp.f32 %v238_v47  ;;  %vm259_vm10 = vweird.f32 %v238_v47  ;;  %v265_v59 = vand.u32 2147483648, %v238_v47 }
 0x436   :  { %v1542_v10 = vadd.f32 %v13174_v21, %v1533_v58  ;;  %v251_v2 = vor.u32 1.1754944e-38, %v250_v28  ;;  %vm249_vm9 = vcmp.eq.f32.partialorder %v248_v26, 8.507059e+37  ;;  %v263_v56 = vand.u32 2147483647, %v238_v47 }
 0x437   :  { %1566 = vmatpush.msrb.mxu0 %v1543_v25  ;;  %v266_v61 = vor.u32 1.1754944e-38, %v265_v59 }
 0x438   :  { %vm264_vm13 = vcmp.eq.f32.partialorder %v263_v56, 8.507059e+37 }
 0x439   :  { %1567 = vmatpush.msrb.mxu0 %v1542_v10  ;;  %v12005_v48 = vpop.eup %12004  ;;  %v1631_v10 = vsel %vm523_vm1, %v12689_v34, 0.0 }
 0x43a   :  { %v240_v24 = vmul.f32 %v12005_v48, %v237_v60  ;;  %vm245_vm7 = vweird.f32 %v12005_v48  ;;  %v1630_v62 = vpop.xlane.xlu2 %1629 }
 0x43b   :  { %1568 = vmatpush.msrb.mxu0 %v1541_v18  ;;  %v12007_v22 = vpop.eup %12006  ;;  %vm246_vm8 = vmor %vm244_vm5, %vm245_vm7  ;;  %v1634_v1 = vmul.f32 %v1630_v62, %v13066_v15  ;;  %v11276_v62 = vld [vmem:[%s13244_s16 + $0x10] sm:$0xff] }
 0x43c   :  { %9033 = vmatmul.msk.f32.vlgmr.msrb.gmra.mxu0 %vm230_vm6, %v13131_v30  ;;  %v241_v33 = vsub.f32 1.0, %v240_v24  ;;  %v255_v29 = vmul.f32 %v12007_v22, %v238_v47  ;;  %vm260_vm11 = vweird.f32 %v12007_v22 }
 0x43d   :  { %vm261_vm12 = vmor %vm259_vm10, %vm260_vm11  ;;  %v13217_v11 = vsub.f32 %v12694_v37, %v1634_v1 }
 0x43e   :  { %v242_v40 = vmul.f32 %v12005_v48, %v241_v33  ;;  %v256_v9 = vsub.f32 1.0, %v255_v29 }
 0x43f   :  { %v1638_v53 = vmul.f32 %v13217_v11, %v13217_v11 }
 0x440   :  { %v243_v17 = vadd.f32 %v12005_v48, %v242_v40  ;;  %v257_v20 = vmul.f32 %v12007_v22, %v256_v9 }
 0x441   :  { %v1640_v60 = vsel %vm523_vm1, %v1638_v53, 0.0 }
 0x442   :  { %v247_v31 = vsel %vm246_vm8, %v12005_v48, %v243_v17  ;;  %v258_v27 = vadd.f32 %v12007_v22, %v257_v20 }
 0x443   :  { %v13203_v51 = vsel %vm249_vm9, %v251_v2, %v247_v31 }
 0x444   :  { %9034 = vmatmul.msk.f32.gmra.mxu0 %vm230_vm6, %v13121_v57  ;;  %v262_v12 = vsel %vm261_vm12, %v12007_v22, %v258_v27  ;;  %v11277_v27 = vld [vmem:[%s13244_s16 + $0x18] sm:$0xff] }
 0x445   :  { %v13213_v44 = vsel %vm264_vm13, %v266_v61, %v262_v12  ;;  %1736 = vmatpush.bf16.msra.mxu0 %v11277_v27 }
 0x449   :  { %1737 = vmatpush.bf16.msra.mxu0 %v11276_v62 }
 0x4b9   :  { %v1570_v39 = vpop.f32.mrf.mxu0 }
 0x4ba   :  { %v1576_v50 = vmul.f32 %v1570_v39, %v13203_v51 }
 0x4bc   :  { %v1578_v46 = vsel %vm523_vm1, %v1576_v50, 0.0 }
 0x4bd   :  { %1579 = vadd.xlane.f32.xlu0 %v1578_v46 }
 0x4c1   :  { %v1573_v58 = vpop.f32.mrf.mxu0 }
 0x4c2   :  { %v1577_v25 = vmul.f32 %v1573_v58, %v13213_v44  ;;  %v11275_v58 = vld [vmem:[%s13244_s16 + $0x8] sm:$0xff] }
 0x4c3   :  { %1738 = vmatpush.bf16.msra.mxu0 %v11275_v58 }
 0x4c4   :  { %v1581_v18 = vsel %vm523_vm1, %v1577_v25, 0.0 }
 0x4c5   :  { %1632 = vadd.xlane.f32.xlu0 %v1631_v10  ;;  %1582 = vadd.xlane.f32.xlu1 %v1581_v18 }
 0x4cd   :  { %1641 = vadd.xlane.f32.xlu0 %v1640_v60 }
 0x530   :  { %v1580_v32 = vpop.xlane.xlu0 %1579 }
 0x531   :  { %v1584_v47 = vmul.f32 %v1580_v32, %v13066_v15 }
 0x533   :  { %v1586_v48 = vsub.f32 %v1576_v50, %v1584_v47 }
 0x535   :  { %v1588_v24 = vmul.f32 %v1586_v48, %v1586_v48 }
 0x537   :  { %v1590_v33 = vsel %vm523_vm1, %v1588_v24, 0.0 }
 0x538   :  { %v1633_v22 = vpop.xlane.xlu0 %1632  ;;  %1591 = vadd.xlane.f32.xlu1 %v1590_v33  ;;  %v1583_v29 = vpop.xlane.xlu1 %1582 }
 0x539   :  { %v1635_v40 = vmul.f32 %v1633_v22, %v13066_v15  ;;  %v1585_v28 = vmul.f32 %v1583_v29, %v13066_v15 }
 0x53b   :  { %v13235_v9 = vsub.f32 %v12689_v34, %v1635_v40  ;;  %v1587_v17 = vsub.f32 %v1577_v25, %v1585_v28 }
 0x53d   :  { %v1639_v26 = vmul.f32 %v13235_v9, %v13235_v9  ;;  %v1589_v2 = vmul.f32 %v1587_v17, %v1587_v17 }
 0x53f   :  { %v1643_v20 = vsel %vm523_vm1, %v1639_v26, 0.0  ;;  %v1593_v31 = vsel %vm523_vm1, %v1589_v2, 0.0 }
 0x540   :  { %1644 = vadd.xlane.f32.xlu1 %v1643_v20  ;;  %1594 = vadd.xlane.f32.xlu2 %v1593_v31 }
 0x5ab   :  { %v1592_v39 = vpop.xlane.xlu1 %1591 }
 0x5ac   :  { %v1596_v59 = vmul.f32 %v1592_v39, %v13066_v15 }
 0x5ae   :  { %v1598_v50 = vadd.f32 1e-05, %v1596_v59 }
 0x5b0   :  { %12008 = vrsqrt.f32 %v1598_v50  ;;  %vm1606_vm3 = vweird.f32 %v1598_v50 }
 0x5b3   :  { %v1595_v56 = vpop.xlane.xlu2 %1594  ;;  %v1645_v27 = vpop.xlane.xlu1 %1644 }
 0x5b4   :  { %v1597_v46 = vmul.f32 %v1595_v56, %v13066_v15  ;;  %v1647_v56 = vmul.f32 %v1645_v27, %v13066_v15 }
 0x5b6   :  { %v12009_v61 = vpop.eup %12008  ;;  %v1599_v12 = vadd.f32 1e-05, %v1597_v46 }
 0x5b7   :  { %v1601_v1 = vmul.f32 %v12009_v61, %v1598_v50  ;;  %vm1607_vm14 = vweird.f32 %v12009_v61  ;;  %v1642_v50 = vpop.xlane.xlu0 %1641 }
 0x5b8   :  { %12010 = vrsqrt.f32 %v1599_v12  ;;  %vm1608_vm5 = vmor %vm1606_vm3, %vm1607_vm14  ;;  %vm1616_vm8 = vweird.f32 %v1599_v12 }
 0x5b9   :  { %v1602_v25 = vmul.f32 %v12009_v61, %v1601_v1  ;;  %v11274_v1 = vld [vmem:[%s13244_s16] sm:$0xff] }
 0x5ba   :  { %1739 = vmatpush.bf16.msra.mxu0 %v11274_v1 }
 0x5bb   :  { %v1603_v10 = vmul.f32 0.5, %v1602_v25 }
 0x5bd   :  { %v1604_v18 = vsub.f32 1.5, %v1603_v10 }
 0x5be   :  { %v12011_v53 = vpop.eup %12010 }
 0x5bf   :  { %v1605_v60 = vmul.f32 %v12009_v61, %v1604_v18  ;;  %v1611_v32 = vmul.f32 %v12011_v53, %v1599_v12  ;;  %vm1617_vm7 = vweird.f32 %v12011_v53 }
 0x5c0   :  { %vm1618_vm9 = vmor %vm1616_vm8, %vm1617_vm7 }
 0x5c1   :  { %v1612_v47 = vmul.f32 %v12011_v53, %v1611_v32  ;;  %v1609_v24 = vsel %vm1608_vm5, %v12009_v61, %v1605_v60 }
 0x5c2   :  { %v1620_v29 = vmul.f32 %v1609_v24, %v1586_v48  ;;  %v1646_v48 = vmul.f32 %v1642_v50, %v13066_v15 }
 0x5c3   :  { %v1613_v33 = vmul.f32 0.5, %v1612_v47 }
 0x5c4   :  { %v1622_v2 = vmul.f32 %v13167_v54, %v1620_v29  ;;  %v1648_v46 = vadd.f32 1e-05, %v1646_v48 }
 0x5c5   :  { %v1614_v22 = vsub.f32 1.5, %v1613_v33  ;;  %v11850_v33 = vld [vmem:[%s13210_s6] ss:$0 sm:$0xff] }
 0x5c6   :  { %v1624_v31 = vadd.f32 %v13174_v21, %v1622_v2  ;;  %12012 = vrsqrt.f32 %v1648_v46  ;;  %vm1656_vm12 = vweird.f32 %v1648_v46 }
 0x5c7   :  { %v1615_v40 = vmul.f32 %v12011_v53, %v1614_v22 }
 0x5c9   :  { %v1619_v28 = vsel %vm1618_vm9, %v12011_v53, %v1615_v40 }
 0x5ca   :  { %v1621_v26 = vmul.f32 %v1619_v28, %v1587_v17  ;;  %v1649_v17 = vadd.f32 1e-05, %v1647_v56  ;;  %v11279_v56 = vld [vmem:[%s13274_s26 + $0x8] sm:$0xff] }
 0x5cc   :  { %v1623_v20 = vmul.f32 %v13167_v54, %v1621_v26  ;;  %12014 = vrsqrt.f32 %v1649_v17  ;;  %v12013_v62 = vpop.eup %12012  ;;  %vm1666_vm14 = vweird.f32 %v1649_v17  ;;  %v11851_v26 = vld [vmem:[%s13228_s11] ss:$0 sm:$0xff] }
 0x5cd   :  { %v1651_v61 = vmul.f32 %v12013_v62, %v1648_v46  ;;  %vm1657_vm10 = vweird.f32 %v12013_v62  ;;  %v11278_v46 = vld [vmem:[%s13274_s26] sm:$0xff] }
 0x5ce   :  { %v1625_v39 = vadd.f32 %v13174_v21, %v1623_v20  ;;  %vm1658_vm13 = vmor %vm1656_vm12, %vm1657_vm10 }
 0x5cf   :  { %v1652_v21 = vmul.f32 %v12013_v62, %v1651_v61  ;;  %v9316_v61 = vld [vmem:[%s12795_s4 + $0x2d0] sm:$0xf] }
 0x5d0   :  { %v11760_v59 = vpack.i.bf16 %v1625_v39, %v1624_v31 }
 0x5d1   :  { %v1653_v25 = vmul.f32 0.5, %v1652_v21  ;;  %v9304_v21 = vld [vmem:[%s12795_s4 + $0x2b8] sm:$0xf] }
 0x5d2   :  { %11761 = vrot.lane.b32.xlu2 %v11760_v59, %s12616_s5  ;;  %v12015_v54 = vpop.eup %12014 }
 0x5d3   :  { %v1661_v12 = vmul.f32 %v12015_v54, %v1649_v17  ;;  %v1654_v18 = vsub.f32 1.5, %v1653_v25  ;;  %vm1667_vm11 = vweird.f32 %v12015_v54  ;;  %v9328_v17 = vld [vmem:[%s12795_s4 + $0x2e8] sm:$0xf] }
 0x5d4   :  { %vm1668_vm3 = vmor %vm1666_vm14, %vm1667_vm11 }
 0x5d5   :  { %v1662_v58 = vmul.f32 %v12015_v54, %v1661_v12  ;;  %v1655_v60 = vmul.f32 %v12013_v62, %v1654_v18  ;;  %v11325_v12 = vld [vmem:[%s12795_s4 + $0x2d8] sm:$0xf0]  ;;  %v9292_v18 = vld [vmem:[%s12795_s4 + $0x2a0] sm:$0xf] }
 0x5d6   :  { %v9317_v1 = vor.u32 %v11325_v12, %v9316_v61 }
 0x5d7   :  { %v1663_v10 = vmul.f32 0.5, %v1662_v58  ;;  %v1659_v47 = vsel %vm1658_vm13, %v12013_v62, %v1655_v60  ;;  %v11328_v62 = vld [vmem:[%s12795_s4 + $0x2f0] sm:$0xf0]  ;;  %v11322_v58 = vld [vmem:[%s12795_s4 + $0x2c0] sm:$0xf0] }
 0x5d8   :  { %v1670_v22 = vmul.f32 %v1659_v47, %v13217_v11  ;;  %v11281_v11 = vld [vmem:[%s13274_s26 + $0x18] sm:$0xff]  ;;  %v9305_v25 = vor.u32 %v11322_v58, %v9304_v21 }
 0x5d9   :  { %v1664_v53 = vsub.f32 1.5, %v1663_v10  ;;  %1802 = vmatpush.bf16.msra.mxu1 %v11281_v11  ;;  %v11852_v10 = vld [vmem:[%s13251_s21] ss:$0 sm:$0xff] }
 0x5da   :  { %v1675_v40 = vmul.f32 %v11850_v33, %v1670_v22  ;;  %v11316_v22 = vld [vmem:[%s12795_s4 + $0x290] sm:$0xf0] }
 0x5db   :  { %v1665_v32 = vmul.f32 %v12015_v54, %v1664_v53  ;;  %v11319_v53 = vld [vmem:[%s12795_s4 + $0x2a8] sm:$0xf0] }
 0x5dc   :  { %v1680_v20 = vadd.f32 %v11851_v26, %v1675_v40  ;;  %v9268_v40 = vld [vmem:[%s12795_s4 + $0x270] sm:$0xf] }
 0x5dd   :  { %v1669_v24 = vsel %vm1668_vm3, %v12015_v54, %v1665_v32  ;;  %v9329_v54 = vor.u32 %v11328_v62, %v9328_v17  ;;  %v9293_v32 = vor.u32 %v11319_v53, %v9292_v18  ;;  %v9324_v18 = vld [vmem:[%s12795_s4 + $0x2d8] sm:$0xf] }
 0x5de   :  { %v1671_v29 = vmul.f32 %v1669_v24, %v13235_v9  ;;  %v11280_v9 = vld [vmem:[%s13274_s26 + $0x10] sm:$0xff] }
 0x5df   :  { %1803 = vmatpush.bf16.msra.mxu1 %v11280_v9 }
 0x5e0   :  { %v1676_v28 = vmul.f32 %v11850_v33, %v1671_v29  ;;  %v9280_v33 = vld [vmem:[%s12795_s4 + $0x288] sm:$0xf] }
 0x5e1   :  { %v9281_v29 = vor.u32 %v11316_v22, %v9280_v33  ;;  %v11323_v33 = vld [vmem:[%s12795_s4 + $0x2c8] sm:$0xf0]  ;;  %v9300_v22 = vld [vmem:[%s12795_s4 + $0x2a8] sm:$0xf] }
 0x5e2   :  { %v1681_v59 = vadd.f32 %v11851_v26, %v1676_v28  ;;  %v11313_v28 = vld [vmem:[%s12795_s4 + $0x278] sm:$0xf0] }
 0x5e3   :  { %1804 = vmatpush.bf16.msra.mxu1 %v11279_v56 }
 0x5e7   :  { %1805 = vmatpush.bf16.msra.mxu1 %v11278_v46 }
 0x5eb   :  { %2333 = vmatpush.bf16.msrb.mxu1 %v9329_v54 }
 0x5ef   :  { %2334 = vmatpush.bf16.msrb.mxu1 %v9317_v1 }
 0x5f3   :  { %2335 = vmatpush.bf16.msrb.mxu1 %v9305_v25  ;;  %v9336_v25 = vld [vmem:[%s12795_s4 + $0x2f0] sm:$0xf] }
 0x5f7   :  { %2336 = vmatpush.bf16.msrb.mxu1 %v9293_v32 }
 0x5fb   :  { %2337 = vmatpush.bf16.msrb.mxu1 %v9281_v29  ;;  %v11320_v29 = vld [vmem:[%s12795_s4 + $0x2b0] sm:$0xf0] }
 0x62c   :  { %v11762_v2 = vpop.permute.xlu2 %11761 }
 0x62d   :  { %v11764_v31 = vunpack.i.h.bf16 %v11762_v2  ;;  %v11763_v39 = vunpack.i.l.bf16 %v11762_v2  ;;  %v9269_v2 = vor.u32 %v11313_v28, %v9268_v40  ;;  %v9301_v40 = vor.u32 %v11320_v29, %v9300_v22  ;;  %v9288_v28 = vld [vmem:[%s12795_s4 + $0x290] sm:$0xf] }
 0x62f   :  { %v1690_v50 = vsel %vm523_vm1, %v1680_v20, %v11763_v39  ;;  %v1691_v27 = vsel %vm523_vm1, %v1681_v59, %v11764_v31  ;;  %v9256_v20 = vld [vmem:[%s12795_s4 + $0x258] sm:$0xf]  ;;  %v11310_v31 = vld [vmem:[%s12795_s4 + $0x260] sm:$0xf0]  ;;  %2338 = vmatpush.bf16.msrb.mxu1 %v9269_v2 }
 0x630   :  { %v1692_v48 = vpack.c.bf16 %v1691_v27, %v1690_v50  ;;  %v9244_v50 = vld [vmem:[%s12795_s4 + $0x240] sm:$0xf]  ;;  %v11307_v27 = vld [vmem:[%s12795_s4 + $0x248] sm:$0xf0]  ;;  %v9276_v2 = vld [vmem:[%s12795_s4 + $0x278] sm:$0xf] }
 0x631   :  { %v9245_v56 = vor.u32 %v11307_v27, %v9244_v50  ;;  %v11311_v50 = vld [vmem:[%s12795_s4 + $0x268] sm:$0xf0] }
 0x632   :  { %9051 = vmatmul.msk.bf16.vlgmr.msra.gmra.mxu0 %vm504_vm15, %v1692_v48  ;;  %v9257_v48 = vor.u32 %v11310_v31, %v9256_v20  ;;  %v11314_v31 = vld [vmem:[%s12795_s4 + $0x280] sm:$0xf0] }
 0x634   :  { %2339 = vmatpush.bf16.msrb.mxu1 %v9257_v48  ;;  %v9252_v48 = vld [vmem:[%s12795_s4 + $0x248] sm:$0xf] }
 0x638   :  { %2340 = vmatpush.bf16.msrb.mxu1 %v9245_v56  ;;  %v11853_v56 = vld [vmem:[%s13296_s2] ss:$0 sm:$0xff] }
 0x6af   :  { %v1741_v60 = vpop.f32.mrf.mxu0 }
 0x6b0   :  { %v1742_v47 = vadd.f32 %v11852_v10, %v1741_v60  ;;  %v11326_v60 = vld [vmem:[%s12795_s4 + $0x2e0] sm:$0xf0] }
 0x6b1   :  { %v9325_v32 = vor.u32 %v11326_v60, %v9324_v18 }
 0x6b2   :  { %v1746_v24 = vsub.f32 0.0, %v1742_v47 }
 0x6b4   :  { %v1748_v26 = vmul.f32 1.442695, %v1746_v24  ;;  %v9312_v24 = vld [vmem:[%s12795_s4 + $0x2c0] sm:$0xf] }
 0x6b6   :  { %12016 = vpow2.f32 %v1748_v26  ;;  %v11317_v26 = vld [vmem:[%s12795_s4 + $0x298] sm:$0xf0] }
 0x6b7   :  { %v1743_v39 = vpop.f32.mrf.mxu0  ;;  %v9289_v20 = vor.u32 %v11317_v26, %v9288_v28 }
 0x6b8   :  { %v1744_v59 = vadd.f32 %v11852_v10, %v1743_v39  ;;  %v11329_v10 = vld [vmem:[%s12795_s4 + $0x2f8] sm:$0xf0]  ;;  %v9277_v39 = vor.u32 %v11314_v31, %v9276_v2 }
 0x6b9   :  { %v9337_v53 = vor.u32 %v11329_v10, %v9336_v25 }
 0x6ba   :  { %v1747_v11 = vsub.f32 0.0, %v1744_v59 }
 0x6bc   :  { %v1750_v9 = vmul.f32 1.442695, %v1747_v11  ;;  %v12017_v46 = vpop.eup %12016  ;;  %v11308_v11 = vld [vmem:[%s12795_s4 + $0x250] sm:$0xf0] }
 0x6bd   :  { %v1752_v17 = vadd.f32 1.0, %v12017_v46 }
 0x6be   :  { %12018 = vpow2.f32 %v1750_v9  ;;  %v9253_v9 = vor.u32 %v11308_v11, %v9252_v48 }
 0x6bf   :  { %12020 = vrcp.f32 %v1752_v17 }
 0x6c4   :  { %v12019_v62 = vpop.eup %12018 }
 0x6c5   :  { %v1753_v54 = vadd.f32 1.0, %v12019_v62  ;;  %v12021_v61 = vpop.eup %12020 }
 0x6c6   :  { %v1756_v1 = vmul.f32 %v12021_v61, %v1742_v47  ;;  %v9313_v47 = vor.u32 %v11323_v33, %v9312_v24 }
 0x6c7   :  { %12022 = vrcp.f32 %v1753_v54 }
 0x6cd   :  { %v12023_v12 = vpop.eup %12022 }
 0x6ce   :  { %v1757_v21 = vmul.f32 %v12023_v12, %v1744_v59  ;;  %v9264_v59 = vld [vmem:[%s12795_s4 + $0x260] sm:$0xf] }
 0x6cf   :  { %v9265_v27 = vor.u32 %v11311_v50, %v9264_v59 }
 0x6d0   :  { %v1758_v58 = vpack.c.bf16 %v1757_v21, %v1756_v1 }
 0x6d2   :  { %9068 = vmatmul.msk.bf16.vlgmr.msra.gmra.mxu1 %vm504_vm15, %v1758_v58 }
 0x6d3   :  { %2429 = vmatpush.bf16.msra.mxu1 %v9337_v53 }
 0x6d7   :  { %2430 = vmatpush.bf16.msra.mxu1 %v9325_v32 }
 0x6db   :  { %2431 = vmatpush.bf16.msra.mxu1 %v9313_v47 }
 0x6df   :  { %2432 = vmatpush.bf16.msra.mxu1 %v9301_v40 }
 0x6e2   :  { %2341 = vmatmul.bf16.vlgmr.msrb.gmra.mxu1 %v12836_v16 }
 0x6e3   :  { %2433 = vmatpush.bf16.msra.mxu1 %v9289_v20 }
 0x6e7   :  { %2434 = vmatpush.bf16.msra.mxu1 %v9277_v39 }
 0x6eb   :  { %2435 = vmatpush.bf16.msra.mxu1 %v9265_v27 }
 0x6ef   :  { %2436 = vmatpush.bf16.msra.mxu1 %v9253_v9 }
 0x6f2   :  { %2346 = vmatmul.bf16.gmra.mxu1 %v12884_v43 }
 0x702   :  { %2351 = vmatmul.bf16.gmra.mxu1 %v12905_v19 }
 0x712   :  { %2437 = vmatmul.bf16.vlgmr.msra.gmra.mxu1 %v12836_v16 }
 0x722   :  { %2442 = vmatmul.bf16.gmra.mxu1 %v12884_v43 }
 0x732   :  { %2447 = vmatmul.bf16.gmra.mxu1 %v12905_v19 }
 0x74f   :  { %v1807_v46 = vpop.f32.mrf.mxu1 }
 0x750   :  { %v1808_v17 = vadd.f32 %v11853_v56, %v1807_v46  ;;  %v11854_v46 = vld [vmem:[%s13330_s10] ss:$0 sm:$0xff] }
 0x752   :  { %v1814_v62 = vsel %vm523_vm1, %v1808_v17, 0.0 }
 0x753   :  { %1815 = vadd.xlane.f32.xlu1 %v1814_v62 }
 0x757   :  { %v1809_v54 = vpop.f32.mrf.mxu1 }
 0x758   :  { %v1810_v61 = vadd.f32 %v11853_v56, %v1809_v54 }
 0x75a   :  { %v1817_v12 = vsel %vm523_vm1, %v1810_v61, 0.0 }
 0x75b   :  { %1818 = vadd.xlane.f32.xlu0 %v1817_v12 }
 0x7c6   :  { %v1816_v1 = vpop.xlane.xlu1 %1815 }
 0x7c7   :  { %v1820_v21 = vmul.f32 %v1816_v1, %v13066_v15 }
 0x7c9   :  { %v1822_v58 = vsub.f32 %v1808_v17, %v1820_v21 }
 0x7cb   :  { %v1824_v25 = vmul.f32 %v1822_v58, %v1822_v58 }
 0x7cd   :  { %v1826_v10 = vsel %vm523_vm1, %v1824_v25, 0.0 }
 0x7ce   :  { %v1819_v18 = vpop.xlane.xlu0 %1818  ;;  %1827 = vadd.xlane.f32.xlu1 %v1826_v10 }
 0x7cf   :  { %v1821_v53 = vmul.f32 %v1819_v18, %v13066_v15  ;;  %v11327_v18 = vld [vmem:[%s12795_s4 + $0x2ec] sm:$0xf] }
 0x7d1   :  { %v1823_v60 = vsub.f32 %v1810_v61, %v1821_v53  ;;  %v11855_v61 = vld [vmem:[%s13335_s18] ss:$0 sm:$0xff]  ;;  %v9330_v53 = vld [vmem:[%s12795_s4 + $0x2f4] sm:$0xf0] }
 0x7d3   :  { %v1825_v32 = vmul.f32 %v1823_v60, %v1823_v60 }
 0x7d5   :  { %v1829_v24 = vsel %vm523_vm1, %v1825_v32, 0.0 }
 0x7d6   :  { %1830 = vadd.xlane.f32.xlu0 %v1829_v24  ;;  %v11324_v24 = vld [vmem:[%s12795_s4 + $0x2d4] sm:$0xf] }
 0x841   :  { %v1828_v33 = vpop.xlane.xlu1 %1827 }
 0x842   :  { %v1832_v47 = vmul.f32 %v1828_v33, %v13066_v15  ;;  %v9318_v33 = vld [vmem:[%s12795_s4 + $0x2dc] sm:$0xf0] }
 0x844   :  { %v1834_v22 = vadd.f32 1e-05, %v1832_v47  ;;  %v9321_v47 = vor.u32 %v11324_v24, %v9318_v33  ;;  %v11303_v24 = vld [vmem:[%s12795_s4 + $0x22c] sm:$0xf] }
 0x846   :  { %12024 = vrsqrt.f32 %v1834_v22  ;;  %vm1842_vm7 = vweird.f32 %v1834_v22 }
 0x849   :  { %v1831_v29 = vpop.xlane.xlu0 %1830 }
 0x84a   :  { %v1833_v40 = vmul.f32 %v1831_v29, %v13066_v15  ;;  %v9306_v29 = vld [vmem:[%s12795_s4 + $0x2c4] sm:$0xf0] }
 0x84c   :  { %v12025_v28 = vpop.eup %12024  ;;  %v1835_v26 = vadd.f32 1e-05, %v1833_v40 }
 0x84d   :  { %v1837_v2 = vmul.f32 %v12025_v28, %v1834_v22  ;;  %vm1843_vm5 = vweird.f32 %v12025_v28  ;;  %v11321_v22 = vld [vmem:[%s12795_s4 + $0x2bc] sm:$0xf] }
 0x84e   :  { %12026 = vrsqrt.f32 %v1835_v26  ;;  %vm1844_vm8 = vmor %vm1842_vm7, %vm1843_vm5  ;;  %vm1852_vm10 = vweird.f32 %v1835_v26  ;;  %v9309_v40 = vor.u32 %v11321_v22, %v9306_v29  ;;  %v9220_v22 = vld [vmem:[%s12795_s4 + $0x210] sm:$0xf]  ;;  %v11301_v29 = vld [vmem:[%s12795_s4 + $0x218] sm:$0xf0] }
 0x84f   :  { %v1838_v20 = vmul.f32 %v12025_v28, %v1837_v2 }
 0x851   :  { %v1839_v31 = vmul.f32 0.5, %v1838_v20  ;;  %v11315_v20 = vld [vmem:[%s12795_s4 + $0x28c] sm:$0xf] }
 0x853   :  { %v1840_v39 = vsub.f32 1.5, %v1839_v31  ;;  %v9282_v31 = vld [vmem:[%s12795_s4 + $0x294] sm:$0xf0] }
 0x854   :  { %v12027_v59 = vpop.eup %12026 }
 0x855   :  { %v1841_v50 = vmul.f32 %v12025_v28, %v1840_v39  ;;  %v1847_v27 = vmul.f32 %v12027_v59, %v1835_v26  ;;  %vm1853_vm9 = vweird.f32 %v12027_v59  ;;  %v9294_v26 = vld [vmem:[%s12795_s4 + $0x2ac] sm:$0xf0]  ;;  %v9285_v39 = vor.u32 %v11315_v20, %v9282_v31  ;;  %v9208_v31 = vld [vmem:[%s12795_s4 + $0x1f8] sm:$0xf] }
 0x856   :  { %vm1854_vm11 = vmor %vm1852_vm10, %vm1853_vm9 }
 0x857   :  { %v1848_v48 = vmul.f32 %v12027_v59, %v1847_v27  ;;  %v1845_v11 = vsel %vm1844_vm8, %v12025_v28, %v1841_v50  ;;  %v11318_v28 = vld [vmem:[%s12795_s4 + $0x2a4] sm:$0xf]  ;;  %v9270_v50 = vld [vmem:[%s12795_s4 + $0x27c] sm:$0xf0] }
 0x858   :  { %v1856_v17 = vmul.f32 %v1845_v11, %v1822_v58  ;;  %v9297_v2 = vor.u32 %v11318_v28, %v9294_v26  ;;  %v9258_v11 = vld [vmem:[%s12795_s4 + $0x264] sm:$0xf0]  ;;  %v11300_v28 = vld [vmem:[%s12795_s4 + $0x214] sm:$0xf]  ;;  %v9222_v26 = vld [vmem:[%s12795_s4 + $0x21c] sm:$0xf0] }
 0x859   :  { %v1849_v9 = vmul.f32 0.5, %v1848_v48  ;;  %v11309_v48 = vld [vmem:[%s12795_s4 + $0x25c] sm:$0xf]  ;;  %v9225_v20 = vor.u32 %v11300_v28, %v9222_v26  ;;  %v9162_v28 = vld [vmem:[%s12795_s4 + $0x1a4] sm:$0xf0] }
 0x85a   :  { %v1861_v12 = vmul.f32 %v11854_v46, %v1856_v17 }
 0x85b   :  { %v1850_v56 = vsub.f32 1.5, %v1849_v9  ;;  %v9261_v9 = vor.u32 %v11309_v48, %v9258_v11  ;;  %v9196_v11 = vld [vmem:[%s12795_s4 + $0x1e0] sm:$0xf] }
 0x85c   :  { %v1866_v25 = vadd.f32 %v11855_v61, %v1861_v12 }
 0x85d   :  { %v1851_v62 = vmul.f32 %v12027_v59, %v1850_v56  ;;  %v11306_v56 = vld [vmem:[%s12795_s4 + $0x244] sm:$0xf] }
 0x85e   :  { %v13352_v58 = vadd.f32 %v1866_v25, %v12694_v37 }
 0x85f   :  { %v1855_v54 = vsel %vm1854_vm11, %v12027_v59, %v1851_v62  ;;  %v11312_v59 = vld [vmem:[%s12795_s4 + $0x274] sm:$0xf] }
 0x860   :  { %v1857_v1 = vmul.f32 %v1855_v54, %v1823_v60  ;;  %v9333_v60 = vor.u32 %v11327_v18, %v9330_v53  ;;  %v9273_v27 = vor.u32 %v11312_v59, %v9270_v50  ;;  %v9232_v53 = vld [vmem:[%s12795_s4 + $0x228] sm:$0xf]  ;;  %v11297_v59 = vld [vmem:[%s12795_s4 + $0x1fc] sm:$0xf] }
 0x861   :  { %v9210_v50 = vld [vmem:[%s12795_s4 + $0x204] sm:$0xf0] }
 0x862   :  { %v1862_v21 = vmul.f32 %v11854_v46, %v1857_v1  ;;  %v9246_v46 = vld [vmem:[%s12795_s4 + $0x24c] sm:$0xf0]  ;;  %v9213_v48 = vor.u32 %v11297_v59, %v9210_v50 }
 0x863   :  { %v9249_v17 = vor.u32 %v11306_v56, %v9246_v46  ;;  %v11294_v56 = vld [vmem:[%s12795_s4 + $0x1e4] sm:$0xf]  ;;  %v9198_v46 = vld [vmem:[%s12795_s4 + $0x1ec] sm:$0xf0] }
 0x864   :  { %v1867_v10 = vadd.f32 %v11855_v61, %v1862_v21  ;;  %v9150_v59 = vld [vmem:[%s12795_s4 + $0x18c] sm:$0xf0] }
 0x866   :  { %v13349_v32 = vadd.f32 %v1867_v10, %v12689_v34 }
 0x868   :  { %1884 = vmatpush.msrb.mxu2 %v13349_v32  ;;  %1919 = vmatpush.msrb.mxu0 %v13349_v32 }
 0x86a   :  { %1885 = vmatpush.msrb.mxu2 %v13352_v58  ;;  %1920 = vmatpush.msrb.mxu0 %v13352_v58 }
 0x86b   :  { %9069 = vmatmul.msk.f32.vlgmr.msrb.gmra.mxu2 %vm337_vm4, %v12697_v38  ;;  %9075 = vmatmul.msk.f32.vlgmr.msrb.gmra.mxu0 %vm337_vm4, %v12692_v36 }
 0x86c   :  { %2381 = vmatpush.bf16.msra.mxu0 %v9333_v60  ;;  %v11304_v60 = vld [vmem:[%s12795_s4 + $0x230] sm:$0xf0] }
 0x86d   :  { %v9233_v33 = vor.u32 %v11304_v60, %v9232_v53  ;;  %v11288_v53 = vld [vmem:[%s12795_s4 + $0x1b4] sm:$0xf]  ;;  %v9174_v60 = vld [vmem:[%s12795_s4 + $0x1bc] sm:$0xf0] }
 0x86f   :  { %2309 = vmatpush.bf16.msrb.mxu3 %v9233_v33  ;;  %v9177_v33 = vor.u32 %v11288_v53, %v9174_v60 }
 0x870   :  { %2382 = vmatpush.bf16.msra.mxu0 %v9321_v47  ;;  %v9234_v47 = vld [vmem:[%s12795_s4 + $0x234] sm:$0xf0] }
 0x873   :  { %9070 = vmatmul.msk.f32.gmra.mxu2 %vm337_vm4, %v12718_v42  ;;  %9076 = vmatmul.msk.f32.gmra.mxu0 %vm337_vm4, %v12715_v41 }
 0x874   :  { %2383 = vmatpush.bf16.msra.mxu0 %v9309_v40  ;;  %v9237_v40 = vor.u32 %v11303_v24, %v9234_v47  ;;  %v9160_v47 = vld [vmem:[%s12795_s4 + $0x198] sm:$0xf] }
 0x876   :  { %2357 = vmatpush.bf16.msra.mxu2 %v9237_v40  ;;  %v11285_v40 = vld [vmem:[%s12795_s4 + $0x19c] sm:$0xf] }
 0x877   :  { %v9165_v26 = vor.u32 %v11285_v40, %v9162_v28  ;;  %v9192_v40 = vld [vmem:[%s12795_s4 + $0x1d0] sm:$0xf]  ;;  %v11293_v28 = vld [vmem:[%s12795_s4 + $0x1d8] sm:$0xf0] }
 0x878   :  { %2384 = vmatpush.bf16.msra.mxu0 %v9297_v2  ;;  %v9221_v2 = vor.u32 %v11301_v29, %v9220_v22  ;;  %v11286_v22 = vld [vmem:[%s12795_s4 + $0x1a0] sm:$0xf0] }
 0x879   :  { %v9161_v29 = vor.u32 %v11286_v22, %v9160_v47 }
 0x87a   :  { %2310 = vmatpush.bf16.msrb.mxu3 %v9221_v2  ;;  %2358 = vmatpush.bf16.msra.mxu2 %v9225_v20  ;;  %v9148_v2 = vld [vmem:[%s12795_s4 + $0x180] sm:$0xf]  ;;  %v11283_v20 = vld [vmem:[%s12795_s4 + $0x188] sm:$0xf0] }
 0x87b   :  { %9071 = vmatmul.msk.f32.gmra.mxu2 %vm337_vm4, %v12740_v55  ;;  %9077 = vmatmul.msk.f32.gmra.mxu0 %vm337_vm4, %v12735_v52 }
 0x87c   :  { %2385 = vmatpush.bf16.msra.mxu0 %v9285_v39  ;;  %v11298_v39 = vld [vmem:[%s12795_s4 + $0x200] sm:$0xf0] }
 0x87e   :  { %2359 = vmatpush.bf16.msra.mxu2 %v9213_v48 }
 0x880   :  { %2386 = vmatpush.bf16.msra.mxu0 %v9273_v27  ;;  %v9209_v27 = vor.u32 %v11298_v39, %v9208_v31  ;;  %v11282_v31 = vld [vmem:[%s12795_s4 + $0x184] sm:$0xf]  ;;  %v9149_v39 = vor.u32 %v11283_v20, %v9148_v2  ;;  %v9193_v2 = vor.u32 %v11293_v28, %v9192_v40  ;;  %v11337_v40 = vld [vmem:[%s12956_s9 + $0xbc] sm:$0xff] }
 0x881   :  { %v9153_v50 = vor.u32 %v11282_v31, %v9150_v59  ;;  %v11290_v20 = vld [vmem:[%s12795_s4 + $0x1c0] sm:$0xf0]  ;;  %v9168_v59 = vld [vmem:[%s12795_s4 + $0x1a0] sm:$0xf] }
 0x882   :  { %2311 = vmatpush.bf16.msrb.mxu3 %v9209_v27  ;;  %v11345_v28 = vld [vmem:[%s12956_s9 + $0xfc] sm:$0xff] }
 0x883   :  { %9072 = vmatmul.msk.f32.gmra.mxu2 %vm337_vm4, %v12759_v0  ;;  %9078 = vmatmul.msk.f32.gmra.mxu0 %vm337_vm4, %v12756_v63 }
 0x884   :  { %2387 = vmatpush.bf16.msra.mxu0 %v9261_v9  ;;  %v11295_v9 = vld [vmem:[%s12795_s4 + $0x1e8] sm:$0xf0] }
 0x888   :  { %2388 = vmatpush.bf16.msra.mxu0 %v9249_v17  ;;  %v9197_v17 = vor.u32 %v11295_v9, %v9196_v11  ;;  %v9240_v11 = vld [vmem:[%s12795_s4 + $0x230] sm:$0xf]  ;;  %v11305_v9 = vld [vmem:[%s12795_s4 + $0x238] sm:$0xf0] }
 0x88a   :  { %2312 = vmatpush.bf16.msrb.mxu3 %v9197_v17  ;;  %v11302_v17 = vld [vmem:[%s12795_s4 + $0x220] sm:$0xf0] }
 0x88b   :  { %9073 = vmatmul.msk.f32.gmra.mxu2 %vm337_vm4, %v12774_v5  ;;  %9079 = vmatmul.msk.f32.gmra.mxu0 %vm337_vm4, %v12771_v4 }
 0x88c   :  { %2744 = vmatpush.bf16.msrb.mxu0 %v11345_v28 }
 0x893   :  { %9074 = vmatmul.msk.f32.gmra.mxu2 %vm337_vm4, %v12786_v8  ;;  %9080 = vmatmul.msk.f32.gmra.mxu0 %vm337_vm4, %v12783_v7 }
 0x89b   :  { %2389 = vmatmul.bf16.vlgmr.msra.gmra.mxu0 %v12836_v16 }
 0x8ab   :  { %2394 = vmatmul.bf16.gmra.mxu0 %v12884_v43 }
 0x8bb   :  { %2399 = vmatmul.bf16.gmra.mxu0 %v12905_v19 }
 0x8e8   :  { %v1922_v62 = vpop.f32.mrf.mxu0 }
 0x8ee   :  { %v1887_v27 = vpop.f32.mrf.mxu2 }
 0x8f0   :  { %v1925_v54 = vpop.f32.mrf.mxu0 }
 0x8f1   :  { %v11765_v61 = vpack.i.bf16 %v1925_v54, %v1922_v62  ;;  %v9201_v62 = vor.u32 %v11294_v56, %v9198_v46  ;;  %v9184_v54 = vld [vmem:[%s12795_s4 + $0x1c8] sm:$0xf]  ;;  %v9228_v56 = vld [vmem:[%s12795_s4 + $0x218] sm:$0xf]  ;;  %v9241_v46 = vor.u32 %v11305_v9, %v9240_v11  ;;  %v11284_v11 = vld [vmem:[%s12795_s4 + $0x190] sm:$0xf0] }
 0x8f3   :  { %11766 = vrot.lane.b32.xlu0 %v11765_v61, %s12616_s5  ;;  %v11292_v61 = vld [vmem:[%s12795_s4 + $0x1d0] sm:$0xf0]  ;;  %2360 = vmatpush.bf16.msra.mxu2 %v9201_v62  ;;  %v9229_v62 = vor.u32 %v11302_v17, %v9228_v56 }
 0x8f6   :  { %v1890_v48 = vpop.f32.mrf.mxu2 }
 0x8f8   :  { %v1928_v12 = vpop.f32.mrf.mxu0 }
 0x900   :  { %v1931_v1 = vpop.f32.mrf.mxu0 }
 0x901   :  { %v11770_v21 = vpack.i.bf16 %v1931_v1, %v1928_v12  ;;  %v11291_v12 = vld [vmem:[%s12795_s4 + $0x1cc] sm:$0xf]  ;;  %v9186_v1 = vld [vmem:[%s12795_s4 + $0x1d4] sm:$0xf0] }
 0x903   :  { %11771 = vrot.lane.b32.xlu1 %v11770_v21, %s12616_s5  ;;  %v9185_v21 = vor.u32 %v11292_v61, %v9184_v54  ;;  %v9216_v54 = vld [vmem:[%s12795_s4 + $0x200] sm:$0xf]  ;;  %v11299_v61 = vld [vmem:[%s12795_s4 + $0x208] sm:$0xf0] }
 0x905   :  { %2313 = vmatpush.bf16.msrb.mxu3 %v9185_v21  ;;  %v11296_v21 = vld [vmem:[%s12795_s4 + $0x1f0] sm:$0xf0] }
 0x908   :  { %v1934_v25 = vpop.f32.mrf.mxu0 }
 0x910   :  { %v1937_v10 = vpop.f32.mrf.mxu0 }
 0x911   :  { %v11775_v18 = vpack.i.bf16 %v1937_v10, %v1934_v25  ;;  %v9189_v25 = vor.u32 %v11291_v12, %v9186_v1  ;;  %v9172_v10 = vld [vmem:[%s12795_s4 + $0x1b0] sm:$0xf]  ;;  %v9217_v12 = vor.u32 %v11299_v61, %v9216_v54  ;;  %v9204_v1 = vld [vmem:[%s12795_s4 + $0x1e8] sm:$0xf] }
 0x912   :  { %v9205_v60 = vor.u32 %v11296_v21, %v9204_v1 }
 0x913   :  { %11776 = vrot.lane.b32.xlu2 %v11775_v18, %s12616_s5  ;;  %v11289_v18 = vld [vmem:[%s12795_s4 + $0x1b8] sm:$0xf0]  ;;  %2361 = vmatpush.bf16.msra.mxu2 %v9189_v25  ;;  %v1893_v25 = vpop.f32.mrf.mxu2 }
 0x914   :  { %v9173_v24 = vor.u32 %v11289_v18, %v9172_v10 }
 0x916   :  { %2314 = vmatpush.bf16.msrb.mxu3 %v9173_v24 }
 0x917   :  { %2362 = vmatpush.bf16.msra.mxu2 %v9177_v33 }
 0x91a   :  { %2315 = vmatpush.bf16.msrb.mxu3 %v9161_v29 }
 0x91b   :  { %2363 = vmatpush.bf16.msra.mxu2 %v9165_v26  ;;  %v9180_v26 = vld [vmem:[%s12795_s4 + $0x1b8] sm:$0xf]  ;;  %v1896_v31 = vpop.f32.mrf.mxu2 }
 0x91e   :  { %2316 = vmatpush.bf16.msrb.mxu3 %v9149_v39  ;;  %v9181_v39 = vor.u32 %v11290_v20, %v9180_v26  ;;  %v2342_v26 = vpop.f32.mrf.mxu1  ;;  %v11344_v20 = vld [vmem:[%s12956_s9 + $0xf4] sm:$0xff] }
 0x91f   :  { %2364 = vmatpush.bf16.msra.mxu2 %v9153_v50  ;;  %v11287_v50 = vld [vmem:[%s12795_s4 + $0x1a8] sm:$0xf0]  ;;  %2745 = vmatpush.bf16.msrb.mxu0 %v11344_v20 }
 0x922   :  { %2405 = vmatpush.bf16.msra.mxu3 %v9241_v46 }
 0x923   :  { %v1899_v61 = vpop.f32.mrf.mxu2  ;;  %2720 = vmatpush.bf16.msrb.mxu2 %v11337_v40 }
 0x926   :  { %2406 = vmatpush.bf16.msra.mxu3 %v9229_v62 }
 0x92a   :  { %2407 = vmatpush.bf16.msra.mxu3 %v9217_v12 }
 0x92e   :  { %2408 = vmatpush.bf16.msra.mxu3 %v9205_v60  ;;  %v1902_v60 = vpop.f32.mrf.mxu2 }
 0x932   :  { %2409 = vmatpush.bf16.msra.mxu3 %v9193_v2  ;;  %v11336_v2 = vld [vmem:[%s12956_s9 + $0xb4] sm:$0xff] }
 0x933   :  { %2721 = vmatpush.bf16.msrb.mxu2 %v11336_v2 }
 0x936   :  { %2410 = vmatpush.bf16.msra.mxu3 %v9181_v39  ;;  %v11334_v39 = vld [vmem:[%s12956_s9 + $0xa4] sm:$0xff] }
 0x965   :  { %v11767_v10 = vpop.permute.xlu0 %11766 }
 0x966   :  { %v11769_v18 = vunpack.i.h.bf16 %v11767_v10  ;;  %v11768_v53 = vunpack.i.l.bf16 %v11767_v10 }
 0x968   :  { %v1964_v24 = vsel %vm523_vm1, %v1887_v27, %v11768_v53  ;;  %v1965_v33 = vsel %vm523_vm1, %v1890_v48, %v11769_v18  ;;  %v9169_v27 = vor.u32 %v11287_v50, %v9168_v59  ;;  %v9156_v48 = vld [vmem:[%s12795_s4 + $0x188] sm:$0xf]  ;;  %v2344_v50 = vpop.f32.mrf.mxu1 }
 0x969   :  { %v1970_v47 = vsel %vm504_vm15, %v1964_v24, %v12817_v49  ;;  %v1971_v22 = vsel %vm504_vm15, %v1965_v33, %v12812_v45  ;;  %v9157_v17 = vor.u32 %v11284_v11, %v9156_v48  ;;  %v11342_v59 = vld [vmem:[%s12956_s9 + $0xe4] sm:$0xff]  ;;  %v11333_v48 = vld [vmem:[%s12956_s9 + $0x9c] sm:$0xff] }
 0x96a   :  { %v1976_v29 = vpack.c.bf16 %v1971_v22, %v1970_v47  ;;  %2411 = vmatpush.bf16.msra.mxu3 %v9169_v27  ;;  %v2390_v27 = vpop.f32.mrf.mxu0  ;;  %v11341_v11 = vld [vmem:[%s12956_s9 + $0xdc] sm:$0xff] }
 0x96c   :  { %2317 = vmatmul.bf16.vlgmr.msrb.gmra.mxu3 %v1976_v29  ;;  %2365 = vmatmul.bf16.vlgmr.msra.gmra.mxu2 %v1976_v29 }
 0x96d   :  { %v11777_v10 = vpop.permute.xlu2 %11776 }
 0x96e   :  { %2412 = vmatpush.bf16.msra.mxu3 %v9157_v17  ;;  %v11779_v18 = vunpack.i.h.bf16 %v11777_v10  ;;  %v11778_v53 = vunpack.i.l.bf16 %v11777_v10 }
 0x970   :  { %v1969_v24 = vsel %vm523_vm1, %v1902_v60, %v11779_v18 }
 0x971   :  { %v1975_v47 = vsel %vm504_vm15, %v1969_v24, %v12896_v13  ;;  %v11330_v24 = vld [vmem:[%s12956_s9 + $0x84] sm:$0xff] }
 0x972   :  { %v2392_v10 = vpop.f32.mrf.mxu0 }
 0x975   :  { %v11772_v9 = vpop.permute.xlu1 %11771 }
 0x976   :  { %v11774_v56 = vunpack.i.h.bf16 %v11772_v9  ;;  %v11773_v46 = vunpack.i.l.bf16 %v11772_v9  ;;  %v13479_v9 = vld [vmem:[%s12966_s13 + $0x3] sm:$0x7] }
 0x977   :  { %v13484_v17 = vperm.slane %v13479_v9, 0 }
 0x978   :  { %v1966_v62 = vsel %vm523_vm1, %v1893_v25, %v11773_v46  ;;  %v1967_v54 = vsel %vm523_vm1, %v1896_v31, %v11774_v56  ;;  %v1968_v25 = vsel %vm523_vm1, %v1899_v61, %v11778_v53  ;;  %v11335_v31 = vld [vmem:[%s12956_s9 + $0xac] sm:$0xff]  ;;  %v11332_v56 = vld [vmem:[%s12956_s9 + $0x94] sm:$0xff] }
 0x979   :  { %v1972_v12 = vsel %vm504_vm15, %v1966_v62, %v12862_v6  ;;  %v1973_v1 = vsel %vm504_vm15, %v1967_v54, %v12860_v3  ;;  %v1974_v33 = vsel %vm504_vm15, %v1968_v25, %v12898_v14  ;;  %2722 = vmatpush.bf16.msrb.mxu2 %v11335_v31  ;;  %v11340_v46 = vld [vmem:[%s12956_s9 + $0xd4] sm:$0xff]  ;;  %v13487_v62 = vperm.slane %v13479_v9, 1  ;;  %v2347_v54 = vpop.f32.mrf.mxu1  ;;  %v11331_v61 = vld [vmem:[%s12956_s9 + $0x8c] sm:$0xff] }
 0x97a   :  { %v1977_v21 = vpack.c.bf16 %v1973_v1, %v1972_v12  ;;  %v1978_v22 = vpack.c.bf16 %v1975_v47, %v1974_v33  ;;  %v11339_v12 = vld [vmem:[%s12956_s9 + $0xcc] sm:$0xff]  ;;  %v11338_v33 = vld [vmem:[%s12956_s9 + $0xc4] sm:$0xff] }
 0x97c   :  { %2322 = vmatmul.bf16.gmra.mxu3 %v1977_v21  ;;  %2370 = vmatmul.bf16.gmra.mxu2 %v1977_v21 }
 0x97d   :  { %2723 = vmatpush.bf16.msrb.mxu2 %v11334_v39  ;;  %v2395_v39 = vpop.f32.mrf.mxu0 }
 0x981   :  { %2724 = vmatpush.bf16.msrb.mxu2 %v11333_v48  ;;  %v2349_v31 = vpop.f32.mrf.mxu1 }
 0x985   :  { %2725 = vmatpush.bf16.msrb.mxu2 %v11332_v56 }
 0x989   :  { %2726 = vmatpush.bf16.msrb.mxu2 %v11331_v61 }
 0x98c   :  { %2327 = vmatmul.bf16.gmra.mxu3 %v1978_v22  ;;  %2375 = vmatmul.bf16.gmra.mxu2 %v1978_v22 }
 0x98d   :  { %2727 = vmatpush.bf16.msrb.mxu2 %v11330_v24  ;;  %v2352_v24 = vpop.f32.mrf.mxu1 }
 0x99c   :  { %2413 = vmatmul.bf16.vlgmr.msra.gmra.mxu3 %v1976_v29  ;;  %v11343_v29 = vld [vmem:[%s12956_s9 + $0xec] sm:$0xff] }
 0x99d   :  { %2746 = vmatpush.bf16.msrb.mxu0 %v11343_v29 }
 0x9a1   :  { %2747 = vmatpush.bf16.msrb.mxu0 %v11342_v59 }
 0x9a5   :  { %2748 = vmatpush.bf16.msrb.mxu0 %v11341_v11 }
 0x9a9   :  { %2749 = vmatpush.bf16.msrb.mxu0 %v11340_v46 }
 0x9ac   :  { %2418 = vmatmul.bf16.gmra.mxu3 %v1977_v21 }
 0x9ad   :  { %2750 = vmatpush.bf16.msrb.mxu0 %v11339_v12 }
 0x9b1   :  { %2751 = vmatpush.bf16.msrb.mxu0 %v11338_v33 }
 0x9bc   :  { %2423 = vmatmul.bf16.gmra.mxu3 %v1978_v22 }
 0x9ef   :  { %v2318_v1 = vpop.f32.mrf.mxu3  ;;  %v2366_v21 = vpop.f32.mrf.mxu2 }
 0x9f0   :  { %v2319_v18 = vadd.f32 %v2318_v1, %v13484_v17  ;;  %v2367_v53 = vadd.f32 %v2366_v21, %v13487_v62 }
 0x9f2   :  { %v13493_v60 = vadd.f32 %v2342_v26, %v2319_v18  ;;  %v13495_v25 = vadd.f32 %v2390_v27, %v2367_v53 }
 0x9f4   :  { %v2453_v47 = vsub.f32 0.0, %v13493_v60  ;;  %v2454_v22 = vsub.f32 0.0, %v13495_v25 }
 0x9f6   :  { %v2471_v40 = vmul.f32 1.442695, %v2453_v47  ;;  %v2473_v28 = vmul.f32 1.442695, %v2454_v22  ;;  %v2397_v22 = vpop.f32.mrf.mxu0 }
 0x9f7   :  { %v2320_v2 = vpop.f32.mrf.mxu3  ;;  %v2368_v20 = vpop.f32.mrf.mxu2 }
 0x9f8   :  { %v2321_v29 = vadd.f32 %v2320_v2, %v13484_v17  ;;  %v2369_v26 = vadd.f32 %v2368_v20, %v13487_v62  ;;  %12028 = vpow2.f32 %v2471_v40 }
 0x9f9   :  { %12030 = vpow2.f32 %v2473_v28 }
 0x9fa   :  { %v2345_v59 = vadd.f32 %v2344_v50, %v2321_v29  ;;  %v13503_v27 = vadd.f32 %v2392_v10, %v2369_v26 }
 0x9fc   :  { %v2456_v48 = vsub.f32 0.0, %v2345_v59  ;;  %v2457_v11 = vsub.f32 0.0, %v13503_v27 }
 0x9fe   :  { %v2477_v56 = vmul.f32 1.442695, %v2456_v48  ;;  %v12029_v46 = vpop.eup %12028  ;;  %v2479_v61 = vmul.f32 1.442695, %v2457_v11 }
 0x9ff   :  { %v2323_v12 = vpop.f32.mrf.mxu3  ;;  %v2371_v1 = vpop.f32.mrf.mxu2  ;;  %v2507_v33 = vadd.f32 1.0, %v12029_v46 }
 0xa00   :  { %v12031_v21 = vpop.eup %12030  ;;  %12032 = vpow2.f32 %v2477_v56  ;;  %v2324_v18 = vadd.f32 %v2323_v12, %v13484_v17  ;;  %v2372_v53 = vadd.f32 %v2371_v1, %v13487_v62 }
 0xa01   :  { %v2508_v10 = vadd.f32 1.0, %v12031_v21  ;;  %12034 = vpow2.f32 %v2479_v61  ;;  %v2354_v21 = vpop.f32.mrf.mxu1 }
 0xa02   :  { %v13508_v47 = vadd.f32 %v2347_v54, %v2324_v18  ;;  %v13510_v50 = vadd.f32 %v2395_v39, %v2372_v53  ;;  %12036 = vrcp.f32 %v2507_v33 }
 0xa03   :  { %12038 = vrcp.f32 %v2508_v10 }
 0xa04   :  { %v2459_v40 = vsub.f32 0.0, %v13508_v47  ;;  %v2460_v28 = vsub.f32 0.0, %v13510_v50 }
 0xa06   :  { %v12033_v2 = vpop.eup %12032  ;;  %v2483_v20 = vmul.f32 1.442695, %v2459_v40  ;;  %v2485_v29 = vmul.f32 1.442695, %v2460_v28  ;;  %v2400_v40 = vpop.f32.mrf.mxu0 }
 0xa07   :  { %v2510_v26 = vadd.f32 1.0, %v12033_v2  ;;  %v2325_v48 = vpop.f32.mrf.mxu3  ;;  %v2373_v11 = vpop.f32.mrf.mxu2 }
 0xa08   :  { %12040 = vpow2.f32 %v2483_v20  ;;  %v2326_v54 = vadd.f32 %v2325_v48, %v13484_v17  ;;  %v2374_v39 = vadd.f32 %v2373_v11, %v13487_v62  ;;  %v12035_v56 = vpop.eup %12034 }
 0xa09   :  { %12042 = vrcp.f32 %v2510_v26  ;;  %v2511_v46 = vadd.f32 1.0, %v12035_v56  ;;  %v12037_v1 = vpop.eup %12036 }
 0xa0a   :  { %12044 = vpow2.f32 %v2485_v29  ;;  %v13516_v61 = vadd.f32 %v2349_v31, %v2326_v54  ;;  %v13518_v12 = vadd.f32 %v2397_v22, %v2374_v39  ;;  %v12039_v33 = vpop.eup %12038  ;;  %v2543_v26 = vmul.f32 %v12037_v1, %v13493_v60 }
 0xa0b   :  { %12046 = vrcp.f32 %v2511_v46 }
 0xa0c   :  { %v2462_v18 = vsub.f32 0.0, %v13516_v61  ;;  %v2463_v53 = vsub.f32 0.0, %v13518_v12 }
 0xa0e   :  { %v12041_v10 = vpop.eup %12040  ;;  %v2489_v28 = vmul.f32 1.442695, %v2462_v18  ;;  %v2491_v2 = vmul.f32 1.442695, %v2463_v53  ;;  %v2544_v53 = vmul.f32 %v12039_v33, %v13495_v25 }
 0xa0f   :  { %v12043_v20 = vpop.eup %12042  ;;  %v2328_v29 = vpop.f32.mrf.mxu3  ;;  %v2513_v39 = vadd.f32 1.0, %v12041_v10 }
 0xa10   :  { %v2376_v31 = vpop.f32.mrf.mxu2  ;;  %v12045_v48 = vpop.eup %12044  ;;  %v2546_v22 = vmul.f32 %v12043_v20, %v2345_v59  ;;  %12048 = vpow2.f32 %v2489_v28  ;;  %v2329_v11 = vadd.f32 %v2328_v29, %v13484_v17 }
 0xa11   :  { %v2377_v54 = vadd.f32 %v2376_v31, %v13487_v62  ;;  %v12047_v56 = vpop.eup %12046  ;;  %12050 = vpow2.f32 %v2491_v2  ;;  %v2514_v1 = vadd.f32 1.0, %v12045_v48  ;;  %v2438_v10 = vpop.f32.mrf.mxu1 }
 0xa12   :  { %v2561_v46 = vpack.c.bf16 %v2546_v22, %v2543_v26  ;;  %v13525_v35 = vadd.f32 %v2352_v24, %v2329_v11  ;;  %v2547_v60 = vmul.f32 %v12047_v56, %v13503_v27  ;;  %12052 = vrcp.f32 %v2513_v39  ;;  %v2402_v48 = vpop.f32.mrf.mxu0 }
 0xa13   :  { %v13527_v18 = vadd.f32 %v2400_v40, %v2377_v54  ;;  %12054 = vrcp.f32 %v2514_v1 }
 0xa14   :  { %v2465_v59 = vsub.f32 0.0, %v13525_v35  ;;  %2728 = vmatmul.bf16.vlgmr.msrb.gmra.mxu2 %v2561_v46  ;;  %v2562_v20 = vpack.c.bf16 %v2547_v60, %v2544_v53  ;;  %v13536_v53 = vperm.slane %v13479_v9, 2 }
 0xa15   :  { %v2466_v28 = vsub.f32 0.0, %v13527_v18 }
 0xa16   :  { %v12049_v29 = vpop.eup %12048  ;;  %v2495_v26 = vmul.f32 1.442695, %v2465_v59  ;;  %2752 = vmatmul.bf16.vlgmr.msrb.gmra.mxu0 %v2562_v20 }
 0xa17   :  { %v2497_v2 = vmul.f32 1.442695, %v2466_v28  ;;  %v2516_v24 = vadd.f32 1.0, %v12049_v29  ;;  %v2330_v40 = vpop.f32.mrf.mxu3  ;;  %v12051_v25 = vpop.eup %12050  ;;  %v9370_v28 = vld [vmem:[%s12956_s9 + $0x104] sm:$0x1] }
 0xa18   :  { %v2378_v31 = vpop.f32.mrf.mxu2  ;;  %12056 = vpow2.f32 %v2495_v26  ;;  %v2331_v27 = vadd.f32 %v2330_v40, %v13484_v17  ;;  %v2517_v22 = vadd.f32 1.0, %v12051_v25  ;;  %v12053_v39 = vpop.eup %12052  ;;  %v2674_v29 = vunpack.c.l.b16 %v9370_v28 }
 0xa19   :  { %v2379_v33 = vadd.f32 %v2378_v31, %v13487_v62  ;;  %12058 = vrcp.f32 %v2516_v24  ;;  %v12055_v60 = vpop.eup %12054  ;;  %v2440_v31 = vpop.f32.mrf.mxu1 }
 0xa1a   :  { %12060 = vpow2.f32 %v2497_v2  ;;  %v2355_v11 = vadd.f32 %v2354_v21, %v2331_v27  ;;  %v2549_v2 = vmul.f32 %v12053_v39, %v13508_v47  ;;  %v2550_v9 = vmul.f32 %v12055_v60, %v13510_v50 }
 0xa1b   :  { %v2403_v54 = vadd.f32 %v2402_v48, %v2379_v33  ;;  %12062 = vrcp.f32 %v2517_v22  ;;  %v2691_v25 = vpack.c.b16 %v2674_v29, %v2674_v29 }
 0xa1c   :  { %v2468_v56 = vsub.f32 0.0, %v2355_v11 }
 0xa1d   :  { %v2469_v46 = vsub.f32 0.0, %v2403_v54 }
 0xa1e   :  { %v12057_v1 = vpop.eup %12056  ;;  %v2501_v59 = vmul.f32 1.442695, %v2468_v56  ;;  %v2718_v56 = vsel %vm296_vm0, %v2691_v25, 0 }
 0xa1f   :  { %v2503_v17 = vmul.f32 1.442695, %v2469_v46  ;;  %v12059_v62 = vpop.eup %12058  ;;  %v2414_v20 = vpop.f32.mrf.mxu3  ;;  %v2519_v22 = vadd.f32 1.0, %v12057_v1  ;;  %2775 = vmatpush.bf16.msrb.mxu3 %v2718_v56 }
 0xa20   :  { %v12061_v26 = vpop.eup %12060  ;;  %v2552_v21 = vmul.f32 %v12059_v62, %v13516_v61  ;;  %12064 = vpow2.f32 %v2501_v59  ;;  %v2415_v24 = vadd.f32 %v2414_v20, %v13536_v53 }
 0xa21   :  { %v12063_v40 = vpop.eup %12062  ;;  %12066 = vpow2.f32 %v2503_v17  ;;  %v2520_v46 = vadd.f32 1.0, %v12061_v26  ;;  %v2443_v17 = vpop.f32.mrf.mxu1 }
 0xa22   :  { %v2553_v27 = vmul.f32 %v12063_v40, %v13518_v12  ;;  %v2439_v33 = vadd.f32 %v2438_v10, %v2415_v24  ;;  %v2564_v48 = vpack.c.bf16 %v2552_v21, %v2549_v2  ;;  %12068 = vrcp.f32 %v2519_v22 }
 0xa23   :  { %12070 = vrcp.f32 %v2520_v46 }
 0xa24   :  { %v2455_v47 = vsub.f32 0.0, %v2439_v33  ;;  %2733 = vmatmul.bf16.gmra.mxu2 %v2564_v48  ;;  %v2565_v61 = vpack.c.bf16 %v2553_v27, %v2550_v9 }
 0xa26   :  { %v12065_v39 = vpop.eup %12064  ;;  %v2475_v59 = vmul.f32 1.442695, %v2455_v47  ;;  %2757 = vmatmul.bf16.gmra.mxu0 %v2565_v61 }
 0xa27   :  { %v2522_v28 = vadd.f32 1.0, %v12065_v39  ;;  %v2416_v50 = vpop.f32.mrf.mxu3  ;;  %v12067_v60 = vpop.eup %12066 }
 0xa28   :  { %v2417_v12 = vadd.f32 %v2416_v50, %v13536_v53  ;;  %v2523_v10 = vadd.f32 1.0, %v12067_v60  ;;  %v12069_v20 = vpop.eup %12068 }
 0xa29   :  { %12072 = vrcp.f32 %v2522_v28  ;;  %v12071_v29 = vpop.eup %12070  ;;  %v2555_v40 = vmul.f32 %v12069_v20, %v13525_v35  ;;  %v2445_v39 = vpop.f32.mrf.mxu1 }
 0xa2a   :  { %12074 = vpow2.f32 %v2475_v59  ;;  %v2441_v1 = vadd.f32 %v2440_v31, %v2417_v12  ;;  %v2556_v48 = vmul.f32 %v12071_v29, %v13527_v18 }
 0xa2b   :  { %12076 = vrcp.f32 %v2523_v10 }
 0xa2c   :  { %v2458_v62 = vsub.f32 0.0, %v2441_v1 }
 0xa2e   :  { %v2481_v26 = vmul.f32 1.442695, %v2458_v62 }
 0xa2f   :  { %v12073_v2 = vpop.eup %12072  ;;  %v2419_v21 = vpop.f32.mrf.mxu3 }
 0xa30   :  { %v12075_v24 = vpop.eup %12074  ;;  %v2558_v9 = vmul.f32 %v12073_v2, %v2355_v11  ;;  %12078 = vpow2.f32 %v2481_v26  ;;  %v2420_v25 = vadd.f32 %v2419_v21, %v13536_v53 }
 0xa31   :  { %v12077_v27 = vpop.eup %12076  ;;  %v2509_v46 = vadd.f32 1.0, %v12075_v24 }
 0xa32   :  { %v2559_v22 = vmul.f32 %v12077_v27, %v2403_v54  ;;  %v2444_v31 = vadd.f32 %v2443_v17, %v2420_v25  ;;  %v2567_v56 = vpack.c.bf16 %v2558_v9, %v2555_v40  ;;  %v2448_v17 = vpop.f32.mrf.mxu1 }
 0xa33   :  { %12080 = vrcp.f32 %v2509_v46 }
 0xa34   :  { %v2461_v47 = vsub.f32 0.0, %v2444_v31  ;;  %2738 = vmatmul.bf16.gmra.mxu2 %v2567_v56  ;;  %v2568_v61 = vpack.c.bf16 %v2559_v22, %v2556_v48 }
 0xa36   :  { %v12079_v59 = vpop.eup %12078  ;;  %v2487_v28 = vmul.f32 1.442695, %v2461_v47  ;;  %2762 = vmatmul.bf16.gmra.mxu0 %v2568_v61 }
 0xa37   :  { %v2512_v50 = vadd.f32 1.0, %v12079_v59  ;;  %v2421_v35 = vpop.f32.mrf.mxu3 }
 0xa38   :  { %v2422_v11 = vadd.f32 %v2421_v35, %v13536_v53 }
 0xa39   :  { %12082 = vrcp.f32 %v2512_v50  ;;  %v12081_v54 = vpop.eup %12080 }
 0xa3a   :  { %12084 = vpow2.f32 %v2487_v28  ;;  %v2446_v60 = vadd.f32 %v2445_v39, %v2422_v11  ;;  %v2545_v29 = vmul.f32 %v12081_v54, %v2439_v33  ;;  %v2450_v46 = vpop.f32.mrf.mxu1 }
 0xa3c   :  { %v2464_v18 = vsub.f32 0.0, %v2446_v60 }
 0xa3e   :  { %v2493_v12 = vmul.f32 1.442695, %v2464_v18 }
 0xa3f   :  { %v12083_v10 = vpop.eup %12082  ;;  %v2424_v62 = vpop.f32.mrf.mxu3 }
 0xa40   :  { %v12085_v20 = vpop.eup %12084  ;;  %v2548_v26 = vmul.f32 %v12083_v10, %v2441_v1  ;;  %12086 = vpow2.f32 %v2493_v12  ;;  %v2425_v2 = vadd.f32 %v2424_v62, %v13536_v53 }
 0xa41   :  { %v2515_v40 = vadd.f32 1.0, %v12085_v20 }
 0xa42   :  { %v2563_v21 = vpack.c.bf16 %v2548_v26, %v2545_v29  ;;  %v2449_v24 = vadd.f32 %v2448_v17, %v2425_v2 }
 0xa43   :  { %12088 = vrcp.f32 %v2515_v40 }
 0xa44   :  { %v2467_v9 = vsub.f32 0.0, %v2449_v24  ;;  %9436 = vmatmul.msk.bf16.vlgmr.msrb.gmra.mxu3 %vm1267_vm2, %v2563_v21 }
 0xa46   :  { %v12087_v25 = vpop.eup %12086  ;;  %v2499_v27 = vmul.f32 1.442695, %v2467_v9 }
 0xa47   :  { %v2518_v48 = vadd.f32 1.0, %v12087_v25  ;;  %v2426_v22 = vpop.f32.mrf.mxu3 }
 0xa48   :  { %v2427_v56 = vadd.f32 %v2426_v22, %v13536_v53 }
 0xa49   :  { %12090 = vrcp.f32 %v2518_v48  ;;  %v12089_v47 = vpop.eup %12088 }
 0xa4a   :  { %12092 = vpow2.f32 %v2499_v27  ;;  %v2451_v33 = vadd.f32 %v2450_v46, %v2427_v56  ;;  %v2551_v28 = vmul.f32 %v12089_v47, %v2444_v31  ;;  %v11856_v27 = vld [vmem:[%s12980_s17 + $0x1] ss:$0 sm:$0xff] }
 0xa4c   :  { %v2470_v1 = vsub.f32 0.0, %v2451_v33 }
 0xa4e   :  { %v2505_v61 = vmul.f32 1.442695, %v2470_v1 }
 0xa4f   :  { %v12091_v39 = vpop.eup %12090 }
 0xa50   :  { %v12093_v59 = vpop.eup %12092  ;;  %v2554_v50 = vmul.f32 %v12091_v39, %v2446_v60  ;;  %12094 = vpow2.f32 %v2505_v61 }
 0xa51   :  { %v2521_v11 = vadd.f32 1.0, %v12093_v59 }
 0xa52   :  { %v2566_v35 = vpack.c.bf16 %v2554_v50, %v2551_v28 }
 0xa53   :  { %12096 = vrcp.f32 %v2521_v11 }
 0xa54   :  { %9437 = vmatmul.msk.bf16.gmra.mxu3 %vm1267_vm2, %v2566_v35 }
 0xa56   :  { %v12095_v18 = vpop.eup %12094 }
 0xa57   :  { %v2524_v54 = vadd.f32 1.0, %v12095_v18 }
 0xa59   :  { %12098 = vrcp.f32 %v2524_v54  ;;  %v12097_v53 = vpop.eup %12096 }
 0xa5a   :  { %v2557_v10 = vmul.f32 %v12097_v53, %v2449_v24 }
 0xa5f   :  { %v12099_v12 = vpop.eup %12098 }
 0xa60   :  { %v2560_v17 = vmul.f32 %v12099_v12, %v2451_v33 }
 0xa62   :  { %v2569_v62 = vpack.c.bf16 %v2560_v17, %v2557_v10 }
 0xa64   :  { %9438 = vmatmul.msk.bf16.gmra.mxu3 %vm1267_vm2, %v2569_v62 }
 0xa93   :  { %v2753_v31 = vpop.f32.mrf.mxu0 }
 0xa97   :  { %v2729_v20 = vpop.f32.mrf.mxu2 }
 0xa9b   :  { %v2755_v29 = vpop.f32.mrf.mxu0 }
 0xa9f   :  { %v2731_v60 = vpop.f32.mrf.mxu2 }
 0xaa0   :  { %v2732_v56 = vadd.f32 %v11856_v27, %v2731_v60 }
 0xaa2   :  { %v2756_v33 = vadd.f32 %v2755_v29, %v2732_v56 }
 0xaa3   :  { %v2758_v21 = vpop.f32.mrf.mxu0 }
 0xaa7   :  { %v2734_v2 = vpop.f32.mrf.mxu2 }
 0xaa8   :  { %v2735_v28 = vadd.f32 %v11856_v27, %v2734_v2 }
 0xaaa   :  { %v2759_v53 = vadd.f32 %v2758_v21, %v2735_v28 }
 0xaab   :  { %v2760_v48 = vpop.f32.mrf.mxu0 }
 0xaaf   :  { %v2736_v9 = vpop.f32.mrf.mxu2 }
 0xab0   :  { %v2737_v22 = vadd.f32 %v11856_v27, %v2736_v9 }
 0xab2   :  { %v2761_v24 = vadd.f32 %v2760_v48, %v2737_v22  ;;  %v2730_v48 = vadd.f32 %v11856_v27, %v2729_v20 }
 0xab3   :  { %v2763_v50 = vpop.f32.mrf.mxu0 }
 0xab7   :  { %v2739_v46 = vpop.f32.mrf.mxu2 }
 0xab8   :  { %v2740_v39 = vadd.f32 %v11856_v27, %v2739_v46 }
 0xaba   :  { %v2764_v18 = vadd.f32 %v2763_v50, %v2740_v39 }
 0xabf   :  { %v2741_v54 = vpop.f32.mrf.mxu2 }
 0xac0   :  { %v2742_v60 = vadd.f32 %v11856_v27, %v2741_v54 }
 0xac7   :  { %v2777_v26 = vpop.f32.mrf.mxu3 }
 0xacf   :  { %v2779_v40 = vpop.f32.mrf.mxu3 }
 0xad0   :  { %v2780_v61 = vadd.f32 %v2779_v40, %v2756_v33  ;;  %v2765_v40 = vpop.f32.mrf.mxu0  ;;  %v2754_v33 = vadd.f32 %v2753_v31, %v2730_v48 }
 0xad1   :  { %v2766_v46 = vadd.f32 %v2765_v40, %v2742_v60 }
 0xad2   :  { %v2793_v11 = vsub.f32 0.0, %v2780_v61  ;;  %v2778_v39 = vadd.f32 %v2777_v26, %v2754_v33 }
 0xad4   :  { %v2800_v17 = vmul.f32 1.442695, %v2793_v11  ;;  %v2792_v27 = vsub.f32 0.0, %v2778_v39 }
 0xad7   :  { %v2782_v25 = vpop.f32.mrf.mxu3 }
 0xad8   :  { %v2783_v62 = vadd.f32 %v2782_v25, %v2759_v53  ;;  %v2798_v53 = vmul.f32 1.442695, %v2792_v27 }
 0xada   :  { %v2794_v56 = vsub.f32 0.0, %v2783_v62 }
 0xadc   :  { %v2802_v21 = vmul.f32 1.442695, %v2794_v56 }
 0xadf   :  { %v2784_v1 = vpop.f32.mrf.mxu3 }
 0xae0   :  { %v2785_v47 = vadd.f32 %v2784_v1, %v2761_v24 }
 0xae2   :  { %v2795_v59 = vsub.f32 0.0, %v2785_v47 }
 0xae4   :  { %v2804_v35 = vmul.f32 1.442695, %v2795_v59 }
 0xae6   :  { %12100 = vpow2.f32 %v2804_v35 }
 0xae7   :  { %v2787_v12 = vpop.f32.mrf.mxu3  ;;  %12102 = vpow2.f32 %v2800_v17 }
 0xae8   :  { %v2788_v10 = vadd.f32 %v2787_v12, %v2764_v18 }
 0xaea   :  { %v2796_v9 = vsub.f32 0.0, %v2788_v10 }
 0xaec   :  { %v12101_v29 = vpop.eup %12100  ;;  %v2806_v22 = vmul.f32 1.442695, %v2796_v9 }
 0xaed   :  { %v2813_v2 = vadd.f32 1.0, %v12101_v29  ;;  %v12103_v28 = vpop.eup %12102 }
 0xaee   :  { %12104 = vpow2.f32 %v2806_v22  ;;  %v2811_v18 = vadd.f32 1.0, %v12103_v28 }
 0xaef   :  { %12106 = vrcp.f32 %v2813_v2  ;;  %v2789_v24 = vpop.f32.mrf.mxu3 }
 0xaf0   :  { %v2790_v1 = vadd.f32 %v2789_v24, %v2766_v46  ;;  %12108 = vpow2.f32 %v2802_v21 }
 0xaf2   :  { %v2797_v59 = vsub.f32 0.0, %v2790_v1 }
 0xaf4   :  { %v12105_v25 = vpop.eup %12104  ;;  %v2808_v50 = vmul.f32 1.442695, %v2797_v59 }
 0xaf5   :  { %v12107_v35 = vpop.eup %12106  ;;  %v2814_v20 = vadd.f32 1.0, %v12105_v25 }
 0xaf6   :  { %12110 = vpow2.f32 %v2808_v50  ;;  %v2825_v11 = vmul.f32 %v12107_v35, %v2785_v47  ;;  %v12109_v31 = vpop.eup %12108 }
 0xaf7   :  { %12112 = vrcp.f32 %v2814_v20  ;;  %v2812_v9 = vadd.f32 1.0, %v12109_v31 }
 0xaf8   :  { %v2841_v54 = vsel %vm523_vm1, %v2825_v11, 0.0  ;;  %12114 = vrcp.f32 %v2811_v18 }
 0xaf9   :  { %2842 = vadd.xlane.f32.xlu1 %v2841_v54  ;;  %12116 = vpow2.f32 %v2798_v53 }
 0xafc   :  { %v12111_v12 = vpop.eup %12110 }
 0xafd   :  { %v12113_v26 = vpop.eup %12112  ;;  %v2815_v17 = vadd.f32 1.0, %v12111_v12 }
 0xafe   :  { %v2826_v60 = vmul.f32 %v12113_v26, %v2788_v10  ;;  %v12115_v48 = vpop.eup %12114 }
 0xaff   :  { %12118 = vrcp.f32 %v2815_v17  ;;  %v12117_v47 = vpop.eup %12116  ;;  %v2823_v22 = vmul.f32 %v12115_v48, %v2780_v61 }
 0xb00   :  { %v2844_v29 = vsel %vm523_vm1, %v2826_v60, 0.0  ;;  %12120 = vrcp.f32 %v2812_v9  ;;  %v2810_v2 = vadd.f32 1.0, %v12117_v47 }
 0xb01   :  { %2845 = vadd.xlane.f32.xlu0 %v2844_v29  ;;  %v2835_v24 = vsel %vm523_vm1, %v2823_v22, 0.0 }
 0xb02   :  { %12122 = vrcp.f32 %v2810_v2 }
 0xb05   :  { %v12119_v40 = vpop.eup %12118 }
 0xb06   :  { %v2827_v56 = vmul.f32 %v12119_v40, %v2790_v1  ;;  %v12121_v33 = vpop.eup %12120 }
 0xb07   :  { %v2824_v10 = vmul.f32 %v12121_v33, %v2783_v62 }
 0xb08   :  { %v2847_v46 = vsel %vm523_vm1, %v2827_v56, 0.0  ;;  %v12123_v59 = vpop.eup %12122 }
 0xb09   :  { %2848 = vadd.xlane.f32.xlu2 %v2847_v46  ;;  %2836 = vadd.xlane.f32.xlu0 %v2835_v24  ;;  %v2838_v21 = vsel %vm523_vm1, %v2824_v10, 0.0  ;;  %v2822_v28 = vmul.f32 %v12123_v59, %v2778_v39 }
 0xb0b   :  { %v2832_v25 = vsel %vm523_vm1, %v2822_v28, 0.0 }
 0xb11   :  { %2839 = vadd.xlane.f32.xlu2 %v2838_v21 }
 0xb19   :  { %2833 = vadd.xlane.f32.xlu2 %v2832_v25 }
 0xb6c   :  { %v2843_v61 = vpop.xlane.xlu1 %2842 }
 0xb6d   :  { %v2853_v1 = vmul.f32 %v2843_v61, %v13066_v15 }
 0xb6f   :  { %v13563_v50 = vsub.f32 %v2825_v11, %v2853_v1 }
 0xb71   :  { %v2865_v35 = vmul.f32 %v13563_v50, %v13563_v50 }
 0xb73   :  { %v2877_v20 = vsel %vm523_vm1, %v2865_v35, 0.0 }
 0xb74   :  { %2878 = vadd.xlane.f32.xlu2 %v2877_v20  ;;  %v2846_v62 = vpop.xlane.xlu0 %2845 }
 0xb75   :  { %v2854_v27 = vmul.f32 %v2846_v62, %v13066_v15 }
 0xb77   :  { %v13569_v18 = vsub.f32 %v2826_v60, %v2854_v27 }
 0xb79   :  { %v2866_v39 = vmul.f32 %v13569_v18, %v13569_v18 }
 0xb7b   :  { %v2880_v54 = vsel %vm523_vm1, %v2866_v39, 0.0 }
 0xb7c   :  { %v2849_v53 = vpop.xlane.xlu2 %2848  ;;  %2881 = vadd.xlane.f32.xlu0 %v2880_v54  ;;  %v2837_v11 = vpop.xlane.xlu0 %2836 }
 0xb7d   :  { %v2855_v31 = vmul.f32 %v2849_v53, %v13066_v15  ;;  %v2851_v12 = vmul.f32 %v2837_v11, %v13066_v15 }
 0xb7f   :  { %v13576_v26 = vsub.f32 %v2827_v56, %v2855_v31  ;;  %v13578_v17 = vsub.f32 %v2823_v22, %v2851_v12 }
 0xb81   :  { %v2867_v60 = vmul.f32 %v13576_v26, %v13576_v26  ;;  %v2863_v9 = vmul.f32 %v13578_v17, %v13578_v17 }
 0xb83   :  { %v2883_v29 = vsel %vm523_vm1, %v2867_v60, 0.0  ;;  %v2871_v48 = vsel %vm523_vm1, %v2863_v9, 0.0 }
 0xb84   :  { %2884 = vadd.xlane.f32.xlu1 %v2883_v29  ;;  %v2840_v47 = vpop.xlane.xlu2 %2839  ;;  %2872 = vadd.xlane.f32.xlu0 %v2871_v48 }
 0xb85   :  { %v2852_v40 = vmul.f32 %v2840_v47, %v13066_v15 }
 0xb87   :  { %v13587_v2 = vsub.f32 %v2824_v10, %v2852_v40  ;;  %v3059_v10 = vsel %vm523_vm1, %v13352_v58, 0.0 }
 0xb89   :  { %v2864_v22 = vmul.f32 %v13587_v2, %v13587_v2 }
 0xb8b   :  { %v2874_v56 = vsel %vm523_vm1, %v2864_v22, 0.0 }
 0xb8c   :  { %2875 = vadd.xlane.f32.xlu1 %v2874_v56  ;;  %v2834_v46 = vpop.xlane.xlu2 %2833 }
 0xb8d   :  { %v2850_v24 = vmul.f32 %v2834_v46, %v13066_v15 }
 0xb8f   :  { %v13593_v33 = vsub.f32 %v2822_v28, %v2850_v24 }
 0xb91   :  { %v2862_v21 = vmul.f32 %v13593_v33, %v13593_v33 }
 0xb93   :  { %v2868_v59 = vsel %vm523_vm1, %v2862_v21, 0.0 }
 0xb94   :  { %2869 = vadd.xlane.f32.xlu2 %v2868_v59 }
 0xb9c   :  { %3060 = vadd.xlane.f32.xlu2 %v3059_v10 }
 0xbe7   :  { %v2879_v25 = vpop.xlane.xlu2 %2878 }
 0xbe8   :  { %v2889_v61 = vmul.f32 %v2879_v25, %v13066_v15 }
 0xbea   :  { %v2895_v1 = vadd.f32 1e-05, %v2889_v61 }
 0xbec   :  { %12124 = vrsqrt.f32 %v2895_v1  ;;  %vm2934_vm5 = vweird.f32 %v2895_v1 }
 0xbef   :  { %v2882_v35 = vpop.xlane.xlu0 %2881 }
 0xbf0   :  { %v2890_v20 = vmul.f32 %v2882_v35, %v13066_v15 }
 0xbf2   :  { %v2896_v28 = vadd.f32 1e-05, %v2890_v20  ;;  %v12125_v62 = vpop.eup %12124 }
 0xbf3   :  { %v2929_v27 = vmul.f32 %v12125_v62, %v2895_v1  ;;  %vm2935_vm13 = vweird.f32 %v12125_v62 }
 0xbf4   :  { %12126 = vrsqrt.f32 %v2896_v28  ;;  %vm2944_vm14 = vweird.f32 %v2896_v28  ;;  %vm13612_vm8 = vmor %vm2934_vm5, %vm2935_vm13 }
 0xbf5   :  { %v2930_v9 = vmul.f32 %v12125_v62, %v2929_v27 }
 0xbf7   :  { %v2885_v39 = vpop.xlane.xlu1 %2884  ;;  %v2873_v54 = vpop.xlane.xlu0 %2872  ;;  %v2931_v47 = vmul.f32 0.5, %v2930_v9 }
 0xbf8   :  { %v2891_v53 = vmul.f32 %v2885_v39, %v13066_v15  ;;  %v2887_v11 = vmul.f32 %v2873_v54, %v13066_v15 }
 0xbf9   :  { %v2932_v10 = vsub.f32 1.5, %v2931_v47 }
 0xbfa   :  { %v12127_v31 = vpop.eup %12126  ;;  %v2897_v12 = vadd.f32 1e-05, %v2891_v53  ;;  %v2893_v60 = vadd.f32 1e-05, %v2887_v11 }
 0xbfb   :  { %v2939_v29 = vmul.f32 %v12127_v31, %v2896_v28  ;;  %vm2945_vm12 = vweird.f32 %v12127_v31  ;;  %v2933_v39 = vmul.f32 %v12125_v62, %v2932_v10 }
 0xbfc   :  { %12128 = vrsqrt.f32 %v2897_v12  ;;  %vm13605_vm3 = vmor %vm2944_vm14, %vm2945_vm12  ;;  %vm2954_vm9 = vweird.f32 %v2897_v12  ;;  %vm2914_vm12 = vweird.f32 %v2893_v60 }
 0xbfd   :  { %v2940_v48 = vmul.f32 %v12127_v31, %v2939_v29  ;;  %12130 = vrsqrt.f32 %v2893_v60 }
 0xbff   :  { %v2941_v40 = vmul.f32 0.5, %v2940_v48  ;;  %v2876_v22 = vpop.xlane.xlu1 %2875 }
 0xc00   :  { %v2888_v56 = vmul.f32 %v2876_v22, %v13066_v15 }
 0xc01   :  { %v2942_v46 = vsub.f32 1.5, %v2941_v40 }
 0xc02   :  { %v12129_v24 = vpop.eup %12128  ;;  %v2894_v21 = vadd.f32 1e-05, %v2888_v56 }
 0xc03   :  { %v12131_v59 = vpop.eup %12130  ;;  %v2949_v25 = vmul.f32 %v12129_v24, %v2897_v12  ;;  %v2943_v35 = vmul.f32 %v12127_v31, %v2942_v46  ;;  %vm2955_vm7 = vweird.f32 %v12129_v24  ;;  %v2937_v46 = vsel %vm13612_vm8, %v12125_v62, %v2933_v39 }
 0xc04   :  { %v2909_v61 = vmul.f32 %v12131_v59, %v2893_v60  ;;  %12132 = vrsqrt.f32 %v2894_v21  ;;  %vm2956_vm10 = vmor %vm2954_vm9, %vm2955_vm7  ;;  %vm2915_vm11 = vweird.f32 %v12131_v59 }
 0xc05   :  { %v2950_v20 = vmul.f32 %v12129_v24, %v2949_v25  ;;  %v2947_v48 = vsel %vm13605_vm3, %v12127_v31, %v2943_v35  ;;  %vm13624_vm13 = vmor %vm2914_vm12, %vm2915_vm11  ;;  %vm2924_vm3 = vweird.f32 %v2894_v21 }
 0xc06   :  { %v2910_v27 = vmul.f32 %v12131_v59, %v2909_v61  ;;  %v2962_v31 = vmul.f32 %v2947_v48, %v13569_v18 }
 0xc07   :  { %v2951_v54 = vmul.f32 0.5, %v2950_v20  ;;  %v2870_v53 = vpop.xlane.xlu2 %2869 }
 0xc08   :  { %v2911_v9 = vmul.f32 0.5, %v2910_v27  ;;  %v2886_v29 = vmul.f32 %v2870_v53, %v13066_v15  ;;  %v13621_v27 = vld [vmem:[%s13082_s25 + $0x1] ss:$0 sm:$0xff] }
 0xc09   :  { %v2952_v47 = vsub.f32 1.5, %v2951_v54  ;;  %v2961_v54 = vmul.f32 %v2937_v46, %v13563_v50  ;;  %v13630_v53 = vld [vmem:[%s13088_s29 + $0x1] ss:$0 sm:$0xff]  ;;  %v2971_v18 = vmul.f32 %v13621_v27, %v2962_v31 }
 0xc0a   :  { %v12133_v40 = vpop.eup %12132  ;;  %v2912_v28 = vsub.f32 1.5, %v2911_v9  ;;  %v2892_v56 = vadd.f32 1e-05, %v2886_v29 }
 0xc0b   :  { %v2953_v10 = vmul.f32 %v12129_v24, %v2952_v47  ;;  %v2919_v1 = vmul.f32 %v12133_v40, %v2894_v21  ;;  %vm2925_vm14 = vweird.f32 %v12133_v40  ;;  %v2970_v60 = vmul.f32 %v13621_v27, %v2961_v54 }
 0xc0c   :  { %12134 = vrsqrt.f32 %v2892_v56  ;;  %v2913_v61 = vmul.f32 %v12131_v59, %v2912_v28  ;;  %vm2926_vm5 = vmor %vm2924_vm3, %vm2925_vm14  ;;  %v2980_v48 = vadd.f32 %v13630_v53, %v2971_v18  ;;  %vm2904_vm8 = vweird.f32 %v2892_v56 }
 0xc0d   :  { %v2957_v25 = vsel %vm2956_vm10, %v12129_v24, %v2953_v10  ;;  %v2920_v35 = vmul.f32 %v12133_v40, %v2919_v1 }
 0xc0e   :  { %v2963_v20 = vmul.f32 %v2957_v25, %v13576_v26  ;;  %v2917_v24 = vsel %vm13624_vm13, %v12131_v59, %v2913_v61  ;;  %v2979_v59 = vadd.f32 %v13630_v53, %v2970_v60 }
 0xc0f   :  { %v2921_v62 = vmul.f32 0.5, %v2920_v35  ;;  %v2959_v47 = vmul.f32 %v2917_v24, %v13578_v17  ;;  %v3061_v12 = vpop.xlane.xlu2 %3060 }
 0xc10   :  { %v2972_v39 = vmul.f32 %v13621_v27, %v2963_v20 }
 0xc11   :  { %v2922_v26 = vsub.f32 1.5, %v2921_v62  ;;  %v2968_v21 = vmul.f32 %v13621_v27, %v2959_v47 }
 0xc12   :  { %v12135_v11 = vpop.eup %12134  ;;  %v2981_v50 = vadd.f32 %v13630_v53, %v2972_v39 }
 0xc13   :  { %v2923_v9 = vmul.f32 %v12133_v40, %v2922_v26  ;;  %v2899_v29 = vmul.f32 %v12135_v11, %v2892_v56  ;;  %vm2905_vm7 = vweird.f32 %v12135_v11  ;;  %v2977_v17 = vadd.f32 %v13630_v53, %v2968_v21 }
 0xc14   :  { %2992 = vmatpush.msrb.mxu1 %v2981_v50  ;;  %vm2906_vm9 = vmor %vm2904_vm8, %vm2905_vm7  ;;  %v3062_v26 = vsel %vm523_vm1, %v13349_v32, 0.0 }
 0xc15   :  { %v2927_v22 = vsel %vm2926_vm5, %v12133_v40, %v2923_v9  ;;  %v2900_v28 = vmul.f32 %v12135_v11, %v2899_v29 }
 0xc16   :  { %2993 = vmatpush.msrb.mxu1 %v2980_v48  ;;  %v2960_v46 = vmul.f32 %v2927_v22, %v13587_v2 }
 0xc17   :  { %v2901_v10 = vmul.f32 0.5, %v2900_v28 }
 0xc18   :  { %2994 = vmatpush.msrb.mxu1 %v2979_v59  ;;  %v2969_v1 = vmul.f32 %v13621_v27, %v2960_v46 }
 0xc19   :  { %v2902_v31 = vsub.f32 1.5, %v2901_v10 }
 0xc1a   :  { %v2978_v25 = vadd.f32 %v13630_v53, %v2969_v1 }
 0xc1b   :  { %v2903_v61 = vmul.f32 %v12135_v11, %v2902_v31 }
 0xc1c   :  { %2995 = vmatpush.msrb.mxu1 %v2978_v25 }
 0xc1d   :  { %v2907_v40 = vsel %vm2906_vm9, %v12135_v11, %v2903_v61 }
 0xc1e   :  { %2996 = vmatpush.msrb.mxu1 %v2977_v17  ;;  %v2958_v2 = vmul.f32 %v2907_v40, %v13593_v33  ;;  %v3065_v33 = vmul.f32 %v3061_v12, %v13066_v15 }
 0xc20   :  { %v2967_v35 = vmul.f32 %v13621_v27, %v2958_v2  ;;  %v13657_v24 = vsub.f32 %v13352_v58, %v3065_v33 }
 0xc22   :  { %v2976_v20 = vadd.f32 %v13630_v53, %v2967_v35  ;;  %v3069_v50 = vmul.f32 %v13657_v24, %v13657_v24 }
 0xc24   :  { %2997 = vmatpush.msrb.mxu1 %v2976_v20  ;;  %v3071_v60 = vsel %vm523_vm1, %v3069_v50, 0.0  ;;  %v11349_v20 = vld [vmem:[%s13244_s16 + $0x38] sm:$0xff] }
 0xc25   :  { %9441 = vmatmul.msk.f32.vlgmr.msrb.gmra.mxu1 %vm230_vm6, %v13131_v30 }
 0xc26   :  { %3169 = vmatpush.bf16.msra.mxu1 %v11349_v20 }
 0xc2d   :  { %9442 = vmatmul.msk.f32.gmra.mxu1 %vm230_vm6, %v13121_v57 }
 0xca2   :  { %v2999_v56 = vpop.f32.mrf.mxu1 }
 0xca3   :  { %v3005_v54 = vmul.f32 %v2999_v56, %v13203_v51 }
 0xca5   :  { %v3007_v62 = vsel %vm523_vm1, %v3005_v54, 0.0 }
 0xca6   :  { %3008 = vadd.xlane.f32.xlu1 %v3007_v62  ;;  %v11348_v62 = vld [vmem:[%s13244_s16 + $0x30] sm:$0xff] }
 0xca7   :  { %3170 = vmatpush.bf16.msra.mxu1 %v11348_v62 }
 0xcaa   :  { %v3002_v39 = vpop.f32.mrf.mxu1 }
 0xcab   :  { %v3006_v18 = vmul.f32 %v3002_v39, %v13213_v44 }
 0xcad   :  { %v3010_v11 = vsel %vm523_vm1, %v3006_v18, 0.0 }
 0xcae   :  { %3063 = vadd.xlane.f32.xlu1 %v3062_v26  ;;  %3011 = vadd.xlane.f32.xlu0 %v3010_v11 }
 0xcb6   :  { %3072 = vadd.xlane.f32.xlu1 %v3071_v60 }
 0xd19   :  { %v3009_v9 = vpop.xlane.xlu1 %3008 }
 0xd1a   :  { %v3013_v29 = vmul.f32 %v3009_v9, %v13066_v15 }
 0xd1c   :  { %v3015_v48 = vsub.f32 %v3005_v54, %v3013_v29 }
 0xd1e   :  { %v3017_v47 = vmul.f32 %v3015_v48, %v3015_v48 }
 0xd20   :  { %v3019_v22 = vsel %vm523_vm1, %v3017_v47, 0.0 }
 0xd21   :  { %v3064_v28 = vpop.xlane.xlu1 %3063  ;;  %3020 = vadd.xlane.f32.xlu0 %v3019_v22  ;;  %v3012_v59 = vpop.xlane.xlu0 %3011 }
 0xd22   :  { %v3066_v46 = vmul.f32 %v3064_v28, %v13066_v15  ;;  %v3014_v10 = vmul.f32 %v3012_v59, %v13066_v15 }
 0xd24   :  { %v13670_v1 = vsub.f32 %v13349_v32, %v3066_v46  ;;  %v3016_v21 = vsub.f32 %v3006_v18, %v3014_v10  ;;  %v11347_v18 = vld [vmem:[%s13244_s16 + $0x28] sm:$0xff] }
 0xd25   :  { %3171 = vmatpush.bf16.msra.mxu1 %v11347_v18  ;;  %v11346_v18 = vld [vmem:[%s13244_s16 + $0x20] sm:$0xff] }
 0xd26   :  { %v3070_v31 = vmul.f32 %v13670_v1, %v13670_v1  ;;  %v3018_v25 = vmul.f32 %v3016_v21, %v3016_v21 }
 0xd28   :  { %v3074_v61 = vsel %vm523_vm1, %v3070_v31, 0.0  ;;  %v3022_v17 = vsel %vm523_vm1, %v3018_v25, 0.0 }
 0xd29   :  { %3075 = vadd.xlane.f32.xlu0 %v3074_v61  ;;  %3023 = vadd.xlane.f32.xlu2 %v3022_v17  ;;  %v3073_v20 = vpop.xlane.xlu1 %3072 }
 0xd2a   :  { %3172 = vmatpush.bf16.msra.mxu1 %v11346_v18  ;;  %v11397_v18 = vld [vmem:[%s12795_s4 + $0x458] sm:$0xf0] }
 0xd94   :  { %v3021_v40 = vpop.xlane.xlu0 %3020 }
 0xd95   :  { %v3025_v2 = vmul.f32 %v3021_v40, %v13066_v15 }
 0xd97   :  { %v3027_v35 = vadd.f32 1e-05, %v3025_v2 }
 0xd99   :  { %12136 = vrsqrt.f32 %v3027_v35  ;;  %vm3035_vm11 = vweird.f32 %v3027_v35 }
 0xd9c   :  { %v3024_v56 = vpop.xlane.xlu2 %3023 }
 0xd9d   :  { %v3026_v54 = vmul.f32 %v3024_v56, %v13066_v15  ;;  %v3076_v56 = vpop.xlane.xlu0 %3075 }
 0xd9f   :  { %v12137_v12 = vpop.eup %12136  ;;  %v3028_v33 = vadd.f32 1e-05, %v3026_v54  ;;  %v3078_v54 = vmul.f32 %v3076_v56, %v13066_v15 }
 0xda0   :  { %v3030_v39 = vmul.f32 %v12137_v12, %v3027_v35  ;;  %vm3036_vm10 = vweird.f32 %v12137_v12 }
 0xda1   :  { %12138 = vrsqrt.f32 %v3028_v33  ;;  %vm3037_vm12 = vmor %vm3035_vm11, %vm3036_vm10  ;;  %vm3045_vm14 = vweird.f32 %v3028_v33 }
 0xda2   :  { %v3031_v26 = vmul.f32 %v12137_v12, %v3030_v39 }
 0xda4   :  { %v3032_v11 = vmul.f32 0.5, %v3031_v26 }
 0xda6   :  { %v3033_v50 = vsub.f32 1.5, %v3032_v11 }
 0xda7   :  { %v12139_v60 = vpop.eup %12138 }
 0xda8   :  { %v3034_v9 = vmul.f32 %v12137_v12, %v3033_v50  ;;  %v3040_v29 = vmul.f32 %v12139_v60, %v3028_v33  ;;  %vm3046_vm13 = vweird.f32 %v12139_v60 }
 0xda9   :  { %vm3047_vm3 = vmor %vm3045_vm14, %vm3046_vm13 }
 0xdaa   :  { %v3041_v47 = vmul.f32 %v12139_v60, %v3040_v29  ;;  %v3038_v22 = vsel %vm3037_vm12, %v12137_v12, %v3034_v9 }
 0xdab   :  { %v3049_v46 = vmul.f32 %v3038_v22, %v3015_v48  ;;  %v3077_v48 = vmul.f32 %v3073_v20, %v13066_v15 }
 0xdac   :  { %v3042_v28 = vmul.f32 0.5, %v3041_v47 }
 0xdad   :  { %v3051_v61 = vmul.f32 %v13621_v27, %v3049_v46  ;;  %v3079_v62 = vadd.f32 1e-05, %v3077_v48 }
 0xdae   :  { %v3043_v59 = vsub.f32 1.5, %v3042_v28 }
 0xdaf   :  { %v3053_v40 = vadd.f32 %v13630_v53, %v3051_v61  ;;  %12140 = vrsqrt.f32 %v3079_v62  ;;  %vm3087_vm8 = vweird.f32 %v3079_v62  ;;  %v11860_v61 = vld [vmem:[%s13228_s11 + $0x1] ss:$0 sm:$0xff] }
 0xdb0   :  { %v3044_v10 = vmul.f32 %v12139_v60, %v3043_v59  ;;  %v11859_v59 = vld [vmem:[%s13210_s6 + $0x1] ss:$0 sm:$0xff] }
 0xdb2   :  { %v3048_v31 = vsel %vm3047_vm3, %v12139_v60, %v3044_v10 }
 0xdb3   :  { %v3050_v25 = vmul.f32 %v3048_v31, %v3016_v21  ;;  %v3080_v21 = vadd.f32 1e-05, %v3078_v54  ;;  %v11352_v54 = vld [vmem:[%s13274_s26 + $0x30] sm:$0xff] }
 0xdb5   :  { %v3052_v17 = vmul.f32 %v13621_v27, %v3050_v25  ;;  %12142 = vrsqrt.f32 %v3080_v21  ;;  %v12141_v12 = vpop.eup %12140  ;;  %vm3097_vm10 = vweird.f32 %v3080_v21 }
 0xdb6   :  { %v3082_v33 = vmul.f32 %v12141_v12, %v3079_v62  ;;  %vm3088_vm5 = vweird.f32 %v12141_v12  ;;  %v11351_v62 = vld [vmem:[%s13274_s26 + $0x28] sm:$0xff] }
 0xdb7   :  { %v3054_v2 = vadd.f32 %v13630_v53, %v3052_v17  ;;  %vm3089_vm9 = vmor %vm3087_vm8, %vm3088_vm5 }
 0xdb8   :  { %v3083_v26 = vmul.f32 %v12141_v12, %v3082_v33 }
 0xdb9   :  { %v11780_v35 = vpack.i.bf16 %v3054_v2, %v3053_v40 }
 0xdba   :  { %v3084_v11 = vmul.f32 0.5, %v3083_v26 }
 0xdbb   :  { %11781 = vrot.lane.b32.xlu2 %v11780_v35, %s12616_s5  ;;  %v12143_v27 = vpop.eup %12142 }
 0xdbc   :  { %v3092_v39 = vmul.f32 %v12143_v27, %v3080_v21  ;;  %v3085_v60 = vsub.f32 1.5, %v3084_v11  ;;  %vm3098_vm7 = vweird.f32 %v12143_v27  ;;  %v11350_v21 = vld [vmem:[%s13274_s26 + $0x20] sm:$0xff] }
 0xdbd   :  { %vm3099_vm11 = vmor %vm3097_vm10, %vm3098_vm7  ;;  %v11394_v11 = vld [vmem:[%s12795_s4 + $0x440] sm:$0xf0] }
 0xdbe   :  { %v3093_v53 = vmul.f32 %v12143_v27, %v3092_v39  ;;  %v3086_v29 = vmul.f32 %v12141_v12, %v3085_v60  ;;  %v9746_v39 = vld [vmem:[%s12795_s4 + $0x450] sm:$0xf] }
 0xdbf   :  { %v9747_v26 = vor.u32 %v11397_v18, %v9746_v39 }
 0xdc0   :  { %v3094_v50 = vmul.f32 0.5, %v3093_v53  ;;  %v3090_v22 = vsel %vm3089_vm9, %v12141_v12, %v3086_v29  ;;  %v9758_v12 = vld [vmem:[%s12795_s4 + $0x468] sm:$0xf]  ;;  %v9734_v53 = vld [vmem:[%s12795_s4 + $0x438] sm:$0xf] }
 0xdc1   :  { %v3101_v46 = vmul.f32 %v3090_v22, %v13657_v24  ;;  %v9735_v60 = vor.u32 %v11394_v11, %v9734_v53  ;;  %v9722_v29 = vld [vmem:[%s12795_s4 + $0x420] sm:$0xf] }
 0xdc2   :  { %v3095_v9 = vsub.f32 1.5, %v3094_v50  ;;  %v11861_v50 = vld [vmem:[%s13251_s21 + $0x1] ss:$0 sm:$0xff] }
 0xdc3   :  { %v3106_v31 = vmul.f32 %v11859_v59, %v3101_v46  ;;  %v9710_v46 = vld [vmem:[%s12795_s4 + $0x408] sm:$0xf] }
 0xdc4   :  { %v3096_v47 = vmul.f32 %v12143_v27, %v3095_v9 }
 0xdc5   :  { %v3111_v40 = vadd.f32 %v11860_v61, %v3106_v31 }
 0xdc6   :  { %v3100_v28 = vsel %vm3099_vm11, %v12143_v27, %v3096_v47  ;;  %v11400_v27 = vld [vmem:[%s12795_s4 + $0x470] sm:$0xf0]  ;;  %v11391_v47 = vld [vmem:[%s12795_s4 + $0x428] sm:$0xf0] }
 0xdc7   :  { %v3102_v10 = vmul.f32 %v3100_v28, %v13670_v1  ;;  %v11353_v1 = vld [vmem:[%s13274_s26 + $0x38] sm:$0xff]  ;;  %v9759_v33 = vor.u32 %v11400_v27, %v9758_v12  ;;  %v9723_v28 = vor.u32 %v11391_v47, %v9722_v29 }
 0xdc8   :  { %3237 = vmatpush.bf16.msra.mxu2 %v11353_v1  ;;  %v9674_v1 = vld [vmem:[%s12795_s4 + $0x3c0] sm:$0xf]  ;;  %v9754_v29 = vld [vmem:[%s12795_s4 + $0x458] sm:$0xf] }
 0xdc9   :  { %v3107_v25 = vmul.f32 %v11859_v59, %v3102_v10  ;;  %v11388_v10 = vld [vmem:[%s12795_s4 + $0x410] sm:$0xf0] }
 0xdca   :  { %v9711_v31 = vor.u32 %v11388_v10, %v9710_v46  ;;  %v9742_v46 = vld [vmem:[%s12795_s4 + $0x440] sm:$0xf]  ;;  %v11395_v10 = vld [vmem:[%s12795_s4 + $0x448] sm:$0xf0] }
 0xdcb   :  { %v3112_v20 = vadd.f32 %v11860_v61, %v3107_v25  ;;  %v9698_v25 = vld [vmem:[%s12795_s4 + $0x3f0] sm:$0xf]  ;;  %v11385_v61 = vld [vmem:[%s12795_s4 + $0x3f8] sm:$0xf0] }
 0xdcc   :  { %3238 = vmatpush.bf16.msra.mxu2 %v11352_v54  ;;  %v11379_v54 = vld [vmem:[%s12795_s4 + $0x3c8] sm:$0xf0] }
 0xdcd   :  { %v9675_v12 = vor.u32 %v11379_v54, %v9674_v1  ;;  %v9682_v54 = vld [vmem:[%s12795_s4 + $0x3c8] sm:$0xf] }
 0xdd0   :  { %3239 = vmatpush.bf16.msra.mxu2 %v11351_v62 }
 0xdd4   :  { %3240 = vmatpush.bf16.msra.mxu2 %v11350_v21 }
 0xdd8   :  { %3770 = vmatpush.bf16.msrb.mxu2 %v9759_v33 }
 0xddc   :  { %3771 = vmatpush.bf16.msrb.mxu2 %v9747_v26 }
 0xde0   :  { %3772 = vmatpush.bf16.msrb.mxu2 %v9735_v60  ;;  %v9766_v60 = vld [vmem:[%s12795_s4 + $0x470] sm:$0xf] }
 0xde4   :  { %3773 = vmatpush.bf16.msrb.mxu2 %v9723_v28  ;;  %v11398_v28 = vld [vmem:[%s12795_s4 + $0x460] sm:$0xf0] }
 0xde8   :  { %3774 = vmatpush.bf16.msrb.mxu2 %v9711_v31  ;;  %v9730_v31 = vld [vmem:[%s12795_s4 + $0x428] sm:$0xf] }
 0xe15   :  { %v11782_v17 = vpop.permute.xlu2 %11781 }
 0xe16   :  { %v11784_v2 = vunpack.i.h.bf16 %v11782_v17  ;;  %v11783_v35 = vunpack.i.l.bf16 %v11782_v17 }
 0xe18   :  { %v3121_v56 = vsel %vm523_vm1, %v3111_v40, %v11783_v35  ;;  %v3122_v24 = vsel %vm523_vm1, %v3112_v20, %v11784_v2  ;;  %v9699_v40 = vor.u32 %v11385_v61, %v9698_v25  ;;  %v9686_v35 = vld [vmem:[%s12795_s4 + $0x3d8] sm:$0xf]  ;;  %v11382_v20 = vld [vmem:[%s12795_s4 + $0x3e0] sm:$0xf0]  ;;  %v11392_v25 = vld [vmem:[%s12795_s4 + $0x430] sm:$0xf0] }
 0xe19   :  { %v3123_v48 = vpack.c.bf16 %v3122_v24, %v3121_v56  ;;  %v9731_v61 = vor.u32 %v11392_v25, %v9730_v31 }
 0xe1a   :  { %3775 = vmatpush.bf16.msrb.mxu2 %v9699_v40  ;;  %v11389_v40 = vld [vmem:[%s12795_s4 + $0x418] sm:$0xf0] }
 0xe1b   :  { %9470 = vmatmul.msk.bf16.vlgmr.msra.gmra.mxu1 %vm504_vm15, %v3123_v48  ;;  %v9687_v48 = vor.u32 %v11382_v20, %v9686_v35  ;;  %v11386_v20 = vld [vmem:[%s12795_s4 + $0x400] sm:$0xf0] }
 0xe1e   :  { %3776 = vmatpush.bf16.msrb.mxu2 %v9687_v48  ;;  %v11383_v48 = vld [vmem:[%s12795_s4 + $0x3e8] sm:$0xf0] }
 0xe22   :  { %3777 = vmatpush.bf16.msrb.mxu2 %v9675_v12  ;;  %v11862_v12 = vld [vmem:[%s13296_s2 + $0x1] ss:$0 sm:$0xff] }
 0xe98   :  { %v3174_v9 = vpop.f32.mrf.mxu1 }
 0xe99   :  { %v3175_v22 = vadd.f32 %v11861_v50, %v3174_v9  ;;  %v11401_v9 = vld [vmem:[%s12795_s4 + $0x478] sm:$0xf0] }
 0xe9a   :  { %v9767_v47 = vor.u32 %v11401_v9, %v9766_v60 }
 0xe9b   :  { %v3179_v59 = vsub.f32 0.0, %v3175_v22 }
 0xe9d   :  { %v3181_v17 = vmul.f32 1.442695, %v3179_v59  ;;  %v9755_v59 = vor.u32 %v11398_v28, %v9754_v29 }
 0xe9f   :  { %12144 = vpow2.f32 %v3181_v17  ;;  %v9718_v17 = vld [vmem:[%s12795_s4 + $0x410] sm:$0xf] }
 0xea0   :  { %v3176_v2 = vpop.f32.mrf.mxu1  ;;  %v9719_v35 = vor.u32 %v11389_v40, %v9718_v17 }
 0xea1   :  { %v3177_v56 = vadd.f32 %v11861_v50, %v3176_v2  ;;  %v9706_v2 = vld [vmem:[%s12795_s4 + $0x3f8] sm:$0xf] }
 0xea3   :  { %v3180_v24 = vsub.f32 0.0, %v3177_v56 }
 0xea5   :  { %v3183_v62 = vmul.f32 1.442695, %v3180_v24  ;;  %v12145_v21 = vpop.eup %12144  ;;  %v9694_v24 = vld [vmem:[%s12795_s4 + $0x3e0] sm:$0xf] }
 0xea6   :  { %v3185_v27 = vadd.f32 1.0, %v12145_v21  ;;  %v9695_v1 = vor.u32 %v11383_v48, %v9694_v24 }
 0xea7   :  { %12146 = vpow2.f32 %v3183_v62  ;;  %v11380_v62 = vld [vmem:[%s12795_s4 + $0x3d0] sm:$0xf0] }
 0xea8   :  { %12148 = vrcp.f32 %v3185_v27  ;;  %v9683_v21 = vor.u32 %v11380_v62, %v9682_v54 }
 0xead   :  { %v12147_v33 = vpop.eup %12146 }
 0xeae   :  { %v3186_v39 = vadd.f32 1.0, %v12147_v33  ;;  %v12149_v18 = vpop.eup %12148 }
 0xeaf   :  { %v3189_v53 = vmul.f32 %v12149_v18, %v3175_v22  ;;  %v9743_v22 = vor.u32 %v11395_v10, %v9742_v46 }
 0xeb0   :  { %12150 = vrcp.f32 %v3186_v39 }
 0xeb6   :  { %v12151_v26 = vpop.eup %12150 }
 0xeb7   :  { %v3190_v11 = vmul.f32 %v12151_v26, %v3177_v56  ;;  %v9707_v56 = vor.u32 %v11386_v20, %v9706_v2 }
 0xeb9   :  { %v3191_v50 = vpack.c.bf16 %v3190_v11, %v3189_v53 }
 0xebb   :  { %9496 = vmatmul.msk.bf16.vlgmr.msra.gmra.mxu2 %vm504_vm15, %v3191_v50 }
 0xebc   :  { %3866 = vmatpush.bf16.msra.mxu2 %v9767_v47 }
 0xec0   :  { %3867 = vmatpush.bf16.msra.mxu2 %v9755_v59 }
 0xec4   :  { %3868 = vmatpush.bf16.msra.mxu2 %v9743_v22 }
 0xec8   :  { %3869 = vmatpush.bf16.msra.mxu2 %v9731_v61 }
 0xecb   :  { %3778 = vmatmul.bf16.vlgmr.msrb.gmra.mxu2 %v12836_v16 }
 0xecc   :  { %3870 = vmatpush.bf16.msra.mxu2 %v9719_v35 }
 0xed0   :  { %3871 = vmatpush.bf16.msra.mxu2 %v9707_v56 }
 0xed4   :  { %3872 = vmatpush.bf16.msra.mxu2 %v9695_v1 }
 0xed8   :  { %3873 = vmatpush.bf16.msra.mxu2 %v9683_v21 }
 0xedb   :  { %3783 = vmatmul.bf16.gmra.mxu2 %v12884_v43 }
 0xeeb   :  { %3788 = vmatmul.bf16.gmra.mxu2 %v12905_v19 }
 0xefb   :  { %3874 = vmatmul.bf16.vlgmr.msra.gmra.mxu2 %v12836_v16 }
 0xf0b   :  { %3879 = vmatmul.bf16.gmra.mxu2 %v12884_v43 }
 0xf1b   :  { %3884 = vmatmul.bf16.gmra.mxu2 %v12905_v19 }
 0xf3e   :  { %v3242_v27 = vpop.f32.mrf.mxu2 }
 0xf3f   :  { %v3243_v33 = vadd.f32 %v11862_v12, %v3242_v27 }
 0xf41   :  { %v3251_v39 = vsel %vm523_vm1, %v3243_v33, 0.0 }
 0xf42   :  { %3252 = vadd.xlane.f32.xlu0 %v3251_v39 }
 0xf46   :  { %v3244_v18 = vpop.f32.mrf.mxu2 }
 0xf47   :  { %v3245_v26 = vadd.f32 %v11862_v12, %v3244_v18 }
 0xf49   :  { %v3254_v53 = vsel %vm523_vm1, %v3245_v26, 0.0 }
 0xf4a   :  { %3255 = vadd.xlane.f32.xlu1 %v3254_v53  ;;  %v11864_v53 = vld [vmem:[%s13335_s18 + $0x1] ss:$0 sm:$0xff] }
 0xfb5   :  { %v3253_v11 = vpop.xlane.xlu0 %3252 }
 0xfb6   :  { %v3257_v50 = vmul.f32 %v3253_v11, %v13066_v15 }
 0xfb8   :  { %v3259_v60 = vsub.f32 %v3243_v33, %v3257_v50  ;;  %v11863_v33 = vld [vmem:[%s13330_s10 + $0x1] ss:$0 sm:$0xff] }
 0xfba   :  { %v3261_v9 = vmul.f32 %v3259_v60, %v3259_v60 }
 0xfbc   :  { %v3263_v29 = vsel %vm523_vm1, %v3261_v9, 0.0 }
 0xfbd   :  { %v3256_v47 = vpop.xlane.xlu1 %3255  ;;  %3264 = vadd.xlane.f32.xlu0 %v3263_v29 }
 0xfbe   :  { %v3258_v28 = vmul.f32 %v3256_v47, %v13066_v15 }
 0xfc0   :  { %v3260_v59 = vsub.f32 %v3245_v26, %v3258_v28  ;;  %v11399_v28 = vld [vmem:[%s12795_s4 + $0x46c] sm:$0xf] }
 0xfc2   :  { %v3262_v46 = vmul.f32 %v3260_v59, %v3260_v59 }
 0xfc4   :  { %v3266_v10 = vsel %vm523_vm1, %v3262_v46, 0.0  ;;  %v9760_v46 = vld [vmem:[%s12795_s4 + $0x474] sm:$0xf0] }
 0xfc5   :  { %3267 = vadd.xlane.f32.xlu1 %v3266_v10 }
0x1030   :  { %v3265_v22 = vpop.xlane.xlu0 %3264 }
0x1031   :  { %v3269_v31 = vmul.f32 %v3265_v22, %v13066_v15  ;;  %v11396_v22 = vld [vmem:[%s12795_s4 + $0x454] sm:$0xf] }
0x1033   :  { %v3271_v25 = vadd.f32 1e-05, %v3269_v31  ;;  %v9748_v31 = vld [vmem:[%s12795_s4 + $0x45c] sm:$0xf0] }
0x1035   :  { %12152 = vrsqrt.f32 %v3271_v25  ;;  %vm3279_vm13 = vweird.f32 %v3271_v25 }
0x1038   :  { %v3268_v61 = vpop.xlane.xlu1 %3267 }
0x1039   :  { %v3270_v17 = vmul.f32 %v3268_v61, %v13066_v15  ;;  %v11393_v61 = vld [vmem:[%s12795_s4 + $0x43c] sm:$0xf] }
0x103b   :  { %v12153_v40 = vpop.eup %12152  ;;  %v3272_v2 = vadd.f32 1e-05, %v3270_v17  ;;  %v9736_v17 = vld [vmem:[%s12795_s4 + $0x444] sm:$0xf0] }
0x103c   :  { %v3274_v35 = vmul.f32 %v12153_v40, %v3271_v25  ;;  %vm3280_vm12 = vweird.f32 %v12153_v40  ;;  %v9751_v25 = vor.u32 %v11396_v22, %v9748_v31  ;;  %v11376_v22 = vld [vmem:[%s12795_s4 + $0x3b0] sm:$0xf0]  ;;  %v11375_v31 = vld [vmem:[%s12795_s4 + $0x3ac] sm:$0xf] }
0x103d   :  { %12154 = vrsqrt.f32 %v3272_v2  ;;  %vm3281_vm14 = vmor %vm3279_vm13, %vm3280_vm12  ;;  %vm3289_vm5 = vweird.f32 %v3272_v2 }
0x103e   :  { %v3275_v20 = vmul.f32 %v12153_v40, %v3274_v35  ;;  %v9724_v35 = vld [vmem:[%s12795_s4 + $0x42c] sm:$0xf0] }
0x1040   :  { %v3276_v56 = vmul.f32 0.5, %v3275_v20 }
0x1042   :  { %v3277_v24 = vsub.f32 1.5, %v3276_v56  ;;  %v11387_v56 = vld [vmem:[%s12795_s4 + $0x40c] sm:$0xf] }
0x1043   :  { %v12155_v48 = vpop.eup %12154 }
0x1044   :  { %v3278_v1 = vmul.f32 %v12153_v40, %v3277_v24  ;;  %v3284_v54 = vmul.f32 %v12155_v48, %v3272_v2  ;;  %vm3290_vm3 = vweird.f32 %v12155_v48  ;;  %v11390_v2 = vld [vmem:[%s12795_s4 + $0x424] sm:$0xf]  ;;  %v9712_v24 = vld [vmem:[%s12795_s4 + $0x414] sm:$0xf0] }
0x1045   :  { %vm3291_vm7 = vmor %vm3289_vm5, %vm3290_vm3  ;;  %v9727_v20 = vor.u32 %v11390_v2, %v9724_v35  ;;  %v11372_v35 = vld [vmem:[%s12795_s4 + $0x394] sm:$0xf] }
0x1046   :  { %v3285_v62 = vmul.f32 %v12155_v48, %v3284_v54  ;;  %v3282_v21 = vsel %vm3281_vm14, %v12153_v40, %v3278_v1  ;;  %v9739_v40 = vor.u32 %v11393_v61, %v9736_v17  ;;  %v11384_v1 = vld [vmem:[%s12795_s4 + $0x3f4] sm:$0xf]  ;;  %v9700_v54 = vld [vmem:[%s12795_s4 + $0x3fc] sm:$0xf0]  ;;  %v9664_v61 = vld [vmem:[%s12795_s4 + $0x3b4] sm:$0xf0] }
0x1047   :  { %v3293_v39 = vmul.f32 %v3282_v21, %v3259_v60  ;;  %v11381_v21 = vld [vmem:[%s12795_s4 + $0x3dc] sm:$0xf]  ;;  %v9650_v17 = vld [vmem:[%s12795_s4 + $0x390] sm:$0xf]  ;;  %v9667_v2 = vor.u32 %v11375_v31, %v9664_v61  ;;  %v9604_v31 = vld [vmem:[%s12795_s4 + $0x33c] sm:$0xf0] }
0x1048   :  { %v3286_v12 = vmul.f32 0.5, %v3285_v62  ;;  %v9703_v62 = vor.u32 %v11384_v1, %v9700_v54  ;;  %v11370_v1 = vld [vmem:[%s12795_s4 + $0x380] sm:$0xf0]  ;;  %v11369_v54 = vld [vmem:[%s12795_s4 + $0x37c] sm:$0xf] }
0x1049   :  { %v3298_v11 = vmul.f32 %v11863_v33, %v3293_v39  ;;  %v9676_v39 = vld [vmem:[%s12795_s4 + $0x3cc] sm:$0xf0] }
0x104a   :  { %v3287_v27 = vsub.f32 1.5, %v3286_v12  ;;  %v9688_v12 = vld [vmem:[%s12795_s4 + $0x3e4] sm:$0xf0] }
0x104b   :  { %v3303_v29 = vadd.f32 %v11864_v53, %v3298_v11 }
0x104c   :  { %v3288_v18 = vmul.f32 %v12155_v48, %v3287_v27  ;;  %v9691_v27 = vor.u32 %v11381_v21, %v9688_v12 }
0x104d   :  { %v13757_v60 = vadd.f32 %v3303_v29, %v13352_v58 }
0x104e   :  { %v3292_v26 = vsel %vm3291_vm7, %v12155_v48, %v3288_v18  ;;  %v9715_v48 = vor.u32 %v11387_v56, %v9712_v24 }
0x104f   :  { %v3294_v50 = vmul.f32 %v3292_v26, %v3260_v59  ;;  %v9763_v59 = vor.u32 %v11399_v28, %v9760_v46 }
0x1051   :  { %v3299_v9 = vmul.f32 %v11863_v33, %v3294_v50  ;;  %v11378_v33 = vld [vmem:[%s12795_s4 + $0x3c4] sm:$0xf] }
0x1052   :  { %v9679_v18 = vor.u32 %v11378_v33, %v9676_v39  ;;  %v11367_v33 = vld [vmem:[%s12795_s4 + $0x368] sm:$0xf0]  ;;  %v11366_v39 = vld [vmem:[%s12795_s4 + $0x364] sm:$0xf] }
0x1053   :  { %v3304_v47 = vadd.f32 %v11864_v53, %v3299_v9 }
0x1055   :  { %v13754_v10 = vadd.f32 %v3304_v47, %v13349_v32 }
0x1057   :  { %3321 = vmatpush.msra.mxu0 %v13754_v10  ;;  %3356 = vmatpush.msrb.mxu1 %v13754_v10 }
0x1059   :  { %3322 = vmatpush.msra.mxu0 %v13757_v60  ;;  %3357 = vmatpush.msrb.mxu1 %v13757_v60 }
0x105a   :  { %9499 = vmatmul.msk.f32.vlgmr.msra.gmra.mxu0 %vm337_vm4, %v12697_v38  ;;  %9505 = vmatmul.msk.f32.vlgmr.msrb.gmra.mxu1 %vm337_vm4, %v12692_v36 }
0x105b   :  { %3818 = vmatpush.bf16.msra.mxu1 %v9763_v59  ;;  %v9662_v59 = vld [vmem:[%s12795_s4 + $0x3a8] sm:$0xf]  ;;  %3794 = vmatpush.bf16.msrb.mxu0 %v9667_v2 }
0x105f   :  { %3819 = vmatpush.bf16.msra.mxu1 %v9751_v25  ;;  %v9663_v25 = vor.u32 %v11376_v22, %v9662_v59  ;;  %v11361_v59 = vld [vmem:[%s12795_s4 + $0x338] sm:$0xf0]  ;;  %v11360_v22 = vld [vmem:[%s12795_s4 + $0x334] sm:$0xf] }
0x1060   :  { %v9607_v61 = vor.u32 %v11360_v22, %v9604_v31 }
0x1061   :  { %3746 = vmatpush.bf16.msra.mxu3 %v9663_v25 }
0x1062   :  { %9500 = vmatmul.msk.f32.gmra.mxu0 %vm337_vm4, %v12718_v42  ;;  %9506 = vmatmul.msk.f32.gmra.mxu1 %vm337_vm4, %v12715_v41 }
0x1063   :  { %3820 = vmatpush.bf16.msra.mxu1 %v9739_v40  ;;  %v11373_v40 = vld [vmem:[%s12795_s4 + $0x398] sm:$0xf0] }
0x1064   :  { %v9651_v56 = vor.u32 %v11373_v40, %v9650_v17  ;;  %v9590_v17 = vld [vmem:[%s12795_s4 + $0x318] sm:$0xf]  ;;  %v11358_v40 = vld [vmem:[%s12795_s4 + $0x320] sm:$0xf0] }
0x1065   :  { %v9591_v2 = vor.u32 %v11358_v40, %v9590_v17 }
0x1066   :  { %3747 = vmatpush.bf16.msra.mxu3 %v9651_v56 }
0x1067   :  { %3821 = vmatpush.bf16.msra.mxu1 %v9727_v20  ;;  %v9652_v20 = vld [vmem:[%s12795_s4 + $0x39c] sm:$0xf0] }
0x1068   :  { %v9655_v24 = vor.u32 %v11372_v35, %v9652_v20  ;;  %v11357_v35 = vld [vmem:[%s12795_s4 + $0x31c] sm:$0xf]  ;;  %v9592_v20 = vld [vmem:[%s12795_s4 + $0x324] sm:$0xf0] }
0x1069   :  { %v9595_v56 = vor.u32 %v11357_v35, %v9592_v20  ;;  %v9622_v20 = vld [vmem:[%s12795_s4 + $0x350] sm:$0xf] }
0x106a   :  { %9501 = vmatmul.msk.f32.gmra.mxu0 %vm337_vm4, %v12740_v55  ;;  %9507 = vmatmul.msk.f32.gmra.mxu1 %vm337_vm4, %v12735_v52 }
0x106b   :  { %3822 = vmatpush.bf16.msra.mxu1 %v9715_v48  ;;  %v9638_v48 = vld [vmem:[%s12795_s4 + $0x378] sm:$0xf]  ;;  %3795 = vmatpush.bf16.msrb.mxu0 %v9655_v24  ;;  %v9578_v24 = vld [vmem:[%s12795_s4 + $0x300] sm:$0xf] }
0x106c   :  { %v9639_v21 = vor.u32 %v11370_v1, %v9638_v48  ;;  %v11355_v48 = vld [vmem:[%s12795_s4 + $0x308] sm:$0xf0]  ;;  %v11354_v1 = vld [vmem:[%s12795_s4 + $0x304] sm:$0xf] }
0x106e   :  { %3748 = vmatpush.bf16.msra.mxu3 %v9639_v21 }
0x106f   :  { %3823 = vmatpush.bf16.msra.mxu1 %v9703_v62  ;;  %v9640_v62 = vld [vmem:[%s12795_s4 + $0x384] sm:$0xf0] }
0x1070   :  { %v9643_v12 = vor.u32 %v11369_v54, %v9640_v62  ;;  %v9579_v54 = vor.u32 %v11355_v48, %v9578_v24  ;;  %v9580_v62 = vld [vmem:[%s12795_s4 + $0x30c] sm:$0xf0]  ;;  %v9610_v24 = vld [vmem:[%s12795_s4 + $0x338] sm:$0xf] }
0x1071   :  { %v9583_v21 = vor.u32 %v11354_v1, %v9580_v62  ;;  %v11362_v1 = vld [vmem:[%s12795_s4 + $0x340] sm:$0xf0] }
0x1072   :  { %9502 = vmatmul.msk.f32.gmra.mxu0 %vm337_vm4, %v12759_v0  ;;  %9508 = vmatmul.msk.f32.gmra.mxu1 %vm337_vm4, %v12756_v63  ;;  %v9611_v62 = vor.u32 %v11362_v1, %v9610_v24  ;;  %v11416_v24 = vld [vmem:[%s12956_s9 + $0x178] sm:$0xff]  ;;  %v11415_v1 = vld [vmem:[%s12956_s9 + $0x170] sm:$0xff] }
0x1073   :  { %3824 = vmatpush.bf16.msra.mxu1 %v9691_v27  ;;  %v9626_v27 = vld [vmem:[%s12795_s4 + $0x360] sm:$0xf]  ;;  %3796 = vmatpush.bf16.msrb.mxu0 %v9643_v12 }
0x1077   :  { %3825 = vmatpush.bf16.msra.mxu1 %v9679_v18  ;;  %v9628_v18 = vld [vmem:[%s12795_s4 + $0x36c] sm:$0xf0] }
0x107a   :  { %9503 = vmatmul.msk.f32.gmra.mxu0 %vm337_vm4, %v12774_v5  ;;  %9509 = vmatmul.msk.f32.gmra.mxu1 %vm337_vm4, %v12771_v4 }
0x1082   :  { %9504 = vmatmul.msk.f32.gmra.mxu0 %vm337_vm4, %v12786_v8  ;;  %9510 = vmatmul.msk.f32.gmra.mxu1 %vm337_vm4, %v12783_v7 }
0x108a   :  { %3826 = vmatmul.bf16.vlgmr.msra.gmra.mxu1 %v12836_v16 }
0x109a   :  { %3831 = vmatmul.bf16.gmra.mxu1 %v12884_v43 }
0x10aa   :  { %3836 = vmatmul.bf16.gmra.mxu1 %v12905_v19 }
0x10d7   :  { %v3359_v26 = vpop.f32.mrf.mxu1  ;;  %v3324_v12 = vpop.f32.mrf.mxu0 }
0x10df   :  { %v3362_v53 = vpop.f32.mrf.mxu1 }
0x10e0   :  { %v11785_v11 = vpack.i.bf16 %v3362_v53, %v3359_v26  ;;  %v9627_v26 = vor.u32 %v11367_v33, %v9626_v27  ;;  %v9631_v53 = vor.u32 %v11366_v39, %v9628_v18  ;;  %v3327_v27 = vpop.f32.mrf.mxu0  ;;  %v9670_v33 = vld [vmem:[%s12795_s4 + $0x3b0] sm:$0xf]  ;;  %v11377_v39 = vld [vmem:[%s12795_s4 + $0x3b8] sm:$0xf0]  ;;  %v9658_v18 = vld [vmem:[%s12795_s4 + $0x398] sm:$0xf] }
0x10e2   :  { %11786 = vrot.lane.b32.xlu1 %v11785_v11, %s12616_s5  ;;  %v9614_v11 = vld [vmem:[%s12795_s4 + $0x348] sm:$0xf]  ;;  %3749 = vmatpush.bf16.msra.mxu3 %v9627_v26  ;;  %v9671_v26 = vor.u32 %v11377_v39, %v9670_v33  ;;  %v11356_v39 = vld [vmem:[%s12795_s4 + $0x310] sm:$0xf0] }
0x10e3   :  { %3797 = vmatpush.bf16.msrb.mxu0 %v9631_v53  ;;  %v11374_v53 = vld [vmem:[%s12795_s4 + $0x3a0] sm:$0xf0]  ;;  %v9586_v33 = vld [vmem:[%s12795_s4 + $0x308] sm:$0xf] }
0x10e7   :  { %v3365_v50 = vpop.f32.mrf.mxu1 }
0x10ef   :  { %v3368_v9 = vpop.f32.mrf.mxu1 }
0x10f0   :  { %v11790_v29 = vpack.i.bf16 %v3368_v9, %v3365_v50  ;;  %v11364_v50 = vld [vmem:[%s12795_s4 + $0x350] sm:$0xf0]  ;;  %v11363_v9 = vld [vmem:[%s12795_s4 + $0x34c] sm:$0xf] }
0x10f2   :  { %11791 = vrot.lane.b32.xlu0 %v11790_v29, %s12616_s5  ;;  %v9616_v29 = vld [vmem:[%s12795_s4 + $0x354] sm:$0xf0] }
0x10f7   :  { %v3371_v47 = vpop.f32.mrf.mxu1 }
0x10ff   :  { %v3374_v28 = vpop.f32.mrf.mxu1 }
0x1100   :  { %v11795_v46 = vpack.i.bf16 %v3374_v28, %v3371_v47  ;;  %v9615_v47 = vor.u32 %v11364_v50, %v9614_v11  ;;  %v9619_v28 = vor.u32 %v11363_v9, %v9616_v29  ;;  %v9659_v11 = vor.u32 %v11374_v53, %v9658_v18  ;;  %v9646_v50 = vld [vmem:[%s12795_s4 + $0x380] sm:$0xf]  ;;  %v11371_v9 = vld [vmem:[%s12795_s4 + $0x388] sm:$0xf0] }
0x1101   :  { %v9647_v29 = vor.u32 %v11371_v9, %v9646_v50 }
0x1102   :  { %11796 = vrot.lane.b32.xlu2 %v11795_v46, %s12616_s5  ;;  %v9602_v46 = vld [vmem:[%s12795_s4 + $0x330] sm:$0xf]  ;;  %3750 = vmatpush.bf16.msra.mxu3 %v9615_v47  ;;  %v9634_v47 = vld [vmem:[%s12795_s4 + $0x368] sm:$0xf] }
0x1103   :  { %v9603_v25 = vor.u32 %v11361_v59, %v9602_v46  ;;  %3798 = vmatpush.bf16.msrb.mxu0 %v9619_v28  ;;  %v11368_v28 = vld [vmem:[%s12795_s4 + $0x370] sm:$0xf0]  ;;  %v3330_v46 = vpop.f32.mrf.mxu0 }
0x1106   :  { %3751 = vmatpush.bf16.msra.mxu3 %v9603_v25  ;;  %v9635_v25 = vor.u32 %v11368_v28, %v9634_v47 }
0x1107   :  { %3799 = vmatpush.bf16.msrb.mxu0 %v9607_v61 }
0x110a   :  { %3752 = vmatpush.bf16.msra.mxu3 %v9591_v2 }
0x110b   :  { %3800 = vmatpush.bf16.msrb.mxu0 %v9595_v56  ;;  %v11365_v56 = vld [vmem:[%s12795_s4 + $0x358] sm:$0xf0] }
0x110c   :  { %v9623_v48 = vor.u32 %v11365_v56, %v9622_v20  ;;  %v11417_v56 = vld [vmem:[%s12956_s9 + $0x180] sm:$0xff] }
0x110d   :  { %4181 = vmatpush.bf16.msrb.mxu1 %v11417_v56 }
0x110e   :  { %3753 = vmatpush.bf16.msra.mxu3 %v9579_v54  ;;  %v3333_v54 = vpop.f32.mrf.mxu0 }
0x110f   :  { %3801 = vmatpush.bf16.msrb.mxu0 %v9583_v21  ;;  %v9598_v21 = vld [vmem:[%s12795_s4 + $0x320] sm:$0xf] }
0x1111   :  { %4182 = vmatpush.bf16.msrb.mxu1 %v11416_v24 }
0x1112   :  { %3842 = vmatpush.bf16.msrb.mxu3 %v9671_v26 }
0x1115   :  { %4183 = vmatpush.bf16.msrb.mxu1 %v11415_v1 }
0x1116   :  { %3843 = vmatpush.bf16.msrb.mxu3 %v9659_v11  ;;  %v9587_v11 = vor.u32 %v11356_v39, %v9586_v33  ;;  %v11406_v33 = vld [vmem:[%s12956_s9 + $0x128] sm:$0xff] }
0x1117   :  { %v13883_v39 = vld [vmem:[%s12966_s13 + $0x6] sm:$0x7] }
0x111a   :  { %3844 = vmatpush.bf16.msrb.mxu3 %v9647_v29  ;;  %v3336_v29 = vpop.f32.mrf.mxu0 }
0x111e   :  { %3845 = vmatpush.bf16.msrb.mxu3 %v9635_v25 }
0x1122   :  { %3846 = vmatpush.bf16.msrb.mxu3 %v9623_v48  ;;  %v11409_v48 = vld [vmem:[%s12956_s9 + $0x140] sm:$0xff] }
0x1123   :  { %4157 = vmatpush.bf16.msra.mxu0 %v11409_v48  ;;  %v11402_v48 = vld [vmem:[%s12956_s9 + $0x108] sm:$0xff] }
0x1126   :  { %3847 = vmatpush.bf16.msrb.mxu3 %v9611_v62  ;;  %v3779_v62 = vpop.f32.mrf.mxu2 }
0x1154   :  { %v11787_v59 = vpop.permute.xlu1 %11786 }
0x1155   :  { %v11789_v22 = vunpack.i.h.bf16 %v11787_v59  ;;  %v11788_v31 = vunpack.i.l.bf16 %v11787_v59 }
0x1157   :  { %v3401_v61 = vsel %vm523_vm1, %v3324_v12, %v11788_v31  ;;  %v3402_v17 = vsel %vm523_vm1, %v3327_v27, %v11789_v22  ;;  %v11359_v12 = vld [vmem:[%s12795_s4 + $0x328] sm:$0xf0] }
0x1158   :  { %v3407_v40 = vsel %vm504_vm15, %v3401_v61, %v12817_v49  ;;  %v3408_v2 = vsel %vm504_vm15, %v3402_v17, %v12812_v45  ;;  %v9599_v27 = vor.u32 %v11359_v12, %v9598_v21  ;;  %v11407_v21 = vld [vmem:[%s12956_s9 + $0x130] sm:$0xff]  ;;  %v11413_v12 = vld [vmem:[%s12956_s9 + $0x160] sm:$0xff] }
0x1159   :  { %v3413_v35 = vpack.c.bf16 %v3408_v2, %v3407_v40 }
0x115a   :  { %3848 = vmatpush.bf16.msrb.mxu3 %v9599_v27  ;;  %v3827_v27 = vpop.f32.mrf.mxu1 }
0x115b   :  { %3754 = vmatmul.bf16.vlgmr.msra.gmra.mxu3 %v3413_v35  ;;  %3802 = vmatmul.bf16.vlgmr.msrb.gmra.mxu0 %v3413_v35 }
0x115c   :  { %v11797_v22 = vpop.permute.xlu2 %11796 }
0x115d   :  { %v11799_v31 = vunpack.i.h.bf16 %v11797_v22  ;;  %v11798_v25 = vunpack.i.l.bf16 %v11797_v22  ;;  %v13896_v22 = vperm.slane %v13883_v39, 0 }
0x115e   :  { %3849 = vmatpush.bf16.msrb.mxu3 %v9587_v11  ;;  %v11405_v11 = vld [vmem:[%s12956_s9 + $0x120] sm:$0xff] }
0x115f   :  { %v3405_v61 = vsel %vm523_vm1, %v3336_v29, %v11798_v25 }
0x1160   :  { %v3411_v40 = vsel %vm504_vm15, %v3405_v61, %v12898_v14 }
0x1164   :  { %v11792_v18 = vpop.permute.xlu0 %11791 }
0x1165   :  { %v11794_v26 = vunpack.i.h.bf16 %v11792_v18  ;;  %v11793_v53 = vunpack.i.l.bf16 %v11792_v18  ;;  %v11412_v18 = vld [vmem:[%s12956_s9 + $0x158] sm:$0xff] }
0x1167   :  { %v3403_v50 = vsel %vm523_vm1, %v3330_v46, %v11793_v53  ;;  %v3404_v9 = vsel %vm523_vm1, %v3333_v54, %v11794_v26  ;;  %v3339_v46 = vpop.f32.mrf.mxu0  ;;  %v11408_v54 = vld [vmem:[%s12956_s9 + $0x138] sm:$0xff]  ;;  %v3781_v26 = vpop.f32.mrf.mxu2  ;;  %v13887_v53 = vperm.slane %v13883_v39, 1 }
0x1168   :  { %v3409_v47 = vsel %vm504_vm15, %v3403_v50, %v12862_v6  ;;  %v3410_v28 = vsel %vm504_vm15, %v3404_v9, %v12860_v3  ;;  %v3406_v17 = vsel %vm523_vm1, %v3339_v46, %v11799_v31  ;;  %4158 = vmatpush.bf16.msra.mxu0 %v11408_v54  ;;  %v11411_v50 = vld [vmem:[%s12956_s9 + $0x150] sm:$0xff]  ;;  %v11410_v31 = vld [vmem:[%s12956_s9 + $0x148] sm:$0xff] }
0x1169   :  { %v3414_v59 = vpack.c.bf16 %v3410_v28, %v3409_v47  ;;  %v3412_v2 = vsel %vm504_vm15, %v3406_v17, %v12896_v13  ;;  %v11404_v47 = vld [vmem:[%s12956_s9 + $0x118] sm:$0xff]  ;;  %v3829_v28 = vpop.f32.mrf.mxu1  ;;  %v11403_v46 = vld [vmem:[%s12956_s9 + $0x110] sm:$0xff] }
0x116a   :  { %v3415_v20 = vpack.c.bf16 %v3412_v2, %v3411_v40 }
0x116b   :  { %3759 = vmatmul.bf16.gmra.mxu3 %v3414_v59  ;;  %3807 = vmatmul.bf16.gmra.mxu0 %v3414_v59 }
0x116c   :  { %4159 = vmatpush.bf16.msra.mxu0 %v11407_v21 }
0x116f   :  { %v3784_v61 = vpop.f32.mrf.mxu2 }
0x1170   :  { %4160 = vmatpush.bf16.msra.mxu0 %v11406_v33 }
0x1174   :  { %4161 = vmatpush.bf16.msra.mxu0 %v11405_v11 }
0x1178   :  { %4162 = vmatpush.bf16.msra.mxu0 %v11404_v47 }
0x117b   :  { %3764 = vmatmul.bf16.gmra.mxu3 %v3415_v20  ;;  %3812 = vmatmul.bf16.gmra.mxu0 %v3415_v20 }
0x117c   :  { %4163 = vmatpush.bf16.msra.mxu0 %v11403_v46 }
0x1180   :  { %4164 = vmatpush.bf16.msra.mxu0 %v11402_v48 }
0x118b   :  { %3850 = vmatmul.bf16.vlgmr.msrb.gmra.mxu3 %v3413_v35  ;;  %v11414_v35 = vld [vmem:[%s12956_s9 + $0x168] sm:$0xff] }
0x118c   :  { %4184 = vmatpush.bf16.msrb.mxu1 %v11414_v35  ;;  %v3832_v35 = vpop.f32.mrf.mxu1 }
0x1190   :  { %4185 = vmatpush.bf16.msrb.mxu1 %v11413_v12 }
0x1194   :  { %4186 = vmatpush.bf16.msrb.mxu1 %v11412_v18 }
0x1198   :  { %4187 = vmatpush.bf16.msrb.mxu1 %v11411_v50  ;;  %v3786_v50 = vpop.f32.mrf.mxu2 }
0x119b   :  { %3855 = vmatmul.bf16.gmra.mxu3 %v3414_v59 }
0x119c   :  { %4188 = vmatpush.bf16.msrb.mxu1 %v11410_v31 }
0x11ab   :  { %3860 = vmatmul.bf16.gmra.mxu3 %v3415_v20 }
0x11d8   :  { %v3803_v9 = vpop.f32.mrf.mxu0 }
0x11d9   :  { %v3804_v29 = vadd.f32 %v3803_v9, %v13887_v53 }
0x11db   :  { %v13893_v59 = vadd.f32 %v3827_v27, %v3804_v29 }
0x11dd   :  { %v3891_v25 = vsub.f32 0.0, %v13893_v59 }
0x11de   :  { %v3755_v17 = vpop.f32.mrf.mxu3 }
0x11df   :  { %v3910_v40 = vmul.f32 1.442695, %v3891_v25  ;;  %v3756_v2 = vadd.f32 %v3755_v17, %v13896_v22 }
0x11e0   :  { %v3805_v20 = vpop.f32.mrf.mxu0 }
0x11e1   :  { %12156 = vpow2.f32 %v3910_v40  ;;  %v13902_v56 = vadd.f32 %v3779_v62, %v3756_v2  ;;  %v3806_v24 = vadd.f32 %v3805_v20, %v13887_v53  ;;  %v3834_v20 = vpop.f32.mrf.mxu1 }
0x11e3   :  { %v3890_v1 = vsub.f32 0.0, %v13902_v56  ;;  %v3830_v54 = vadd.f32 %v3829_v28, %v3806_v24 }
0x11e5   :  { %v3908_v21 = vmul.f32 1.442695, %v3890_v1  ;;  %v3894_v12 = vsub.f32 0.0, %v3830_v54 }
0x11e6   :  { %v3757_v27 = vpop.f32.mrf.mxu3 }
0x11e7   :  { %v12157_v33 = vpop.eup %12156  ;;  %v3916_v18 = vmul.f32 1.442695, %v3894_v12  ;;  %v3758_v11 = vadd.f32 %v3757_v27, %v13896_v22  ;;  %12158 = vpow2.f32 %v3908_v21 }
0x11e8   :  { %v3808_v9 = vpop.f32.mrf.mxu0  ;;  %v3945_v47 = vadd.f32 1.0, %v12157_v33 }
0x11e9   :  { %12160 = vpow2.f32 %v3916_v18  ;;  %v3782_v62 = vadd.f32 %v3781_v26, %v3758_v11  ;;  %v3809_v29 = vadd.f32 %v3808_v9, %v13887_v53 }
0x11ea   :  { %12162 = vrcp.f32 %v3945_v47 }
0x11eb   :  { %v3893_v31 = vsub.f32 0.0, %v3782_v62  ;;  %v13909_v25 = vadd.f32 %v3832_v35, %v3809_v29  ;;  %v3789_v35 = vpop.f32.mrf.mxu2 }
0x11ed   :  { %v3914_v28 = vmul.f32 1.442695, %v3893_v31  ;;  %v3897_v46 = vsub.f32 0.0, %v13909_v25  ;;  %v12159_v17 = vpop.eup %12158 }
0x11ee   :  { %v3760_v40 = vpop.f32.mrf.mxu3  ;;  %v3944_v27 = vadd.f32 1.0, %v12159_v17 }
0x11ef   :  { %v12161_v2 = vpop.eup %12160  ;;  %12164 = vpow2.f32 %v3914_v28  ;;  %v3922_v24 = vmul.f32 1.442695, %v3897_v46  ;;  %v3761_v48 = vadd.f32 %v3760_v40, %v13896_v22 }
0x11f0   :  { %v3948_v1 = vadd.f32 1.0, %v12161_v2  ;;  %v3810_v26 = vpop.f32.mrf.mxu0  ;;  %v12163_v11 = vpop.eup %12162 }
0x11f1   :  { %v13913_v21 = vadd.f32 %v3784_v61, %v3761_v48  ;;  %v3811_v12 = vadd.f32 %v3810_v26, %v13887_v53  ;;  %v3981_v17 = vmul.f32 %v12163_v11, %v13893_v59 }
0x11f2   :  { %12166 = vrcp.f32 %v3948_v1 }
0x11f3   :  { %12168 = vpow2.f32 %v3922_v24  ;;  %v3896_v33 = vsub.f32 0.0, %v13913_v21  ;;  %v13917_v18 = vadd.f32 %v3834_v20, %v3811_v12  ;;  %v3837_v20 = vpop.f32.mrf.mxu1 }
0x11f4   :  { %12170 = vrcp.f32 %v3944_v27 }
0x11f5   :  { %v12165_v9 = vpop.eup %12164  ;;  %v3920_v29 = vmul.f32 1.442695, %v3896_v33  ;;  %v3900_v47 = vsub.f32 0.0, %v13917_v18 }
0x11f6   :  { %v3947_v31 = vadd.f32 1.0, %v12165_v9  ;;  %v3762_v28 = vpop.f32.mrf.mxu3 }
0x11f7   :  { %12172 = vpow2.f32 %v3920_v29  ;;  %v3928_v61 = vmul.f32 1.442695, %v3900_v47  ;;  %v3763_v46 = vadd.f32 %v3762_v28, %v13896_v22  ;;  %v3791_v29 = vpop.f32.mrf.mxu2 }
0x11f8   :  { %v12167_v40 = vpop.eup %12166  ;;  %12174 = vrcp.f32 %v3947_v31  ;;  %v3813_v2 = vpop.f32.mrf.mxu0 }
0x11f9   :  { %v12169_v24 = vpop.eup %12168  ;;  %v3984_v48 = vmul.f32 %v12167_v40, %v3830_v54  ;;  %12176 = vpow2.f32 %v3928_v61  ;;  %v13922_v1 = vadd.f32 %v3786_v50, %v3763_v46  ;;  %v3814_v26 = vadd.f32 %v3813_v2, %v13887_v53 }
0x11fa   :  { %v12171_v9 = vpop.eup %12170  ;;  %v3951_v47 = vadd.f32 1.0, %v12169_v24 }
0x11fb   :  { %v3999_v12 = vpack.c.bf16 %v3984_v48, %v3981_v17  ;;  %v3899_v27 = vsub.f32 0.0, %v13922_v1  ;;  %v13926_v33 = vadd.f32 %v3837_v20, %v3814_v26  ;;  %v3980_v50 = vmul.f32 %v12171_v9, %v13902_v56 }
0x11fd   :  { %v12173_v28 = vpop.eup %12172  ;;  %v3926_v59 = vmul.f32 1.442695, %v3899_v27  ;;  %v3903_v11 = vsub.f32 0.0, %v13926_v33  ;;  %4189 = vmatmul.bf16.vlgmr.msrb.gmra.mxu1 %v3999_v12  ;;  %v3839_v27 = vpop.f32.mrf.mxu1 }
0x11fe   :  { %v12175_v31 = vpop.eup %12174  ;;  %v3765_v54 = vpop.f32.mrf.mxu3  ;;  %v3950_v26 = vadd.f32 1.0, %v12173_v28 }
0x11ff   :  { %v12177_v61 = vpop.eup %12176  ;;  %v3983_v46 = vmul.f32 %v12175_v31, %v3782_v62  ;;  %12178 = vpow2.f32 %v3926_v59  ;;  %v3766_v40 = vadd.f32 %v3765_v54, %v13896_v22  ;;  %v3934_v48 = vmul.f32 1.442695, %v3903_v11 }
0x1200   :  { %12180 = vrcp.f32 %v3951_v47  ;;  %v3954_v17 = vadd.f32 1.0, %v12177_v61  ;;  %v3815_v2 = vpop.f32.mrf.mxu0  ;;  %v3875_v47 = vpop.f32.mrf.mxu2 }
0x1201   :  { %v3998_v20 = vpack.c.bf16 %v3983_v46, %v3980_v50  ;;  %v13931_v24 = vadd.f32 %v3789_v35, %v3766_v40  ;;  %v3816_v12 = vadd.f32 %v3815_v2, %v13887_v53  ;;  %v13939_v2 = vperm.slane %v13883_v39, 2 }
0x1202   :  { %12182 = vrcp.f32 %v3954_v17 }
0x1203   :  { %v3902_v23 = vsub.f32 0.0, %v13931_v24  ;;  %4165 = vmatmul.bf16.vlgmr.msra.gmra.mxu0 %v3998_v20  ;;  %v3840_v56 = vadd.f32 %v3839_v27, %v3816_v12  ;;  %12184 = vpow2.f32 %v3934_v48 }
0x1204   :  { %12186 = vrcp.f32 %v3950_v26 }
0x1205   :  { %v12179_v62 = vpop.eup %12178  ;;  %v3932_v9 = vmul.f32 1.442695, %v3902_v23  ;;  %v3906_v54 = vsub.f32 0.0, %v3840_v56 }
0x1206   :  { %v12181_v59 = vpop.eup %12180  ;;  %v3953_v31 = vadd.f32 1.0, %v12179_v62  ;;  %v3767_v11 = vpop.f32.mrf.mxu3 }
0x1207   :  { %v3768_v35 = vadd.f32 %v3767_v11, %v13896_v22  ;;  %v3940_v53 = vmul.f32 1.442695, %v3906_v54  ;;  %v3987_v61 = vmul.f32 %v12181_v59, %v13909_v25  ;;  %v9800_v22 = vld [vmem:[%s12956_s9 + $0x188] sm:$0x1] }
0x1208   :  { %v12183_v28 = vpop.eup %12182  ;;  %12188 = vrcp.f32 %v3953_v31  ;;  %v4111_v62 = vunpack.c.l.b16 %v9800_v22  ;;  %v3877_v59 = vpop.f32.mrf.mxu2 }
0x1209   :  { %v3990_v50 = vmul.f32 %v12183_v28, %v13917_v18  ;;  %12190 = vpow2.f32 %v3932_v9  ;;  %v3792_v46 = vadd.f32 %v3791_v29, %v3768_v35  ;;  %v12185_v40 = vpop.eup %12184 }
0x120a   :  { %12192 = vpow2.f32 %v3940_v53  ;;  %v12187_v20 = vpop.eup %12186  ;;  %v3957_v12 = vadd.f32 1.0, %v12185_v40  ;;  %v4128_v31 = vpack.c.b16 %v4111_v62, %v4111_v62 }
0x120b   :  { %v3905_v23 = vsub.f32 0.0, %v3792_v46  ;;  %v4002_v17 = vpack.c.bf16 %v3990_v50, %v3987_v61  ;;  %v3986_v18 = vmul.f32 %v12187_v20, %v13913_v21 }
0x120c   :  { %v4155_v53 = vsel %vm296_vm0, %v4128_v31, 0 }
0x120d   :  { %v3938_v48 = vmul.f32 1.442695, %v3905_v23  ;;  %4194 = vmatmul.bf16.gmra.mxu1 %v4002_v17  ;;  %4212 = vmatpush.bf16.msra.mxu3 %v4155_v53 }
0x120e   :  { %v12189_v26 = vpop.eup %12188  ;;  %v3851_v27 = vpop.f32.mrf.mxu3 }
0x120f   :  { %v12191_v25 = vpop.eup %12190  ;;  %v3989_v29 = vmul.f32 %v12189_v26, %v13922_v1  ;;  %12194 = vpow2.f32 %v3938_v48  ;;  %v3852_v9 = vadd.f32 %v3851_v27, %v13939_v2 }
0x1210   :  { %v12193_v39 = vpop.eup %12192  ;;  %12196 = vrcp.f32 %v3957_v12  ;;  %v3956_v35 = vadd.f32 1.0, %v12191_v25  ;;  %v3880_v48 = vpop.f32.mrf.mxu2 }
0x1211   :  { %v3876_v54 = vadd.f32 %v3875_v47, %v3852_v9  ;;  %v4001_v11 = vpack.c.bf16 %v3989_v29, %v3986_v18  ;;  %v3960_v28 = vadd.f32 1.0, %v12193_v39 }
0x1213   :  { %v3892_v61 = vsub.f32 0.0, %v3876_v54  ;;  %4170 = vmatmul.bf16.gmra.mxu0 %v4001_v11  ;;  %12198 = vrcp.f32 %v3960_v28 }
0x1214   :  { %12200 = vrcp.f32 %v3956_v35 }
0x1215   :  { %v12195_v21 = vpop.eup %12194  ;;  %v3912_v50 = vmul.f32 1.442695, %v3892_v61 }
0x1216   :  { %v3959_v1 = vadd.f32 1.0, %v12195_v21  ;;  %v3853_v40 = vpop.f32.mrf.mxu3  ;;  %v12197_v17 = vpop.eup %12196 }
0x1217   :  { %v3854_v23 = vadd.f32 %v3853_v40, %v13939_v2  ;;  %v3993_v22 = vmul.f32 %v12197_v17, %v13926_v33 }
0x1218   :  { %12202 = vrcp.f32 %v3959_v1  ;;  %v3882_v33 = vpop.f32.mrf.mxu2 }
0x1219   :  { %12204 = vpow2.f32 %v3912_v50  ;;  %v3878_v47 = vadd.f32 %v3877_v59, %v3854_v23  ;;  %v12199_v20 = vpop.eup %12198 }
0x121a   :  { %v3996_v26 = vmul.f32 %v12199_v20, %v3840_v56  ;;  %v12201_v27 = vpop.eup %12200 }
0x121b   :  { %v3895_v12 = vsub.f32 0.0, %v3878_v47  ;;  %v3992_v31 = vmul.f32 %v12201_v27, %v13931_v24 }
0x121c   :  { %v4005_v25 = vpack.c.bf16 %v3996_v26, %v3993_v22 }
0x121d   :  { %v3918_v62 = vmul.f32 1.442695, %v3895_v12 }
0x121e   :  { %v12203_v18 = vpop.eup %12202  ;;  %v3856_v29 = vpop.f32.mrf.mxu3  ;;  %4199 = vmatmul.bf16.gmra.mxu1 %v4005_v25 }
0x121f   :  { %v12205_v9 = vpop.eup %12204  ;;  %v3995_v39 = vmul.f32 %v12203_v18, %v3792_v46  ;;  %12206 = vpow2.f32 %v3918_v62  ;;  %v3857_v11 = vadd.f32 %v3856_v29, %v13939_v2 }
0x1220   :  { %v3946_v28 = vadd.f32 1.0, %v12205_v9  ;;  %v3885_v20 = vpop.f32.mrf.mxu2 }
0x1221   :  { %v3881_v59 = vadd.f32 %v3880_v48, %v3857_v11  ;;  %v4004_v35 = vpack.c.bf16 %v3995_v39, %v3992_v31 }
0x1222   :  { %12208 = vrcp.f32 %v3946_v28 }
0x1223   :  { %v3898_v53 = vsub.f32 0.0, %v3881_v59  ;;  %4175 = vmatmul.bf16.gmra.mxu0 %v4004_v35 }
0x1225   :  { %v12207_v56 = vpop.eup %12206  ;;  %v3924_v61 = vmul.f32 1.442695, %v3898_v53 }
0x1226   :  { %v3949_v21 = vadd.f32 1.0, %v12207_v56  ;;  %v3858_v50 = vpop.f32.mrf.mxu3 }
0x1227   :  { %v3859_v1 = vadd.f32 %v3858_v50, %v13939_v2 }
0x1228   :  { %12210 = vrcp.f32 %v3949_v21  ;;  %v12209_v40 = vpop.eup %12208  ;;  %v3887_v28 = vpop.f32.mrf.mxu2 }
0x1229   :  { %12212 = vpow2.f32 %v3924_v61  ;;  %v3883_v24 = vadd.f32 %v3882_v33, %v3859_v1  ;;  %v3982_v26 = vmul.f32 %v12209_v40, %v3876_v54 }
0x122b   :  { %v3901_v46 = vsub.f32 0.0, %v3883_v24 }
0x122d   :  { %v3930_v23 = vmul.f32 1.442695, %v3901_v46 }
0x122e   :  { %v12211_v17 = vpop.eup %12210  ;;  %v3861_v48 = vpop.f32.mrf.mxu3 }
0x122f   :  { %v12213_v22 = vpop.eup %12212  ;;  %v3985_v12 = vmul.f32 %v12211_v17, %v3878_v47  ;;  %12214 = vpow2.f32 %v3930_v23  ;;  %v3862_v27 = vadd.f32 %v3861_v48, %v13939_v2 }
0x1230   :  { %v3952_v18 = vadd.f32 1.0, %v12213_v22 }
0x1231   :  { %v4000_v62 = vpack.c.bf16 %v3985_v12, %v3982_v26  ;;  %v3886_v25 = vadd.f32 %v3885_v20, %v3862_v27 }
0x1232   :  { %12216 = vrcp.f32 %v3952_v18 }
0x1233   :  { %v3904_v29 = vsub.f32 0.0, %v3886_v25  ;;  %9866 = vmatmul.msk.bf16.vlgmr.msra.gmra.mxu3 %vm1267_vm2, %v4000_v62 }
0x1235   :  { %v12215_v9 = vpop.eup %12214  ;;  %v3936_v31 = vmul.f32 1.442695, %v3904_v29 }
0x1236   :  { %v3955_v39 = vadd.f32 1.0, %v12215_v9  ;;  %v3863_v11 = vpop.f32.mrf.mxu3  ;;  %v11865_v9 = vld [vmem:[%s12980_s17 + $0x2] ss:$0 sm:$0xff] }
0x1237   :  { %v3864_v35 = vadd.f32 %v3863_v11, %v13939_v2 }
0x1238   :  { %12218 = vrcp.f32 %v3955_v39  ;;  %v12217_v53 = vpop.eup %12216 }
0x1239   :  { %12220 = vpow2.f32 %v3936_v31  ;;  %v3888_v54 = vadd.f32 %v3887_v28, %v3864_v35  ;;  %v3988_v21 = vmul.f32 %v12217_v53, %v3881_v59 }
0x123b   :  { %v3907_v47 = vsub.f32 0.0, %v3888_v54 }
0x123d   :  { %v3942_v33 = vmul.f32 1.442695, %v3907_v47 }
0x123e   :  { %v12219_v56 = vpop.eup %12218 }
0x123f   :  { %v12221_v61 = vpop.eup %12220  ;;  %v3991_v50 = vmul.f32 %v12219_v56, %v3883_v24  ;;  %12222 = vpow2.f32 %v3942_v33 }
0x1240   :  { %v3958_v46 = vadd.f32 1.0, %v12221_v61 }
0x1241   :  { %v4003_v1 = vpack.c.bf16 %v3991_v50, %v3988_v21 }
0x1242   :  { %12224 = vrcp.f32 %v3958_v46 }
0x1243   :  { %9867 = vmatmul.msk.bf16.gmra.mxu3 %vm1267_vm2, %v4003_v1 }
0x1245   :  { %v12223_v40 = vpop.eup %12222 }
0x1246   :  { %v3961_v23 = vadd.f32 1.0, %v12223_v40 }
0x1248   :  { %12226 = vrcp.f32 %v3961_v23  ;;  %v12225_v2 = vpop.eup %12224 }
0x1249   :  { %v3994_v20 = vmul.f32 %v12225_v2, %v3886_v25 }
0x124e   :  { %v12227_v17 = vpop.eup %12226 }
0x124f   :  { %v3997_v48 = vmul.f32 %v12227_v17, %v3888_v54 }
0x1251   :  { %v4006_v22 = vpack.c.bf16 %v3997_v48, %v3994_v20 }
0x1253   :  { %9868 = vmatmul.msk.bf16.gmra.mxu3 %vm1267_vm2, %v4006_v22 }
0x127a   :  { %v4190_v59 = vpop.f32.mrf.mxu1 }
0x1280   :  { %v4166_v26 = vpop.f32.mrf.mxu0 }
0x1281   :  { %v4167_v53 = vadd.f32 %v11865_v9, %v4166_v26 }
0x1282   :  { %v4192_v12 = vpop.f32.mrf.mxu1 }
0x1283   :  { %v4191_v21 = vadd.f32 %v4190_v59, %v4167_v53 }
0x1288   :  { %v4168_v24 = vpop.f32.mrf.mxu0 }
0x1289   :  { %v4169_v2 = vadd.f32 %v11865_v9, %v4168_v24 }
0x128a   :  { %v4195_v18 = vpop.f32.mrf.mxu1 }
0x128b   :  { %v4193_v26 = vadd.f32 %v4192_v12, %v4169_v2 }
0x1290   :  { %v4171_v62 = vpop.f32.mrf.mxu0 }
0x1291   :  { %v4172_v31 = vadd.f32 %v11865_v9, %v4171_v62 }
0x1292   :  { %v4197_v47 = vpop.f32.mrf.mxu1 }
0x1293   :  { %v4196_v11 = vadd.f32 %v4195_v18, %v4172_v31 }
0x1298   :  { %v4173_v39 = vpop.f32.mrf.mxu0 }
0x1299   :  { %v4174_v25 = vadd.f32 %v11865_v9, %v4173_v39 }
0x129b   :  { %v4198_v61 = vadd.f32 %v4197_v47, %v4174_v25  ;;  %v4200_v17 = vpop.f32.mrf.mxu1 }
0x12a0   :  { %v4176_v56 = vpop.f32.mrf.mxu0 }
0x12a1   :  { %v4177_v40 = vadd.f32 %v11865_v9, %v4176_v56 }
0x12a3   :  { %v4201_v18 = vadd.f32 %v4200_v17, %v4177_v40  ;;  %v4202_v24 = vpop.f32.mrf.mxu1 }
0x12a8   :  { %v4178_v31 = vpop.f32.mrf.mxu0 }
0x12a9   :  { %v4179_v47 = vadd.f32 %v11865_v9, %v4178_v31 }
0x12b6   :  { %v4214_v27 = vpop.f32.mrf.mxu3 }
0x12b7   :  { %v4215_v46 = vadd.f32 %v4214_v27, %v4191_v21 }
0x12b9   :  { %v4229_v22 = vsub.f32 0.0, %v4215_v46 }
0x12be   :  { %v4216_v29 = vpop.f32.mrf.mxu3 }
0x12bf   :  { %v4217_v59 = vadd.f32 %v4216_v29, %v4193_v26 }
0x12c6   :  { %v4219_v35 = vpop.f32.mrf.mxu3 }
0x12c7   :  { %v4220_v28 = vadd.f32 %v4219_v35, %v4196_v11  ;;  %v4235_v35 = vmul.f32 1.442695, %v4229_v22 }
0x12c9   :  { %v4231_v54 = vsub.f32 0.0, %v4220_v28 }
0x12cb   :  { %v4239_v33 = vmul.f32 1.442695, %v4231_v54 }
0x12cd   :  { %12228 = vpow2.f32 %v4239_v33  ;;  %v4230_v33 = vsub.f32 0.0, %v4217_v59 }
0x12ce   :  { %v4221_v50 = vpop.f32.mrf.mxu3 }
0x12cf   :  { %v4222_v1 = vadd.f32 %v4221_v50, %v4198_v61  ;;  %v4203_v61 = vadd.f32 %v4202_v24, %v4179_v47  ;;  %v4237_v29 = vmul.f32 1.442695, %v4230_v33 }
0x12d1   :  { %v4232_v23 = vsub.f32 0.0, %v4222_v1 }
0x12d3   :  { %v12229_v20 = vpop.eup %12228  ;;  %v4241_v48 = vmul.f32 1.442695, %v4232_v23 }
0x12d4   :  { %v4249_v62 = vadd.f32 1.0, %v12229_v20 }
0x12d5   :  { %12230 = vpow2.f32 %v4241_v48 }
0x12d6   :  { %12232 = vrcp.f32 %v4249_v62  ;;  %v4224_v39 = vpop.f32.mrf.mxu3 }
0x12d7   :  { %v4225_v11 = vadd.f32 %v4224_v39, %v4201_v18  ;;  %12234 = vpow2.f32 %v4235_v35 }
0x12d9   :  { %v4233_v25 = vsub.f32 0.0, %v4225_v11 }
0x12db   :  { %v12231_v27 = vpop.eup %12230  ;;  %v4243_v54 = vmul.f32 1.442695, %v4233_v25 }
0x12dc   :  { %v12233_v53 = vpop.eup %12232  ;;  %v4250_v56 = vadd.f32 1.0, %v12231_v27 }
0x12dd   :  { %12236 = vpow2.f32 %v4243_v54  ;;  %v13957_v21 = vmul.f32 %v12233_v53, %v4220_v28  ;;  %v12235_v23 = vpop.eup %12234 }
0x12de   :  { %12238 = vrcp.f32 %v4250_v56  ;;  %v4226_v12 = vpop.f32.mrf.mxu3  ;;  %v4247_v62 = vadd.f32 1.0, %v12235_v23 }
0x12df   :  { %v4227_v50 = vadd.f32 %v4226_v12, %v4203_v61  ;;  %v4275_v40 = vsel %vm523_vm1, %v13957_v21, 0.0  ;;  %12240 = vpow2.f32 %v4237_v29 }
0x12e0   :  { %4276 = vadd.xlane.f32.xlu2 %v4275_v40 }
0x12e1   :  { %v4234_v9 = vsub.f32 0.0, %v4227_v50 }
0x12e3   :  { %v12237_v2 = vpop.eup %12236  ;;  %v4245_v17 = vmul.f32 1.442695, %v4234_v9 }
0x12e4   :  { %v12239_v20 = vpop.eup %12238  ;;  %v4251_v48 = vadd.f32 1.0, %v12237_v2 }
0x12e5   :  { %12242 = vpow2.f32 %v4245_v17  ;;  %v4262_v22 = vmul.f32 %v12239_v20, %v4222_v1  ;;  %v12241_v18 = vpop.eup %12240 }
0x12e6   :  { %12244 = vrcp.f32 %v4251_v48  ;;  %v4248_v47 = vadd.f32 1.0, %v12241_v18 }
0x12e7   :  { %v4278_v28 = vsel %vm523_vm1, %v4262_v22, 0.0  ;;  %12246 = vrcp.f32 %v4247_v62 }
0x12e8   :  { %4279 = vadd.xlane.f32.xlu1 %v4278_v28 }
0x12eb   :  { %v12243_v31 = vpop.eup %12242 }
0x12ec   :  { %v12245_v26 = vpop.eup %12244  ;;  %v4252_v39 = vadd.f32 1.0, %v12243_v31 }
0x12ed   :  { %v4263_v35 = vmul.f32 %v12245_v26, %v4225_v11  ;;  %v12247_v27 = vpop.eup %12246 }
0x12ee   :  { %12248 = vrcp.f32 %v4252_v39  ;;  %v4259_v54 = vmul.f32 %v12247_v27, %v4215_v46 }
0x12ef   :  { %v4281_v25 = vsel %vm523_vm1, %v4263_v35, 0.0  ;;  %12250 = vrcp.f32 %v4248_v47 }
0x12f0   :  { %4282 = vadd.xlane.f32.xlu0 %v4281_v25  ;;  %v4269_v33 = vsel %vm523_vm1, %v4259_v54, 0.0 }
0x12f4   :  { %v12249_v1 = vpop.eup %12248 }
0x12f5   :  { %v4264_v53 = vmul.f32 %v12249_v1, %v4227_v50  ;;  %v12251_v56 = vpop.eup %12250 }
0x12f6   :  { %v4260_v61 = vmul.f32 %v12251_v56, %v4217_v59 }
0x12f7   :  { %v4284_v24 = vsel %vm523_vm1, %v4264_v53, 0.0 }
0x12f8   :  { %4285 = vadd.xlane.f32.xlu2 %v4284_v24  ;;  %4270 = vadd.xlane.f32.xlu0 %v4269_v33  ;;  %v4272_v11 = vsel %vm523_vm1, %v4260_v61, 0.0 }
0x1300   :  { %4273 = vadd.xlane.f32.xlu2 %v4272_v11  ;;  %v4496_v11 = vsel %vm523_vm1, %v13757_v60, 0.0 }
0x1353   :  { %v4277_v9 = vpop.xlane.xlu2 %4276 }
0x1354   :  { %v4289_v18 = vmul.f32 %v4277_v9, %v13066_v15 }
0x1356   :  { %v13990_v47 = vsub.f32 %v13957_v21, %v4289_v18 }
0x1358   :  { %v4301_v24 = vmul.f32 %v13990_v47, %v13990_v47 }
0x135a   :  { %v4311_v21 = vsel %vm523_vm1, %v4301_v24, 0.0 }
0x135b   :  { %v4280_v12 = vpop.xlane.xlu1 %4279 }
0x135c   :  { %v4290_v40 = vmul.f32 %v4280_v12, %v13066_v15 }
0x135e   :  { %v13967_v29 = vsub.f32 %v4262_v22, %v4290_v40 }
0x1360   :  { %v4302_v46 = vmul.f32 %v13967_v29, %v13967_v29 }
0x1362   :  { %v4314_v50 = vsel %vm523_vm1, %v4302_v46, 0.0 }
0x1363   :  { %4315 = vadd.xlane.f32.xlu0 %v4314_v50  ;;  %v4283_v23 = vpop.xlane.xlu0 %4282 }
0x1364   :  { %v4291_v2 = vmul.f32 %v4283_v23, %v13066_v15 }
0x1366   :  { %v13973_v17 = vsub.f32 %v4263_v35, %v4291_v2 }
0x1368   :  { %v4303_v59 = vmul.f32 %v13973_v17, %v13973_v17 }
0x136a   :  { %v4317_v20 = vsel %vm523_vm1, %v4303_v59, 0.0 }
0x136b   :  { %v4286_v48 = vpop.xlane.xlu2 %4285  ;;  %4318 = vadd.xlane.f32.xlu2 %v4317_v20  ;;  %v4271_v22 = vpop.xlane.xlu0 %4270 }
0x136c   :  { %v4292_v62 = vmul.f32 %v4286_v48, %v13066_v15  ;;  %v4287_v28 = vmul.f32 %v4271_v22, %v13066_v15 }
0x136e   :  { %v13981_v31 = vsub.f32 %v4264_v53, %v4292_v62  ;;  %v13983_v26 = vsub.f32 %v4259_v54, %v4287_v28 }
0x1370   :  { %v4304_v39 = vmul.f32 %v13981_v31, %v13981_v31  ;;  %v4299_v35 = vmul.f32 %v13983_v26, %v13983_v26 }
0x1372   :  { %v4320_v25 = vsel %vm523_vm1, %v4304_v39, 0.0  ;;  %v4305_v27 = vsel %vm523_vm1, %v4299_v35, 0.0 }
0x1373   :  { %4321 = vadd.xlane.f32.xlu1 %v4320_v25  ;;  %v4274_v1 = vpop.xlane.xlu2 %4273  ;;  %4306 = vadd.xlane.f32.xlu0 %v4305_v27 }
0x1374   :  { %v4288_v53 = vmul.f32 %v4274_v1, %v13066_v15 }
0x1376   :  { %v13995_v54 = vsub.f32 %v4260_v61, %v4288_v53 }
0x1378   :  { %v4300_v33 = vmul.f32 %v13995_v54, %v13995_v54 }
0x137a   :  { %v4308_v56 = vsel %vm523_vm1, %v4300_v33, 0.0 }
0x137b   :  { %4312 = vadd.xlane.f32.xlu1 %v4311_v21  ;;  %4309 = vadd.xlane.f32.xlu2 %v4308_v56 }
0x137c   :  { %4497 = vadd.xlane.f32.xlu0 %v4496_v11 }
0x13d6   :  { %v4316_v12 = vpop.xlane.xlu0 %4315 }
0x13d7   :  { %v4326_v61 = vmul.f32 %v4316_v12, %v13066_v15 }
0x13d9   :  { %v4332_v40 = vadd.f32 1e-05, %v4326_v61 }
0x13db   :  { %12252 = vrsqrt.f32 %v4332_v40  ;;  %vm4371_vm12 = vweird.f32 %v4332_v40 }
0x13de   :  { %v4319_v46 = vpop.xlane.xlu2 %4318 }
0x13df   :  { %v4327_v50 = vmul.f32 %v4319_v46, %v13066_v15 }
0x13e1   :  { %v4333_v9 = vadd.f32 1e-05, %v4327_v50  ;;  %v12253_v23 = vpop.eup %12252 }
0x13e2   :  { %v4366_v2 = vmul.f32 %v12253_v23, %v4332_v40  ;;  %vm4372_vm9 = vweird.f32 %v12253_v23 }
0x13e3   :  { %12254 = vrsqrt.f32 %v4333_v9  ;;  %vm4381_vm10 = vweird.f32 %v4333_v9  ;;  %vm4373_vm14 = vmor %vm4371_vm12, %vm4372_vm9 }
0x13e4   :  { %v4367_v39 = vmul.f32 %v12253_v23, %v4366_v2 }
0x13e6   :  { %v4322_v59 = vpop.xlane.xlu1 %4321  ;;  %v4307_v20 = vpop.xlane.xlu0 %4306  ;;  %v4368_v27 = vmul.f32 0.5, %v4367_v39 }
0x13e7   :  { %v4328_v48 = vmul.f32 %v4322_v59, %v13066_v15  ;;  %v4323_v22 = vmul.f32 %v4307_v20, %v13066_v15 }
0x13e8   :  { %v4369_v50 = vsub.f32 1.5, %v4368_v27 }
0x13e9   :  { %v12255_v62 = vpop.eup %12254  ;;  %v4334_v28 = vadd.f32 1e-05, %v4328_v48  ;;  %v14009_v18 = vadd.f32 1e-05, %v4323_v22 }
0x13ea   :  { %v4376_v35 = vmul.f32 %v12255_v62, %v4333_v9  ;;  %vm4382_vm8 = vweird.f32 %v12255_v62  ;;  %v4370_v39 = vmul.f32 %v12253_v23, %v4369_v50 }
0x13eb   :  { %12256 = vrsqrt.f32 %v4334_v28  ;;  %vm14022_vm11 = vmor %vm4381_vm10, %vm4382_vm8  ;;  %vm4391_vm3 = vweird.f32 %v4334_v28  ;;  %vm4341_vm8 = vweird.f32 %v14009_v18 }
0x13ec   :  { %v4377_v25 = vmul.f32 %v12255_v62, %v4376_v35  ;;  %12258 = vrsqrt.f32 %v14009_v18 }
0x13ee   :  { %v4378_v1 = vmul.f32 0.5, %v4377_v25  ;;  %v4313_v53 = vpop.xlane.xlu1 %4312  ;;  %v4310_v24 = vpop.xlane.xlu2 %4309 }
0x13ef   :  { %v4325_v33 = vmul.f32 %v4313_v53, %v13066_v15  ;;  %v4324_v21 = vmul.f32 %v4310_v24, %v13066_v15 }
0x13f0   :  { %v4379_v56 = vsub.f32 1.5, %v4378_v1 }
0x13f1   :  { %v12257_v11 = vpop.eup %12256  ;;  %v4331_v12 = vadd.f32 1e-05, %v4325_v33  ;;  %v14014_v61 = vadd.f32 1e-05, %v4324_v21  ;;  %v4374_v21 = vsel %vm4373_vm14, %v12253_v23, %v4370_v39 }
0x13f2   :  { %v14016_v46 = vpop.eup %12258  ;;  %v4386_v2 = vmul.f32 %v12257_v11, %v4334_v28  ;;  %v4380_v20 = vmul.f32 %v12255_v62, %v4379_v56  ;;  %vm4392_vm13 = vweird.f32 %v12257_v11  ;;  %v4398_v28 = vmul.f32 %v4374_v21, %v13967_v29 }
0x13f3   :  { %v4336_v59 = vmul.f32 %v14016_v46, %v14009_v18  ;;  %12260 = vrsqrt.f32 %v4331_v12  ;;  %vm4393_vm5 = vmor %vm4391_vm3, %vm4392_vm13  ;;  %vm4342_vm7 = vweird.f32 %v14016_v46  ;;  %vm4361_vm12 = vweird.f32 %v4331_v12 }
0x13f4   :  { %v4387_v48 = vmul.f32 %v12257_v11, %v4386_v2  ;;  %12262 = vrsqrt.f32 %v14014_v61  ;;  %v4384_v1 = vsel %vm14022_vm11, %v12255_v62, %v4380_v20  ;;  %vm14043_vm10 = vmor %vm4341_vm8, %vm4342_vm7  ;;  %vm4351_vm14 = vweird.f32 %v14014_v61 }
0x13f5   :  { %v4337_v22 = vmul.f32 %v14016_v46, %v4336_v59  ;;  %v4399_v40 = vmul.f32 %v4384_v1, %v13973_v17 }
0x13f6   :  { %v4388_v35 = vmul.f32 0.5, %v4387_v48 }
0x13f7   :  { %v4338_v27 = vmul.f32 0.5, %v4337_v22  ;;  %v14032_v22 = vld [vmem:[%s13082_s25 + $0x2] ss:$0 sm:$0xff] }
0x13f8   :  { %v4389_v53 = vsub.f32 1.5, %v4388_v35  ;;  %v4408_v17 = vmul.f32 %v14032_v22, %v4399_v40 }
0x13f9   :  { %v12261_v24 = vpop.eup %12260  ;;  %v4339_v9 = vsub.f32 1.5, %v4338_v27  ;;  %v14039_v27 = vld [vmem:[%s13088_s29 + $0x2] ss:$0 sm:$0xff] }
0x13fa   :  { %v12263_v33 = vpop.eup %12262  ;;  %v4390_v56 = vmul.f32 %v12257_v11, %v4389_v53  ;;  %v4356_v50 = vmul.f32 %v12261_v24, %v4331_v12  ;;  %vm4362_vm9 = vweird.f32 %v12261_v24  ;;  %v4407_v53 = vmul.f32 %v14032_v22, %v4398_v28  ;;  %v4498_v28 = vpop.xlane.xlu0 %4497 }
0x13fb   :  { %v4346_v2 = vmul.f32 %v12263_v33, %v14014_v61  ;;  %v4340_v23 = vmul.f32 %v14016_v46, %v4339_v9  ;;  %vm4352_vm11 = vweird.f32 %v12263_v33  ;;  %vm4363_vm13 = vmor %vm4361_vm12, %vm4362_vm9  ;;  %v4417_v9 = vadd.f32 %v14039_v27, %v4408_v17 }
0x13fc   :  { %v4394_v59 = vsel %vm4393_vm5, %v12257_v11, %v4390_v56  ;;  %v4357_v48 = vmul.f32 %v12261_v24, %v4356_v50  ;;  %vm4353_vm3 = vmor %vm4351_vm14, %vm4352_vm11  ;;  %v4416_v40 = vadd.f32 %v14039_v27, %v4407_v53  ;;  %v4499_v17 = vsel %vm523_vm1, %v13754_v10, 0.0 }
0x13fd   :  { %v4400_v62 = vmul.f32 %v4394_v59, %v13981_v31  ;;  %v4347_v20 = vmul.f32 %v12263_v33, %v4346_v2  ;;  %v4344_v21 = vsel %vm14043_vm10, %v14016_v46, %v4340_v23  ;;  %v4502_v23 = vmul.f32 %v4498_v28, %v13066_v15  ;;  %v11420_v28 = vld [vmem:[%s13244_s16 + $0x50] sm:$0xff] }
0x13fe   :  { %v4358_v39 = vmul.f32 0.5, %v4357_v48  ;;  %v4395_v48 = vmul.f32 %v4344_v21, %v13983_v26 }
0x13ff   :  { %v4348_v35 = vmul.f32 0.5, %v4347_v20  ;;  %v4409_v25 = vmul.f32 %v14032_v22, %v4400_v62 }
0x1400   :  { %v4359_v31 = vsub.f32 1.5, %v4358_v39 }
0x1401   :  { %v4349_v29 = vsub.f32 1.5, %v4348_v35  ;;  %v4418_v1 = vadd.f32 %v14039_v27, %v4409_v25  ;;  %v14073_v25 = vsub.f32 %v13757_v60, %v4502_v23 }
0x1402   :  { %v4360_v56 = vmul.f32 %v12261_v24, %v4359_v31 }
0x1403   :  { %v4350_v18 = vmul.f32 %v12263_v33, %v4349_v29  ;;  %4429 = vmatpush.msrb.mxu2 %v4418_v1  ;;  %v4506_v11 = vmul.f32 %v14073_v25, %v14073_v25 }
0x1404   :  { %v4364_v50 = vsel %vm4363_vm13, %v12261_v24, %v4360_v56  ;;  %v4404_v24 = vmul.f32 %v14032_v22, %v4395_v48 }
0x1405   :  { %v4354_v2 = vsel %vm4353_vm3, %v12263_v33, %v4350_v18  ;;  %4430 = vmatpush.msrb.mxu2 %v4417_v9  ;;  %v4397_v59 = vmul.f32 %v4364_v50, %v13990_v47  ;;  %v4508_v29 = vsel %vm523_vm1, %v4506_v11, 0.0 }
0x1406   :  { %v4396_v46 = vmul.f32 %v4354_v2, %v13995_v54  ;;  %v4413_v20 = vadd.f32 %v14039_v27, %v4404_v24 }
0x1407   :  { %4431 = vmatpush.msrb.mxu2 %v4416_v40  ;;  %v4406_v12 = vmul.f32 %v14032_v22, %v4397_v59 }
0x1408   :  { %v4405_v61 = vmul.f32 %v14032_v22, %v4396_v46 }
0x1409   :  { %v4415_v62 = vadd.f32 %v14039_v27, %v4406_v12 }
0x140a   :  { %v4414_v33 = vadd.f32 %v14039_v27, %v4405_v61 }
0x140b   :  { %4432 = vmatpush.msrb.mxu2 %v4415_v62 }
0x140d   :  { %4433 = vmatpush.msrb.mxu2 %v4414_v33 }
0x140f   :  { %4434 = vmatpush.msrb.mxu2 %v4413_v20 }
0x1410   :  { %9871 = vmatmul.msk.f32.vlgmr.msrb.gmra.mxu2 %vm230_vm6, %v13131_v30 }
0x1418   :  { %9872 = vmatmul.msk.f32.gmra.mxu2 %vm230_vm6, %v13121_v57 }
0x1493   :  { %v4436_v26 = vpop.f32.mrf.mxu2 }
0x1494   :  { %v4442_v47 = vmul.f32 %v4436_v26, %v13203_v51 }
0x1496   :  { %v4444_v54 = vsel %vm523_vm1, %v4442_v47, 0.0 }
0x1497   :  { %4445 = vadd.xlane.f32.xlu1 %v4444_v54 }
0x149b   :  { %v4439_v39 = vpop.f32.mrf.mxu2 }
0x149c   :  { %v4443_v35 = vmul.f32 %v4439_v39, %v13213_v44 }
0x149e   :  { %v4447_v31 = vsel %vm523_vm1, %v4443_v35, 0.0 }
0x149f   :  { %4500 = vadd.xlane.f32.xlu1 %v4499_v17  ;;  %4448 = vadd.xlane.f32.xlu2 %v4447_v31  ;;  %v11419_v31 = vld [vmem:[%s13244_s16 + $0x48] sm:$0xff] }
0x14a7   :  { %4509 = vadd.xlane.f32.xlu1 %v4508_v29 }
0x150a   :  { %v4446_v1 = vpop.xlane.xlu1 %4445 }
0x150b   :  { %v4450_v53 = vmul.f32 %v4446_v1, %v13066_v15 }
0x150d   :  { %v4452_v21 = vsub.f32 %v4442_v47, %v4450_v53  ;;  %v11421_v47 = vld [vmem:[%s13244_s16 + $0x58] sm:$0xff] }
0x150e   :  { %4606 = vmatpush.bf16.msra.mxu2 %v11421_v47 }
0x150f   :  { %v4454_v56 = vmul.f32 %v4452_v21, %v4452_v21 }
0x1511   :  { %v4456_v18 = vsel %vm523_vm1, %v4454_v56, 0.0 }
0x1512   :  { %v4501_v9 = vpop.xlane.xlu1 %4500  ;;  %4457 = vadd.xlane.f32.xlu2 %v4456_v18  ;;  %v4449_v50 = vpop.xlane.xlu2 %4448  ;;  %4607 = vmatpush.bf16.msra.mxu2 %v11420_v28 }
0x1513   :  { %v4503_v2 = vmul.f32 %v4501_v9, %v13066_v15  ;;  %v4451_v40 = vmul.f32 %v4449_v50, %v13066_v15 }
0x1515   :  { %v14086_v59 = vsub.f32 %v13754_v10, %v4503_v2  ;;  %v4453_v48 = vsub.f32 %v4443_v35, %v4451_v40 }
0x1516   :  { %4608 = vmatpush.bf16.msra.mxu2 %v11419_v31  ;;  %v11418_v31 = vld [vmem:[%s13244_s16 + $0x40] sm:$0xff] }
0x1517   :  { %v4507_v46 = vmul.f32 %v14086_v59, %v14086_v59  ;;  %v4455_v12 = vmul.f32 %v4453_v48, %v4453_v48 }
0x1519   :  { %v4511_v61 = vsel %vm523_vm1, %v4507_v46, 0.0  ;;  %v4459_v62 = vsel %vm523_vm1, %v4455_v12, 0.0 }
0x151a   :  { %4512 = vadd.xlane.f32.xlu2 %v4511_v61  ;;  %4460 = vadd.xlane.f32.xlu0 %v4459_v62  ;;  %v4510_v47 = vpop.xlane.xlu1 %4509 }
0x151b   :  { %4609 = vmatpush.bf16.msra.mxu2 %v11418_v31  ;;  %v10176_v31 = vld [vmem:[%s12795_s4 + $0x5d0] sm:$0xf] }
0x1585   :  { %v4458_v24 = vpop.xlane.xlu2 %4457 }
0x1586   :  { %v4462_v33 = vmul.f32 %v4458_v24, %v13066_v15 }
0x1588   :  { %v4464_v20 = vadd.f32 1e-05, %v4462_v33 }
0x158a   :  { %12264 = vrsqrt.f32 %v4464_v20  ;;  %vm4472_vm7 = vweird.f32 %v4464_v20 }
0x158d   :  { %v4461_v26 = vpop.xlane.xlu0 %4460 }
0x158e   :  { %v4463_v54 = vmul.f32 %v4461_v26, %v13066_v15 }
0x1590   :  { %v12265_v23 = vpop.eup %12264  ;;  %v4465_v39 = vadd.f32 1e-05, %v4463_v54  ;;  %v4513_v54 = vpop.xlane.xlu2 %4512 }
0x1591   :  { %v4467_v35 = vmul.f32 %v12265_v23, %v4464_v20  ;;  %vm4473_vm5 = vweird.f32 %v12265_v23  ;;  %v4515_v28 = vmul.f32 %v4513_v54, %v13066_v15 }
0x1592   :  { %12266 = vrsqrt.f32 %v4465_v39  ;;  %vm4474_vm8 = vmor %vm4472_vm7, %vm4473_vm5  ;;  %vm4482_vm10 = vweird.f32 %v4465_v39 }
0x1593   :  { %v4468_v17 = vmul.f32 %v12265_v23, %v4467_v35 }
0x1595   :  { %v4469_v11 = vmul.f32 0.5, %v4468_v17 }
0x1597   :  { %v4470_v29 = vsub.f32 1.5, %v4469_v11 }
0x1598   :  { %v12267_v1 = vpop.eup %12266 }
0x1599   :  { %v4471_v53 = vmul.f32 %v12265_v23, %v4470_v29  ;;  %v4477_v56 = vmul.f32 %v12267_v1, %v4465_v39  ;;  %vm4483_vm9 = vweird.f32 %v12267_v1 }
0x159a   :  { %vm4484_vm11 = vmor %vm4482_vm10, %vm4483_vm9 }
0x159b   :  { %v4478_v18 = vmul.f32 %v12267_v1, %v4477_v56  ;;  %v4475_v9 = vsel %vm4474_vm8, %v12265_v23, %v4471_v53 }
0x159c   :  { %v4486_v40 = vmul.f32 %v4475_v9, %v4452_v21  ;;  %v4514_v21 = vmul.f32 %v4510_v47, %v13066_v15 }
0x159d   :  { %v4479_v50 = vmul.f32 0.5, %v4478_v18 }
0x159e   :  { %v4488_v62 = vmul.f32 %v14032_v22, %v4486_v40  ;;  %v4516_v23 = vadd.f32 1e-05, %v4514_v21  ;;  %v11868_v40 = vld [vmem:[%s13210_s6 + $0x2] ss:$0 sm:$0xff] }
0x159f   :  { %v4480_v2 = vsub.f32 1.5, %v4479_v50 }
0x15a0   :  { %v4490_v33 = vadd.f32 %v14039_v27, %v4488_v62  ;;  %12268 = vrsqrt.f32 %v4516_v23  ;;  %vm4524_vm14 = vweird.f32 %v4516_v23 }
0x15a1   :  { %v4481_v46 = vmul.f32 %v12267_v1, %v4480_v2 }
0x15a3   :  { %v4485_v12 = vsel %vm4484_vm11, %v12267_v1, %v4481_v46 }
0x15a4   :  { %v4487_v61 = vmul.f32 %v4485_v12, %v4453_v48  ;;  %v4517_v48 = vadd.f32 1e-05, %v4515_v28 }
0x15a6   :  { %v4489_v24 = vmul.f32 %v14032_v22, %v4487_v61  ;;  %12270 = vrsqrt.f32 %v4517_v48  ;;  %v12269_v39 = vpop.eup %12268  ;;  %vm4534_vm5 = vweird.f32 %v4517_v48 }
0x15a7   :  { %v4519_v35 = vmul.f32 %v12269_v39, %v4516_v23  ;;  %vm4525_vm12 = vweird.f32 %v12269_v39  ;;  %v11424_v23 = vld [vmem:[%s13274_s26 + $0x50] sm:$0xff] }
0x15a8   :  { %v4491_v20 = vadd.f32 %v14039_v27, %v4489_v24  ;;  %vm4526_vm3 = vmor %vm4524_vm14, %vm4525_vm12  ;;  %v11869_v24 = vld [vmem:[%s13228_s11 + $0x2] ss:$0 sm:$0xff] }
0x15a9   :  { %v4520_v27 = vmul.f32 %v12269_v39, %v4519_v35  ;;  %v11472_v35 = vld [vmem:[%s12795_s4 + $0x5f0] sm:$0xf0] }
0x15aa   :  { %v11800_v26 = vpack.i.bf16 %v4491_v20, %v4490_v33 }
0x15ab   :  { %v4521_v29 = vmul.f32 0.5, %v4520_v27  ;;  %v11469_v27 = vld [vmem:[%s12795_s4 + $0x5d8] sm:$0xf0] }
0x15ac   :  { %11801 = vrot.lane.b32.xlu0 %v11800_v26, %s12616_s5  ;;  %v12271_v22 = vpop.eup %12270 }
0x15ad   :  { %v4529_v17 = vmul.f32 %v12271_v22, %v4517_v48  ;;  %v4522_v53 = vsub.f32 1.5, %v4521_v29  ;;  %vm4535_vm13 = vweird.f32 %v12271_v22  ;;  %v11423_v48 = vld [vmem:[%s13274_s26 + $0x48] sm:$0xff]  ;;  %v10164_v29 = vld [vmem:[%s12795_s4 + $0x5b8] sm:$0xf] }
0x15ae   :  { %vm4536_vm7 = vmor %vm4534_vm5, %vm4535_vm13 }
0x15af   :  { %v4530_v11 = vmul.f32 %v12271_v22, %v4529_v17  ;;  %v4523_v18 = vmul.f32 %v12269_v39, %v4522_v53 }
0x15b1   :  { %v4531_v1 = vmul.f32 0.5, %v4530_v11  ;;  %v4527_v50 = vsel %vm4526_vm3, %v12269_v39, %v4523_v18  ;;  %v11422_v39 = vld [vmem:[%s13274_s26 + $0x40] sm:$0xff]  ;;  %v10177_v11 = vor.u32 %v11469_v27, %v10176_v31 }
0x15b2   :  { %v4538_v46 = vmul.f32 %v4527_v50, %v14073_v25  ;;  %v10152_v18 = vld [vmem:[%s12795_s4 + $0x5a0] sm:$0xf] }
0x15b3   :  { %v4532_v56 = vsub.f32 1.5, %v4531_v1  ;;  %v11466_v1 = vld [vmem:[%s12795_s4 + $0x5c0] sm:$0xf0] }
0x15b4   :  { %v4543_v61 = vmul.f32 %v11868_v40, %v4538_v46  ;;  %v10165_v53 = vor.u32 %v11466_v1, %v10164_v29 }
0x15b5   :  { %v4533_v9 = vmul.f32 %v12271_v22, %v4532_v56  ;;  %v11870_v56 = vld [vmem:[%s13251_s21 + $0x2] ss:$0 sm:$0xff] }
0x15b6   :  { %v4548_v20 = vadd.f32 %v11869_v24, %v4543_v61  ;;  %v11460_v61 = vld [vmem:[%s12795_s4 + $0x590] sm:$0xf0] }
0x15b7   :  { %v4537_v2 = vsel %vm4536_vm7, %v12271_v22, %v4533_v9  ;;  %v10188_v22 = vld [vmem:[%s12795_s4 + $0x5e8] sm:$0xf]  ;;  %v11463_v9 = vld [vmem:[%s12795_s4 + $0x5a8] sm:$0xf0] }
0x15b8   :  { %v4539_v12 = vmul.f32 %v4537_v2, %v14086_v59  ;;  %v11425_v59 = vld [vmem:[%s13274_s26 + $0x58] sm:$0xff]  ;;  %v10189_v17 = vor.u32 %v11472_v35, %v10188_v22  ;;  %v10153_v2 = vor.u32 %v11463_v9, %v10152_v18  ;;  %v10196_v18 = vld [vmem:[%s12795_s4 + $0x5f0] sm:$0xf] }
0x15b9   :  { %4674 = vmatpush.bf16.msrb.mxu0 %v11425_v59  ;;  %v11473_v9 = vld [vmem:[%s12795_s4 + $0x5f8] sm:$0xf0] }
0x15ba   :  { %v4544_v62 = vmul.f32 %v11868_v40, %v4539_v12  ;;  %v10140_v12 = vld [vmem:[%s12795_s4 + $0x588] sm:$0xf] }
0x15bc   :  { %v4549_v26 = vadd.f32 %v11869_v24, %v4544_v62  ;;  %v10141_v62 = vor.u32 %v11460_v61, %v10140_v12  ;;  %v10128_v24 = vld [vmem:[%s12795_s4 + $0x570] sm:$0xf]  ;;  %v10172_v61 = vld [vmem:[%s12795_s4 + $0x5c0] sm:$0xf] }
0x15bd   :  { %4675 = vmatpush.bf16.msrb.mxu0 %v11424_v23  ;;  %v10104_v23 = vld [vmem:[%s12795_s4 + $0x540] sm:$0xf] }
0x15c1   :  { %4676 = vmatpush.bf16.msrb.mxu0 %v11423_v48  ;;  %v11451_v48 = vld [vmem:[%s12795_s4 + $0x548] sm:$0xf0] }
0x15c2   :  { %v10105_v22 = vor.u32 %v11451_v48, %v10104_v23  ;;  %v11455_v23 = vld [vmem:[%s12795_s4 + $0x568] sm:$0xf0] }
0x15c5   :  { %4677 = vmatpush.bf16.msrb.mxu0 %v11422_v39 }
0x15c9   :  { %5207 = vmatpush.bf16.msra.mxu0 %v10189_v17 }
0x15cd   :  { %5208 = vmatpush.bf16.msra.mxu0 %v10177_v11 }
0x15d1   :  { %5209 = vmatpush.bf16.msra.mxu0 %v10165_v53 }
0x15d5   :  { %5210 = vmatpush.bf16.msra.mxu0 %v10153_v2  ;;  %v10197_v2 = vor.u32 %v11473_v9, %v10196_v18 }
0x15d9   :  { %5211 = vmatpush.bf16.msra.mxu0 %v10141_v62  ;;  %v11467_v62 = vld [vmem:[%s12795_s4 + $0x5c8] sm:$0xf0] }
0x161e   :  { %v11802_v33 = vpop.permute.xlu0 %11801 }
0x161f   :  { %v11804_v47 = vunpack.i.h.bf16 %v11802_v33  ;;  %v11803_v54 = vunpack.i.l.bf16 %v11802_v33  ;;  %v11457_v33 = vld [vmem:[%s12795_s4 + $0x578] sm:$0xf0] }
0x1621   :  { %v4559_v21 = vsel %vm523_vm1, %v4549_v26, %v11804_v47  ;;  %v4558_v25 = vsel %vm523_vm1, %v4548_v20, %v11803_v54  ;;  %v10129_v26 = vor.u32 %v11457_v33, %v10128_v24  ;;  %v10116_v47 = vld [vmem:[%s12795_s4 + $0x558] sm:$0xf]  ;;  %v11454_v54 = vld [vmem:[%s12795_s4 + $0x560] sm:$0xf0]  ;;  %v10160_v24 = vld [vmem:[%s12795_s4 + $0x5a8] sm:$0xf] }
0x1622   :  { %v4560_v28 = vpack.c.bf16 %v4559_v21, %v4558_v25  ;;  %v11464_v33 = vld [vmem:[%s12795_s4 + $0x5b0] sm:$0xf0] }
0x1623   :  { %5212 = vmatpush.bf16.msra.mxu0 %v10129_v26  ;;  %v10148_v26 = vld [vmem:[%s12795_s4 + $0x590] sm:$0xf] }
0x1624   :  { %9900 = vmatmul.msk.bf16.vlgmr.msra.gmra.mxu2 %vm504_vm15, %v4560_v28  ;;  %v10117_v28 = vor.u32 %v11454_v54, %v10116_v47  ;;  %v11461_v47 = vld [vmem:[%s12795_s4 + $0x598] sm:$0xf0]  ;;  %v10136_v54 = vld [vmem:[%s12795_s4 + $0x578] sm:$0xf] }
0x1627   :  { %5213 = vmatpush.bf16.msra.mxu0 %v10117_v28 }
0x162b   :  { %5214 = vmatpush.bf16.msra.mxu0 %v10105_v22  ;;  %v11452_v22 = vld [vmem:[%s12795_s4 + $0x550] sm:$0xf0] }
0x16a7   :  { %v4611_v50 = vpop.f32.mrf.mxu2 }
0x16a8   :  { %v4612_v40 = vadd.f32 %v11870_v56, %v4611_v50  ;;  %v10184_v50 = vld [vmem:[%s12795_s4 + $0x5d8] sm:$0xf] }
0x16aa   :  { %v4616_v46 = vsub.f32 0.0, %v4612_v40 }
0x16ac   :  { %v4618_v20 = vmul.f32 1.442695, %v4616_v46  ;;  %v11470_v46 = vld [vmem:[%s12795_s4 + $0x5e0] sm:$0xf0] }
0x16ad   :  { %v10185_v12 = vor.u32 %v11470_v46, %v10184_v50 }
0x16ae   :  { %12272 = vpow2.f32 %v4618_v20  ;;  %v10161_v20 = vor.u32 %v11464_v33, %v10160_v24 }
0x16af   :  { %v4613_v21 = vpop.f32.mrf.mxu2 }
0x16b0   :  { %v4614_v25 = vadd.f32 %v11870_v56, %v4613_v21  ;;  %v10149_v21 = vor.u32 %v11461_v47, %v10148_v26 }
0x16b2   :  { %v4617_v59 = vsub.f32 0.0, %v4614_v25 }
0x16b4   :  { %v4620_v39 = vmul.f32 1.442695, %v4617_v59  ;;  %v12273_v35 = vpop.eup %12272  ;;  %v10124_v59 = vld [vmem:[%s12795_s4 + $0x560] sm:$0xf] }
0x16b5   :  { %v4622_v17 = vadd.f32 1.0, %v12273_v35  ;;  %v10125_v48 = vor.u32 %v11455_v23, %v10124_v59 }
0x16b6   :  { %12274 = vpow2.f32 %v4620_v39  ;;  %v10112_v39 = vld [vmem:[%s12795_s4 + $0x548] sm:$0xf] }
0x16b7   :  { %12276 = vrcp.f32 %v4622_v17  ;;  %v10113_v35 = vor.u32 %v11452_v22, %v10112_v39  ;;  %v11871_v17 = vld [vmem:[%s13296_s2 + $0x2] ss:$0 sm:$0xff] }
0x16bc   :  { %v12275_v31 = vpop.eup %12274 }
0x16bd   :  { %v4623_v27 = vadd.f32 1.0, %v12275_v31  ;;  %v12277_v11 = vpop.eup %12276 }
0x16be   :  { %v4626_v1 = vmul.f32 %v12277_v11, %v4612_v40  ;;  %v10173_v40 = vor.u32 %v11467_v62, %v10172_v61 }
0x16bf   :  { %12278 = vrcp.f32 %v4623_v27 }
0x16c5   :  { %v12279_v29 = vpop.eup %12278 }
0x16c6   :  { %v4627_v53 = vmul.f32 %v12279_v29, %v4614_v25  ;;  %v11458_v25 = vld [vmem:[%s12795_s4 + $0x580] sm:$0xf0] }
0x16c7   :  { %v10137_v28 = vor.u32 %v11458_v25, %v10136_v54 }
0x16c8   :  { %v4628_v56 = vpack.c.bf16 %v4627_v53, %v4626_v1 }
0x16ca   :  { %9926 = vmatmul.msk.bf16.vlgmr.msrb.gmra.mxu0 %vm504_vm15, %v4628_v56 }
0x16cb   :  { %5303 = vmatpush.bf16.msrb.mxu0 %v10197_v2 }
0x16cf   :  { %5304 = vmatpush.bf16.msrb.mxu0 %v10185_v12 }
0x16d3   :  { %5305 = vmatpush.bf16.msrb.mxu0 %v10173_v40 }
0x16d7   :  { %5306 = vmatpush.bf16.msrb.mxu0 %v10161_v20 }
0x16da   :  { %5215 = vmatmul.bf16.vlgmr.msra.gmra.mxu0 %v12836_v16 }
0x16db   :  { %5307 = vmatpush.bf16.msrb.mxu0 %v10149_v21 }
0x16df   :  { %5308 = vmatpush.bf16.msrb.mxu0 %v10137_v28 }
0x16e3   :  { %5309 = vmatpush.bf16.msrb.mxu0 %v10125_v48 }
0x16e7   :  { %5310 = vmatpush.bf16.msrb.mxu0 %v10113_v35 }
0x16ea   :  { %5220 = vmatmul.bf16.gmra.mxu0 %v12884_v43 }
0x16fa   :  { %5225 = vmatmul.bf16.gmra.mxu0 %v12905_v19 }
0x170a   :  { %5311 = vmatmul.bf16.vlgmr.msrb.gmra.mxu0 %v12836_v16 }
0x171a   :  { %5316 = vmatmul.bf16.gmra.mxu0 %v12884_v43 }
0x172a   :  { %5321 = vmatmul.bf16.gmra.mxu0 %v12905_v19 }
0x1747   :  { %v4679_v31 = vpop.f32.mrf.mxu0 }
0x1748   :  { %v4680_v27 = vadd.f32 %v11871_v17, %v4679_v31 }
0x174a   :  { %v4688_v11 = vsel %vm523_vm1, %v4680_v27, 0.0 }
0x174b   :  { %4689 = vadd.xlane.f32.xlu2 %v4688_v11  ;;  %v11872_v11 = vld [vmem:[%s13330_s10 + $0x2] ss:$0 sm:$0xff] }
0x174f   :  { %v4681_v29 = vpop.f32.mrf.mxu0 }
0x1750   :  { %v4682_v1 = vadd.f32 %v11871_v17, %v4681_v29 }
0x1752   :  { %v4691_v53 = vsel %vm523_vm1, %v4682_v1, 0.0 }
0x1753   :  { %4692 = vadd.xlane.f32.xlu1 %v4691_v53 }
0x17be   :  { %v4690_v56 = vpop.xlane.xlu2 %4689 }
0x17bf   :  { %v4694_v18 = vmul.f32 %v4690_v56, %v13066_v15  ;;  %v11873_v56 = vld [vmem:[%s13335_s18 + $0x2] ss:$0 sm:$0xff] }
0x17c1   :  { %v4696_v9 = vsub.f32 %v4680_v27, %v4694_v18 }
0x17c3   :  { %v4698_v50 = vmul.f32 %v4696_v9, %v4696_v9 }
0x17c5   :  { %v4700_v2 = vsel %vm523_vm1, %v4698_v50, 0.0 }
0x17c6   :  { %v4693_v46 = vpop.xlane.xlu1 %4692  ;;  %4701 = vadd.xlane.f32.xlu2 %v4700_v2 }
0x17c7   :  { %v4695_v12 = vmul.f32 %v4693_v46, %v13066_v15 }
0x17c9   :  { %v4697_v61 = vsub.f32 %v4682_v1, %v4695_v12 }
0x17cb   :  { %v4699_v62 = vmul.f32 %v4697_v61, %v4697_v61 }
0x17cd   :  { %v4703_v40 = vsel %vm523_vm1, %v4699_v62, 0.0  ;;  %v11471_v62 = vld [vmem:[%s12795_s4 + $0x5ec] sm:$0xf] }
0x17ce   :  { %4704 = vadd.xlane.f32.xlu1 %v4703_v40  ;;  %v10190_v40 = vld [vmem:[%s12795_s4 + $0x5f4] sm:$0xf0] }
0x1839   :  { %v4702_v24 = vpop.xlane.xlu2 %4701 }
0x183a   :  { %v4706_v33 = vmul.f32 %v4702_v24, %v13066_v15 }
0x183c   :  { %v4708_v20 = vadd.f32 1e-05, %v4706_v33  ;;  %v11468_v33 = vld [vmem:[%s12795_s4 + $0x5d4] sm:$0xf] }
0x183e   :  { %12280 = vrsqrt.f32 %v4708_v20  ;;  %vm4716_vm9 = vweird.f32 %v4708_v20 }
0x1841   :  { %v4705_v26 = vpop.xlane.xlu1 %4704 }
0x1842   :  { %v4707_v47 = vmul.f32 %v4705_v26, %v13066_v15 }
0x1844   :  { %v12281_v54 = vpop.eup %12280  ;;  %v4709_v21 = vadd.f32 1e-05, %v4707_v47  ;;  %v11465_v47 = vld [vmem:[%s12795_s4 + $0x5bc] sm:$0xf] }
0x1845   :  { %v4711_v25 = vmul.f32 %v12281_v54, %v4708_v20  ;;  %vm4717_vm8 = vweird.f32 %v12281_v54  ;;  %v10178_v20 = vld [vmem:[%s12795_s4 + $0x5dc] sm:$0xf0] }
0x1846   :  { %12282 = vrsqrt.f32 %v4709_v21  ;;  %vm4718_vm10 = vmor %vm4716_vm9, %vm4717_vm8  ;;  %vm4726_vm12 = vweird.f32 %v4709_v21  ;;  %v10181_v26 = vor.u32 %v11468_v33, %v10178_v20  ;;  %v10092_v33 = vld [vmem:[%s12795_s4 + $0x528] sm:$0xf]  ;;  %v11448_v20 = vld [vmem:[%s12795_s4 + $0x530] sm:$0xf0] }
0x1847   :  { %v4712_v28 = vmul.f32 %v12281_v54, %v4711_v25  ;;  %v11462_v25 = vld [vmem:[%s12795_s4 + $0x5a4] sm:$0xf] }
0x1849   :  { %v4713_v59 = vmul.f32 0.5, %v4712_v28  ;;  %v10154_v28 = vld [vmem:[%s12795_s4 + $0x5ac] sm:$0xf0] }
0x184b   :  { %v4714_v23 = vsub.f32 1.5, %v4713_v59  ;;  %v10157_v59 = vor.u32 %v11462_v25, %v10154_v28  ;;  %v11445_v25 = vld [vmem:[%s12795_s4 + $0x518] sm:$0xf0] }
0x184c   :  { %v12283_v48 = vpop.eup %12282 }
0x184d   :  { %v4715_v39 = vmul.f32 %v12281_v54, %v4714_v23  ;;  %v4721_v22 = vmul.f32 %v12283_v48, %v4709_v21  ;;  %vm4727_vm11 = vweird.f32 %v12283_v48  ;;  %v11459_v23 = vld [vmem:[%s12795_s4 + $0x58c] sm:$0xf] }
0x184e   :  { %vm4728_vm13 = vmor %vm4726_vm12, %vm4727_vm11 }
0x184f   :  { %v4722_v35 = vmul.f32 %v12283_v48, %v4721_v22  ;;  %v4719_v17 = vsel %vm4718_vm10, %v12281_v54, %v4715_v39  ;;  %v10166_v54 = vld [vmem:[%s12795_s4 + $0x5c4] sm:$0xf0]  ;;  %v11456_v22 = vld [vmem:[%s12795_s4 + $0x574] sm:$0xf] }
0x1850   :  { %v4730_v29 = vmul.f32 %v4719_v17, %v4696_v9  ;;  %v10169_v21 = vor.u32 %v11465_v47, %v10166_v54  ;;  %v10093_v47 = vor.u32 %v11448_v20, %v10092_v33  ;;  %v10094_v54 = vld [vmem:[%s12795_s4 + $0x534] sm:$0xf0]  ;;  %v10032_v33 = vld [vmem:[%s12795_s4 + $0x4b0] sm:$0xf]  ;;  %v11433_v20 = vld [vmem:[%s12795_s4 + $0x4b8] sm:$0xf0] }
0x1851   :  { %v4723_v31 = vmul.f32 0.5, %v4722_v35  ;;  %v10130_v35 = vld [vmem:[%s12795_s4 + $0x57c] sm:$0xf0] }
0x1852   :  { %v4735_v18 = vmul.f32 %v11872_v11, %v4730_v29  ;;  %v10133_v17 = vor.u32 %v11456_v22, %v10130_v35  ;;  %v11450_v29 = vld [vmem:[%s12795_s4 + $0x544] sm:$0xf]  ;;  %5183 = vmatpush.bf16.msrb.mxu3 %v10093_v47  ;;  %v10068_v22 = vld [vmem:[%s12795_s4 + $0x4f8] sm:$0xf]  ;;  %v10034_v47 = vld [vmem:[%s12795_s4 + $0x4bc] sm:$0xf0] }
0x1853   :  { %v4724_v27 = vsub.f32 1.5, %v4723_v31  ;;  %v11453_v31 = vld [vmem:[%s12795_s4 + $0x55c] sm:$0xf]  ;;  %v11442_v35 = vld [vmem:[%s12795_s4 + $0x500] sm:$0xf0] }
0x1854   :  { %v4740_v46 = vadd.f32 %v11873_v56, %v4735_v18 }
0x1855   :  { %v4725_v1 = vmul.f32 %v12283_v48, %v4724_v27  ;;  %v10118_v27 = vld [vmem:[%s12795_s4 + $0x564] sm:$0xf0] }
0x1856   :  { %v14173_v9 = vadd.f32 %v4740_v46, %v13757_v60 }
0x1857   :  { %v4729_v53 = vsel %vm4728_vm13, %v12283_v48, %v4725_v1  ;;  %v10142_v48 = vld [vmem:[%s12795_s4 + $0x594] sm:$0xf0]  ;;  %v10106_v1 = vld [vmem:[%s12795_s4 + $0x54c] sm:$0xf0] }
0x1858   :  { %v4731_v50 = vmul.f32 %v4729_v53, %v4697_v61  ;;  %v10193_v61 = vor.u32 %v11471_v62, %v10190_v40  ;;  %v10145_v39 = vor.u32 %v11459_v23, %v10142_v48  ;;  %v10109_v53 = vor.u32 %v11450_v29, %v10106_v1  ;;  %v10082_v23 = vld [vmem:[%s12795_s4 + $0x51c] sm:$0xf0]  ;;  %v11439_v1 = vld [vmem:[%s12795_s4 + $0x4e8] sm:$0xf0] }
0x1859   :  { %v10056_v29 = vld [vmem:[%s12795_s4 + $0x4e0] sm:$0xf] }
0x185a   :  { %v4736_v2 = vmul.f32 %v11872_v11, %v4731_v50  ;;  %v10121_v11 = vor.u32 %v11453_v31, %v10118_v27  ;;  %v10070_v31 = vld [vmem:[%s12795_s4 + $0x504] sm:$0xf0]  ;;  %v10069_v27 = vor.u32 %v11442_v35, %v10068_v22  ;;  %v10008_v22 = vld [vmem:[%s12795_s4 + $0x480] sm:$0xf]  ;;  %v11427_v35 = vld [vmem:[%s12795_s4 + $0x488] sm:$0xf0] }
0x185c   :  { %v4741_v12 = vadd.f32 %v11873_v56, %v4736_v2 }
0x185e   :  { %v14170_v24 = vadd.f32 %v4741_v12, %v13754_v10 }
0x1860   :  { %4758 = vmatpush.msra.mxu1 %v14170_v24  ;;  %4793 = vmatpush.msrb.mxu2 %v14170_v24 }
0x1862   :  { %4759 = vmatpush.msra.mxu1 %v14173_v9  ;;  %4794 = vmatpush.msrb.mxu2 %v14173_v9 }
0x1863   :  { %9929 = vmatmul.msk.f32.vlgmr.msra.gmra.mxu1 %vm337_vm4, %v12697_v38  ;;  %9935 = vmatmul.msk.f32.vlgmr.msrb.gmra.mxu2 %vm337_vm4, %v12692_v36 }
0x1864   :  { %5255 = vmatpush.bf16.msra.mxu2 %v10193_v61 }
0x1868   :  { %5256 = vmatpush.bf16.msra.mxu2 %v10181_v26  ;;  %v11447_v26 = vld [vmem:[%s12795_s4 + $0x52c] sm:$0xf] }
0x1869   :  { %v10097_v28 = vor.u32 %v11447_v26, %v10094_v54  ;;  %v11432_v26 = vld [vmem:[%s12795_s4 + $0x4b4] sm:$0xf]  ;;  %v10033_v54 = vor.u32 %v11433_v20, %v10032_v33 }
0x186a   :  { %v11440_v33 = vld [vmem:[%s12795_s4 + $0x4f0] sm:$0xf0] }
0x186b   :  { %9930 = vmatmul.msk.f32.gmra.mxu1 %vm337_vm4, %v12718_v42  ;;  %9936 = vmatmul.msk.f32.gmra.mxu2 %vm337_vm4, %v12715_v41 }
0x186c   :  { %5257 = vmatpush.bf16.msra.mxu2 %v10169_v21  ;;  %v10080_v21 = vld [vmem:[%s12795_s4 + $0x510] sm:$0xf]  ;;  %5231 = vmatpush.bf16.msrb.mxu1 %v10097_v28  ;;  %v11430_v28 = vld [vmem:[%s12795_s4 + $0x4a0] sm:$0xf0] }
0x186d   :  { %v10081_v48 = vor.u32 %v11445_v25, %v10080_v21  ;;  %v10037_v21 = vor.u32 %v11432_v26, %v10034_v47  ;;  %v10020_v25 = vld [vmem:[%s12795_s4 + $0x498] sm:$0xf] }
0x186f   :  { %5184 = vmatpush.bf16.msrb.mxu3 %v10081_v48  ;;  %v10022_v48 = vld [vmem:[%s12795_s4 + $0x4a4] sm:$0xf0] }
0x1870   :  { %5258 = vmatpush.bf16.msra.mxu2 %v10157_v59  ;;  %v11444_v59 = vld [vmem:[%s12795_s4 + $0x514] sm:$0xf] }
0x1873   :  { %9931 = vmatmul.msk.f32.gmra.mxu1 %vm337_vm4, %v12740_v55  ;;  %9937 = vmatmul.msk.f32.gmra.mxu2 %vm337_vm4, %v12735_v52 }
0x1874   :  { %5259 = vmatpush.bf16.msra.mxu2 %v10145_v39  ;;  %v10085_v39 = vor.u32 %v11444_v59, %v10082_v23  ;;  %5185 = vmatpush.bf16.msrb.mxu3 %v10069_v27  ;;  %v10021_v59 = vor.u32 %v11430_v28, %v10020_v25  ;;  %v11429_v23 = vld [vmem:[%s12795_s4 + $0x49c] sm:$0xf]  ;;  %v10010_v27 = vld [vmem:[%s12795_s4 + $0x48c] sm:$0xf0] }
0x1876   :  { %5232 = vmatpush.bf16.msrb.mxu1 %v10085_v39  ;;  %v10025_v39 = vor.u32 %v11429_v23, %v10022_v48 }
0x1878   :  { %5260 = vmatpush.bf16.msra.mxu2 %v10133_v17  ;;  %v11441_v17 = vld [vmem:[%s12795_s4 + $0x4fc] sm:$0xf] }
0x187b   :  { %9932 = vmatmul.msk.f32.gmra.mxu1 %vm337_vm4, %v12759_v0  ;;  %9938 = vmatmul.msk.f32.gmra.mxu2 %vm337_vm4, %v12756_v63 }
0x187c   :  { %5261 = vmatpush.bf16.msra.mxu2 %v10121_v11  ;;  %v10073_v11 = vor.u32 %v11441_v17, %v10070_v31  ;;  %v11426_v17 = vld [vmem:[%s12795_s4 + $0x484] sm:$0xf]  ;;  %v10009_v31 = vor.u32 %v11427_v35, %v10008_v22  ;;  %v11437_v22 = vld [vmem:[%s12795_s4 + $0x4d8] sm:$0xf0]  ;;  %v10040_v35 = vld [vmem:[%s12795_s4 + $0x4b8] sm:$0xf] }
0x187e   :  { %5233 = vmatpush.bf16.msrb.mxu1 %v10073_v11  ;;  %v10013_v11 = vor.u32 %v11426_v17, %v10010_v27 }
0x1880   :  { %5262 = vmatpush.bf16.msra.mxu2 %v10109_v53  ;;  %v11438_v53 = vld [vmem:[%s12795_s4 + $0x4e4] sm:$0xf] }
0x1883   :  { %9933 = vmatmul.msk.f32.gmra.mxu1 %vm337_vm4, %v12774_v5  ;;  %9939 = vmatmul.msk.f32.gmra.mxu2 %vm337_vm4, %v12771_v4 }
0x188b   :  { %9934 = vmatmul.msk.f32.gmra.mxu1 %vm337_vm4, %v12786_v8  ;;  %9940 = vmatmul.msk.f32.gmra.mxu2 %vm337_vm4, %v12783_v7 }
0x1893   :  { %5263 = vmatmul.bf16.vlgmr.msra.gmra.mxu2 %v12836_v16 }
0x18a3   :  { %5268 = vmatmul.bf16.gmra.mxu2 %v12884_v43 }
0x18b3   :  { %5273 = vmatmul.bf16.gmra.mxu2 %v12905_v19 }
0x18e6   :  { %v4796_v56 = vpop.f32.mrf.mxu2 }
0x18ee   :  { %v4799_v18 = vpop.f32.mrf.mxu2 }
0x18ef   :  { %v11805_v50 = vpack.i.bf16 %v4799_v18, %v4796_v56  ;;  %v10058_v56 = vld [vmem:[%s12795_s4 + $0x4ec] sm:$0xf0]  ;;  %v10057_v18 = vor.u32 %v11439_v1, %v10056_v29  ;;  %v4761_v29 = vpop.f32.mrf.mxu1 }
0x18f1   :  { %11806 = vrot.lane.b32.xlu1 %v11805_v50, %s12616_s5  ;;  %v10061_v50 = vor.u32 %v11438_v53, %v10058_v56  ;;  %5186 = vmatpush.bf16.msrb.mxu3 %v10057_v18  ;;  %v10100_v53 = vld [vmem:[%s12795_s4 + $0x530] sm:$0xf]  ;;  %v11449_v56 = vld [vmem:[%s12795_s4 + $0x538] sm:$0xf0]  ;;  %v10088_v18 = vld [vmem:[%s12795_s4 + $0x518] sm:$0xf] }
0x18f3   :  { %5234 = vmatpush.bf16.msrb.mxu1 %v10061_v50  ;;  %v10101_v50 = vor.u32 %v11449_v56, %v10100_v53  ;;  %v10016_v56 = vld [vmem:[%s12795_s4 + $0x488] sm:$0xf] }
0x18f6   :  { %v4802_v2 = vpop.f32.mrf.mxu2 }
0x18f7   :  { %v4764_v1 = vpop.f32.mrf.mxu1 }
0x18fe   :  { %v4805_v46 = vpop.f32.mrf.mxu2 }
0x18ff   :  { %v11810_v12 = vpack.i.bf16 %v4805_v46, %v4802_v2  ;;  %v10044_v2 = vld [vmem:[%s12795_s4 + $0x4c8] sm:$0xf]  ;;  %v11436_v46 = vld [vmem:[%s12795_s4 + $0x4d0] sm:$0xf0]  ;;  %v4767_v20 = vpop.f32.mrf.mxu1 }
0x1901   :  { %11811 = vrot.lane.b32.xlu0 %v11810_v12, %s12616_s5  ;;  %v11435_v12 = vld [vmem:[%s12795_s4 + $0x4cc] sm:$0xf] }
0x1906   :  { %v4808_v62 = vpop.f32.mrf.mxu2 }
0x1907   :  { %v4770_v27 = vpop.f32.mrf.mxu1 }
0x190e   :  { %v4811_v40 = vpop.f32.mrf.mxu2 }
0x190f   :  { %v11815_v61 = vpack.i.bf16 %v4811_v40, %v4808_v62  ;;  %v10046_v62 = vld [vmem:[%s12795_s4 + $0x4d4] sm:$0xf0]  ;;  %v10045_v40 = vor.u32 %v11436_v46, %v10044_v2  ;;  %v11446_v2 = vld [vmem:[%s12795_s4 + $0x520] sm:$0xf0] }
0x1910   :  { %v10089_v46 = vor.u32 %v11446_v2, %v10088_v18  ;;  %v11428_v18 = vld [vmem:[%s12795_s4 + $0x490] sm:$0xf0] }
0x1911   :  { %11816 = vrot.lane.b32.xlu2 %v11815_v61, %s12616_s5  ;;  %v10049_v61 = vor.u32 %v11435_v12, %v10046_v62  ;;  %5187 = vmatpush.bf16.msrb.mxu3 %v10045_v40  ;;  %v10076_v12 = vld [vmem:[%s12795_s4 + $0x500] sm:$0xf]  ;;  %v11443_v62 = vld [vmem:[%s12795_s4 + $0x508] sm:$0xf0] }
0x1912   :  { %v10077_v40 = vor.u32 %v11443_v62, %v10076_v12  ;;  %v10017_v12 = vor.u32 %v11428_v18, %v10016_v56  ;;  %v11478_v56 = vld [vmem:[%s12956_s9 + $0x1ac] sm:$0xff] }
0x1913   :  { %5235 = vmatpush.bf16.msrb.mxu1 %v10049_v61  ;;  %v10064_v61 = vld [vmem:[%s12795_s4 + $0x4e8] sm:$0xf] }
0x1915   :  { %5188 = vmatpush.bf16.msrb.mxu3 %v10033_v54 }
0x1916   :  { %v5264_v18 = vpop.f32.mrf.mxu2 }
0x1917   :  { %5236 = vmatpush.bf16.msrb.mxu1 %v10037_v21  ;;  %v10065_v21 = vor.u32 %v11440_v33, %v10064_v61  ;;  %v4773_v61 = vpop.f32.mrf.mxu1 }
0x1919   :  { %5189 = vmatpush.bf16.msrb.mxu3 %v10021_v59 }
0x191b   :  { %5237 = vmatpush.bf16.msrb.mxu1 %v10025_v39  ;;  %v10052_v39 = vld [vmem:[%s12795_s4 + $0x4d0] sm:$0xf] }
0x191c   :  { %v10053_v17 = vor.u32 %v11437_v22, %v10052_v39 }
0x191d   :  { %5190 = vmatpush.bf16.msrb.mxu3 %v10009_v31  ;;  %v11434_v31 = vld [vmem:[%s12795_s4 + $0x4c0] sm:$0xf0] }
0x191f   :  { %5238 = vmatpush.bf16.msrb.mxu1 %v10013_v11  ;;  %v10041_v11 = vor.u32 %v11434_v31, %v10040_v35  ;;  %v11489_v35 = vld [vmem:[%s12956_s9 + $0x204] sm:$0xff] }
0x1920   :  { %5618 = vmatpush.bf16.msrb.mxu2 %v11489_v35  ;;  %v11481_v31 = vld [vmem:[%s12956_s9 + $0x1c4] sm:$0xff] }
0x1921   :  { %5279 = vmatpush.bf16.msra.mxu3 %v10101_v50 }
0x1923   :  { %5594 = vmatpush.bf16.msra.mxu1 %v11481_v31 }
0x1925   :  { %5280 = vmatpush.bf16.msra.mxu3 %v10089_v46 }
0x1929   :  { %5281 = vmatpush.bf16.msra.mxu3 %v10077_v40 }
0x192d   :  { %5282 = vmatpush.bf16.msra.mxu3 %v10065_v21 }
0x1931   :  { %5283 = vmatpush.bf16.msra.mxu3 %v10053_v17  ;;  %v11488_v17 = vld [vmem:[%s12956_s9 + $0x1fc] sm:$0xff] }
0x1932   :  { %5619 = vmatpush.bf16.msrb.mxu2 %v11488_v17  ;;  %v11474_v17 = vld [vmem:[%s12956_s9 + $0x18c] sm:$0xff] }
0x1935   :  { %5284 = vmatpush.bf16.msra.mxu3 %v10041_v11  ;;  %v11480_v11 = vld [vmem:[%s12956_s9 + $0x1bc] sm:$0xff] }
0x1936   :  { %5595 = vmatpush.bf16.msra.mxu1 %v11480_v11 }
0x1963   :  { %v11807_v26 = vpop.permute.xlu1 %11806 }
0x1964   :  { %v11809_v47 = vunpack.i.h.bf16 %v11807_v26  ;;  %v11808_v54 = vunpack.i.l.bf16 %v11807_v26 }
0x1966   :  { %v4838_v25 = vsel %vm523_vm1, %v4761_v29, %v11808_v54  ;;  %v4839_v28 = vsel %vm523_vm1, %v4764_v1, %v11809_v47  ;;  %v10028_v29 = vld [vmem:[%s12795_s4 + $0x4a0] sm:$0xf]  ;;  %v11431_v1 = vld [vmem:[%s12795_s4 + $0x4a8] sm:$0xf0] }
0x1967   :  { %v4844_v59 = vsel %vm504_vm15, %v4838_v25, %v12817_v49  ;;  %v4845_v23 = vsel %vm504_vm15, %v4839_v28, %v12812_v45  ;;  %v10029_v53 = vor.u32 %v11431_v1, %v10028_v29  ;;  %v5216_v29 = vpop.f32.mrf.mxu0  ;;  %v11479_v1 = vld [vmem:[%s12956_s9 + $0x1b4] sm:$0xff] }
0x1968   :  { %v4850_v48 = vpack.c.bf16 %v4845_v23, %v4844_v59  ;;  %5596 = vmatpush.bf16.msra.mxu1 %v11479_v1 }
0x1969   :  { %5285 = vmatpush.bf16.msra.mxu3 %v10029_v53  ;;  %v11485_v53 = vld [vmem:[%s12956_s9 + $0x1e4] sm:$0xff] }
0x196a   :  { %5191 = vmatmul.bf16.vlgmr.msrb.gmra.mxu3 %v4850_v48  ;;  %5239 = vmatmul.bf16.vlgmr.msrb.gmra.mxu1 %v4850_v48 }
0x196b   :  { %v11817_v54 = vpop.permute.xlu2 %11816 }
0x196c   :  { %v11819_v21 = vunpack.i.h.bf16 %v11817_v54  ;;  %v11818_v25 = vunpack.i.l.bf16 %v11817_v54  ;;  %5597 = vmatpush.bf16.msra.mxu1 %v11478_v56  ;;  %v5266_v54 = vpop.f32.mrf.mxu2 }
0x196d   :  { %5286 = vmatpush.bf16.msra.mxu3 %v10017_v12  ;;  %v11477_v12 = vld [vmem:[%s12956_s9 + $0x1a4] sm:$0xff] }
0x196e   :  { %v4842_v28 = vsel %vm523_vm1, %v4773_v61, %v11818_v25 }
0x196f   :  { %v4848_v23 = vsel %vm504_vm15, %v4842_v28, %v12898_v14 }
0x1970   :  { %5598 = vmatpush.bf16.msra.mxu1 %v11477_v12 }
0x1973   :  { %v11812_v50 = vpop.permute.xlu0 %11811 }
0x1974   :  { %v11814_v2 = vunpack.i.h.bf16 %v11812_v50  ;;  %v11813_v46 = vunpack.i.l.bf16 %v11812_v50  ;;  %v14299_v50 = vld [vmem:[%s12966_s13 + $0x9] sm:$0x7]  ;;  %v5269_v1 = vpop.f32.mrf.mxu2 }
0x1975   :  { %v14313_v25 = vperm.slane %v14299_v50, 0 }
0x1976   :  { %v4840_v62 = vsel %vm523_vm1, %v4767_v20, %v11813_v46  ;;  %v4841_v40 = vsel %vm523_vm1, %v4770_v27, %v11814_v2  ;;  %v4776_v20 = vpop.f32.mrf.mxu1  ;;  %v11487_v27 = vld [vmem:[%s12956_s9 + $0x1f4] sm:$0xff]  ;;  %v11484_v2 = vld [vmem:[%s12956_s9 + $0x1dc] sm:$0xff]  ;;  %v5218_v46 = vpop.f32.mrf.mxu0 }
0x1977   :  { %v4846_v33 = vsel %vm504_vm15, %v4840_v62, %v12862_v6  ;;  %v4847_v26 = vsel %vm504_vm15, %v4841_v40, %v12860_v3  ;;  %v4843_v59 = vsel %vm523_vm1, %v4776_v20, %v11819_v21  ;;  %5620 = vmatpush.bf16.msrb.mxu2 %v11487_v27  ;;  %v14304_v62 = vperm.slane %v14299_v50, 1  ;;  %v11483_v40 = vld [vmem:[%s12956_s9 + $0x1d4] sm:$0xff] }
0x1978   :  { %v4851_v47 = vpack.c.bf16 %v4847_v26, %v4846_v33  ;;  %v4849_v39 = vsel %vm504_vm15, %v4843_v59, %v12896_v13  ;;  %v11476_v33 = vld [vmem:[%s12956_s9 + $0x19c] sm:$0xff]  ;;  %v11475_v20 = vld [vmem:[%s12956_s9 + $0x194] sm:$0xff] }
0x1979   :  { %v4852_v22 = vpack.c.bf16 %v4849_v39, %v4848_v23  ;;  %5599 = vmatpush.bf16.msra.mxu1 %v11476_v33 }
0x197a   :  { %5196 = vmatmul.bf16.gmra.mxu3 %v4851_v47  ;;  %5244 = vmatmul.bf16.gmra.mxu1 %v4851_v47 }
0x197d   :  { %5600 = vmatpush.bf16.msra.mxu1 %v11475_v20 }
0x197e   :  { %v5221_v59 = vpop.f32.mrf.mxu0 }
0x1981   :  { %5601 = vmatpush.bf16.msra.mxu1 %v11474_v17  ;;  %v5271_v17 = vpop.f32.mrf.mxu2 }
0x198a   :  { %5201 = vmatmul.bf16.gmra.mxu3 %v4852_v22  ;;  %5249 = vmatmul.bf16.gmra.mxu1 %v4852_v22 }
0x199a   :  { %5287 = vmatmul.bf16.vlgmr.msra.gmra.mxu3 %v4850_v48  ;;  %v11486_v48 = vld [vmem:[%s12956_s9 + $0x1ec] sm:$0xff] }
0x199b   :  { %5621 = vmatpush.bf16.msrb.mxu2 %v11486_v48 }
0x199f   :  { %5622 = vmatpush.bf16.msrb.mxu2 %v11485_v53 }
0x19a3   :  { %5623 = vmatpush.bf16.msrb.mxu2 %v11484_v2 }
0x19a7   :  { %5624 = vmatpush.bf16.msrb.mxu2 %v11483_v40 }
0x19aa   :  { %5292 = vmatmul.bf16.gmra.mxu3 %v4851_v47  ;;  %v11482_v47 = vld [vmem:[%s12956_s9 + $0x1cc] sm:$0xff] }
0x19ab   :  { %5625 = vmatpush.bf16.msrb.mxu2 %v11482_v47 }
0x19ba   :  { %5297 = vmatmul.bf16.gmra.mxu3 %v4852_v22 }
0x19e7   :  { %v5240_v61 = vpop.f32.mrf.mxu1 }
0x19e8   :  { %v5241_v26 = vadd.f32 %v5240_v61, %v14304_v62  ;;  %v5223_v61 = vpop.f32.mrf.mxu0 }
0x19ea   :  { %v14310_v21 = vadd.f32 %v5264_v18, %v5241_v26 }
0x19ec   :  { %v5328_v28 = vsub.f32 0.0, %v14310_v21 }
0x19ed   :  { %v5192_v23 = vpop.f32.mrf.mxu3 }
0x19ee   :  { %v5347_v39 = vmul.f32 1.442695, %v5328_v28  ;;  %v5193_v22 = vadd.f32 %v5192_v23, %v14313_v25 }
0x19ef   :  { %v5242_v35 = vpop.f32.mrf.mxu1 }
0x19f0   :  { %12284 = vpow2.f32 %v5347_v39  ;;  %v14319_v31 = vadd.f32 %v5216_v29, %v5193_v22  ;;  %v5243_v27 = vadd.f32 %v5242_v35, %v14304_v62 }
0x19f2   :  { %v5327_v11 = vsub.f32 0.0, %v14319_v31  ;;  %v5267_v48 = vadd.f32 %v5266_v54, %v5243_v27 }
0x19f4   :  { %v5345_v53 = vmul.f32 1.442695, %v5327_v11  ;;  %v5331_v56 = vsub.f32 0.0, %v5267_v48 }
0x19f5   :  { %v5194_v18 = vpop.f32.mrf.mxu3 }
0x19f6   :  { %v12285_v2 = vpop.eup %12284  ;;  %v5353_v12 = vmul.f32 1.442695, %v5331_v56  ;;  %v5195_v40 = vadd.f32 %v5194_v18, %v14313_v25  ;;  %12286 = vpow2.f32 %v5345_v53 }
0x19f7   :  { %v5245_v33 = vpop.f32.mrf.mxu1  ;;  %v5382_v47 = vadd.f32 1.0, %v12285_v2 }
0x19f8   :  { %12288 = vpow2.f32 %v5353_v12  ;;  %v5219_v29 = vadd.f32 %v5218_v46, %v5195_v40  ;;  %v5246_v26 = vadd.f32 %v5245_v33, %v14304_v62 }
0x19f9   :  { %12290 = vrcp.f32 %v5382_v47 }
0x19fa   :  { %v5330_v20 = vsub.f32 0.0, %v5219_v29  ;;  %v14325_v28 = vadd.f32 %v5269_v1, %v5246_v26  ;;  %v5226_v1 = vpop.f32.mrf.mxu0 }
0x19fc   :  { %v5351_v54 = vmul.f32 1.442695, %v5330_v20  ;;  %v5334_v23 = vsub.f32 0.0, %v14325_v28  ;;  %v12287_v39 = vpop.eup %12286 }
0x19fd   :  { %v5197_v22 = vpop.f32.mrf.mxu3  ;;  %v5381_v2 = vadd.f32 1.0, %v12287_v39 }
0x19fe   :  { %v12289_v35 = vpop.eup %12288  ;;  %12292 = vpow2.f32 %v5351_v54  ;;  %v5359_v27 = vmul.f32 1.442695, %v5334_v23  ;;  %v5198_v11 = vadd.f32 %v5197_v22, %v14313_v25 }
0x19ff   :  { %v5385_v53 = vadd.f32 1.0, %v12289_v35  ;;  %v5247_v46 = vpop.f32.mrf.mxu1  ;;  %v12291_v33 = vpop.eup %12290 }
0x1a00   :  { %v14329_v56 = vadd.f32 %v5221_v59, %v5198_v11  ;;  %v5248_v18 = vadd.f32 %v5247_v46, %v14304_v62  ;;  %v5418_v39 = vmul.f32 %v12291_v33, %v14310_v21 }
0x1a01   :  { %12294 = vrcp.f32 %v5385_v53 }
0x1a02   :  { %12296 = vpow2.f32 %v5359_v27  ;;  %v5333_v12 = vsub.f32 0.0, %v14329_v56  ;;  %v14333_v40 = vadd.f32 %v5271_v17, %v5248_v18  ;;  %v5274_v17 = vpop.f32.mrf.mxu2 }
0x1a03   :  { %12298 = vrcp.f32 %v5381_v2 }
0x1a04   :  { %v12293_v26 = vpop.eup %12292  ;;  %v5357_v47 = vmul.f32 1.442695, %v5333_v12  ;;  %v5337_v20 = vsub.f32 0.0, %v14333_v40 }
0x1a05   :  { %v5384_v54 = vadd.f32 1.0, %v12293_v26  ;;  %v5199_v23 = vpop.f32.mrf.mxu3 }
0x1a06   :  { %12300 = vpow2.f32 %v5357_v47  ;;  %v5365_v59 = vmul.f32 1.442695, %v5337_v20  ;;  %v5200_v22 = vadd.f32 %v5199_v23, %v14313_v25  ;;  %v5228_v20 = vpop.f32.mrf.mxu0 }
0x1a07   :  { %v12295_v35 = vpop.eup %12294  ;;  %12302 = vrcp.f32 %v5384_v54  ;;  %v5250_v27 = vpop.f32.mrf.mxu1 }
0x1a08   :  { %v12297_v11 = vpop.eup %12296  ;;  %v5421_v53 = vmul.f32 %v12295_v35, %v5267_v48  ;;  %12304 = vpow2.f32 %v5365_v59  ;;  %v14338_v46 = vadd.f32 %v5223_v61, %v5200_v22  ;;  %v5251_v18 = vadd.f32 %v5250_v27, %v14304_v62 }
0x1a09   :  { %v12299_v47 = vpop.eup %12298  ;;  %v5388_v23 = vadd.f32 1.0, %v12297_v11 }
0x1a0a   :  { %v5436_v2 = vpack.c.bf16 %v5421_v53, %v5418_v39  ;;  %v5336_v12 = vsub.f32 0.0, %v14338_v46  ;;  %v14342_v26 = vadd.f32 %v5274_v17, %v5251_v18  ;;  %v5417_v61 = vmul.f32 %v12299_v47, %v14319_v31 }
0x1a0c   :  { %v12301_v34 = vpop.eup %12300  ;;  %v5363_v21 = vmul.f32 1.442695, %v5336_v12  ;;  %v5340_v33 = vsub.f32 0.0, %v14342_v26  ;;  %5626 = vmatmul.bf16.vlgmr.msrb.gmra.mxu2 %v5436_v2  ;;  %v5276_v12 = vpop.f32.mrf.mxu2 }
0x1a0d   :  { %v12303_v54 = vpop.eup %12302  ;;  %v5202_v48 = vpop.f32.mrf.mxu3  ;;  %v5387_v39 = vadd.f32 1.0, %v12301_v34 }
0x1a0e   :  { %v12305_v59 = vpop.eup %12304  ;;  %v5420_v22 = vmul.f32 %v12303_v54, %v5219_v29  ;;  %12306 = vpow2.f32 %v5363_v21  ;;  %v5203_v35 = vadd.f32 %v5202_v48, %v14313_v25  ;;  %v5371_v11 = vmul.f32 1.442695, %v5340_v33  ;;  %v5312_v34 = vpop.f32.mrf.mxu0 }
0x1a0f   :  { %12308 = vrcp.f32 %v5388_v23  ;;  %v5391_v27 = vadd.f32 1.0, %v12305_v59  ;;  %v5252_v17 = vpop.f32.mrf.mxu1 }
0x1a10   :  { %v5435_v53 = vpack.c.bf16 %v5420_v22, %v5417_v61  ;;  %v14347_v18 = vadd.f32 %v5226_v1, %v5203_v35  ;;  %v5253_v2 = vadd.f32 %v5252_v17, %v14304_v62  ;;  %v14355_v17 = vperm.slane %v14299_v50, 2 }
0x1a11   :  { %12310 = vrcp.f32 %v5391_v27 }
0x1a12   :  { %v5339_v37 = vsub.f32 0.0, %v14347_v18  ;;  %5602 = vmatmul.bf16.vlgmr.msra.gmra.mxu1 %v5435_v53  ;;  %12312 = vrcp.f32 %v5387_v39  ;;  %v5277_v31 = vadd.f32 %v5276_v12, %v5253_v2  ;;  %v10230_v53 = vld [vmem:[%s12956_s9 + $0x20c] sm:$0x1] }
0x1a13   :  { %12314 = vpow2.f32 %v5371_v11 }
0x1a14   :  { %v12307_v29 = vpop.eup %12306  ;;  %v5369_v47 = vmul.f32 1.442695, %v5339_v37  ;;  %v5343_v54 = vsub.f32 0.0, %v5277_v31 }
0x1a15   :  { %v12309_v23 = vpop.eup %12308  ;;  %v5390_v21 = vadd.f32 1.0, %v12307_v29  ;;  %v5204_v33 = vpop.f32.mrf.mxu3 }
0x1a16   :  { %v5205_v1 = vadd.f32 %v5204_v33, %v14313_v25  ;;  %v5377_v62 = vmul.f32 1.442695, %v5343_v54  ;;  %v5424_v59 = vmul.f32 %v12309_v23, %v14325_v28  ;;  %v5548_v25 = vunpack.c.l.b16 %v10230_v53 }
0x1a17   :  { %v12311_v48 = vpop.eup %12310  ;;  %12316 = vrcp.f32 %v5390_v21  ;;  %v5314_v21 = vpop.f32.mrf.mxu0 }
0x1a18   :  { %v5427_v61 = vmul.f32 %v12311_v48, %v14333_v40  ;;  %12318 = vpow2.f32 %v5369_v47  ;;  %v5229_v22 = vadd.f32 %v5228_v20, %v5205_v1  ;;  %v12313_v35 = vpop.eup %12312  ;;  %v5565_v23 = vpack.c.b16 %v5548_v25, %v5548_v25 }
0x1a19   :  { %v12315_v39 = vpop.eup %12314  ;;  %12320 = vpow2.f32 %v5377_v62  ;;  %v5423_v12 = vmul.f32 %v12313_v35, %v14329_v56 }
0x1a1a   :  { %v5342_v37 = vsub.f32 0.0, %v5229_v22  ;;  %v5439_v27 = vpack.c.bf16 %v5427_v61, %v5424_v59  ;;  %v5394_v28 = vadd.f32 1.0, %v12315_v39  ;;  %v5592_v1 = vsel %vm296_vm0, %v5565_v23, 0 }
0x1a1b   :  { %5649 = vmatpush.bf16.msrb.mxu3 %v5592_v1 }
0x1a1c   :  { %v5375_v11 = vmul.f32 1.442695, %v5342_v37  ;;  %5631 = vmatmul.bf16.gmra.mxu2 %v5439_v27 }
0x1a1d   :  { %v12317_v2 = vpop.eup %12316  ;;  %v5288_v29 = vpop.f32.mrf.mxu3 }
0x1a1e   :  { %v12319_v40 = vpop.eup %12318  ;;  %v5426_v20 = vmul.f32 %v12317_v2, %v14338_v46  ;;  %12322 = vpow2.f32 %v5375_v11  ;;  %v5289_v47 = vadd.f32 %v5288_v29, %v14355_v17 }
0x1a1f   :  { %v12321_v54 = vpop.eup %12320  ;;  %12324 = vrcp.f32 %v5394_v28  ;;  %v5393_v48 = vadd.f32 1.0, %v12319_v40  ;;  %v5317_v53 = vpop.f32.mrf.mxu0 }
0x1a20   :  { %v5313_v50 = vadd.f32 %v5312_v34, %v5289_v47  ;;  %v5438_v33 = vpack.c.bf16 %v5426_v20, %v5423_v12  ;;  %v5397_v62 = vadd.f32 1.0, %v12321_v54 }
0x1a22   :  { %v5329_v56 = vsub.f32 0.0, %v5313_v50  ;;  %5607 = vmatmul.bf16.gmra.mxu1 %v5438_v33  ;;  %12326 = vrcp.f32 %v5397_v62 }
0x1a23   :  { %12328 = vrcp.f32 %v5393_v48 }
0x1a24   :  { %v12323_v59 = vpop.eup %12322  ;;  %v5349_v61 = vmul.f32 1.442695, %v5329_v56 }
0x1a25   :  { %v5396_v46 = vadd.f32 1.0, %v12323_v59  ;;  %v5290_v35 = vpop.f32.mrf.mxu3  ;;  %v12325_v37 = vpop.eup %12324 }
0x1a26   :  { %v5291_v39 = vadd.f32 %v5290_v35, %v14355_v17  ;;  %v5430_v11 = vmul.f32 %v12325_v37, %v14342_v26 }
0x1a27   :  { %12330 = vrcp.f32 %v5396_v46  ;;  %v5319_v26 = vpop.f32.mrf.mxu0 }
0x1a28   :  { %12332 = vpow2.f32 %v5349_v61  ;;  %v5315_v34 = vadd.f32 %v5314_v21, %v5291_v39  ;;  %v12327_v27 = vpop.eup %12326 }
0x1a29   :  { %v5433_v25 = vmul.f32 %v12327_v27, %v5277_v31  ;;  %v12329_v12 = vpop.eup %12328 }
0x1a2a   :  { %v5332_v2 = vsub.f32 0.0, %v5315_v34  ;;  %v5429_v23 = vmul.f32 %v12329_v12, %v14347_v18 }
0x1a2b   :  { %v5442_v29 = vpack.c.bf16 %v5433_v25, %v5430_v11 }
0x1a2c   :  { %v5355_v28 = vmul.f32 1.442695, %v5332_v2 }
0x1a2d   :  { %v12331_v40 = vpop.eup %12330  ;;  %v5293_v20 = vpop.f32.mrf.mxu3  ;;  %5636 = vmatmul.bf16.gmra.mxu2 %v5442_v29 }
0x1a2e   :  { %v12333_v47 = vpop.eup %12332  ;;  %v5432_v54 = vmul.f32 %v12331_v40, %v5229_v22  ;;  %12334 = vpow2.f32 %v5355_v28  ;;  %v5294_v33 = vadd.f32 %v5293_v20, %v14355_v17 }
0x1a2f   :  { %v5383_v48 = vadd.f32 1.0, %v12333_v47  ;;  %v5322_v27 = vpop.f32.mrf.mxu0 }
0x1a30   :  { %v5318_v21 = vadd.f32 %v5317_v53, %v5294_v33  ;;  %v5441_v1 = vpack.c.bf16 %v5432_v54, %v5429_v23 }
0x1a31   :  { %12336 = vrcp.f32 %v5383_v48 }
0x1a32   :  { %v5335_v62 = vsub.f32 0.0, %v5318_v21  ;;  %5612 = vmatmul.bf16.gmra.mxu1 %v5441_v1 }
0x1a34   :  { %v12335_v31 = vpop.eup %12334  ;;  %v5361_v56 = vmul.f32 1.442695, %v5335_v62 }
0x1a35   :  { %v5386_v59 = vadd.f32 1.0, %v12335_v31  ;;  %v5295_v61 = vpop.f32.mrf.mxu3 }
0x1a36   :  { %v5296_v46 = vadd.f32 %v5295_v61, %v14355_v17 }
0x1a37   :  { %12338 = vrcp.f32 %v5386_v59  ;;  %v12337_v35 = vpop.eup %12336  ;;  %v5324_v48 = vpop.f32.mrf.mxu0 }
0x1a38   :  { %12340 = vpow2.f32 %v5361_v56  ;;  %v5320_v18 = vadd.f32 %v5319_v26, %v5296_v46  ;;  %v5419_v25 = vmul.f32 %v12337_v35, %v5313_v50 }
0x1a3a   :  { %v5338_v22 = vsub.f32 0.0, %v5320_v18 }
0x1a3c   :  { %v5367_v39 = vmul.f32 1.442695, %v5338_v22 }
0x1a3d   :  { %v12339_v37 = vpop.eup %12338  ;;  %v5298_v53 = vpop.f32.mrf.mxu3 }
0x1a3e   :  { %v12341_v11 = vpop.eup %12340  ;;  %v5422_v2 = vmul.f32 %v12339_v37, %v5315_v34  ;;  %12342 = vpow2.f32 %v5367_v39  ;;  %v5299_v12 = vadd.f32 %v5298_v53, %v14355_v17 }
0x1a3f   :  { %v5389_v40 = vadd.f32 1.0, %v12341_v11 }
0x1a40   :  { %v5437_v28 = vpack.c.bf16 %v5422_v2, %v5419_v25  ;;  %v5323_v29 = vadd.f32 %v5322_v27, %v5299_v12 }
0x1a41   :  { %12344 = vrcp.f32 %v5389_v40 }
0x1a42   :  { %v5341_v20 = vsub.f32 0.0, %v5323_v29  ;;  %10296 = vmatmul.msk.bf16.vlgmr.msrb.gmra.mxu3 %vm1267_vm2, %v5437_v28 }
0x1a44   :  { %v12343_v47 = vpop.eup %12342  ;;  %v5373_v23 = vmul.f32 1.442695, %v5341_v20 }
0x1a45   :  { %v5392_v54 = vadd.f32 1.0, %v12343_v47  ;;  %v5300_v33 = vpop.f32.mrf.mxu3  ;;  %v11874_v47 = vld [vmem:[%s12980_s17 + $0x3] ss:$0 sm:$0xff] }
0x1a46   :  { %v5301_v1 = vadd.f32 %v5300_v33, %v14355_v17 }
0x1a47   :  { %12346 = vrcp.f32 %v5392_v54  ;;  %v12345_v62 = vpop.eup %12344 }
0x1a48   :  { %12348 = vpow2.f32 %v5373_v23  ;;  %v5325_v50 = vadd.f32 %v5324_v48, %v5301_v1  ;;  %v5425_v59 = vmul.f32 %v12345_v62, %v5318_v21 }
0x1a4a   :  { %v5344_v34 = vsub.f32 0.0, %v5325_v50 }
0x1a4c   :  { %v5379_v26 = vmul.f32 1.442695, %v5344_v34 }
0x1a4d   :  { %v12347_v31 = vpop.eup %12346 }
0x1a4e   :  { %v12349_v56 = vpop.eup %12348  ;;  %v5428_v61 = vmul.f32 %v12347_v31, %v5320_v18  ;;  %12350 = vpow2.f32 %v5379_v26 }
0x1a4f   :  { %v5395_v22 = vadd.f32 1.0, %v12349_v56 }
0x1a50   :  { %v5440_v46 = vpack.c.bf16 %v5428_v61, %v5425_v59 }
0x1a51   :  { %12352 = vrcp.f32 %v5395_v22 }
0x1a52   :  { %10297 = vmatmul.msk.bf16.gmra.mxu3 %vm1267_vm2, %v5440_v46 }
0x1a54   :  { %v12351_v35 = vpop.eup %12350 }
0x1a55   :  { %v5398_v39 = vadd.f32 1.0, %v12351_v35 }
0x1a57   :  { %12354 = vrcp.f32 %v5398_v39  ;;  %v12353_v17 = vpop.eup %12352 }
0x1a58   :  { %v5431_v27 = vmul.f32 %v12353_v17, %v5323_v29 }
0x1a5d   :  { %v12355_v37 = vpop.eup %12354 }
0x1a5e   :  { %v5434_v53 = vmul.f32 %v12355_v37, %v5325_v50 }
0x1a60   :  { %v5443_v11 = vpack.c.bf16 %v5434_v53, %v5431_v27 }
0x1a62   :  { %10298 = vmatmul.msk.bf16.gmra.mxu3 %vm1267_vm2, %v5443_v11 }
0x1a8f   :  { %v5603_v25 = vpop.f32.mrf.mxu1  ;;  %v5627_v21 = vpop.f32.mrf.mxu2 }
0x1a90   :  { %v5604_v62 = vadd.f32 %v11874_v47, %v5603_v25 }
0x1a92   :  { %v5628_v59 = vadd.f32 %v5627_v21, %v5604_v62 }
0x1a97   :  { %v5605_v18 = vpop.f32.mrf.mxu1  ;;  %v5629_v2 = vpop.f32.mrf.mxu2 }
0x1a98   :  { %v5606_v17 = vadd.f32 %v11874_v47, %v5605_v18 }
0x1a9f   :  { %v5608_v28 = vpop.f32.mrf.mxu1  ;;  %v5632_v40 = vpop.f32.mrf.mxu2 }
0x1aa0   :  { %v5609_v23 = vadd.f32 %v11874_v47, %v5608_v28 }
0x1aa2   :  { %v5633_v33 = vadd.f32 %v5632_v40, %v5609_v23  ;;  %v5630_v23 = vadd.f32 %v5629_v2, %v5606_v17 }
0x1aa7   :  { %v5610_v54 = vpop.f32.mrf.mxu1  ;;  %v5634_v34 = vpop.f32.mrf.mxu2 }
0x1aa8   :  { %v5611_v29 = vadd.f32 %v11874_v47, %v5610_v54 }
0x1aaa   :  { %v5635_v56 = vadd.f32 %v5634_v34, %v5611_v29 }
0x1aaf   :  { %v5613_v31 = vpop.f32.mrf.mxu1 }
0x1ab0   :  { %v5614_v35 = vadd.f32 %v11874_v47, %v5613_v31  ;;  %v5637_v37 = vpop.f32.mrf.mxu2 }
0x1ab2   :  { %v5638_v40 = vadd.f32 %v5637_v37, %v5614_v35 }
0x1ab7   :  { %v5615_v25 = vpop.f32.mrf.mxu1 }
0x1ab8   :  { %v5616_v34 = vadd.f32 %v11874_v47, %v5615_v25  ;;  %v5639_v18 = vpop.f32.mrf.mxu2 }
0x1ac5   :  { %v5651_v12 = vpop.f32.mrf.mxu3 }
0x1ac6   :  { %v5652_v22 = vadd.f32 %v5651_v12, %v5628_v59 }
0x1ac8   :  { %v5666_v11 = vsub.f32 0.0, %v5652_v22 }
0x1acd   :  { %v5653_v20 = vpop.f32.mrf.mxu3 }
0x1ace   :  { %v5654_v21 = vadd.f32 %v5653_v20, %v5630_v23 }
0x1ad5   :  { %v5656_v1 = vpop.f32.mrf.mxu3 }
0x1ad6   :  { %v5657_v48 = vadd.f32 %v5656_v1, %v5633_v33  ;;  %v5672_v1 = vmul.f32 1.442695, %v5666_v11 }
0x1ad8   :  { %v5668_v50 = vsub.f32 0.0, %v5657_v48 }
0x1ada   :  { %v5676_v26 = vmul.f32 1.442695, %v5668_v50 }
0x1adc   :  { %12356 = vpow2.f32 %v5676_v26  ;;  %v5667_v26 = vsub.f32 0.0, %v5654_v21 }
0x1add   :  { %v5658_v61 = vpop.f32.mrf.mxu3 }
0x1ade   :  { %v5659_v46 = vadd.f32 %v5658_v61, %v5635_v56  ;;  %v5640_v56 = vadd.f32 %v5639_v18, %v5616_v34  ;;  %v5674_v20 = vmul.f32 1.442695, %v5667_v26 }
0x1ae0   :  { %v5669_v39 = vsub.f32 0.0, %v5659_v46 }
0x1ae2   :  { %v12357_v27 = vpop.eup %12356  ;;  %v5678_v53 = vmul.f32 1.442695, %v5669_v39 }
0x1ae3   :  { %v5686_v28 = vadd.f32 1.0, %v12357_v27 }
0x1ae4   :  { %12358 = vpow2.f32 %v5678_v53 }
0x1ae5   :  { %12360 = vrcp.f32 %v5686_v28  ;;  %v5661_v54 = vpop.f32.mrf.mxu3 }
0x1ae6   :  { %v5662_v33 = vadd.f32 %v5661_v54, %v5638_v40  ;;  %12362 = vpow2.f32 %v5672_v1 }
0x1ae8   :  { %v5670_v29 = vsub.f32 0.0, %v5662_v33 }
0x1aea   :  { %v12359_v12 = vpop.eup %12358  ;;  %v5680_v50 = vmul.f32 1.442695, %v5670_v29 }
0x1aeb   :  { %v12361_v62 = vpop.eup %12360  ;;  %v5687_v31 = vadd.f32 1.0, %v12359_v12 }
0x1aec   :  { %12364 = vpow2.f32 %v5680_v50  ;;  %v14373_v59 = vmul.f32 %v12361_v62, %v5657_v48  ;;  %v12363_v39 = vpop.eup %12362 }
0x1aed   :  { %12366 = vrcp.f32 %v5687_v31  ;;  %v5663_v2 = vpop.f32.mrf.mxu3  ;;  %v5684_v28 = vadd.f32 1.0, %v12363_v39 }
0x1aee   :  { %v5664_v61 = vadd.f32 %v5663_v2, %v5640_v56  ;;  %v5712_v35 = vsel %vm523_vm1, %v14373_v59, 0.0  ;;  %12368 = vpow2.f32 %v5674_v20 }
0x1aef   :  { %5713 = vadd.xlane.f32.xlu0 %v5712_v35 }
0x1af0   :  { %v5671_v47 = vsub.f32 0.0, %v5664_v61 }
0x1af2   :  { %v12365_v17 = vpop.eup %12364  ;;  %v5682_v37 = vmul.f32 1.442695, %v5671_v47 }
0x1af3   :  { %v12367_v27 = vpop.eup %12366  ;;  %v5688_v53 = vadd.f32 1.0, %v12365_v17 }
0x1af4   :  { %12370 = vpow2.f32 %v5682_v37  ;;  %v5699_v11 = vmul.f32 %v12367_v27, %v5659_v46  ;;  %v12369_v40 = vpop.eup %12368 }
0x1af5   :  { %12372 = vrcp.f32 %v5688_v53  ;;  %v5685_v34 = vadd.f32 1.0, %v12369_v40 }
0x1af6   :  { %v5715_v48 = vsel %vm523_vm1, %v5699_v11, 0.0  ;;  %12374 = vrcp.f32 %v5684_v28 }
0x1af7   :  { %5716 = vadd.xlane.f32.xlu2 %v5715_v48 }
0x1afa   :  { %v12371_v23 = vpop.eup %12370 }
0x1afb   :  { %v12373_v25 = vpop.eup %12372  ;;  %v5689_v54 = vadd.f32 1.0, %v12371_v23 }
0x1afc   :  { %v5700_v1 = vmul.f32 %v12373_v25, %v5662_v33  ;;  %v12375_v12 = vpop.eup %12374 }
0x1afd   :  { %12376 = vrcp.f32 %v5689_v54  ;;  %v5696_v50 = vmul.f32 %v12375_v12, %v5652_v22 }
0x1afe   :  { %v5718_v29 = vsel %vm523_vm1, %v5700_v1, 0.0  ;;  %12378 = vrcp.f32 %v5685_v34 }
0x1aff   :  { %5719 = vadd.xlane.f32.xlu1 %v5718_v29  ;;  %v5706_v26 = vsel %vm523_vm1, %v5696_v50, 0.0 }
0x1b03   :  { %v12377_v46 = vpop.eup %12376 }
0x1b04   :  { %v5701_v62 = vmul.f32 %v12377_v46, %v5664_v61  ;;  %v12379_v31 = vpop.eup %12378 }
0x1b05   :  { %v5697_v56 = vmul.f32 %v12379_v31, %v5654_v21 }
0x1b06   :  { %v5721_v18 = vsel %vm523_vm1, %v5701_v62, 0.0 }
0x1b07   :  { %5722 = vadd.xlane.f32.xlu0 %v5721_v18  ;;  %5707 = vadd.xlane.f32.xlu1 %v5706_v26  ;;  %v5709_v33 = vsel %vm523_vm1, %v5697_v56, 0.0 }
0x1b0f   :  { %5710 = vadd.xlane.f32.xlu0 %v5709_v33  ;;  %v5933_v33 = vsel %vm523_vm1, %v14173_v9, 0.0 }
0x1b62   :  { %v5714_v47 = vpop.xlane.xlu0 %5713 }
0x1b63   :  { %v5726_v40 = vmul.f32 %v5714_v47, %v13066_v15 }
0x1b65   :  { %v14406_v34 = vsub.f32 %v14373_v59, %v5726_v40 }
0x1b67   :  { %v5738_v18 = vmul.f32 %v14406_v34, %v14406_v34 }
0x1b69   :  { %v5748_v59 = vsel %vm523_vm1, %v5738_v18, 0.0 }
0x1b6a   :  { %v5717_v2 = vpop.xlane.xlu2 %5716 }
0x1b6b   :  { %v5727_v35 = vmul.f32 %v5717_v2, %v13066_v15 }
0x1b6d   :  { %v14383_v20 = vsub.f32 %v5699_v11, %v5727_v35 }
0x1b6f   :  { %v5739_v22 = vmul.f32 %v14383_v20, %v14383_v20 }
0x1b71   :  { %v5751_v61 = vsel %vm523_vm1, %v5739_v22, 0.0 }
0x1b72   :  { %5752 = vadd.xlane.f32.xlu1 %v5751_v61  ;;  %v5720_v39 = vpop.xlane.xlu1 %5719 }
0x1b73   :  { %v5728_v17 = vmul.f32 %v5720_v39, %v13066_v15 }
0x1b75   :  { %v14389_v37 = vsub.f32 %v5700_v1, %v5728_v17 }
0x1b77   :  { %v5740_v21 = vmul.f32 %v14389_v37, %v14389_v37 }
0x1b79   :  { %v5754_v27 = vsel %vm523_vm1, %v5740_v21, 0.0 }
0x1b7a   :  { %v5723_v53 = vpop.xlane.xlu0 %5722  ;;  %5755 = vadd.xlane.f32.xlu2 %v5754_v27  ;;  %v5708_v11 = vpop.xlane.xlu1 %5707 }
0x1b7b   :  { %v5729_v28 = vmul.f32 %v5723_v53, %v13066_v15  ;;  %v5724_v48 = vmul.f32 %v5708_v11, %v13066_v15 }
0x1b7d   :  { %v14397_v23 = vsub.f32 %v5701_v62, %v5729_v28  ;;  %v14399_v25 = vsub.f32 %v5696_v50, %v5724_v48 }
0x1b7f   :  { %v5741_v54 = vmul.f32 %v14397_v23, %v14397_v23  ;;  %v5736_v1 = vmul.f32 %v14399_v25, %v14399_v25 }
0x1b81   :  { %v5757_v29 = vsel %vm523_vm1, %v5741_v54, 0.0  ;;  %v5742_v12 = vsel %vm523_vm1, %v5736_v1, 0.0 }
0x1b82   :  { %5758 = vadd.xlane.f32.xlu0 %v5757_v29  ;;  %v5711_v46 = vpop.xlane.xlu0 %5710  ;;  %5743 = vadd.xlane.f32.xlu1 %v5742_v12 }
0x1b83   :  { %v5725_v62 = vmul.f32 %v5711_v46, %v13066_v15 }
0x1b85   :  { %v14411_v50 = vsub.f32 %v5697_v56, %v5725_v62 }
0x1b87   :  { %v5737_v26 = vmul.f32 %v14411_v50, %v14411_v50 }
0x1b89   :  { %v5745_v31 = vsel %vm523_vm1, %v5737_v26, 0.0 }
0x1b8a   :  { %5749 = vadd.xlane.f32.xlu0 %v5748_v59  ;;  %5746 = vadd.xlane.f32.xlu2 %v5745_v31 }
0x1b8b   :  { %5934 = vadd.xlane.f32.xlu1 %v5933_v33 }
0x1be5   :  { %v5753_v2 = vpop.xlane.xlu1 %5752 }
0x1be6   :  { %v5763_v56 = vmul.f32 %v5753_v2, %v13066_v15 }
0x1be8   :  { %v5769_v35 = vadd.f32 1e-05, %v5763_v56 }
0x1bea   :  { %12380 = vrsqrt.f32 %v5769_v35  ;;  %vm5808_vm8 = vweird.f32 %v5769_v35 }
0x1bed   :  { %v5756_v22 = vpop.xlane.xlu2 %5755 }
0x1bee   :  { %v5764_v61 = vmul.f32 %v5756_v22, %v13066_v15 }
0x1bf0   :  { %v5770_v47 = vadd.f32 1e-05, %v5764_v61  ;;  %v12381_v39 = vpop.eup %12380 }
0x1bf1   :  { %v5803_v17 = vmul.f32 %v12381_v39, %v5769_v35  ;;  %vm5809_vm3 = vweird.f32 %v12381_v39 }
0x1bf2   :  { %12382 = vrsqrt.f32 %v5770_v47  ;;  %vm5818_vm5 = vweird.f32 %v5770_v47  ;;  %vm5810_vm10 = vmor %vm5808_vm8, %vm5809_vm3 }
0x1bf3   :  { %v5804_v54 = vmul.f32 %v12381_v39, %v5803_v17 }
0x1bf5   :  { %v5759_v21 = vpop.xlane.xlu0 %5758  ;;  %v5744_v27 = vpop.xlane.xlu1 %5743  ;;  %v5805_v12 = vmul.f32 0.5, %v5804_v54 }
0x1bf6   :  { %v5765_v53 = vmul.f32 %v5759_v21, %v13066_v15  ;;  %v5760_v11 = vmul.f32 %v5744_v27, %v13066_v15 }
0x1bf7   :  { %v5806_v61 = vsub.f32 1.5, %v5805_v12 }
0x1bf8   :  { %v12383_v28 = vpop.eup %12382  ;;  %v5771_v48 = vadd.f32 1e-05, %v5765_v53  ;;  %v14425_v40 = vadd.f32 1e-05, %v5760_v11 }
0x1bf9   :  { %v5813_v1 = vmul.f32 %v12383_v28, %v5770_v47  ;;  %vm5819_vm14 = vweird.f32 %v12383_v28  ;;  %v5807_v54 = vmul.f32 %v12381_v39, %v5806_v61 }
0x1bfa   :  { %12384 = vrsqrt.f32 %v5771_v48  ;;  %vm14438_vm7 = vmor %vm5818_vm5, %vm5819_vm14  ;;  %vm5828_vm11 = vweird.f32 %v5771_v48  ;;  %vm5778_vm14 = vweird.f32 %v14425_v40 }
0x1bfb   :  { %v5814_v29 = vmul.f32 %v12383_v28, %v5813_v1  ;;  %12386 = vrsqrt.f32 %v14425_v40 }
0x1bfd   :  { %v5815_v46 = vmul.f32 0.5, %v5814_v29  ;;  %v5750_v62 = vpop.xlane.xlu0 %5749  ;;  %v5747_v18 = vpop.xlane.xlu2 %5746 }
0x1bfe   :  { %v5762_v26 = vmul.f32 %v5750_v62, %v13066_v15  ;;  %v5761_v59 = vmul.f32 %v5747_v18, %v13066_v15 }
0x1bff   :  { %v5816_v31 = vsub.f32 1.5, %v5815_v46 }
0x1c00   :  { %v12385_v33 = vpop.eup %12384  ;;  %v5768_v2 = vadd.f32 1e-05, %v5762_v26  ;;  %v14430_v56 = vadd.f32 1e-05, %v5761_v59  ;;  %v5811_v59 = vsel %vm5810_vm10, %v12381_v39, %v5807_v54 }
0x1c01   :  { %v14432_v22 = vpop.eup %12386  ;;  %v5823_v17 = vmul.f32 %v12385_v33, %v5771_v48  ;;  %v5817_v27 = vmul.f32 %v12383_v28, %v5816_v31  ;;  %vm5829_vm9 = vweird.f32 %v12385_v33  ;;  %v5835_v48 = vmul.f32 %v5811_v59, %v14383_v20 }
0x1c02   :  { %v5773_v21 = vmul.f32 %v14432_v22, %v14425_v40  ;;  %12388 = vrsqrt.f32 %v5768_v2  ;;  %vm5830_vm12 = vmor %vm5828_vm11, %vm5829_vm9  ;;  %vm5779_vm13 = vweird.f32 %v14432_v22  ;;  %vm5798_vm8 = vweird.f32 %v5768_v2 }
0x1c03   :  { %v5824_v53 = vmul.f32 %v12385_v33, %v5823_v17  ;;  %12390 = vrsqrt.f32 %v14430_v56  ;;  %v5821_v46 = vsel %vm14438_vm7, %v12383_v28, %v5817_v27  ;;  %vm14459_vm5 = vmor %vm5778_vm14, %vm5779_vm13  ;;  %vm5788_vm10 = vweird.f32 %v14430_v56 }
0x1c04   :  { %v5774_v11 = vmul.f32 %v14432_v22, %v5773_v21  ;;  %v5836_v35 = vmul.f32 %v5821_v46, %v14389_v37 }
0x1c05   :  { %v5825_v1 = vmul.f32 0.5, %v5824_v53 }
0x1c06   :  { %v5775_v12 = vmul.f32 0.5, %v5774_v11  ;;  %v14448_v11 = vld [vmem:[%s13082_s25 + $0x3] ss:$0 sm:$0xff] }
0x1c07   :  { %v5826_v62 = vsub.f32 1.5, %v5825_v1  ;;  %v5845_v37 = vmul.f32 %v14448_v11, %v5836_v35 }
0x1c08   :  { %v12389_v18 = vpop.eup %12388  ;;  %v5776_v47 = vsub.f32 1.5, %v5775_v12  ;;  %v14455_v12 = vld [vmem:[%s13088_s29 + $0x3] ss:$0 sm:$0xff] }
0x1c09   :  { %v12391_v26 = vpop.eup %12390  ;;  %v5827_v31 = vmul.f32 %v12385_v33, %v5826_v62  ;;  %v5793_v61 = vmul.f32 %v12389_v18, %v5768_v2  ;;  %vm5799_vm3 = vweird.f32 %v12389_v18  ;;  %v5844_v62 = vmul.f32 %v14448_v11, %v5835_v48  ;;  %v5935_v48 = vpop.xlane.xlu1 %5934 }
0x1c0a   :  { %v5783_v17 = vmul.f32 %v12391_v26, %v14430_v56  ;;  %v5777_v39 = vmul.f32 %v14432_v22, %v5776_v47  ;;  %vm5789_vm7 = vweird.f32 %v12391_v26  ;;  %vm5800_vm9 = vmor %vm5798_vm8, %vm5799_vm3  ;;  %v5854_v47 = vadd.f32 %v14455_v12, %v5845_v37 }
0x1c0b   :  { %v5831_v21 = vsel %vm5830_vm12, %v12385_v33, %v5827_v31  ;;  %v5794_v53 = vmul.f32 %v12389_v18, %v5793_v61  ;;  %vm5790_vm11 = vmor %vm5788_vm10, %vm5789_vm7  ;;  %v5853_v35 = vadd.f32 %v14455_v12, %v5844_v62  ;;  %v5936_v37 = vsel %vm523_vm1, %v14170_v24, 0.0 }
0x1c0c   :  { %v5837_v28 = vmul.f32 %v5831_v21, %v14397_v23  ;;  %v5784_v27 = vmul.f32 %v12391_v26, %v5783_v17  ;;  %v5781_v59 = vsel %vm14459_vm5, %v14432_v22, %v5777_v39  ;;  %v5939_v39 = vmul.f32 %v5935_v48, %v13066_v15  ;;  %v11492_v48 = vld [vmem:[%s13244_s16 + $0x70] sm:$0xff] }
0x1c0d   :  { %v5795_v54 = vmul.f32 0.5, %v5794_v53  ;;  %v5832_v53 = vmul.f32 %v5781_v59, %v14399_v25 }
0x1c0e   :  { %v5785_v1 = vmul.f32 0.5, %v5784_v27  ;;  %v5846_v29 = vmul.f32 %v14448_v11, %v5837_v28 }
0x1c0f   :  { %v5796_v23 = vsub.f32 1.5, %v5795_v54 }
0x1c10   :  { %v5786_v20 = vsub.f32 1.5, %v5785_v1  ;;  %v5855_v46 = vadd.f32 %v14455_v12, %v5846_v29  ;;  %v14489_v29 = vsub.f32 %v14173_v9, %v5939_v39 }
0x1c11   :  { %v5797_v31 = vmul.f32 %v12389_v18, %v5796_v23 }
0x1c12   :  { %v5787_v40 = vmul.f32 %v12391_v26, %v5786_v20  ;;  %5866 = vmatpush.msra.mxu0 %v5855_v46  ;;  %v5943_v33 = vmul.f32 %v14489_v29, %v14489_v29 }
0x1c13   :  { %v5801_v61 = vsel %vm5800_vm9, %v12389_v18, %v5797_v31  ;;  %v5841_v18 = vmul.f32 %v14448_v11, %v5832_v53 }
0x1c14   :  { %v5791_v17 = vsel %vm5790_vm11, %v12391_v26, %v5787_v40  ;;  %5867 = vmatpush.msra.mxu0 %v5854_v47  ;;  %v5834_v21 = vmul.f32 %v5801_v61, %v14406_v34  ;;  %v5945_v20 = vsel %vm523_vm1, %v5943_v33, 0.0 }
0x1c15   :  { %v5833_v22 = vmul.f32 %v5791_v17, %v14411_v50  ;;  %v5850_v27 = vadd.f32 %v14455_v12, %v5841_v18 }
0x1c16   :  { %5868 = vmatpush.msra.mxu0 %v5853_v35  ;;  %v5843_v2 = vmul.f32 %v14448_v11, %v5834_v21 }
0x1c17   :  { %v5842_v56 = vmul.f32 %v14448_v11, %v5833_v22 }
0x1c18   :  { %v5852_v28 = vadd.f32 %v14455_v12, %v5843_v2 }
0x1c19   :  { %v5851_v26 = vadd.f32 %v14455_v12, %v5842_v56 }
0x1c1a   :  { %5869 = vmatpush.msra.mxu0 %v5852_v28 }
0x1c1c   :  { %5870 = vmatpush.msra.mxu0 %v5851_v26 }
0x1c1e   :  { %5871 = vmatpush.msra.mxu0 %v5850_v27 }
0x1c1f   :  { %10301 = vmatmul.msk.f32.vlgmr.msra.gmra.mxu0 %vm230_vm6, %v13131_v30 }
0x1c27   :  { %10302 = vmatmul.msk.f32.gmra.mxu0 %vm230_vm6, %v13121_v57 }
0x1c9c   :  { %v5873_v25 = vpop.f32.mrf.mxu0 }
0x1c9d   :  { %v5879_v34 = vmul.f32 %v5873_v25, %v13203_v51 }
0x1c9f   :  { %v5881_v50 = vsel %vm523_vm1, %v5879_v34, 0.0 }
0x1ca0   :  { %5882 = vadd.xlane.f32.xlu0 %v5881_v50 }
0x1ca4   :  { %v5876_v54 = vpop.f32.mrf.mxu0 }
0x1ca5   :  { %v5880_v1 = vmul.f32 %v5876_v54, %v13213_v44 }
0x1ca7   :  { %v5884_v23 = vsel %vm523_vm1, %v5880_v1, 0.0 }
0x1ca8   :  { %5937 = vadd.xlane.f32.xlu0 %v5936_v37  ;;  %5885 = vadd.xlane.f32.xlu2 %v5884_v23  ;;  %v11491_v23 = vld [vmem:[%s13244_s16 + $0x68] sm:$0xff] }
0x1cb0   :  { %5946 = vadd.xlane.f32.xlu0 %v5945_v20 }
0x1d13   :  { %v5883_v46 = vpop.xlane.xlu0 %5882 }
0x1d14   :  { %v5887_v62 = vmul.f32 %v5883_v46, %v13066_v15 }
0x1d16   :  { %v5889_v59 = vsub.f32 %v5879_v34, %v5887_v62  ;;  %v11493_v34 = vld [vmem:[%s13244_s16 + $0x78] sm:$0xff] }
0x1d17   :  { %6043 = vmatpush.bf16.msrb.mxu0 %v11493_v34 }
0x1d18   :  { %v5891_v31 = vmul.f32 %v5889_v59, %v5889_v59 }
0x1d1a   :  { %v5893_v40 = vsel %vm523_vm1, %v5891_v31, 0.0 }
0x1d1b   :  { %v5938_v47 = vpop.xlane.xlu0 %5937  ;;  %5894 = vadd.xlane.f32.xlu2 %v5893_v40  ;;  %v5886_v61 = vpop.xlane.xlu2 %5885  ;;  %6044 = vmatpush.bf16.msrb.mxu0 %v11492_v48 }
0x1d1c   :  { %v5940_v17 = vmul.f32 %v5938_v47, %v13066_v15  ;;  %v5888_v35 = vmul.f32 %v5886_v61, %v13066_v15 }
0x1d1e   :  { %v14502_v21 = vsub.f32 %v14170_v24, %v5940_v17  ;;  %v5890_v53 = vsub.f32 %v5880_v1, %v5888_v35 }
0x1d1f   :  { %6045 = vmatpush.bf16.msrb.mxu0 %v11491_v23  ;;  %v11490_v23 = vld [vmem:[%s13244_s16 + $0x60] sm:$0xff] }
0x1d20   :  { %v5944_v22 = vmul.f32 %v14502_v21, %v14502_v21  ;;  %v5892_v2 = vmul.f32 %v5890_v53, %v5890_v53 }
0x1d22   :  { %v5948_v56 = vsel %vm523_vm1, %v5944_v22, 0.0  ;;  %v5896_v28 = vsel %vm523_vm1, %v5892_v2, 0.0 }
0x1d23   :  { %5949 = vadd.xlane.f32.xlu2 %v5948_v56  ;;  %5897 = vadd.xlane.f32.xlu1 %v5896_v28  ;;  %v5947_v34 = vpop.xlane.xlu0 %5946 }
0x1d24   :  { %6046 = vmatpush.bf16.msrb.mxu0 %v11490_v23  ;;  %v10606_v23 = vld [vmem:[%s12795_s4 + $0x750] sm:$0xf] }
0x1d8e   :  { %v5895_v18 = vpop.xlane.xlu2 %5894 }
0x1d8f   :  { %v5899_v26 = vmul.f32 %v5895_v18, %v13066_v15 }
0x1d91   :  { %v5901_v27 = vadd.f32 1e-05, %v5899_v26 }
0x1d93   :  { %12392 = vrsqrt.f32 %v5901_v27  ;;  %vm5909_vm13 = vweird.f32 %v5901_v27 }
0x1d96   :  { %v5898_v25 = vpop.xlane.xlu1 %5897 }
0x1d97   :  { %v5900_v50 = vmul.f32 %v5898_v25, %v13066_v15 }
0x1d99   :  { %v12393_v39 = vpop.eup %12392  ;;  %v5902_v54 = vadd.f32 1e-05, %v5900_v50  ;;  %v5950_v50 = vpop.xlane.xlu2 %5949 }
0x1d9a   :  { %v5904_v1 = vmul.f32 %v12393_v39, %v5901_v27  ;;  %vm5910_vm12 = vweird.f32 %v12393_v39  ;;  %v5952_v48 = vmul.f32 %v5950_v50, %v13066_v15 }
0x1d9b   :  { %12394 = vrsqrt.f32 %v5902_v54  ;;  %vm5911_vm14 = vmor %vm5909_vm13, %vm5910_vm12  ;;  %vm5919_vm5 = vweird.f32 %v5902_v54 }
0x1d9c   :  { %v5905_v37 = vmul.f32 %v12393_v39, %v5904_v1 }
0x1d9e   :  { %v5906_v33 = vmul.f32 0.5, %v5905_v37 }
0x1da0   :  { %v5907_v20 = vsub.f32 1.5, %v5906_v33 }
0x1da1   :  { %v12395_v46 = vpop.eup %12394 }
0x1da2   :  { %v5908_v62 = vmul.f32 %v12393_v39, %v5907_v20  ;;  %v5914_v31 = vmul.f32 %v12395_v46, %v5902_v54  ;;  %vm5920_vm3 = vweird.f32 %v12395_v46 }
0x1da3   :  { %vm5921_vm7 = vmor %vm5919_vm5, %vm5920_vm3 }
0x1da4   :  { %v5915_v40 = vmul.f32 %v12395_v46, %v5914_v31  ;;  %v5912_v47 = vsel %vm5911_vm14, %v12393_v39, %v5908_v62 }
0x1da5   :  { %v5923_v35 = vmul.f32 %v5912_v47, %v5889_v59  ;;  %v5951_v59 = vmul.f32 %v5947_v34, %v13066_v15 }
0x1da6   :  { %v5916_v61 = vmul.f32 0.5, %v5915_v40 }
0x1da7   :  { %v5925_v28 = vmul.f32 %v14448_v11, %v5923_v35  ;;  %v5953_v39 = vadd.f32 1e-05, %v5951_v59  ;;  %v11877_v35 = vld [vmem:[%s13210_s6 + $0x3] ss:$0 sm:$0xff] }
0x1da8   :  { %v5917_v17 = vsub.f32 1.5, %v5916_v61 }
0x1da9   :  { %v5927_v26 = vadd.f32 %v14455_v12, %v5925_v28  ;;  %12396 = vrsqrt.f32 %v5953_v39  ;;  %vm5961_vm10 = vweird.f32 %v5953_v39 }
0x1daa   :  { %v5918_v22 = vmul.f32 %v12395_v46, %v5917_v17 }
0x1dac   :  { %v5922_v2 = vsel %vm5921_vm7, %v12395_v46, %v5918_v22 }
0x1dad   :  { %v5924_v56 = vmul.f32 %v5922_v2, %v5890_v53  ;;  %v5954_v53 = vadd.f32 1e-05, %v5952_v48 }
0x1daf   :  { %v5926_v18 = vmul.f32 %v14448_v11, %v5924_v56  ;;  %12398 = vrsqrt.f32 %v5954_v53  ;;  %v12397_v54 = vpop.eup %12396  ;;  %vm5971_vm12 = vweird.f32 %v5954_v53 }
0x1db0   :  { %v5956_v1 = vmul.f32 %v12397_v54, %v5953_v39  ;;  %vm5962_vm8 = vweird.f32 %v12397_v54  ;;  %v11496_v39 = vld [vmem:[%s13274_s26 + $0x70] sm:$0xff] }
0x1db1   :  { %v5928_v27 = vadd.f32 %v14455_v12, %v5926_v18  ;;  %vm5963_vm11 = vmor %vm5961_vm10, %vm5962_vm8  ;;  %v11878_v18 = vld [vmem:[%s13228_s11 + $0x3] ss:$0 sm:$0xff] }
0x1db2   :  { %v5957_v12 = vmul.f32 %v12397_v54, %v5956_v1  ;;  %v11544_v1 = vld [vmem:[%s12795_s4 + $0x770] sm:$0xf0] }
0x1db3   :  { %v11820_v25 = vpack.i.bf16 %v5928_v27, %v5927_v26 }
0x1db4   :  { %v5958_v20 = vmul.f32 0.5, %v5957_v12  ;;  %v11541_v12 = vld [vmem:[%s12795_s4 + $0x758] sm:$0xf0] }
0x1db5   :  { %11821 = vrot.lane.b32.xlu1 %v11820_v25, %s12616_s5  ;;  %v12399_v11 = vpop.eup %12398 }
0x1db6   :  { %v5966_v37 = vmul.f32 %v12399_v11, %v5954_v53  ;;  %v5959_v62 = vsub.f32 1.5, %v5958_v20  ;;  %vm5972_vm9 = vweird.f32 %v12399_v11  ;;  %v11495_v53 = vld [vmem:[%s13274_s26 + $0x68] sm:$0xff]  ;;  %v10594_v20 = vld [vmem:[%s12795_s4 + $0x738] sm:$0xf] }
0x1db7   :  { %vm5973_vm13 = vmor %vm5971_vm12, %vm5972_vm9 }
0x1db8   :  { %v5967_v33 = vmul.f32 %v12399_v11, %v5966_v37  ;;  %v5960_v40 = vmul.f32 %v12397_v54, %v5959_v62 }
0x1dba   :  { %v5968_v46 = vmul.f32 0.5, %v5967_v33  ;;  %v5964_v61 = vsel %vm5963_vm11, %v12397_v54, %v5960_v40  ;;  %v11494_v54 = vld [vmem:[%s13274_s26 + $0x60] sm:$0xff]  ;;  %v10607_v33 = vor.u32 %v11541_v12, %v10606_v23 }
0x1dbb   :  { %v5975_v22 = vmul.f32 %v5964_v61, %v14489_v29  ;;  %v10582_v40 = vld [vmem:[%s12795_s4 + $0x720] sm:$0xf] }
0x1dbc   :  { %v5969_v31 = vsub.f32 1.5, %v5968_v46  ;;  %v11538_v46 = vld [vmem:[%s12795_s4 + $0x740] sm:$0xf0] }
0x1dbd   :  { %v5980_v56 = vmul.f32 %v11877_v35, %v5975_v22  ;;  %v10595_v62 = vor.u32 %v11538_v46, %v10594_v20  ;;  %v10570_v22 = vld [vmem:[%s12795_s4 + $0x708] sm:$0xf] }
0x1dbe   :  { %v5970_v47 = vmul.f32 %v12399_v11, %v5969_v31  ;;  %v11879_v31 = vld [vmem:[%s13251_s21 + $0x3] ss:$0 sm:$0xff] }
0x1dbf   :  { %v5985_v27 = vadd.f32 %v11878_v18, %v5980_v56 }
0x1dc0   :  { %v5974_v17 = vsel %vm5973_vm13, %v12399_v11, %v5970_v47  ;;  %v10618_v11 = vld [vmem:[%s12795_s4 + $0x768] sm:$0xf]  ;;  %v11535_v47 = vld [vmem:[%s12795_s4 + $0x728] sm:$0xf0] }
0x1dc1   :  { %v5976_v2 = vmul.f32 %v5974_v17, %v14502_v21  ;;  %v11497_v21 = vld [vmem:[%s13274_s26 + $0x78] sm:$0xff]  ;;  %v10619_v37 = vor.u32 %v11544_v1, %v10618_v11  ;;  %v10583_v61 = vor.u32 %v11535_v47, %v10582_v40  ;;  %v10626_v40 = vld [vmem:[%s12795_s4 + $0x770] sm:$0xf] }
0x1dc2   :  { %6111 = vmatpush.bf16.msrb.mxu1 %v11497_v21  ;;  %v10534_v21 = vld [vmem:[%s12795_s4 + $0x6c0] sm:$0xf]  ;;  %v11545_v47 = vld [vmem:[%s12795_s4 + $0x778] sm:$0xf0] }
0x1dc3   :  { %v5981_v28 = vmul.f32 %v11877_v35, %v5976_v2  ;;  %v11532_v2 = vld [vmem:[%s12795_s4 + $0x710] sm:$0xf0] }
0x1dc5   :  { %v5986_v25 = vadd.f32 %v11878_v18, %v5981_v28  ;;  %v10571_v28 = vor.u32 %v11532_v2, %v10570_v22  ;;  %v10558_v18 = vld [vmem:[%s12795_s4 + $0x6f0] sm:$0xf]  ;;  %v11542_v22 = vld [vmem:[%s12795_s4 + $0x760] sm:$0xf0] }
0x1dc6   :  { %6112 = vmatpush.bf16.msrb.mxu1 %v11496_v39  ;;  %v11523_v39 = vld [vmem:[%s12795_s4 + $0x6c8] sm:$0xf0] }
0x1dc7   :  { %v10535_v11 = vor.u32 %v11523_v39, %v10534_v21  ;;  %v10554_v21 = vld [vmem:[%s12795_s4 + $0x6e0] sm:$0xf]  ;;  %v11527_v39 = vld [vmem:[%s12795_s4 + $0x6e8] sm:$0xf0] }
0x1dca   :  { %6113 = vmatpush.bf16.msrb.mxu1 %v11495_v53 }
0x1dce   :  { %6114 = vmatpush.bf16.msrb.mxu1 %v11494_v54 }
0x1dd2   :  { %6644 = vmatpush.bf16.msra.mxu1 %v10619_v37 }
0x1dd6   :  { %6645 = vmatpush.bf16.msra.mxu1 %v10607_v33 }
0x1dda   :  { %6646 = vmatpush.bf16.msra.mxu1 %v10595_v62 }
0x1dde   :  { %6647 = vmatpush.bf16.msra.mxu1 %v10583_v61  ;;  %v10627_v61 = vor.u32 %v11545_v47, %v10626_v40 }
0x1de2   :  { %6648 = vmatpush.bf16.msra.mxu1 %v10571_v28  ;;  %v11539_v28 = vld [vmem:[%s12795_s4 + $0x748] sm:$0xf0] }
0x1e27   :  { %v11822_v26 = vpop.permute.xlu1 %11821 }
0x1e28   :  { %v11824_v34 = vunpack.i.h.bf16 %v11822_v26  ;;  %v11823_v50 = vunpack.i.l.bf16 %v11822_v26  ;;  %v11529_v26 = vld [vmem:[%s12795_s4 + $0x6f8] sm:$0xf0] }
0x1e2a   :  { %v5996_v59 = vsel %vm523_vm1, %v5986_v25, %v11824_v34  ;;  %v5995_v29 = vsel %vm523_vm1, %v5985_v27, %v11823_v50  ;;  %v10559_v25 = vor.u32 %v11529_v26, %v10558_v18  ;;  %v10546_v34 = vld [vmem:[%s12795_s4 + $0x6d8] sm:$0xf]  ;;  %v11526_v50 = vld [vmem:[%s12795_s4 + $0x6e0] sm:$0xf0]  ;;  %v10590_v18 = vld [vmem:[%s12795_s4 + $0x728] sm:$0xf] }
0x1e2b   :  { %v5997_v48 = vpack.c.bf16 %v5996_v59, %v5995_v29  ;;  %v11536_v26 = vld [vmem:[%s12795_s4 + $0x730] sm:$0xf0] }
0x1e2c   :  { %6649 = vmatpush.bf16.msra.mxu1 %v10559_v25  ;;  %v10578_v25 = vld [vmem:[%s12795_s4 + $0x710] sm:$0xf] }
0x1e2d   :  { %10330 = vmatmul.msk.bf16.vlgmr.msrb.gmra.mxu0 %vm504_vm15, %v5997_v48  ;;  %v10547_v48 = vor.u32 %v11526_v50, %v10546_v34  ;;  %v11533_v34 = vld [vmem:[%s12795_s4 + $0x718] sm:$0xf0] }
0x1e2e   :  { %v10579_v50 = vor.u32 %v11533_v34, %v10578_v25 }
0x1e30   :  { %6650 = vmatpush.bf16.msra.mxu1 %v10547_v48 }
0x1e34   :  { %6651 = vmatpush.bf16.msra.mxu1 %v10535_v11  ;;  %v11524_v11 = vld [vmem:[%s12795_s4 + $0x6d0] sm:$0xf0] }
0x1eaa   :  { %v6048_v17 = vpop.f32.mrf.mxu0 }
0x1eab   :  { %v6049_v35 = vadd.f32 %v11879_v31, %v6048_v17  ;;  %v10614_v17 = vld [vmem:[%s12795_s4 + $0x758] sm:$0xf] }
0x1eac   :  { %v10615_v2 = vor.u32 %v11542_v22, %v10614_v17 }
0x1ead   :  { %v6053_v56 = vsub.f32 0.0, %v6049_v35 }
0x1eaf   :  { %v6055_v27 = vmul.f32 1.442695, %v6053_v56  ;;  %v10602_v56 = vld [vmem:[%s12795_s4 + $0x740] sm:$0xf] }
0x1eb1   :  { %12400 = vpow2.f32 %v6055_v27  ;;  %v10591_v27 = vor.u32 %v11536_v26, %v10590_v18 }
0x1eb2   :  { %v6050_v59 = vpop.f32.mrf.mxu0 }
0x1eb3   :  { %v6051_v29 = vadd.f32 %v11879_v31, %v6050_v59  ;;  %v10566_v59 = vld [vmem:[%s12795_s4 + $0x6f8] sm:$0xf] }
0x1eb5   :  { %v6054_v53 = vsub.f32 0.0, %v6051_v29 }
0x1eb7   :  { %v6057_v54 = vmul.f32 1.442695, %v6054_v53  ;;  %v12401_v1 = vpop.eup %12400  ;;  %v10555_v53 = vor.u32 %v11527_v39, %v10554_v21 }
0x1eb8   :  { %v6059_v37 = vadd.f32 1.0, %v12401_v1 }
0x1eb9   :  { %12402 = vpow2.f32 %v6057_v54  ;;  %v10542_v54 = vld [vmem:[%s12795_s4 + $0x6c8] sm:$0xf] }
0x1eba   :  { %12404 = vrcp.f32 %v6059_v37  ;;  %v10543_v1 = vor.u32 %v11524_v11, %v10542_v54  ;;  %v11880_v37 = vld [vmem:[%s13296_s2 + $0x3] ss:$0 sm:$0xff] }
0x1ebf   :  { %v12403_v23 = vpop.eup %12402 }
0x1ec0   :  { %v6060_v12 = vadd.f32 1.0, %v12403_v23  ;;  %v12405_v33 = vpop.eup %12404 }
0x1ec1   :  { %v6063_v46 = vmul.f32 %v12405_v33, %v6049_v35  ;;  %v10603_v35 = vor.u32 %v11539_v28, %v10602_v56 }
0x1ec2   :  { %12406 = vrcp.f32 %v6060_v12 }
0x1ec8   :  { %v12407_v20 = vpop.eup %12406 }
0x1ec9   :  { %v6064_v62 = vmul.f32 %v12407_v20, %v6051_v29  ;;  %v11530_v29 = vld [vmem:[%s12795_s4 + $0x700] sm:$0xf0] }
0x1eca   :  { %v10567_v48 = vor.u32 %v11530_v29, %v10566_v59 }
0x1ecb   :  { %v6065_v31 = vpack.c.bf16 %v6064_v62, %v6063_v46 }
0x1ecd   :  { %10356 = vmatmul.msk.bf16.vlgmr.msrb.gmra.mxu1 %vm504_vm15, %v6065_v31 }
0x1ece   :  { %6740 = vmatpush.bf16.msrb.mxu1 %v10627_v61 }
0x1ed2   :  { %6741 = vmatpush.bf16.msrb.mxu1 %v10615_v2 }
0x1ed6   :  { %6742 = vmatpush.bf16.msrb.mxu1 %v10603_v35 }
0x1eda   :  { %6743 = vmatpush.bf16.msrb.mxu1 %v10591_v27 }
0x1edd   :  { %6652 = vmatmul.bf16.vlgmr.msra.gmra.mxu1 %v12836_v16 }
0x1ede   :  { %6744 = vmatpush.bf16.msrb.mxu1 %v10579_v50 }
0x1ee2   :  { %6745 = vmatpush.bf16.msrb.mxu1 %v10567_v48 }
0x1ee6   :  { %6746 = vmatpush.bf16.msrb.mxu1 %v10555_v53 }
0x1eea   :  { %6747 = vmatpush.bf16.msrb.mxu1 %v10543_v1 }
0x1eed   :  { %6657 = vmatmul.bf16.gmra.mxu1 %v12884_v43 }
0x1efd   :  { %6662 = vmatmul.bf16.gmra.mxu1 %v12905_v19 }
0x1f0d   :  { %6748 = vmatmul.bf16.vlgmr.msrb.gmra.mxu1 %v12836_v16 }
0x1f1d   :  { %6753 = vmatmul.bf16.gmra.mxu1 %v12884_v43 }
0x1f2d   :  { %6758 = vmatmul.bf16.gmra.mxu1 %v12905_v19 }
0x1f4a   :  { %v6116_v23 = vpop.f32.mrf.mxu1 }
0x1f4b   :  { %v6117_v12 = vadd.f32 %v11880_v37, %v6116_v23 }
0x1f4d   :  { %v6125_v33 = vsel %vm523_vm1, %v6117_v12, 0.0 }
0x1f4e   :  { %6126 = vadd.xlane.f32.xlu2 %v6125_v33  ;;  %v11881_v33 = vld [vmem:[%s13330_s10 + $0x3] ss:$0 sm:$0xff] }
0x1f52   :  { %v6118_v20 = vpop.f32.mrf.mxu1 }
0x1f53   :  { %v6119_v46 = vadd.f32 %v11880_v37, %v6118_v20 }
0x1f55   :  { %v6128_v62 = vsel %vm523_vm1, %v6119_v46, 0.0 }
0x1f56   :  { %6129 = vadd.xlane.f32.xlu0 %v6128_v62 }
0x1fc1   :  { %v6127_v31 = vpop.xlane.xlu2 %6126 }
0x1fc2   :  { %v6131_v40 = vmul.f32 %v6127_v31, %v13066_v15  ;;  %v11882_v31 = vld [vmem:[%s13335_s18 + $0x3] ss:$0 sm:$0xff] }
0x1fc4   :  { %v6133_v47 = vsub.f32 %v6117_v12, %v6131_v40 }
0x1fc6   :  { %v6135_v61 = vmul.f32 %v6133_v47, %v6133_v47 }
0x1fc8   :  { %v6137_v17 = vsel %vm523_vm1, %v6135_v61, 0.0 }
0x1fc9   :  { %v6130_v22 = vpop.xlane.xlu0 %6129  ;;  %6138 = vadd.xlane.f32.xlu2 %v6137_v17 }
0x1fca   :  { %v6132_v2 = vmul.f32 %v6130_v22, %v13066_v15 }
0x1fcc   :  { %v6134_v56 = vsub.f32 %v6119_v46, %v6132_v2 }
0x1fce   :  { %v6136_v28 = vmul.f32 %v6134_v56, %v6134_v56 }
0x1fd0   :  { %v6140_v35 = vsel %vm523_vm1, %v6136_v28, 0.0  ;;  %v11543_v28 = vld [vmem:[%s12795_s4 + $0x76c] sm:$0xf] }
0x1fd1   :  { %6141 = vadd.xlane.f32.xlu0 %v6140_v35  ;;  %v10620_v35 = vld [vmem:[%s12795_s4 + $0x774] sm:$0xf0] }
0x203c   :  { %v6139_v18 = vpop.xlane.xlu2 %6138 }
0x203d   :  { %v6143_v26 = vmul.f32 %v6139_v18, %v13066_v15 }
0x203f   :  { %v6145_v27 = vadd.f32 1e-05, %v6143_v26  ;;  %v11540_v26 = vld [vmem:[%s12795_s4 + $0x754] sm:$0xf] }
0x2041   :  { %12408 = vrsqrt.f32 %v6145_v27  ;;  %vm6153_vm3 = vweird.f32 %v6145_v27 }
0x2044   :  { %v6142_v25 = vpop.xlane.xlu0 %6141 }
0x2045   :  { %v6144_v34 = vmul.f32 %v6142_v25, %v13066_v15 }
0x2047   :  { %v12409_v50 = vpop.eup %12408  ;;  %v6146_v59 = vadd.f32 1e-05, %v6144_v34  ;;  %v11537_v34 = vld [vmem:[%s12795_s4 + $0x73c] sm:$0xf] }
0x2048   :  { %v6148_v29 = vmul.f32 %v12409_v50, %v6145_v27  ;;  %vm6154_vm14 = vweird.f32 %v12409_v50  ;;  %v10608_v27 = vld [vmem:[%s12795_s4 + $0x75c] sm:$0xf0] }
0x2049   :  { %12410 = vrsqrt.f32 %v6146_v59  ;;  %vm6155_vm5 = vmor %vm6153_vm3, %vm6154_vm14  ;;  %vm6163_vm8 = vweird.f32 %v6146_v59  ;;  %v10611_v25 = vor.u32 %v11540_v26, %v10608_v27  ;;  %v10500_v26 = vld [vmem:[%s12795_s4 + $0x684] sm:$0xf0] }
0x204a   :  { %v6149_v48 = vmul.f32 %v12409_v50, %v6148_v29  ;;  %v11534_v29 = vld [vmem:[%s12795_s4 + $0x724] sm:$0xf] }
0x204c   :  { %v6150_v21 = vmul.f32 0.5, %v6149_v48  ;;  %v10584_v48 = vld [vmem:[%s12795_s4 + $0x72c] sm:$0xf0] }
0x204e   :  { %v6151_v39 = vsub.f32 1.5, %v6150_v21  ;;  %v10572_v21 = vld [vmem:[%s12795_s4 + $0x714] sm:$0xf0] }
0x204f   :  { %v12411_v53 = vpop.eup %12410 }
0x2050   :  { %v6152_v54 = vmul.f32 %v12409_v50, %v6151_v39  ;;  %v6158_v11 = vmul.f32 %v12411_v53, %v6146_v59  ;;  %vm6164_vm7 = vweird.f32 %v12411_v53 }
0x2051   :  { %vm6165_vm9 = vmor %vm6163_vm8, %vm6164_vm7 }
0x2052   :  { %v6159_v1 = vmul.f32 %v12411_v53, %v6158_v11  ;;  %v6156_v37 = vsel %vm6155_vm5, %v12409_v50, %v6152_v54  ;;  %v10596_v50 = vld [vmem:[%s12795_s4 + $0x744] sm:$0xf0]  ;;  %v10560_v54 = vld [vmem:[%s12795_s4 + $0x6fc] sm:$0xf0]  ;;  %v11525_v11 = vld [vmem:[%s12795_s4 + $0x6dc] sm:$0xf] }
0x2053   :  { %v6167_v20 = vmul.f32 %v6156_v37, %v6133_v47  ;;  %v10599_v59 = vor.u32 %v11537_v34, %v10596_v50  ;;  %v11522_v37 = vld [vmem:[%s12795_s4 + $0x6c4] sm:$0xf]  ;;  %v10486_v34 = vld [vmem:[%s12795_s4 + $0x660] sm:$0xf]  ;;  %v11511_v50 = vld [vmem:[%s12795_s4 + $0x668] sm:$0xf0] }
0x2054   :  { %v6160_v23 = vmul.f32 0.5, %v6159_v1 }
0x2055   :  { %v6172_v40 = vmul.f32 %v11881_v33, %v6167_v20 }
0x2056   :  { %v6161_v12 = vsub.f32 1.5, %v6160_v23  ;;  %v10536_v23 = vld [vmem:[%s12795_s4 + $0x6cc] sm:$0xf0] }
0x2057   :  { %v6177_v22 = vadd.f32 %v11882_v31, %v6172_v40 }
0x2058   :  { %v6162_v46 = vmul.f32 %v12411_v53, %v6161_v12  ;;  %v10539_v12 = vor.u32 %v11522_v37, %v10536_v23  ;;  %v10464_v23 = vld [vmem:[%s12795_s4 + $0x63c] sm:$0xf0] }
0x2059   :  { %v14589_v47 = vadd.f32 %v6177_v22, %v14173_v9 }
0x205a   :  { %v6166_v62 = vsel %vm6165_vm9, %v12411_v53, %v6162_v46  ;;  %v11528_v53 = vld [vmem:[%s12795_s4 + $0x6f4] sm:$0xf]  ;;  %v10524_v46 = vld [vmem:[%s12795_s4 + $0x6b4] sm:$0xf0] }
0x205b   :  { %v6168_v61 = vmul.f32 %v6166_v62, %v6134_v56  ;;  %v10623_v56 = vor.u32 %v11543_v28, %v10620_v35  ;;  %v10510_v62 = vld [vmem:[%s12795_s4 + $0x690] sm:$0xf]  ;;  %v10498_v28 = vld [vmem:[%s12795_s4 + $0x678] sm:$0xf]  ;;  %v11514_v35 = vld [vmem:[%s12795_s4 + $0x680] sm:$0xf0] }
0x205c   :  { %v10499_v27 = vor.u32 %v11514_v35, %v10498_v28  ;;  %v11515_v28 = vld [vmem:[%s12795_s4 + $0x688] sm:$0xf0] }
0x205d   :  { %v6173_v17 = vmul.f32 %v11881_v33, %v6168_v61  ;;  %v11519_v33 = vld [vmem:[%s12795_s4 + $0x6ac] sm:$0xf]  ;;  %v11516_v61 = vld [vmem:[%s12795_s4 + $0x694] sm:$0xf] }
0x205e   :  { %v10527_v40 = vor.u32 %v11519_v33, %v10524_v46  ;;  %v10530_v46 = vld [vmem:[%s12795_s4 + $0x6b0] sm:$0xf] }
0x205f   :  { %v6178_v2 = vadd.f32 %v11882_v31, %v6173_v17  ;;  %v11517_v31 = vld [vmem:[%s12795_s4 + $0x698] sm:$0xf0]  ;;  %v10512_v17 = vld [vmem:[%s12795_s4 + $0x69c] sm:$0xf0] }
0x2060   :  { %v10511_v22 = vor.u32 %v11517_v31, %v10510_v62  ;;  %v11521_v62 = vld [vmem:[%s12795_s4 + $0x6b8] sm:$0xf0] }
0x2061   :  { %v14586_v18 = vadd.f32 %v6178_v2, %v14170_v24  ;;  %v10515_v2 = vor.u32 %v11516_v61, %v10512_v17  ;;  %v10531_v31 = vor.u32 %v11521_v62, %v10530_v46  ;;  %v11518_v61 = vld [vmem:[%s12795_s4 + $0x6a0] sm:$0xf0] }
0x2063   :  { %6195 = vmatpush.msra.mxu2 %v14586_v18  ;;  %6230 = vmatpush.msra.mxu3 %v14586_v18 }
0x2065   :  { %6196 = vmatpush.msra.mxu2 %v14589_v47  ;;  %6231 = vmatpush.msra.mxu3 %v14589_v47 }
0x2066   :  { %10359 = vmatmul.msk.f32.vlgmr.msra.gmra.mxu2 %vm337_vm4, %v12697_v38  ;;  %10365 = vmatmul.msk.f32.vlgmr.msra.gmra.mxu3 %vm337_vm4, %v12692_v36  ;;  %v10587_v36 = vor.u32 %v11534_v29, %v10584_v48  ;;  %v11531_v38 = vld [vmem:[%s12795_s4 + $0x70c] sm:$0xf]  ;;  %v10488_v29 = vld [vmem:[%s12795_s4 + $0x66c] sm:$0xf0]  ;;  %v10487_v48 = vor.u32 %v11511_v50, %v10486_v34  ;;  %v11512_v34 = vld [vmem:[%s12795_s4 + $0x670] sm:$0xf0] }
0x2067   :  { %6692 = vmatpush.bf16.msrb.mxu3 %v10623_v56  ;;  %v10575_v39 = vor.u32 %v11531_v38, %v10572_v21  ;;  %6668 = vmatpush.bf16.msrb.mxu2 %v10527_v40  ;;  %v11513_v56 = vld [vmem:[%s12795_s4 + $0x67c] sm:$0xf]  ;;  %v10474_v38 = vld [vmem:[%s12795_s4 + $0x648] sm:$0xf]  ;;  %v11508_v21 = vld [vmem:[%s12795_s4 + $0x650] sm:$0xf0] }
0x2068   :  { %v10518_v40 = vld [vmem:[%s12795_s4 + $0x698] sm:$0xf] }
0x2069   :  { %v10519_v17 = vor.u32 %v11518_v61, %v10518_v40  ;;  %v11553_v61 = vld [vmem:[%s12956_s9 + $0x248] sm:$0xff] }
0x206b   :  { %6693 = vmatpush.bf16.msrb.mxu3 %v10611_v25  ;;  %6669 = vmatpush.bf16.msrb.mxu2 %v10515_v2  ;;  %v10503_v25 = vor.u32 %v11513_v56, %v10500_v26  ;;  %v10506_v2 = vld [vmem:[%s12795_s4 + $0x680] sm:$0xf] }
0x206c   :  { %v10507_v35 = vor.u32 %v11515_v28, %v10506_v2  ;;  %v11560_v2 = vld [vmem:[%s12956_s9 + $0x280] sm:$0xff]  ;;  %v11550_v28 = vld [vmem:[%s12956_s9 + $0x230] sm:$0xff] }
0x206e   :  { %10360 = vmatmul.msk.f32.gmra.mxu2 %vm337_vm4, %v12718_v42  ;;  %10366 = vmatmul.msk.f32.gmra.mxu3 %vm337_vm4, %v12715_v41  ;;  %v10563_v42 = vor.u32 %v11528_v53, %v10560_v54  ;;  %v10548_v41 = vld [vmem:[%s12795_s4 + $0x6e4] sm:$0xf0]  ;;  %v11507_v53 = vld [vmem:[%s12795_s4 + $0x64c] sm:$0xf]  ;;  %v10476_v54 = vld [vmem:[%s12795_s4 + $0x654] sm:$0xf0] }
0x206f   :  { %6694 = vmatpush.bf16.msrb.mxu3 %v10599_v59  ;;  %v10551_v1 = vor.u32 %v11525_v11, %v10548_v41  ;;  %v11510_v59 = vld [vmem:[%s12795_s4 + $0x664] sm:$0xf]  ;;  %6670 = vmatpush.bf16.msrb.mxu2 %v10503_v25  ;;  %v10462_v11 = vld [vmem:[%s12795_s4 + $0x630] sm:$0xf]  ;;  %v11505_v41 = vld [vmem:[%s12795_s4 + $0x638] sm:$0xf0] }
0x2070   :  { %v10463_v37 = vor.u32 %v11505_v41, %v10462_v11  ;;  %v10494_v25 = vld [vmem:[%s12795_s4 + $0x668] sm:$0xf]  ;;  %v11506_v11 = vld [vmem:[%s12795_s4 + $0x640] sm:$0xf0] }
0x2073   :  { %6695 = vmatpush.bf16.msrb.mxu3 %v10587_v36  ;;  %v10491_v36 = vor.u32 %v11510_v59, %v10488_v29  ;;  %v10495_v29 = vor.u32 %v11512_v34, %v10494_v25  ;;  %v11548_v25 = vld [vmem:[%s12956_s9 + $0x220] sm:$0xff]  ;;  %v14716_v34 = vld [vmem:[%s12966_s13 + $0xc] sm:$0x7]  ;;  %s12641_s13 = smov 30  }
0x2075   :  { %6671 = vmatpush.bf16.msrb.mxu2 %v10491_v36 }
0x2076   :  { %10361 = vmatmul.msk.f32.gmra.mxu2 %vm337_vm4, %v12740_v55  ;;  %10367 = vmatmul.msk.f32.gmra.mxu3 %vm337_vm4, %v12735_v52 }
0x2077   :  { %6696 = vmatpush.bf16.msrb.mxu3 %v10575_v39  ;;  %v10475_v39 = vor.u32 %v11508_v21, %v10474_v38 }
0x207b   :  { %6697 = vmatpush.bf16.msrb.mxu3 %v10563_v42  ;;  %v10479_v42 = vor.u32 %v11507_v53, %v10476_v54  ;;  %v11509_v53 = vld [vmem:[%s12795_s4 + $0x658] sm:$0xf0] }
0x207d   :  { %6672 = vmatpush.bf16.msrb.mxu2 %v10479_v42  ;;  %v10470_v42 = vld [vmem:[%s12795_s4 + $0x638] sm:$0xf] }
0x207e   :  { %10362 = vmatmul.msk.f32.gmra.mxu2 %vm337_vm4, %v12759_v0  ;;  %10368 = vmatmul.msk.f32.gmra.mxu3 %vm337_vm4, %v12756_v63 }
0x207f   :  { %6698 = vmatpush.bf16.msrb.mxu3 %v10551_v1  ;;  %v11504_v1 = vld [vmem:[%s12795_s4 + $0x634] sm:$0xf] }
0x2083   :  { %6699 = vmatpush.bf16.msrb.mxu3 %v10539_v12  ;;  %v10450_v12 = vld [vmem:[%s12795_s4 + $0x618] sm:$0xf] }
0x2086   :  { %10363 = vmatmul.msk.f32.gmra.mxu2 %vm337_vm4, %v12774_v5  ;;  %10369 = vmatmul.msk.f32.gmra.mxu3 %vm337_vm4, %v12771_v4 }
0x208e   :  { %10364 = vmatmul.msk.f32.gmra.mxu2 %vm337_vm4, %v12786_v8  ;;  %10370 = vmatmul.msk.f32.gmra.mxu3 %vm337_vm4, %v12783_v7 }
0x2096   :  { %6700 = vmatmul.bf16.vlgmr.msrb.gmra.mxu3 %v12836_v16 }
0x20a6   :  { %6705 = vmatmul.bf16.gmra.mxu3 %v12884_v43  ;;  %v10522_v43 = vld [vmem:[%s12795_s4 + $0x6a8] sm:$0xf] }
0x20b6   :  { %6710 = vmatmul.bf16.gmra.mxu3 %v12905_v19  ;;  %v11520_v19 = vld [vmem:[%s12795_s4 + $0x6b0] sm:$0xf0] }
0x20b7   :  { %v10523_v20 = vor.u32 %v11520_v19, %v10522_v43  ;;  %v10440_v19 = vld [vmem:[%s12795_s4 + $0x60c] sm:$0xf0] }
0x20b9   :  { %6620 = vmatpush.bf16.msra.mxu0 %v10523_v20 }
0x20bd   :  { %6621 = vmatpush.bf16.msra.mxu0 %v10511_v22 }
0x20c1   :  { %6622 = vmatpush.bf16.msra.mxu0 %v10499_v27 }
0x20c5   :  { %6623 = vmatpush.bf16.msra.mxu0 %v10487_v48 }
0x20c9   :  { %6624 = vmatpush.bf16.msra.mxu0 %v10475_v39  ;;  %v10482_v39 = vld [vmem:[%s12795_s4 + $0x650] sm:$0xf] }
0x20ca   :  { %v10483_v54 = vor.u32 %v11509_v53, %v10482_v39  ;;  %v11546_v53 = vld [vmem:[%s12956_s9 + $0x210] sm:$0xff] }
0x20cd   :  { %6625 = vmatpush.bf16.msra.mxu0 %v10463_v37  ;;  %v10458_v37 = vld [vmem:[%s12795_s4 + $0x620] sm:$0xf] }
0x20e9   :  { %v6233_v52 = vpop.f32.mrf.mxu3  ;;  %v6198_v20 = vpop.f32.mrf.mxu2 }
0x20f1   :  { %v6236_v55 = vpop.f32.mrf.mxu3  ;;  %v6201_v22 = vpop.f32.mrf.mxu2 }
0x20f2   :  { %v11825_v63 = vpack.i.bf16 %v6236_v55, %v6233_v52  ;;  %v11502_v52 = vld [vmem:[%s12795_s4 + $0x620] sm:$0xf0]  ;;  %v10467_v55 = vor.u32 %v11504_v1, %v10464_v23  ;;  %v10471_v1 = vor.u32 %v11506_v11, %v10470_v42  ;;  %v11503_v23 = vld [vmem:[%s12795_s4 + $0x628] sm:$0xf0]  ;;  %v14729_v42 = vperm.slane %v14716_v34, 1  ;;  %v11555_v11 = vld [vmem:[%s12956_s9 + $0x258] sm:$0xff] }
0x20f4   :  { %11826 = vrot.lane.b32.xlu0 %v11825_v63, %s12616_s5  ;;  %v10451_v63 = vor.u32 %v11502_v52, %v10450_v12  ;;  %6673 = vmatpush.bf16.msrb.mxu2 %v10467_v55  ;;  %v10446_v55 = vld [vmem:[%s12795_s4 + $0x608] sm:$0xf] }
0x20f6   :  { %6626 = vmatpush.bf16.msra.mxu0 %v10451_v63  ;;  %v11500_v63 = vld [vmem:[%s12795_s4 + $0x610] sm:$0xf0] }
0x20f9   :  { %v6239_v0 = vpop.f32.mrf.mxu3  ;;  %v6204_v48 = vpop.f32.mrf.mxu2 }
0x2101   :  { %v6242_v4 = vpop.f32.mrf.mxu3  ;;  %v6207_v52 = vpop.f32.mrf.mxu2 }
0x2102   :  { %v11830_v5 = vpack.i.bf16 %v6242_v4, %v6239_v0  ;;  %v11501_v0 = vld [vmem:[%s12795_s4 + $0x61c] sm:$0xf]  ;;  %v10452_v4 = vld [vmem:[%s12795_s4 + $0x624] sm:$0xf0] }
0x2104   :  { %11831 = vrot.lane.b32.xlu2 %v11830_v5, %s12616_s5  ;;  %v10455_v5 = vor.u32 %v11501_v0, %v10452_v4 }
0x2106   :  { %6674 = vmatpush.bf16.msrb.mxu2 %v10455_v5  ;;  %v10447_v5 = vor.u32 %v11500_v63, %v10446_v55 }
0x2109   :  { %v6245_v7 = vpop.f32.mrf.mxu3 }
0x2111   :  { %v6248_v8 = vpop.f32.mrf.mxu3 }
0x2112   :  { %v11835_v16 = vpack.i.bf16 %v6248_v8, %v6245_v7  ;;  %v10438_v7 = vld [vmem:[%s12795_s4 + $0x600] sm:$0xf]  ;;  %v11499_v8 = vld [vmem:[%s12795_s4 + $0x608] sm:$0xf0] }
0x2113   :  { %v10439_v43 = vor.u32 %v11499_v8, %v10438_v7 }
0x2114   :  { %11836 = vrot.lane.b32.xlu1 %v11835_v16, %s12616_s5  ;;  %v11498_v16 = vld [vmem:[%s12795_s4 + $0x604] sm:$0xf]  ;;  %s12632_s4 = smov 96  }
0x2115   :  { %v10443_v33 = vor.u32 %v11498_v16, %v10440_v19  ;;  %6627 = vmatpush.bf16.msra.mxu0 %v10439_v43  ;;  %v6210_v43 = vpop.f32.mrf.mxu2 }
0x2117   :  { %6675 = vmatpush.bf16.msrb.mxu2 %v10443_v33 }
0x2119   :  { %6716 = vmatpush.bf16.msrb.mxu0 %v10531_v31 }
0x211b   :  { %7031 = vmatpush.bf16.msra.mxu2 %v11553_v61 }
0x211d   :  { %6717 = vmatpush.bf16.msrb.mxu0 %v10519_v17  ;;  %v6213_v46 = vpop.f32.mrf.mxu2  ;;  %v11552_v17 = vld [vmem:[%s12956_s9 + $0x240] sm:$0xff] }
0x211f   :  { %7032 = vmatpush.bf16.msra.mxu2 %v11552_v17 }
0x2121   :  { %6718 = vmatpush.bf16.msrb.mxu0 %v10507_v35  ;;  %v11559_v35 = vld [vmem:[%s12956_s9 + $0x278] sm:$0xff] }
0x2125   :  { %6719 = vmatpush.bf16.msrb.mxu0 %v10495_v29  ;;  %v11547_v29 = vld [vmem:[%s12956_s9 + $0x218] sm:$0xff] }
0x2129   :  { %6720 = vmatpush.bf16.msrb.mxu0 %v10483_v54 }
0x212d   :  { %6721 = vmatpush.bf16.msrb.mxu0 %v10471_v1 }
0x215e   :  { %v11832_v41 = vpop.permute.xlu2 %11831 }
0x215f   :  { %v11833_v12 = vunpack.i.l.bf16 %v11832_v41 }
0x2161   :  { %v6277_v0 = vsel %vm523_vm1, %v6204_v48, %v11833_v12  ;;  %v6701_v48 = vpop.f32.mrf.mxu3 }
0x2162   :  { %v6283_v7 = vsel %vm504_vm15, %v6277_v0, %v12862_v6 }
0x2166   :  { %v11827_v56 = vpop.permute.xlu0 %11826 }
0x2167   :  { %v11829_v26 = vunpack.i.h.bf16 %v11827_v56  ;;  %v11828_v27 = vunpack.i.l.bf16 %v11827_v56  ;;  %v11549_v56 = vld [vmem:[%s12956_s9 + $0x228] sm:$0xff] }
0x2169   :  { %v6275_v50 = vsel %vm523_vm1, %v6198_v20, %v11828_v27  ;;  %v6276_v59 = vsel %vm523_vm1, %v6201_v22, %v11829_v26  ;;  %v11561_v22 = vld [vmem:[%s12956_s9 + $0x288] sm:$0xff]  ;;  %v11558_v27 = vld [vmem:[%s12956_s9 + $0x270] sm:$0xff] }
0x216a   :  { %v6281_v36 = vsel %vm504_vm15, %v6275_v50, %v12817_v49  ;;  %v6282_v38 = vsel %vm504_vm15, %v6276_v59, %v12812_v45  ;;  %v11834_v49 = vunpack.i.h.bf16 %v11832_v41  ;;  %v10459_v45 = vor.u32 %v11503_v23, %v10458_v37  ;;  %7055 = vmatpush.bf16.msra.mxu3 %v11561_v22  ;;  %v11557_v50 = vld [vmem:[%s12956_s9 + $0x268] sm:$0xff] }
0x216b   :  { %v6287_v21 = vpack.c.bf16 %v6282_v38, %v6281_v36  ;;  %v14720_v59 = vperm.slane %v14716_v34, 0  ;;  %v11556_v36 = vld [vmem:[%s12956_s9 + $0x260] sm:$0xff] }
0x216c   :  { %v6278_v4 = vsel %vm523_vm1, %v6207_v52, %v11834_v49  ;;  %6722 = vmatpush.bf16.msrb.mxu0 %v10459_v45  ;;  %v6703_v49 = vpop.f32.mrf.mxu3  ;;  %v11554_v45 = vld [vmem:[%s12956_s9 + $0x250] sm:$0xff] }
0x216d   :  { %6628 = vmatmul.bf16.vlgmr.msra.gmra.mxu0 %v6287_v21  ;;  %6676 = vmatmul.bf16.vlgmr.msrb.gmra.mxu2 %v6287_v21  ;;  %v6284_v8 = vsel %vm504_vm15, %v6278_v4, %v12860_v3 }
0x216e   :  { %v6288_v16 = vpack.c.bf16 %v6284_v8, %v6283_v7  ;;  %7056 = vmatpush.bf16.msra.mxu3 %v11560_v2 }
0x2170   :  { %6723 = vmatpush.bf16.msrb.mxu0 %v10447_v5 }
0x2172   :  { %7057 = vmatpush.bf16.msra.mxu3 %v11559_v35 }
0x2176   :  { %7058 = vmatpush.bf16.msra.mxu3 %v11558_v27 }
0x217a   :  { %7059 = vmatpush.bf16.msra.mxu3 %v11557_v50 }
0x217d   :  { %6633 = vmatmul.bf16.gmra.mxu0 %v6288_v16  ;;  %6681 = vmatmul.bf16.gmra.mxu2 %v6288_v16 }
0x217e   :  { %7060 = vmatpush.bf16.msra.mxu3 %v11556_v36 }
0x2182   :  { %7061 = vmatpush.bf16.msra.mxu3 %v11555_v11 }
0x2186   :  { %v11837_v19 = vpop.permute.xlu1 %11836  ;;  %7062 = vmatpush.bf16.msra.mxu3 %v11554_v45 }
0x2187   :  { %v11839_v33 = vunpack.i.h.bf16 %v11837_v19  ;;  %v11838_v20 = vunpack.i.l.bf16 %v11837_v19 }
0x2189   :  { %v6279_v62 = vsel %vm523_vm1, %v6210_v43, %v11838_v20  ;;  %v6280_v31 = vsel %vm523_vm1, %v6213_v46, %v11839_v33 }
0x218a   :  { %v6285_v3 = vsel %vm504_vm15, %v6279_v62, %v12898_v14  ;;  %v6286_v6 = vsel %vm504_vm15, %v6280_v31, %v12896_v13  ;;  %v6653_v14 = vpop.f32.mrf.mxu1  ;;  %v11551_v13 = vld [vmem:[%s12956_s9 + $0x238] sm:$0xff]  ;;  %v6706_v62 = vpop.f32.mrf.mxu3 }
0x218b   :  { %v6289_v40 = vpack.c.bf16 %v6286_v6, %v6285_v3  ;;  %7033 = vmatpush.bf16.msra.mxu2 %v11551_v13 }
0x218d   :  { %6638 = vmatmul.bf16.gmra.mxu0 %v6289_v40  ;;  %6686 = vmatmul.bf16.gmra.mxu2 %v6289_v40 }
0x218f   :  { %7034 = vmatpush.bf16.msra.mxu2 %v11550_v28 }
0x2192   :  { %v6655_v26 = vpop.f32.mrf.mxu1  ;;  %v6708_v36 = vpop.f32.mrf.mxu3 }
0x2193   :  { %7035 = vmatpush.bf16.msra.mxu2 %v11549_v56 }
0x2197   :  { %7036 = vmatpush.bf16.msra.mxu2 %v11548_v25 }
0x219a   :  { %v6658_v38 = vpop.f32.mrf.mxu1 }
0x219b   :  { %7037 = vmatpush.bf16.msra.mxu2 %v11547_v29 }
0x219d   :  { %6724 = vmatmul.bf16.vlgmr.msrb.gmra.mxu0 %v6287_v21 }
0x219f   :  { %7038 = vmatpush.bf16.msra.mxu2 %v11546_v53 }
0x21a2   :  { %v6660_v63 = vpop.f32.mrf.mxu1 }
0x21ad   :  { %6729 = vmatmul.bf16.gmra.mxu0 %v6288_v16 }
0x21bd   :  { %6734 = vmatmul.bf16.gmra.mxu0 %v6289_v40  ;;  %v6663_v40 = vpop.f32.mrf.mxu1 }
0x21c5   :  { %v6665_v53 = vpop.f32.mrf.mxu1 }
0x21ea   :  { %v6629_v21 = vpop.f32.mrf.mxu0 }
0x21eb   :  { %v6630_v39 = vadd.f32 %v6629_v21, %v14720_v59 }
0x21ed   :  { %v14726_v54 = vadd.f32 %v6653_v14, %v6630_v39 }
0x21ef   :  { %v6764_v41 = vsub.f32 0.0, %v14726_v54 }
0x21f0   :  { %v6677_v1 = vpop.f32.mrf.mxu2 }
0x21f1   :  { %v6782_v37 = vmul.f32 1.442695, %v6764_v41  ;;  %v6678_v23 = vadd.f32 %v6677_v1, %v14729_v42 }
0x21f2   :  { %v6631_v12 = vpop.f32.mrf.mxu0 }
0x21f3   :  { %12412 = vpow2.f32 %v6782_v37  ;;  %v14735_v52 = vadd.f32 %v6701_v48, %v6678_v23  ;;  %v6632_v55 = vadd.f32 %v6631_v12, %v14720_v59 }
0x21f5   :  { %v6765_v0 = vsub.f32 0.0, %v14735_v52  ;;  %v6656_v4 = vadd.f32 %v6655_v26, %v6632_v55 }
0x21f7   :  { %v6784_v5 = vmul.f32 1.442695, %v6765_v0  ;;  %v6767_v7 = vsub.f32 0.0, %v6656_v4 }
0x21f8   :  { %v6679_v8 = vpop.f32.mrf.mxu2 }
0x21f9   :  { %v12413_v16 = vpop.eup %12412  ;;  %v6788_v43 = vmul.f32 1.442695, %v6767_v7  ;;  %v6680_v19 = vadd.f32 %v6679_v8, %v14729_v42  ;;  %12414 = vpow2.f32 %v6784_v5 }
0x21fa   :  { %v6634_v33 = vpop.f32.mrf.mxu0  ;;  %v6818_v31 = vadd.f32 1.0, %v12413_v16 }
0x21fb   :  { %12416 = vpow2.f32 %v6788_v43  ;;  %v6704_v20 = vadd.f32 %v6703_v49, %v6680_v19  ;;  %v6635_v46 = vadd.f32 %v6634_v33, %v14720_v59 }
0x21fc   :  { %12418 = vrcp.f32 %v6818_v31 }
0x21fd   :  { %v6768_v3 = vsub.f32 0.0, %v6704_v20  ;;  %v14741_v6 = vadd.f32 %v6658_v38, %v6635_v46 }
0x21ff   :  { %v6790_v61 = vmul.f32 1.442695, %v6768_v3  ;;  %v6770_v17 = vsub.f32 0.0, %v14741_v6  ;;  %v12415_v22 = vpop.eup %12414 }
0x2200   :  { %v6682_v14 = vpop.f32.mrf.mxu2  ;;  %v6819_v25 = vadd.f32 1.0, %v12415_v22  ;;  %v6749_v22 = vpop.f32.mrf.mxu1 }
0x2201   :  { %v12417_v13 = vpop.eup %12416  ;;  %12420 = vpow2.f32 %v6790_v61  ;;  %v6794_v2 = vmul.f32 1.442695, %v6770_v17  ;;  %v6683_v28 = vadd.f32 %v6682_v14, %v14729_v42 }
0x2202   :  { %v6821_v35 = vadd.f32 1.0, %v12417_v13  ;;  %v6636_v56 = vpop.f32.mrf.mxu0  ;;  %v12419_v48 = vpop.eup %12418 }
0x2203   :  { %12422 = vpow2.f32 %v6794_v2  ;;  %v14745_v26 = vadd.f32 %v6706_v62, %v6683_v28  ;;  %v6637_v27 = vadd.f32 %v6636_v56, %v14720_v59  ;;  %v6854_v12 = vmul.f32 %v12419_v48, %v14726_v54  ;;  %v6711_v62 = vpop.f32.mrf.mxu3 }
0x2204   :  { %12424 = vrcp.f32 %v6821_v35  ;;  %v14770_v48 = vperm.slane %v14716_v34, 2 }
0x2205   :  { %v6771_v50 = vsub.f32 0.0, %v14745_v26  ;;  %v14749_v29 = vadd.f32 %v6660_v63, %v6637_v27  ;;  %12426 = vrcp.f32 %v6819_v25 }
0x2207   :  { %v12421_v38 = vpop.eup %12420  ;;  %v6796_v21 = vmul.f32 1.442695, %v6771_v50  ;;  %v6773_v39 = vsub.f32 0.0, %v14749_v29 }
0x2208   :  { %v6822_v11 = vadd.f32 1.0, %v12421_v38  ;;  %v6684_v41 = vpop.f32.mrf.mxu2 }
0x2209   :  { %v12423_v1 = vpop.eup %12422  ;;  %12428 = vpow2.f32 %v6796_v21  ;;  %v6800_v37 = vmul.f32 1.442695, %v6773_v39  ;;  %v6685_v23 = vadd.f32 %v6684_v41, %v14729_v42  ;;  %v10660_v39 = vld [vmem:[%s12956_s9 + $0x290] sm:$0x1] }
0x220a   :  { %v12425_v49 = vpop.eup %12424  ;;  %12430 = vrcp.f32 %v6822_v11  ;;  %v6639_v45 = vpop.f32.mrf.mxu0  ;;  %v6824_v5 = vadd.f32 1.0, %v12423_v1  ;;  %v6985_v11 = vunpack.c.l.b16 %v10660_v39 }
0x220b   :  { %v6857_v55 = vmul.f32 %v12425_v49, %v6656_v4  ;;  %12432 = vpow2.f32 %v6800_v37  ;;  %v14754_v63 = vadd.f32 %v6708_v36, %v6685_v23  ;;  %v6640_v0 = vadd.f32 %v6639_v45, %v14720_v59  ;;  %v12427_v43 = vpop.eup %12426  ;;  %v6713_v1 = vpop.f32.mrf.mxu3 }
0x220c   :  { %12434 = vrcp.f32 %v6824_v5  ;;  %v6855_v3 = vmul.f32 %v12427_v43, %v14735_v52  ;;  %v7002_v45 = vpack.c.b16 %v6985_v11, %v6985_v11 }
0x220d   :  { %v6872_v7 = vpack.c.bf16 %v6857_v55, %v6854_v12  ;;  %v6774_v8 = vsub.f32 0.0, %v14754_v63  ;;  %v14758_v16 = vadd.f32 %v6663_v40, %v6640_v0  ;;  %v6751_v55 = vpop.f32.mrf.mxu1 }
0x220e   :  { %v7029_v43 = vsel %vm296_vm0, %v7002_v45, 0 }
0x220f   :  { %v12429_v19 = vpop.eup %12428  ;;  %v6802_v33 = vmul.f32 1.442695, %v6774_v8  ;;  %v6776_v46 = vsub.f32 0.0, %v14758_v16  ;;  %7039 = vmatmul.bf16.vlgmr.msra.gmra.mxu2 %v6872_v7  ;;  %7086 = vmatpush.bf16.msra.mxu0 %v7029_v43 }
0x2210   :  { %v12431_v54 = vpop.eup %12430  ;;  %v6687_v4 = vpop.f32.mrf.mxu2  ;;  %v6825_v35 = vadd.f32 1.0, %v12429_v19 }
0x2211   :  { %v12433_v31 = vpop.eup %12432  ;;  %v6858_v61 = vmul.f32 %v12431_v54, %v6704_v20  ;;  %12436 = vpow2.f32 %v6802_v33  ;;  %v6688_v17 = vadd.f32 %v6687_v4, %v14729_v42  ;;  %v6806_v2 = vmul.f32 1.442695, %v6776_v46 }
0x2212   :  { %v6827_v40 = vadd.f32 1.0, %v12433_v31  ;;  %v6641_v14 = vpop.f32.mrf.mxu0  ;;  %v12435_v52 = vpop.eup %12434 }
0x2213   :  { %v6873_v13 = vpack.c.bf16 %v6858_v61, %v6855_v3  ;;  %v14763_v28 = vadd.f32 %v6711_v62, %v6688_v17  ;;  %v6642_v56 = vadd.f32 %v6641_v14, %v14720_v59 }
0x2214   :  { %12438 = vrcp.f32 %v6827_v40 }
0x2215   :  { %v6777_v27 = vsub.f32 0.0, %v14763_v28  ;;  %7063 = vmatmul.bf16.vlgmr.msra.gmra.mxu3 %v6873_v13  ;;  %v14767_v20 = vadd.f32 %v6665_v53, %v6642_v56  ;;  %12440 = vpow2.f32 %v6806_v2  ;;  %v6860_v53 = vmul.f32 %v12435_v52, %v14741_v6  ;;  %v6754_v13 = vpop.f32.mrf.mxu1 }
0x2216   :  { %12442 = vrcp.f32 %v6825_v35 }
0x2217   :  { %v12437_v25 = vpop.eup %12436  ;;  %v6808_v50 = vmul.f32 1.442695, %v6777_v27  ;;  %v6779_v38 = vsub.f32 0.0, %v14767_v20 }
0x2218   :  { %v6828_v36 = vadd.f32 1.0, %v12437_v25  ;;  %v6689_v21 = vpop.f32.mrf.mxu2 }
0x2219   :  { %12444 = vpow2.f32 %v6808_v50  ;;  %v6690_v59 = vadd.f32 %v6689_v21, %v14729_v42  ;;  %v6812_v37 = vmul.f32 1.442695, %v6779_v38 }
0x221a   :  { %v12439_v41 = vpop.eup %12438  ;;  %12446 = vrcp.f32 %v6828_v36  ;;  %v6725_v23 = vpop.f32.mrf.mxu0 }
0x221b   :  { %v6863_v34 = vmul.f32 %v12439_v41, %v14749_v29  ;;  %v6714_v49 = vadd.f32 %v6713_v1, %v6690_v59  ;;  %v6726_v12 = vadd.f32 %v6725_v23, %v14770_v48  ;;  %v12441_v0 = vpop.eup %12440  ;;  %12448 = vpow2.f32 %v6812_v37 }
0x221c   :  { %v12443_v8 = vpop.eup %12442  ;;  %v6830_v46 = vadd.f32 1.0, %v12441_v0 }
0x221d   :  { %v6780_v5 = vsub.f32 0.0, %v6714_v49  ;;  %v14778_v7 = vadd.f32 %v6749_v22, %v6726_v12  ;;  %v6875_v42 = vpack.c.bf16 %v6863_v34, %v6860_v53  ;;  %v6861_v54 = vmul.f32 %v12443_v8, %v14745_v26  ;;  %v6756_v53 = vpop.f32.mrf.mxu1 }
0x221f   :  { %v12445_v6 = vpop.eup %12444  ;;  %v6814_v19 = vmul.f32 1.442695, %v6780_v5  ;;  %v6766_v33 = vsub.f32 0.0, %v14778_v7  ;;  %7044 = vmatmul.bf16.gmra.mxu2 %v6875_v42 }
0x2220   :  { %v12447_v29 = vpop.eup %12446  ;;  %v6831_v22 = vadd.f32 1.0, %v12445_v6 }
0x2221   :  { %v6864_v62 = vmul.f32 %v12447_v29, %v14754_v63  ;;  %12450 = vpow2.f32 %v6814_v19  ;;  %v6786_v4 = vmul.f32 1.442695, %v6766_v33  ;;  %v12449_v3 = vpop.eup %12448 }
0x2222   :  { %v6727_v31 = vpop.f32.mrf.mxu0  ;;  %12452 = vrcp.f32 %v6830_v46  ;;  %v6833_v40 = vadd.f32 1.0, %v12449_v3 }
0x2223   :  { %v6728_v61 = vadd.f32 %v6727_v31, %v14770_v48  ;;  %v6876_v17 = vpack.c.bf16 %v6864_v62, %v6861_v54  ;;  %12454 = vpow2.f32 %v6786_v4 }
0x2224   :  { %12456 = vrcp.f32 %v6833_v40 }
0x2225   :  { %v6752_v14 = vadd.f32 %v6751_v55, %v6728_v61  ;;  %7068 = vmatmul.bf16.gmra.mxu3 %v6876_v17  ;;  %12458 = vrcp.f32 %v6831_v22  ;;  %v6759_v6 = vpop.f32.mrf.mxu1 }
0x2227   :  { %v12451_v2 = vpop.eup %12450  ;;  %v6769_v35 = vsub.f32 0.0, %v6752_v14 }
0x2228   :  { %v6834_v26 = vadd.f32 1.0, %v12451_v2  ;;  %v12453_v56 = vpop.eup %12452 }
0x2229   :  { %v6792_v63 = vmul.f32 1.442695, %v6769_v35  ;;  %v12455_v52 = vpop.eup %12454  ;;  %v6866_v36 = vmul.f32 %v12453_v56, %v14758_v16 }
0x222a   :  { %12460 = vrcp.f32 %v6834_v26  ;;  %v6730_v27 = vpop.f32.mrf.mxu0  ;;  %v12457_v50 = vpop.eup %12456  ;;  %v6820_v59 = vadd.f32 1.0, %v12455_v52 }
0x222b   :  { %12462 = vpow2.f32 %v6792_v63  ;;  %v6731_v25 = vadd.f32 %v6730_v27, %v14770_v48  ;;  %v6869_v38 = vmul.f32 %v12457_v50, %v14767_v20  ;;  %v12459_v39 = vpop.eup %12458 }
0x222c   :  { %v6867_v23 = vmul.f32 %v12459_v39, %v14763_v28  ;;  %12464 = vrcp.f32 %v6820_v59 }
0x222d   :  { %v6755_v21 = vadd.f32 %v6754_v13, %v6731_v25  ;;  %v6878_v41 = vpack.c.bf16 %v6869_v38, %v6866_v36  ;;  %v6761_v40 = vpop.f32.mrf.mxu1 }
0x222f   :  { %v6772_v11 = vsub.f32 0.0, %v6755_v21  ;;  %7049 = vmatmul.bf16.gmra.mxu2 %v6878_v41 }
0x2230   :  { %v12461_v1 = vpop.eup %12460 }
0x2231   :  { %v12463_v37 = vpop.eup %12462  ;;  %v6870_v34 = vmul.f32 %v12461_v1, %v6714_v49  ;;  %v6798_v12 = vmul.f32 1.442695, %v6772_v11 }
0x2232   :  { %v6823_v45 = vadd.f32 1.0, %v12463_v37  ;;  %v6732_v55 = vpop.f32.mrf.mxu0  ;;  %v12465_v42 = vpop.eup %12464 }
0x2233   :  { %v6733_v16 = vadd.f32 %v6732_v55, %v14770_v48  ;;  %v6879_v0 = vpack.c.bf16 %v6870_v34, %v6867_v23  ;;  %v6856_v49 = vmul.f32 %v12465_v42, %v14778_v7 }
0x2234   :  { %12466 = vrcp.f32 %v6823_v45 }
0x2235   :  { %12468 = vpow2.f32 %v6798_v12  ;;  %v6757_v20 = vadd.f32 %v6756_v53, %v6733_v16  ;;  %7073 = vmatmul.bf16.gmra.mxu3 %v6879_v0  ;;  %v11883_v12 = vld [vmem:[%s12980_s17 + $0x4] ss:$0 sm:$0xff] }
0x2237   :  { %v6775_v5 = vsub.f32 0.0, %v6757_v20 }
0x2239   :  { %v6804_v8 = vmul.f32 1.442695, %v6775_v5 }
0x223a   :  { %v12467_v43 = vpop.eup %12466  ;;  %v6735_v19 = vpop.f32.mrf.mxu0 }
0x223b   :  { %v12469_v28 = vpop.eup %12468  ;;  %v6859_v33 = vmul.f32 %v12467_v43, %v6752_v14  ;;  %12470 = vpow2.f32 %v6804_v8  ;;  %v6736_v29 = vadd.f32 %v6735_v19, %v14770_v48 }
0x223c   :  { %v6826_v62 = vadd.f32 1.0, %v12469_v28 }
0x223d   :  { %v6874_v46 = vpack.c.bf16 %v6859_v33, %v6856_v49  ;;  %v6760_v54 = vadd.f32 %v6759_v6, %v6736_v29 }
0x223e   :  { %12472 = vrcp.f32 %v6826_v62 }
0x223f   :  { %v6778_v4 = vsub.f32 0.0, %v6760_v54  ;;  %10726 = vmatmul.msk.bf16.vlgmr.msra.gmra.mxu0 %vm1267_vm2, %v6874_v46 }
0x2241   :  { %v12471_v31 = vpop.eup %12470  ;;  %v6810_v3 = vmul.f32 1.442695, %v6778_v4 }
0x2242   :  { %v6829_v61 = vadd.f32 1.0, %v12471_v31  ;;  %v6737_v17 = vpop.f32.mrf.mxu0 }
0x2243   :  { %v6738_v22 = vadd.f32 %v6737_v17, %v14770_v48 }
0x2244   :  { %12474 = vrcp.f32 %v6829_v61  ;;  %v12473_v13 = vpop.eup %12472 }
0x2245   :  { %12476 = vpow2.f32 %v6810_v3  ;;  %v6762_v7 = vadd.f32 %v6761_v40, %v6738_v22  ;;  %v6862_v63 = vmul.f32 %v12473_v13, %v6755_v21 }
0x2247   :  { %v6781_v14 = vsub.f32 0.0, %v6762_v7 }
0x2249   :  { %v6816_v2 = vmul.f32 1.442695, %v6781_v14 }
0x224a   :  { %v12475_v35 = vpop.eup %12474 }
0x224b   :  { %v12477_v26 = vpop.eup %12476  ;;  %v6865_v56 = vmul.f32 %v12475_v35, %v6757_v20  ;;  %12478 = vpow2.f32 %v6816_v2 }
0x224c   :  { %v6832_v52 = vadd.f32 1.0, %v12477_v26 }
0x224d   :  { %v6877_v27 = vpack.c.bf16 %v6865_v56, %v6862_v63 }
0x224e   :  { %12480 = vrcp.f32 %v6832_v52 }
0x224f   :  { %10727 = vmatmul.msk.bf16.gmra.mxu0 %vm1267_vm2, %v6877_v27 }
0x2251   :  { %v12479_v25 = vpop.eup %12478 }
0x2252   :  { %v6835_v50 = vadd.f32 1.0, %v12479_v25 }
0x2254   :  { %12482 = vrcp.f32 %v6835_v50  ;;  %v12481_v48 = vpop.eup %12480 }
0x2255   :  { %v6868_v38 = vmul.f32 %v12481_v48, %v6760_v54 }
0x225a   :  { %v12483_v36 = vpop.eup %12482 }
0x225b   :  { %v6871_v39 = vmul.f32 %v12483_v36, %v6762_v7 }
0x225d   :  { %v6880_v59 = vpack.c.bf16 %v6871_v39, %v6868_v38 }
0x225f   :  { %10728 = vmatmul.msk.bf16.gmra.mxu0 %vm1267_vm2, %v6880_v59 }
0x2292   :  { %v7040_v11 = vpop.f32.mrf.mxu2 }
0x2293   :  { %v7041_v45 = vadd.f32 %v11883_v12, %v7040_v11 }
0x2298   :  { %v7064_v21 = vpop.f32.mrf.mxu3 }
0x2299   :  { %v7065_v16 = vadd.f32 %v7064_v21, %v7041_v45 }
0x229a   :  { %v7042_v41 = vpop.f32.mrf.mxu2 }
0x229b   :  { %v7043_v8 = vadd.f32 %v11883_v12, %v7042_v41 }
0x22a0   :  { %v7066_v1 = vpop.f32.mrf.mxu3 }
0x22a1   :  { %v7067_v19 = vadd.f32 %v7066_v1, %v7043_v8 }
0x22a2   :  { %v7045_v37 = vpop.f32.mrf.mxu2 }
0x22a3   :  { %v7046_v3 = vadd.f32 %v11883_v12, %v7045_v37 }
0x22a8   :  { %v7069_v23 = vpop.f32.mrf.mxu3 }
0x22a9   :  { %v7070_v22 = vadd.f32 %v7069_v23, %v7046_v3 }
0x22aa   :  { %v7047_v55 = vpop.f32.mrf.mxu2 }
0x22ab   :  { %v7048_v42 = vadd.f32 %v11883_v12, %v7047_v55 }
0x22b0   :  { %v7071_v0 = vpop.f32.mrf.mxu3 }
0x22b1   :  { %v7072_v6 = vadd.f32 %v7071_v0, %v7048_v42 }
0x22b2   :  { %v7050_v28 = vpop.f32.mrf.mxu2 }
0x22b3   :  { %v7051_v4 = vadd.f32 %v11883_v12, %v7050_v28 }
0x22b8   :  { %v7074_v29 = vpop.f32.mrf.mxu3 }
0x22b9   :  { %v7075_v17 = vadd.f32 %v7074_v29, %v7051_v4 }
0x22ba   :  { %v7052_v14 = vpop.f32.mrf.mxu2 }
0x22bb   :  { %v7053_v27 = vadd.f32 %v11883_v12, %v7052_v14 }
0x22bc   :  { %v7088_v53 = vpop.f32.mrf.mxu0 }
0x22bd   :  { %v7089_v5 = vadd.f32 %v7088_v53, %v7065_v16 }
0x22bf   :  { %v7103_v43 = vsub.f32 0.0, %v7089_v5 }
0x22c0   :  { %v7076_v63 = vpop.f32.mrf.mxu3 }
0x22c1   :  { %v7109_v46 = vmul.f32 1.442695, %v7103_v43  ;;  %v7077_v48 = vadd.f32 %v7076_v63, %v7053_v27 }
0x22c3   :  { %12484 = vpow2.f32 %v7109_v46 }
0x22c4   :  { %v7090_v34 = vpop.f32.mrf.mxu0 }
0x22c5   :  { %v7091_v54 = vadd.f32 %v7090_v34, %v7067_v19 }
0x22c7   :  { %v7104_v61 = vsub.f32 0.0, %v7091_v54 }
0x22c9   :  { %v7111_v13 = vmul.f32 1.442695, %v7104_v61  ;;  %v12485_v26 = vpop.eup %12484 }
0x22ca   :  { %v7121_v36 = vadd.f32 1.0, %v12485_v26 }
0x22cc   :  { %v7093_v20 = vpop.f32.mrf.mxu0 }
0x22cd   :  { %v7094_v2 = vadd.f32 %v7093_v20, %v7070_v22 }
0x22cf   :  { %v7105_v25 = vsub.f32 0.0, %v7094_v2 }
0x22d1   :  { %v7113_v59 = vmul.f32 1.442695, %v7105_v25 }
0x22d4   :  { %v7095_v49 = vpop.f32.mrf.mxu0 }
0x22d5   :  { %v7096_v33 = vadd.f32 %v7095_v49, %v7072_v6 }
0x22d7   :  { %v7106_v62 = vsub.f32 0.0, %v7096_v33 }
0x22d9   :  { %v7115_v31 = vmul.f32 1.442695, %v7106_v62 }
0x22db   :  { %12486 = vpow2.f32 %v7115_v31 }
0x22dc   :  { %v7098_v40 = vpop.f32.mrf.mxu0  ;;  %12488 = vpow2.f32 %v7111_v13 }
0x22dd   :  { %v7099_v7 = vadd.f32 %v7098_v40, %v7075_v17 }
0x22df   :  { %v7107_v35 = vsub.f32 0.0, %v7099_v7 }
0x22e1   :  { %v12487_v56 = vpop.eup %12486  ;;  %v7117_v52 = vmul.f32 1.442695, %v7107_v35 }
0x22e2   :  { %v7124_v50 = vadd.f32 1.0, %v12487_v56  ;;  %v12489_v21 = vpop.eup %12488 }
0x22e3   :  { %12490 = vpow2.f32 %v7117_v52  ;;  %v7122_v34 = vadd.f32 1.0, %v12489_v21 }
0x22e4   :  { %12492 = vrcp.f32 %v7124_v50  ;;  %v7100_v38 = vpop.f32.mrf.mxu0 }
0x22e5   :  { %v7101_v39 = vadd.f32 %v7100_v38, %v7077_v48  ;;  %12494 = vrcp.f32 %v7121_v36 }
0x22e6   :  { %12496 = vpow2.f32 %v7113_v59 }
0x22e7   :  { %v7108_v11 = vsub.f32 0.0, %v7101_v39 }
0x22e9   :  { %v12491_v41 = vpop.eup %12490  ;;  %v7119_v1 = vmul.f32 1.442695, %v7108_v11  ;;  %v7370_v11 = vsel %vm523_vm1, %v14589_v47, 0.0 }
0x22ea   :  { %v12493_v53 = vpop.eup %12492  ;;  %v7125_v37 = vadd.f32 1.0, %v12491_v41 }
0x22eb   :  { %12498 = vpow2.f32 %v7119_v1  ;;  %v7136_v23 = vmul.f32 %v12493_v53, %v7096_v33  ;;  %v12495_v45 = vpop.eup %12494 }
0x22ec   :  { %12500 = vrcp.f32 %v7125_v37  ;;  %v12497_v55 = vpop.eup %12496  ;;  %v7133_v0 = vmul.f32 %v12495_v45, %v7089_v5 }
0x22ed   :  { %v7152_v12 = vsel %vm523_vm1, %v7136_v23, 0.0  ;;  %12502 = vrcp.f32 %v7122_v34  ;;  %v7123_v43 = vadd.f32 1.0, %v12497_v55 }
0x22ee   :  { %7153 = vadd.xlane.f32.xlu2 %v7152_v12  ;;  %v7143_v6 = vsel %vm523_vm1, %v7133_v0, 0.0 }
0x22f1   :  { %v12499_v16 = vpop.eup %12498 }
0x22f2   :  { %v12501_v20 = vpop.eup %12500  ;;  %v7126_v42 = vadd.f32 1.0, %v12499_v16 }
0x22f3   :  { %v7137_v8 = vmul.f32 %v12501_v20, %v7099_v7  ;;  %v12503_v28 = vpop.eup %12502 }
0x22f4   :  { %12504 = vrcp.f32 %v7126_v42  ;;  %v7134_v49 = vmul.f32 %v12503_v28, %v7091_v54 }
0x22f5   :  { %v7155_v19 = vsel %vm523_vm1, %v7137_v8, 0.0  ;;  %12506 = vrcp.f32 %v7123_v43 }
0x22f6   :  { %7144 = vadd.xlane.f32.xlu2 %v7143_v6  ;;  %7156 = vadd.xlane.f32.xlu0 %v7155_v19  ;;  %v7146_v5 = vsel %vm523_vm1, %v7134_v49, 0.0 }
0x22fa   :  { %v12505_v33 = vpop.eup %12504 }
0x22fb   :  { %v7138_v29 = vmul.f32 %v12505_v33, %v7101_v39  ;;  %v12507_v62 = vpop.eup %12506 }
0x22fc   :  { %v7135_v4 = vmul.f32 %v12507_v62, %v7094_v2 }
0x22fd   :  { %v7158_v46 = vsel %vm523_vm1, %v7138_v29, 0.0 }
0x22fe   :  { %7159 = vadd.xlane.f32.xlu1 %v7158_v46  ;;  %7147 = vadd.xlane.f32.xlu0 %v7146_v5  ;;  %v7149_v31 = vsel %vm523_vm1, %v7135_v4, 0.0 }
0x2306   :  { %7150 = vadd.xlane.f32.xlu1 %v7149_v31 }
0x2361   :  { %v7154_v3 = vpop.xlane.xlu2 %7153 }
0x2362   :  { %v7164_v61 = vmul.f32 %v7154_v3, %v13066_v15 }
0x2364   :  { %v14804_v17 = vsub.f32 %v7136_v23, %v7164_v61 }
0x2366   :  { %v7176_v54 = vmul.f32 %v14804_v17, %v14804_v17 }
0x2368   :  { %v7188_v22 = vsel %vm523_vm1, %v7176_v54, 0.0 }
0x2369   :  { %7189 = vadd.xlane.f32.xlu2 %v7188_v22  ;;  %v7145_v40 = vpop.xlane.xlu2 %7144  ;;  %v7157_v7 = vpop.xlane.xlu0 %7156 }
0x236a   :  { %v7161_v14 = vmul.f32 %v7145_v40, %v13066_v15  ;;  %v7165_v13 = vmul.f32 %v7157_v7, %v13066_v15 }
0x236c   :  { %v14811_v2 = vsub.f32 %v7133_v0, %v7161_v14  ;;  %v14813_v35 = vsub.f32 %v7137_v8, %v7165_v13 }
0x236e   :  { %v7173_v26 = vmul.f32 %v14811_v2, %v14811_v2  ;;  %v7177_v63 = vmul.f32 %v14813_v35, %v14813_v35 }
0x2370   :  { %v7179_v56 = vsel %vm523_vm1, %v7173_v26, 0.0  ;;  %v7191_v27 = vsel %vm523_vm1, %v7177_v63, 0.0 }
0x2371   :  { %7180 = vadd.xlane.f32.xlu2 %v7179_v56  ;;  %v7160_v52 = vpop.xlane.xlu1 %7159  ;;  %7192 = vadd.xlane.f32.xlu0 %v7191_v27  ;;  %v7148_v25 = vpop.xlane.xlu0 %7147 }
0x2372   :  { %v7166_v50 = vmul.f32 %v7160_v52, %v13066_v15  ;;  %v7162_v48 = vmul.f32 %v7148_v25, %v13066_v15 }
0x2374   :  { %v14823_v36 = vsub.f32 %v7138_v29, %v7166_v50  ;;  %v14825_v38 = vsub.f32 %v7134_v49, %v7162_v48 }
0x2376   :  { %v7178_v39 = vmul.f32 %v14823_v36, %v14823_v36  ;;  %v7174_v59 = vmul.f32 %v14825_v38, %v14825_v38 }
0x2378   :  { %v7194_v21 = vsel %vm523_vm1, %v7178_v39, 0.0  ;;  %v7182_v41 = vsel %vm523_vm1, %v7174_v59, 0.0 }
0x2379   :  { %7371 = vadd.xlane.f32.xlu2 %v7370_v11  ;;  %7195 = vadd.xlane.f32.xlu1 %v7194_v21  ;;  %v7151_v1 = vpop.xlane.xlu1 %7150 }
0x237a   :  { %v7163_v53 = vmul.f32 %v7151_v1, %v13066_v15  ;;  %7183 = vadd.xlane.f32.xlu0 %v7182_v41 }
0x237c   :  { %v14836_v37 = vsub.f32 %v7135_v4, %v7163_v53 }
0x237e   :  { %v7175_v23 = vmul.f32 %v14836_v37, %v14836_v37 }
0x2380   :  { %v7185_v34 = vsel %vm523_vm1, %v7175_v23, 0.0 }
0x2381   :  { %7186 = vadd.xlane.f32.xlu1 %v7185_v34 }
0x23dc   :  { %v7190_v12 = vpop.xlane.xlu2 %7189 }
0x23dd   :  { %v7200_v45 = vmul.f32 %v7190_v12, %v13066_v15 }
0x23df   :  { %v7206_v55 = vadd.f32 1e-05, %v7200_v45 }
0x23e1   :  { %12508 = vrsqrt.f32 %v7206_v55  ;;  %vm7245_vm12 = vweird.f32 %v7206_v55 }
0x23e4   :  { %v7181_v16 = vpop.xlane.xlu2 %7180  ;;  %v7193_v0 = vpop.xlane.xlu0 %7192 }
0x23e5   :  { %v7197_v20 = vmul.f32 %v7181_v16, %v13066_v15  ;;  %v7201_v42 = vmul.f32 %v7193_v0, %v13066_v15 }
0x23e7   :  { %v14844_v8 = vadd.f32 1e-05, %v7197_v20  ;;  %v7207_v43 = vadd.f32 1e-05, %v7201_v42  ;;  %v14846_v6 = vpop.eup %12508 }
0x23e8   :  { %v7240_v19 = vmul.f32 %v14846_v6, %v7206_v55  ;;  %vm7246_vm2 = vweird.f32 %v14846_v6 }
0x23e9   :  { %12510 = vrsqrt.f32 %v7207_v43  ;;  %vm7255_vm10 = vweird.f32 %v7207_v43  ;;  %vm7247_vm14 = vmor %vm7245_vm12, %vm7246_vm2  ;;  %vm7215_vm2 = vweird.f32 %v14844_v8 }
0x23ea   :  { %12512 = vrsqrt.f32 %v14844_v8  ;;  %v7241_v62 = vmul.f32 %v14846_v6, %v7240_v19 }
0x23ec   :  { %v7196_v28 = vpop.xlane.xlu1 %7195  ;;  %v7242_v54 = vmul.f32 0.5, %v7241_v62  ;;  %v14882_v62 = vld [vmem:[%s13088_s29 + $0x4] ss:$0 sm:$0xff]  ;;  %s12642_s29 = smov 31  }
0x23ed   :  { %v7202_v49 = vmul.f32 %v7196_v28, %v13066_v15  ;;  %v7184_v33 = vpop.xlane.xlu0 %7183 }
0x23ee   :  { %v7198_v29 = vmul.f32 %v7184_v33, %v13066_v15  ;;  %v7243_v27 = vsub.f32 1.5, %v7242_v54  ;;  %v14871_v33 = vld [vmem:[%s13082_s25 + $0x4] ss:$0 sm:$0xff]  ;;  %s8743_s25 = sld [smem:[%s15271_s0 + %s12641_s13]]  }
0x23ef   :  { %v7208_v46 = vadd.f32 1e-05, %v7202_v49  ;;  %v12511_v5 = vpop.eup %12510 }
0x23f0   :  { %v7204_v4 = vadd.f32 1e-05, %v7198_v29  ;;  %v14853_v31 = vpop.eup %12512  ;;  %v7250_v3 = vmul.f32 %v12511_v5, %v7207_v43  ;;  %vm7256_vm0 = vweird.f32 %v12511_v5  ;;  %v7244_v11 = vmul.f32 %v14846_v6, %v7243_v27 }
0x23f1   :  { %12514 = vrsqrt.f32 %v7208_v46  ;;  %v7210_v22 = vmul.f32 %v14853_v31, %v14844_v8  ;;  %vm14861_vm11 = vmor %vm7255_vm10, %vm7256_vm0  ;;  %vm7265_vm3 = vweird.f32 %v7208_v46  ;;  %vm7216_vm8 = vweird.f32 %v14853_v31 }
0x23f2   :  { %12516 = vrsqrt.f32 %v7204_v4  ;;  %v7251_v61 = vmul.f32 %v12511_v5, %v7250_v3  ;;  %v7248_v16 = vsel %vm7247_vm14, %v14846_v6, %v7244_v11  ;;  %vm7225_vm9 = vweird.f32 %v7204_v4 }
0x23f3   :  { %v7211_v52 = vmul.f32 %v14853_v31, %v7210_v22  ;;  %v7272_v29 = vmul.f32 %v7248_v16, %v14804_v17 }
0x23f4   :  { %v7187_v40 = vpop.xlane.xlu1 %7186  ;;  %v7252_v7 = vmul.f32 0.5, %v7251_v61 }
0x23f5   :  { %v7199_v14 = vmul.f32 %v7187_v40, %v13066_v15  ;;  %v7212_v21 = vmul.f32 0.5, %v7211_v52  ;;  %v7281_v61 = vmul.f32 %v14871_v33, %v7272_v29 }
0x23f6   :  { %v7253_v26 = vsub.f32 1.5, %v7252_v7 }
0x23f7   :  { %v12515_v13 = vpop.eup %12514  ;;  %v7205_v63 = vadd.f32 1e-05, %v7199_v14  ;;  %v7213_v0 = vsub.f32 1.5, %v7212_v21  ;;  %v7290_v14 = vadd.f32 %v14882_v62, %v7281_v61 }
0x23f8   :  { %v12517_v56 = vpop.eup %12516  ;;  %v7260_v25 = vmul.f32 %v12515_v13, %v7208_v46  ;;  %v7254_v48 = vmul.f32 %v12511_v5, %v7253_v26  ;;  %vm7266_vm13 = vweird.f32 %v12515_v13 }
0x23f9   :  { %v7220_v50 = vmul.f32 %v12517_v56, %v7204_v4  ;;  %12518 = vrsqrt.f32 %v7205_v63  ;;  %vm7267_vm5 = vmor %vm7265_vm3, %vm7266_vm13  ;;  %vm7226_vm7 = vweird.f32 %v12517_v56  ;;  %v7214_v46 = vmul.f32 %v14853_v31, %v7213_v0 }
0x23fa   :  { %v7261_v39 = vmul.f32 %v12515_v13, %v7260_v25  ;;  %v7258_v23 = vsel %vm14861_vm11, %v12511_v5, %v7254_v48  ;;  %vm14876_vm0 = vmor %vm7225_vm9, %vm7226_vm7  ;;  %vm7235_vm12 = vweird.f32 %v7205_v63 }
0x23fb   :  { %v7221_v59 = vmul.f32 %v12517_v56, %v7220_v50  ;;  %v7273_v43 = vmul.f32 %v7258_v23, %v14813_v35  ;;  %vm7217_vm11 = vmor %vm7215_vm2, %vm7216_vm8  ;;  %v7372_v50 = vpop.xlane.xlu2 %7371 }
0x23fc   :  { %v7262_v41 = vmul.f32 0.5, %v7261_v39  ;;  %v7218_v54 = vsel %vm7217_vm11, %v14853_v31, %v7214_v46  ;;  %v7376_v48 = vmul.f32 %v7372_v50, %v13066_v15  ;;  %v11563_v50 = vld [vmem:[%s13244_s16 + $0x88] sm:$0xff] }
0x23fd   :  { %v7222_v53 = vmul.f32 0.5, %v7221_v59  ;;  %v7269_v26 = vmul.f32 %v7218_v54, %v14811_v2 }
0x23fe   :  { %v7263_v34 = vsub.f32 1.5, %v7262_v41  ;;  %v14911_v11 = vsub.f32 %v14589_v47, %v7376_v48 }
0x23ff   :  { %v12519_v12 = vpop.eup %12518  ;;  %v7223_v45 = vsub.f32 1.5, %v7222_v53  ;;  %v7278_v27 = vmul.f32 %v14871_v33, %v7269_v26 }
0x2400   :  { %v7264_v20 = vmul.f32 %v12515_v13, %v7263_v34  ;;  %v7230_v42 = vmul.f32 %v12519_v12, %v7205_v63  ;;  %vm7236_vm10 = vweird.f32 %v12519_v12 }
0x2401   :  { %v7224_v19 = vmul.f32 %v12517_v56, %v7223_v45  ;;  %vm7237_vm13 = vmor %vm7235_vm12, %vm7236_vm10  ;;  %v7287_v52 = vadd.f32 %v14882_v62, %v7278_v27  ;;  %v11565_v27 = vld [vmem:[%s13244_s16 + $0x98] sm:$0xff] }
0x2402   :  { %v7268_v55 = vsel %vm7267_vm5, %v12515_v13, %v7264_v20  ;;  %v7231_v28 = vmul.f32 %v12519_v12, %v7230_v42 }
0x2403   :  { %v7274_v49 = vmul.f32 %v7268_v55, %v14823_v36  ;;  %v7282_v36 = vmul.f32 %v14871_v33, %v7273_v43  ;;  %v7228_v17 = vsel %vm14876_vm0, %v12517_v56, %v7224_v19 }
0x2404   :  { %v7232_v6 = vmul.f32 0.5, %v7231_v28  ;;  %v7270_v8 = vmul.f32 %v7228_v17, %v14825_v38 }
0x2405   :  { %v7283_v35 = vmul.f32 %v14871_v33, %v7274_v49  ;;  %v7291_v40 = vadd.f32 %v14882_v62, %v7282_v36 }
0x2406   :  { %v7233_v3 = vsub.f32 1.5, %v7232_v6  ;;  %v7279_v31 = vmul.f32 %v14871_v33, %v7270_v8 }
0x2407   :  { %v7292_v4 = vadd.f32 %v14882_v62, %v7283_v35 }
0x2408   :  { %v7234_v22 = vmul.f32 %v12519_v12, %v7233_v3  ;;  %v7288_v38 = vadd.f32 %v14882_v62, %v7279_v31 }
0x2409   :  { %7303 = vmatpush.msra.mxu1 %v7292_v4 }
0x240a   :  { %v7238_v7 = vsel %vm7237_vm13, %v12519_v12, %v7234_v22 }
0x240b   :  { %7304 = vmatpush.msra.mxu1 %v7291_v40  ;;  %v7271_v13 = vmul.f32 %v7238_v7, %v14836_v37 }
0x240d   :  { %7305 = vmatpush.msra.mxu1 %v7290_v14  ;;  %v7280_v56 = vmul.f32 %v14871_v33, %v7271_v13 }
0x240f   :  { %v7289_v63 = vadd.f32 %v14882_v62, %v7280_v56 }
0x2411   :  { %7306 = vmatpush.msra.mxu1 %v7289_v63 }
0x2413   :  { %7307 = vmatpush.msra.mxu1 %v7288_v38 }
0x2415   :  { %7308 = vmatpush.msra.mxu1 %v7287_v52  ;;  %v11564_v52 = vld [vmem:[%s13244_s16 + $0x90] sm:$0xff] }
0x2416   :  { %10731 = vmatmul.msk.f32.vlgmr.msra.gmra.mxu1 %vm230_vm6, %v13131_v30  ;;  %v7373_v30 = vsel %vm523_vm1, %v14586_v18, 0.0 }
0x2417   :  { %7480 = vmatpush.bf16.msrb.mxu1 %v11565_v27 }
0x241b   :  { %7481 = vmatpush.bf16.msrb.mxu1 %v11564_v52 }
0x241e   :  { %10732 = vmatmul.msk.f32.gmra.mxu1 %vm230_vm6, %v13121_v57 }
0x241f   :  { %7482 = vmatpush.bf16.msrb.mxu1 %v11563_v50  ;;  %v11889_v50 = vld [vmem:[%s13296_s2 + $0x4] ss:$0 sm:$0xff]  ;;  %s12638_s2 = smov 6  }
0x2420   :  { %s8719_s8 = sld [smem:[%s15271_s0 + %s12638_s2]]  }
0x2493   :  { %v7310_v2 = vpop.f32.mrf.mxu1 }
0x2494   :  { %v7316_v37 = vmul.f32 %v7310_v2, %v13203_v51  ;;  %v7380_v51 = vmul.f32 %v14911_v11, %v14911_v11 }
0x2496   :  { %v7318_v25 = vsel %vm523_vm1, %v7316_v37, 0.0  ;;  %v7382_v21 = vsel %vm523_vm1, %v7380_v51, 0.0 }
0x2497   :  { %7319 = vadd.xlane.f32.xlu1 %v7318_v25 }
0x249b   :  { %v7313_v39 = vpop.f32.mrf.mxu1 }
0x249c   :  { %v7317_v59 = vmul.f32 %v7313_v39, %v13213_v44 }
0x249e   :  { %v7321_v57 = vsel %vm523_vm1, %v7317_v59, 0.0 }
0x249f   :  { %7374 = vadd.xlane.f32.xlu1 %v7373_v30  ;;  %7322 = vadd.xlane.f32.xlu0 %v7321_v57 }
0x24a7   :  { %7383 = vadd.xlane.f32.xlu1 %v7382_v21 }
0x250a   :  { %v7320_v41 = vpop.xlane.xlu1 %7319 }
0x250b   :  { %v7324_v1 = vmul.f32 %v7320_v41, %v13066_v15  ;;  %v11562_v41 = vld [vmem:[%s13244_s16 + $0x80] sm:$0xff]  ;;  %s8744_s16 = sld [smem:[%s15271_s0 + %s12642_s29]]  }
0x250c   :  { %7483 = vmatpush.bf16.msrb.mxu1 %v11562_v41 }
0x250d   :  { %v7326_v44 = vsub.f32 %v7316_v37, %v7324_v1 }
0x250f   :  { %v7328_v53 = vmul.f32 %v7326_v44, %v7326_v44 }
0x2511   :  { %v7330_v23 = vsel %vm523_vm1, %v7328_v53, 0.0 }
0x2512   :  { %v7375_v34 = vpop.xlane.xlu1 %7374  ;;  %7331 = vadd.xlane.f32.xlu0 %v7330_v23  ;;  %v7323_v12 = vpop.xlane.xlu0 %7322 }
0x2513   :  { %v7377_v45 = vmul.f32 %v7375_v34, %v13066_v15  ;;  %v7325_v16 = vmul.f32 %v7323_v12, %v13066_v15 }
0x2515   :  { %v14924_v0 = vsub.f32 %v14586_v18, %v7377_v45  ;;  %v7327_v20 = vsub.f32 %v7317_v59, %v7325_v16 }
0x2517   :  { %v7381_v42 = vmul.f32 %v14924_v0, %v14924_v0  ;;  %v7329_v43 = vmul.f32 %v7327_v20, %v7327_v20 }
0x2519   :  { %v7385_v55 = vsel %vm523_vm1, %v7381_v42, 0.0  ;;  %v7333_v19 = vsel %vm523_vm1, %v7329_v43, 0.0 }
0x251a   :  { %7386 = vadd.xlane.f32.xlu0 %v7385_v55  ;;  %7334 = vadd.xlane.f32.xlu2 %v7333_v19 }
0x2585   :  { %v7332_v28 = vpop.xlane.xlu0 %7331 }
0x2586   :  { %v7336_v49 = vmul.f32 %v7332_v28, %v13066_v15  ;;  %v11887_v28 = vld [vmem:[%s13228_s11 + $0x4] ss:$0 sm:$0xff]  ;;  %s12635_s11 = smov 24  }
0x2587   :  { %s15102_s20 = sld [smem:[%s15271_s0 + %s12635_s11]]  }
0x2588   :  { %v7338_v29 = vadd.f32 1e-05, %v7336_v49 }
0x258a   :  { %12520 = vrsqrt.f32 %v7338_v29  ;;  %vm7346_vm14 = vweird.f32 %v7338_v29 }
0x258d   :  { %v7335_v46 = vpop.xlane.xlu2 %7334  ;;  %v7387_v48 = vpop.xlane.xlu0 %7386 }
0x258e   :  { %v7337_v6 = vmul.f32 %v7335_v46, %v13066_v15  ;;  %v7389_v39 = vmul.f32 %v7387_v48, %v13066_v15 }
0x2590   :  { %v12521_v5 = vpop.eup %12520  ;;  %v7339_v35 = vadd.f32 1e-05, %v7337_v6  ;;  %v7391_v30 = vadd.f32 1e-05, %v7389_v39 }
0x2591   :  { %v7341_v36 = vmul.f32 %v12521_v5, %v7338_v29  ;;  %vm7347_vm6 = vweird.f32 %v12521_v5 }
0x2592   :  { %12522 = vrsqrt.f32 %v7339_v35  ;;  %vm7348_vm3 = vmor %vm7346_vm14, %vm7347_vm6  ;;  %vm7356_vm7 = vweird.f32 %v7339_v35  ;;  %vm7408_vm11 = vweird.f32 %v7391_v30 }
0x2593   :  { %v7342_v17 = vmul.f32 %v12521_v5, %v7341_v36 }
0x2595   :  { %v7343_v3 = vmul.f32 0.5, %v7342_v17 }
0x2597   :  { %v7344_v4 = vsub.f32 1.5, %v7343_v3  ;;  %v11567_v3 = vld [vmem:[%s13274_s26 + $0x88] sm:$0xff] }
0x2598   :  { %v12523_v61 = vpop.eup %12522 }
0x2599   :  { %v7345_v54 = vmul.f32 %v12521_v5, %v7344_v4  ;;  %v7351_v22 = vmul.f32 %v12523_v61, %v7339_v35  ;;  %vm7357_vm5 = vweird.f32 %v12523_v61  ;;  %v11888_v4 = vld [vmem:[%s13251_s21 + $0x4] ss:$0 sm:$0xff]  ;;  %s12636_s21 = smov 27  }
0x259a   :  { %vm7358_vm8 = vmor %vm7356_vm7, %vm7357_vm5  ;;  %s15153_s24 = sld [smem:[%s15271_s0 + %s12636_s21]]  }
0x259b   :  { %v7352_v40 = vmul.f32 %v12523_v61, %v7351_v22  ;;  %v7349_v8 = vsel %vm7348_vm3, %v12521_v5, %v7345_v54  ;;  %v11566_v54 = vld [vmem:[%s13274_s26 + $0x80] sm:$0xff]  ;;  %vm7654_vm3 = vcmask 785408  }
0x259c   :  { %v7360_v13 = vmul.f32 %v7349_v8, %v7326_v44 }
0x259d   :  { %v7353_v7 = vmul.f32 0.5, %v7352_v40 }
0x259e   :  { %v7362_v63 = vmul.f32 %v14871_v33, %v7360_v13 }
0x259f   :  { %v7354_v14 = vsub.f32 1.5, %v7353_v7 }
0x25a0   :  { %v7364_v2 = vadd.f32 %v14882_v62, %v7362_v63 }
0x25a1   :  { %v7355_v26 = vmul.f32 %v12523_v61, %v7354_v14 }
0x25a3   :  { %v7359_v56 = vsel %vm7358_vm8, %v12523_v61, %v7355_v26 }
0x25a4   :  { %v7361_v31 = vmul.f32 %v7359_v56, %v7327_v20  ;;  %v11886_v20 = vld [vmem:[%s13210_s6 + $0x4] ss:$0 sm:$0xff] }
0x25a6   :  { %v7363_v38 = vmul.f32 %v14871_v33, %v7361_v31  ;;  %v7384_v33 = vpop.xlane.xlu1 %7383 }
0x25a8   :  { %v7365_v37 = vadd.f32 %v14882_v62, %v7363_v38  ;;  %v7388_v62 = vmul.f32 %v7384_v33, %v13066_v15 }
0x25aa   :  { %v11840_v25 = vpack.i.bf16 %v7365_v37, %v7364_v2  ;;  %v7390_v59 = vadd.f32 1e-05, %v7388_v62 }
0x25ac   :  { %11841 = vrot.lane.b32.xlu2 %v11840_v25, %s12616_s5  ;;  %12524 = vrsqrt.f32 %v7390_v59  ;;  %vm7398_vm2 = vweird.f32 %v7390_v59 }
0x25ad   :  { %12526 = vrsqrt.f32 %v7391_v30 }
0x25b2   :  { %v12525_v57 = vpop.eup %12524 }
0x25b3   :  { %v7393_v51 = vmul.f32 %v12525_v57, %v7390_v59  ;;  %vm7399_vm9 = vweird.f32 %v12525_v57 }
0x25b4   :  { %7628 = vrot.lane.b32.xlu2 %v13757_v60, %s12614_s30  ;;  %v12527_v60 = vpop.eup %12526  ;;  %vm7400_vm10 = vmor %vm7398_vm2, %vm7399_vm9 }
0x25b5   :  { %v7403_v21 = vmul.f32 %v12527_v60, %v7391_v30  ;;  %vm7409_vm0 = vweird.f32 %v12527_v60 }
0x25b6   :  { %vm7410_vm12 = vmor %vm7408_vm11, %vm7409_vm0 }
0x25b7   :  { %v7404_v1 = vmul.f32 %v12527_v60, %v7403_v21 }
0x25b9   :  { %v7405_v44 = vmul.f32 0.5, %v7404_v1 }
0x25bb   :  { %v7406_v23 = vsub.f32 1.5, %v7405_v44 }
0x25bc   :  { %7630 = vrot.lane.b32.xlu2 %v13754_v10, %s12614_s30  ;;  %v7394_v10 = vmul.f32 %v12525_v57, %v7393_v51  ;;  %s12633_s30 = smov 23  }
0x25bd   :  { %v7407_v12 = vmul.f32 %v12527_v60, %v7406_v23  ;;  %s14986_s17 = sld [smem:[%s15271_s0 + %s12633_s30]]  }
0x25bf   :  { %v7411_v16 = vsel %vm7410_vm12, %v12527_v60, %v7407_v12 }
0x25c0   :  { %v7413_v43 = vmul.f32 %v7411_v16, %v14924_v0  ;;  %v11568_v0 = vld [vmem:[%s13274_s26 + $0x90] sm:$0xff] }
0x25c2   :  { %v7418_v19 = vmul.f32 %v11886_v20, %v7413_v43 }
0x25c3   :  { %v11585_v23 = vld [vmem:[%s14986_s17 + $0x74] sm:$0xf0]  ;;  %v10849_v12 = vld [vmem:[%s14986_s17 + $0x78] sm:$0xf0]  ;;  %v11583_v16 = vld [vmem:[%s14986_s17 + $0x64] sm:$0xf0] }
0x25c4   :  { %7636 = vrot.lane.b32.xlu2 %v14173_v9, %s12632_s4  ;;  %v7395_v9 = vmul.f32 0.5, %v7394_v10  ;;  %v7423_v5 = vadd.f32 %v11887_v28, %v7418_v19 }
0x25c6   :  { %v7396_v53 = vsub.f32 1.5, %v7395_v9 }
0x25c8   :  { %v7397_v34 = vmul.f32 %v12525_v57, %v7396_v53 }
0x25ca   :  { %v7401_v45 = vsel %vm7400_vm10, %v12525_v57, %v7397_v34  ;;  %vm8708_vm10 = vcmask 1024  }
0x25cb   :  { %v7412_v42 = vmul.f32 %v7401_v45, %v14911_v11  ;;  %v11569_v11 = vld [vmem:[%s13274_s26 + $0x98] sm:$0xff]  ;;  %v10839_v45 = vld [vmem:[%s14986_s17 + $0x60] sm:$0xf]  ;;  %s12637_s26 = smov 26  }
0x25cc   :  { %7548 = vmatpush.bf16.msrb.mxu2 %v11569_v11  ;;  %v10840_v43 = vor.u32 %v11583_v16, %v10839_v45  ;;  %s15182_s1 = sld [smem:[%s15271_s0 + %s12637_s26]]  }
0x25cd   :  { %v7417_v55 = vmul.f32 %v11886_v20, %v7412_v42  ;;  %v11582_v20 = vld [vmem:[%s14986_s17 + $0x64] sm:$0xf] }
0x25cf   :  { %v7422_v29 = vadd.f32 %v11887_v28, %v7417_v55  ;;  %v10841_v55 = vld [vmem:[%s14986_s17 + $0x68] sm:$0xf0] }
0x25d0   :  { %7549 = vmatpush.bf16.msrb.mxu2 %v11568_v0  ;;  %v10844_v28 = vor.u32 %v11582_v20, %v10841_v55  ;;  %v10791_v20 = vld [vmem:[%s14986_s17] sm:$0xf] }
0x25d4   :  { %7550 = vmatpush.bf16.msrb.mxu2 %v11567_v3  ;;  %v10823_v3 = vld [vmem:[%s14986_s17 + $0x40] sm:$0xf] }
0x25d8   :  { %7551 = vmatpush.bf16.msrb.mxu2 %v11566_v54 }
0x2606   :  { %v11842_v49 = vpop.permute.xlu2 %11841 }
0x2607   :  { %v11844_v46 = vunpack.i.h.bf16 %v11842_v49  ;;  %v11843_v6 = vunpack.i.l.bf16 %v11842_v49 }
0x2609   :  { %v7432_v35 = vsel %vm523_vm1, %v7422_v29, %v11843_v6  ;;  %v7433_v36 = vsel %vm523_vm1, %v7423_v5, %v11844_v46  ;;  %v10831_v29 = vld [vmem:[%s14986_s17 + $0x50] sm:$0xf]  ;;  %v11581_v46 = vld [vmem:[%s14986_s17 + $0x54] sm:$0xf0]  ;;  %v11580_v6 = vld [vmem:[%s14986_s17 + $0x54] sm:$0xf] }
0x260a   :  { %v7434_v17 = vpack.c.bf16 %v7433_v36, %v7432_v35  ;;  %v10832_v35 = vor.u32 %v11581_v46, %v10831_v29  ;;  %v10833_v36 = vld [vmem:[%s14986_s17 + $0x58] sm:$0xf0] }
0x260c   :  { %10760 = vmatmul.msk.bf16.vlgmr.msrb.gmra.mxu1 %vm504_vm15, %v7434_v17  ;;  %v10836_v17 = vor.u32 %v11580_v6, %v10833_v36 }
0x260e   :  { %v15000_v5 = vpop.permute.xlu2 %7628 }
0x2689   :  { %v7485_v61 = vpop.f32.mrf.mxu1 }
0x268a   :  { %v7486_v22 = vadd.f32 %v11888_v4, %v7485_v61  ;;  %v11578_v61 = vld [vmem:[%s14986_s17 + $0x44] sm:$0xf] }
0x268c   :  { %v7490_v40 = vsub.f32 0.0, %v7486_v22 }
0x268e   :  { %v7492_v8 = vmul.f32 1.442695, %v7490_v40 }
0x2690   :  { %12528 = vpow2.f32 %v7492_v8 }
0x2691   :  { %v7487_v7 = vpop.f32.mrf.mxu1 }
0x2692   :  { %v7488_v14 = vadd.f32 %v11888_v4, %v7487_v7  ;;  %v11579_v4 = vld [vmem:[%s14986_s17 + $0x44] sm:$0xf0] }
0x2693   :  { %v10824_v54 = vor.u32 %v11579_v4, %v10823_v3  ;;  %v15302_v4 = vld [vmem:[#allocation3_spill] sm:$0xff] }
0x2694   :  { %v7491_v13 = vsub.f32 0.0, %v7488_v14 }
0x2696   :  { %v7494_v26 = vmul.f32 1.442695, %v7491_v13  ;;  %v12529_v56 = vpop.eup %12528  ;;  %v11577_v13 = vld [vmem:[%s14986_s17 + $0x34] sm:$0xf0] }
0x2697   :  { %v7496_v31 = vadd.f32 1.0, %v12529_v56 }
0x2698   :  { %12530 = vpow2.f32 %v7494_v26 }
0x2699   :  { %12532 = vrcp.f32 %v7496_v31  ;;  %v11576_v31 = vld [vmem:[%s14986_s17 + $0x34] sm:$0xf] }
0x269e   :  { %v12531_v63 = vpop.eup %12530 }
0x269f   :  { %v7497_v27 = vadd.f32 1.0, %v12531_v63  ;;  %v12533_v38 = vpop.eup %12532  ;;  %v10817_v63 = vld [vmem:[%s14986_s17 + $0x38] sm:$0xf0] }
0x26a0   :  { %v7500_v2 = vmul.f32 %v12533_v38, %v7486_v22  ;;  %v10825_v22 = vld [vmem:[%s14986_s17 + $0x48] sm:$0xf0]  ;;  %v15015_v38 = vpop.permute.xlu2 %7630 }
0x26a1   :  { %12534 = vrcp.f32 %v7497_v27  ;;  %v10828_v7 = vor.u32 %v11578_v61, %v10825_v22  ;;  %v10820_v27 = vor.u32 %v11576_v31, %v10817_v63 }
0x26a7   :  { %v12535_v52 = vpop.eup %12534 }
0x26a8   :  { %v7501_v37 = vmul.f32 %v12535_v52, %v7488_v14  ;;  %v7637_v55 = vpop.permute.xlu2 %7636 }
0x26aa   :  { %v7502_v25 = vpack.c.bf16 %v7501_v37, %v7500_v2  ;;  %v10807_v2 = vld [vmem:[%s14986_s17 + $0x20] sm:$0xf]  ;;  %v11575_v37 = vld [vmem:[%s14986_s17 + $0x24] sm:$0xf0] }
0x26ac   :  { %10786 = vmatmul.msk.bf16.vlgmr.msrb.gmra.mxu2 %vm504_vm15, %v7502_v25  ;;  %v11574_v25 = vld [vmem:[%s14986_s17 + $0x24] sm:$0xf] }
0x272f   :  { %v7553_v33 = vpop.f32.mrf.mxu2 }
0x2730   :  { %v7554_v48 = vadd.f32 %v11889_v50, %v7553_v33  ;;  %v10808_v33 = vor.u32 %v11575_v37, %v10807_v2  ;;  %v10879_v37 = vld [vmem:[%s14986_s17 + $0xb0] sm:$0xf] }
0x2732   :  { %v7562_v62 = vsel %vm523_vm1, %v7554_v48, 0.0 }
0x2733   :  { %7563 = vadd.xlane.f32.xlu1 %v7562_v62 }
0x2737   :  { %v7555_v39 = vpop.f32.mrf.mxu2 }
0x2738   :  { %v7556_v59 = vadd.f32 %v11889_v50, %v7555_v39 }
0x273a   :  { %v7565_v30 = vsel %vm523_vm1, %v7556_v59, 0.0 }
0x273b   :  { %7566 = vadd.xlane.f32.xlu0 %v7565_v30 }
0x27a6   :  { %v7564_v57 = vpop.xlane.xlu1 %7563 }
0x27a7   :  { %v7568_v60 = vmul.f32 %v7564_v57, %v13066_v15  ;;  %v11890_v57 = vld [vmem:[%s13330_s10 + $0x4] ss:$0 sm:$0xff]  ;;  %s12639_s10 = smov 28  }
0x27a8   :  { %s8741_s15 = sld [smem:[%s15271_s0 + %s12639_s10]]  }
0x27a9   :  { %v14966_v51 = vsub.f32 %v7554_v48, %v7568_v60  ;;  %v10809_v48 = vld [vmem:[%s14986_s17 + $0x28] sm:$0xf0]  ;;  %v10799_v60 = vld [vmem:[%s14986_s17 + $0x10] sm:$0xf] }
0x27aa   :  { %v10812_v39 = vor.u32 %v11574_v25, %v10809_v48  ;;  %v11593_v25 = vld [vmem:[%s14986_s17 + $0xb4] sm:$0xf0]  ;;  %v10881_v48 = vld [vmem:[%s14986_s17 + $0xb8] sm:$0xf0] }
0x27ab   :  { %v7572_v21 = vmul.f32 %v14966_v51, %v14966_v51 }
0x27ad   :  { %v7574_v41 = vsel %vm523_vm1, %v7572_v21, 0.0  ;;  %v11573_v21 = vld [vmem:[%s14986_s17 + $0x14] sm:$0xf0] }
0x27ae   :  { %v7567_v10 = vpop.xlane.xlu0 %7566  ;;  %7575 = vadd.xlane.f32.xlu1 %v7574_v41 }
0x27af   :  { %v7569_v1 = vmul.f32 %v7567_v10, %v13066_v15 }
0x27b1   :  { %v14972_v9 = vsub.f32 %v7556_v59, %v7569_v1  ;;  %v10800_v1 = vor.u32 %v11573_v21, %v10799_v60  ;;  %v10873_v60 = vld [vmem:[%s14986_s17 + $0xa8] sm:$0xf0] }
0x27b3   :  { %v7573_v44 = vmul.f32 %v14972_v9, %v14972_v9 }
0x27b5   :  { %v7577_v53 = vsel %vm523_vm1, %v7573_v44, 0.0  ;;  %v11572_v44 = vld [vmem:[%s14986_s17 + $0x14] sm:$0xf] }
0x27b6   :  { %7578 = vadd.xlane.f32.xlu0 %v7577_v53  ;;  %v10801_v53 = vld [vmem:[%s14986_s17 + $0x18] sm:$0xf0] }
0x27c7   :  { %7620 = vrot.lane.b32.xlu1 %v13352_v58, %s12616_s5  ;;  %v10847_v58 = vld [vmem:[%s14986_s17 + $0x70] sm:$0xf] }
0x27c8   :  { %v10848_v34 = vor.u32 %v11585_v23, %v10847_v58  ;;  %v11891_v23 = vld [vmem:[%s13335_s18 + $0x4] ss:$0 sm:$0xff]  ;;  %s12640_s18 = smov 29  }
0x27c9   :  { %s15243_s9 = sld [smem:[%s15271_s0 + %s12640_s18]]  }
0x27ca   :  { %7622 = vrot.lane.b32.xlu0 %v13349_v32, %s12616_s5  ;;  %v11584_v32 = vld [vmem:[%s14986_s17 + $0x74] sm:$0xf]  ;;  %7838 = vmatpush.bf16.msrb.mxu3 %v10848_v34 }
0x27ce   :  { %7839 = vmatpush.bf16.msrb.mxu3 %v10840_v43  ;;  %v11570_v43 = vld [vmem:[%s14986_s17 + $0x4] sm:$0xf] }
0x27d2   :  { %7638 = vrot.lane.b32.xlu0 %v14170_v24, %s12632_s4  ;;  %v10852_v24 = vor.u32 %v11584_v32, %v10849_v12  ;;  %7840 = vmatpush.bf16.msrb.mxu3 %v10832_v35  ;;  %v10804_v32 = vor.u32 %v11572_v44, %v10801_v53  ;;  %v11588_v53 = vld [vmem:[%s14986_s17 + $0x94] sm:$0xf] }
0x27d4   :  { %7866 = vmatpush.bf16.msrb.mxu0 %v10852_v24  ;;  %v15301_v24 = vld [vmem:[#allocation4_spill] sm:$0xff] }
0x27d6   :  { %7841 = vmatpush.bf16.msrb.mxu3 %v10824_v54 }
0x27d8   :  { %7867 = vmatpush.bf16.msrb.mxu0 %v10844_v28 }
0x27dc   :  { %7868 = vmatpush.bf16.msrb.mxu0 %v10836_v17 }
0x27e0   :  { %7869 = vmatpush.bf16.msrb.mxu0 %v10828_v7 }
0x27e4   :  { %7870 = vmatpush.bf16.msrb.mxu0 %v10820_v27 }
0x27e8   :  { %7871 = vmatpush.bf16.msrb.mxu0 %v10812_v39  ;;  %v10871_v39 = vld [vmem:[%s14986_s17 + $0xa0] sm:$0xf] }
0x27ec   :  { %7872 = vmatpush.bf16.msrb.mxu0 %v10804_v32 }
0x2821   :  { %v7576_v42 = vpop.xlane.xlu1 %7575 }
0x2822   :  { %v7580_v19 = vmul.f32 %v7576_v42, %v13066_v15  ;;  %v11571_v42 = vld [vmem:[%s14986_s17 + $0x4] sm:$0xf0] }
0x2823   :  { %v10792_v28 = vor.u32 %v11571_v42, %v10791_v20 }
0x2824   :  { %v7582_v49 = vadd.f32 1e-05, %v7580_v19 }
0x2826   :  { %12536 = vrsqrt.f32 %v7582_v49  ;;  %vm7590_vm6 = vweird.f32 %v7582_v49 }
0x2829   :  { %v7579_v11 = vpop.xlane.xlu0 %7578 }
0x282a   :  { %v7581_v0 = vmul.f32 %v7579_v11, %v13066_v15  ;;  %v10815_v15 = vld [vmem:[%s14986_s17 + $0x30] sm:$0xf] }
0x282b   :  { %v10816_v56 = vor.u32 %v11577_v13, %v10815_v15 }
0x282c   :  { %v12537_v40 = vpop.eup %12536  ;;  %v15008_v8 = vadd.f32 1e-05, %v7581_v0 }
0x282d   :  { %v7585_v14 = vmul.f32 %v12537_v40, %v7582_v49  ;;  %7842 = vmatpush.bf16.msrb.mxu3 %v10816_v56  ;;  %vm7591_vm13 = vweird.f32 %v12537_v40  ;;  %v10793_v49 = vld [vmem:[%s14986_s17 + $0x8] sm:$0xf0] }
0x282e   :  { %12538 = vrsqrt.f32 %v15008_v8  ;;  %vm7592_vm14 = vmor %vm7590_vm6, %vm7591_vm13  ;;  %v10796_v35 = vor.u32 %v11570_v43, %v10793_v49  ;;  %vm7600_vm7 = vweird.f32 %v15008_v8 }
0x282f   :  { %v7586_v26 = vmul.f32 %v12537_v40, %v7585_v14 }
0x2830   :  { %7873 = vmatpush.bf16.msrb.mxu0 %v10796_v35 }
0x2831   :  { %v7587_v52 = vmul.f32 0.5, %v7586_v26  ;;  %7843 = vmatpush.bf16.msrb.mxu3 %v10808_v33  ;;  %v10880_v33 = vor.u32 %v11593_v25, %v10879_v37 }
0x2833   :  { %v7588_v50 = vsub.f32 1.5, %v7587_v52  ;;  %7856 = vmatpush.bf16.msra.mxu1 %v10880_v33 }
0x2834   :  { %v12539_v62 = vpop.eup %12538 }
0x2835   :  { %v7589_v59 = vmul.f32 %v12537_v40, %v7588_v50  ;;  %v7595_v30 = vmul.f32 %v12539_v62, %v15008_v8  ;;  %7844 = vmatpush.bf16.msrb.mxu3 %v10800_v1  ;;  %vm7601_vm5 = vweird.f32 %v12539_v62  ;;  %v11592_v50 = vld [vmem:[%s14986_s17 + $0xb4] sm:$0xf]  ;;  %v11589_v1 = vld [vmem:[%s14986_s17 + $0x94] sm:$0xf0] }
0x2836   :  { %vm7602_vm8 = vmor %vm7600_vm7, %vm7601_vm5 }
0x2837   :  { %v7593_v41 = vsel %vm7592_vm14, %v12537_v40, %v7589_v59  ;;  %v7596_v10 = vmul.f32 %v12539_v62, %v7595_v30  ;;  %v11591_v59 = vld [vmem:[%s14986_s17 + $0xa4] sm:$0xf0]  ;;  %v11590_v30 = vld [vmem:[%s14986_s17 + $0xa4] sm:$0xf] }
0x2838   :  { %v7604_v58 = vmul.f32 %v7593_v41, %v14966_v51  ;;  %v10876_v21 = vor.u32 %v11590_v30, %v10873_v60 }
0x2839   :  { %v7597_v34 = vmul.f32 0.5, %v7596_v10  ;;  %v7621_v12 = vpop.permute.xlu1 %7620  ;;  %7845 = vmatpush.bf16.msrb.mxu3 %v10792_v28  ;;  %v10863_v10 = vld [vmem:[%s14986_s17 + $0x90] sm:$0xf] }
0x283a   :  { %v7650_v45 = vsel %vm523_vm1, %v15301_v24, %v7621_v12  ;;  %v7609_v16 = vmul.f32 %v11890_v57, %v7604_v58  ;;  %v10864_v44 = vor.u32 %v11589_v1, %v10863_v10  ;;  %v10865_v58 = vld [vmem:[%s14986_s17 + $0x98] sm:$0xf0]  ;;  %v11587_v12 = vld [vmem:[%s14986_s17 + $0x84] sm:$0xf0]  ;;  %v11586_v24 = vld [vmem:[%s14986_s17 + $0x84] sm:$0xf] }
0x283b   :  { %v7598_v19 = vsub.f32 1.5, %v7597_v34  ;;  %v7652_v51 = vsel %vm504_vm15, %v7650_v45, %v15000_v5  ;;  %v10855_v34 = vld [vmem:[%s14986_s17 + $0x80] sm:$0xf] }
0x283c   :  { %v7623_v29 = vpop.permute.xlu0 %7622  ;;  %v7614_v46 = vadd.f32 %v11891_v23, %v7609_v16  ;;  %v7655_v6 = vsel %vm7654_vm3, %v7652_v51, %v7637_v55  ;;  %v10856_v45 = vor.u32 %v11587_v12, %v10855_v34  ;;  %v10857_v16 = vld [vmem:[%s14986_s17 + $0x88] sm:$0xf0] }
0x283d   :  { %v7599_v36 = vmul.f32 %v12539_v62, %v7598_v19  ;;  %v7659_v17 = vsub.f32 0.0, %v7655_v6  ;;  %v7651_v61 = vsel %vm523_vm1, %v15302_v4, %v7623_v29  ;;  %v10860_v42 = vor.u32 %v11586_v24, %v10857_v16 }
0x283e   :  { %v7616_v11 = vadd.f32 %v7614_v46, %v14589_v47  ;;  %v7653_v22 = vsel %vm504_vm15, %v7651_v61, %v15015_v38 }
0x283f   :  { %v7603_v0 = vsel %vm7602_vm8, %v12539_v62, %v7599_v36  ;;  %v7663_v5 = vmul.f32 1.442695, %v7659_v17  ;;  %v10884_v62 = vor.u32 %v11592_v50, %v10881_v48 }
0x2840   :  { %v7605_v3 = vmul.f32 %v7603_v0, %v14972_v9  ;;  %7644 = vrot.lane.b32.xlu1 %v7616_v11, %s12616_s5 }
0x2841   :  { %12540 = vpow2.f32 %v7663_v5  ;;  %7884 = vmatpush.bf16.msra.mxu2 %v10884_v62 }
0x2842   :  { %v7610_v54 = vmul.f32 %v11890_v57, %v7605_v3  ;;  %v10872_v57 = vor.u32 %v11591_v59, %v10871_v39 }
0x2844   :  { %v7639_v40 = vpop.permute.xlu0 %7638  ;;  %v7615_v8 = vadd.f32 %v11891_v23, %v7610_v54  ;;  %7857 = vmatpush.bf16.msra.mxu1 %v10872_v57  ;;  %v10868_v23 = vor.u32 %v11588_v53, %v10865_v58 }
0x2845   :  { %v7656_v7 = vsel %vm7654_vm3, %v7653_v22, %v7639_v40  ;;  %7885 = vmatpush.bf16.msra.mxu2 %v10876_v21 }
0x2846   :  { %v7661_v14 = vsub.f32 0.0, %v7656_v7  ;;  %v7617_v15 = vadd.f32 %v7615_v8, %v14586_v18 }
0x2847   :  { %v12541_v9 = vpop.eup %12540 }
0x2848   :  { %v7667_v13 = vmul.f32 1.442695, %v7661_v14  ;;  %7646 = vrot.lane.b32.xlu2 %v7617_v15, %s12616_s5  ;;  %v7671_v26 = vadd.f32 1.0, %v12541_v9  ;;  %7858 = vmatpush.bf16.msra.mxu1 %v10864_v44  ;;  %s12634_s5 = smov 25  }
0x2849   :  { %7886 = vmatpush.bf16.msra.mxu2 %v10868_v23  ;;  %s15074_s6 = sld [smem:[%s15271_s0 + %s12634_s5]]  }
0x284a   :  { %12542 = vpow2.f32 %v7667_v13 }
0x284b   :  { %12544 = vrcp.f32 %v7671_v26 }
0x284c   :  { %7859 = vmatpush.bf16.msra.mxu1 %v10856_v45 }
0x284d   :  { %7887 = vmatpush.bf16.msra.mxu2 %v10860_v42 }
0x284f   :  { %v11609_v0 = vld [vmem:[%s15074_s6 + $0x74] sm:$0xf0]  ;;  %v11608_v3 = vld [vmem:[%s15074_s6 + $0x74] sm:$0xf]  ;;  %v10947_v4 = vld [vmem:[%s15074_s6 + $0x78] sm:$0xf0] }
0x2850   :  { %v12543_v56 = vpop.eup %12542  ;;  %v10950_v61 = vor.u32 %v11608_v3, %v10947_v4  ;;  %v10937_v54 = vld [vmem:[%s15074_s6 + $0x60] sm:$0xf]  ;;  %v11607_v22 = vld [vmem:[%s15074_s6 + $0x64] sm:$0xf0]  ;;  %v11606_v40 = vld [vmem:[%s15074_s6 + $0x64] sm:$0xf] }
0x2851   :  { %v7673_v31 = vadd.f32 1.0, %v12543_v56  ;;  %v12545_v63 = vpop.eup %12544  ;;  %v10938_v8 = vor.u32 %v11607_v22, %v10937_v54  ;;  %v11009_v15 = vld [vmem:[%s15074_s6 + $0xf0] sm:$0xf]  ;;  %v11625_v13 = vld [vmem:[%s15074_s6 + $0xf4] sm:$0xf0] }
0x2852   :  { %v7679_v38 = vmul.f32 %v12545_v63, %v7655_v6  ;;  %8146 = vmatpush.bf16.msrb.mxu2 %v10950_v61  ;;  %v11624_v9 = vld [vmem:[%s15074_s6 + $0xf4] sm:$0xf]  ;;  %v11010_v26 = vor.u32 %v11625_v13, %v11009_v15  ;;  %v11011_v56 = vld [vmem:[%s15074_s6 + $0xf8] sm:$0xf0]  ;;  %v10929_v63 = vld [vmem:[%s15074_s6 + $0x50] sm:$0xf] }
0x2853   :  { %12546 = vrcp.f32 %v7673_v31  ;;  %v11014_v31 = vor.u32 %v11624_v9, %v11011_v56  ;;  %v11001_v25 = vld [vmem:[%s15074_s6 + $0xe0] sm:$0xf]  ;;  %v11623_v50 = vld [vmem:[%s15074_s6 + $0xe4] sm:$0xf0]  ;;  %v11622_v33 = vld [vmem:[%s15074_s6 + $0xe4] sm:$0xf] }
0x2854   :  { %8132 = vmatpush.bf16.msrb.mxu1 %v11010_v26  ;;  %v11002_v48 = vor.u32 %v11623_v50, %v11001_v25  ;;  %v11003_v62 = vld [vmem:[%s15074_s6 + $0xe8] sm:$0xf0]  ;;  %v10921_v59 = vld [vmem:[%s15074_s6 + $0x40] sm:$0xf]  ;;  %v11603_v30 = vld [vmem:[%s15074_s6 + $0x44] sm:$0xf0] }
0x2855   :  { %8160 = vmatpush.bf16.msra.mxu0 %v11014_v31  ;;  %v11006_v39 = vor.u32 %v11622_v33, %v11003_v62  ;;  %v11602_v57 = vld [vmem:[%s15074_s6 + $0x44] sm:$0xf]  ;;  %v10922_v60 = vor.u32 %v11603_v30, %v10921_v59  ;;  %v10923_v21 = vld [vmem:[%s15074_s6 + $0x48] sm:$0xf0]  ;;  %v10993_v10 = vld [vmem:[%s15074_s6 + $0xd0] sm:$0xf] }
0x2856   :  { %v11621_v1 = vld [vmem:[%s15074_s6 + $0xd4] sm:$0xf0]  ;;  %v11620_v44 = vld [vmem:[%s15074_s6 + $0xd4] sm:$0xf]  ;;  %v10995_v58 = vld [vmem:[%s15074_s6 + $0xd8] sm:$0xf0] }
0x2857   :  { %v10994_v53 = vor.u32 %v11621_v1, %v10993_v10  ;;  %v10998_v23 = vor.u32 %v11620_v44, %v10995_v58  ;;  %v11601_v34 = vld [vmem:[%s15074_s6 + $0x34] sm:$0xf0]  ;;  %v11600_v12 = vld [vmem:[%s15074_s6 + $0x34] sm:$0xf]  ;;  %v10915_v45 = vld [vmem:[%s15074_s6 + $0x38] sm:$0xf0] }
0x2858   :  { %8133 = vmatpush.bf16.msrb.mxu1 %v11002_v48  ;;  %v10918_v16 = vor.u32 %v11600_v12, %v10915_v45  ;;  %v11619_v42 = vld [vmem:[%s15074_s6 + $0xc4] sm:$0xf0]  ;;  %v10897_v61 = vld [vmem:[%s15074_s6 + $0x10] sm:$0xf]  ;;  %v11597_v54 = vld [vmem:[%s15074_s6 + $0x14] sm:$0xf0] }
0x2859   :  { %v12547_v27 = vpop.eup %12546  ;;  %8161 = vmatpush.bf16.msra.mxu0 %v11006_v39  ;;  %v11596_v22 = vld [vmem:[%s15074_s6 + $0x14] sm:$0xf]  ;;  %v11615_v15 = vld [vmem:[%s15074_s6 + $0xa4] sm:$0xf0]  ;;  %v11614_v13 = vld [vmem:[%s15074_s6 + $0xa4] sm:$0xf] }
0x285a   :  { %v7681_v52 = vmul.f32 %v12547_v27, %v7656_v7  ;;  %v10939_v7 = vld [vmem:[%s15074_s6 + $0x68] sm:$0xf0]  ;;  %v11605_v27 = vld [vmem:[%s15074_s6 + $0x54] sm:$0xf0]  ;;  %v10961_v62 = vld [vmem:[%s15074_s6 + $0x90] sm:$0xf] }
0x285b   :  { %v10942_v14 = vor.u32 %v11606_v40, %v10939_v7  ;;  %v10898_v40 = vor.u32 %v11597_v54, %v10897_v61  ;;  %v10971_v26 = vld [vmem:[%s15074_s6 + $0xa8] sm:$0xf0]  ;;  %v11613_v39 = vld [vmem:[%s15074_s6 + $0x94] sm:$0xf0]  ;;  %v11612_v59 = vld [vmem:[%s15074_s6 + $0x94] sm:$0xf] }
0x285c   :  { %v7683_v2 = vpack.c.bf16 %v7681_v52, %v7679_v38  ;;  %v11604_v38 = vld [vmem:[%s15074_s6 + $0x54] sm:$0xf]  ;;  %v10930_v52 = vor.u32 %v11605_v27, %v10929_v63  ;;  %8134 = vmatpush.bf16.msrb.mxu1 %v10994_v53  ;;  %v10974_v31 = vor.u32 %v11614_v13, %v10971_v26  ;;  %v10889_v63 = vld [vmem:[%s15074_s6] sm:$0xf]  ;;  %v11595_v27 = vld [vmem:[%s15074_s6 + $0x4] sm:$0xf0]  ;;  %v10962_v30 = vor.u32 %v11613_v39, %v10961_v62 }
0x285d   :  { %8147 = vmatpush.bf16.msrb.mxu2 %v10942_v14  ;;  %8162 = vmatpush.bf16.msra.mxu0 %v10998_v23  ;;  %v10969_v14 = vld [vmem:[%s15074_s6 + $0xa0] sm:$0xf]  ;;  %v10890_v25 = vor.u32 %v11595_v27, %v10889_v63  ;;  %v10891_v50 = vld [vmem:[%s15074_s6 + $0x8] sm:$0xf0]  ;;  %v11611_v53 = vld [vmem:[%s15074_s6 + $0x84] sm:$0xf0] }
0x285e   :  { %7846 = vmatmul.bf16.vlgmr.msrb.gmra.mxu3 %v7683_v2  ;;  %7874 = vmatmul.bf16.vlgmr.msrb.gmra.mxu0 %v7683_v2  ;;  %v10931_v2 = vld [vmem:[%s15074_s6 + $0x58] sm:$0xf0]  ;;  %v10970_v9 = vor.u32 %v11615_v15, %v10969_v14  ;;  %v10953_v44 = vld [vmem:[%s15074_s6 + $0x80] sm:$0xf]  ;;  %v11073_v13 = vld [vmem:[%s15153_s24 + $0x70] sm:$0xf] }
0x285f   :  { %v10934_v37 = vor.u32 %v11604_v38, %v10931_v2  ;;  %v11594_v38 = vld [vmem:[%s15074_s6 + $0x4] sm:$0xf]  ;;  %v10954_v23 = vor.u32 %v11611_v53, %v10953_v44  ;;  %v11137_v26 = vld [vmem:[%s15153_s24 + $0xf0] sm:$0xf]  ;;  %v11640_v63 = vld [vmem:[%s15153_s24 + $0x74] sm:$0xf] }
0x2860   :  { %v10894_v48 = vor.u32 %v11594_v38, %v10891_v50  ;;  %v11075_v27 = vld [vmem:[%s15153_s24 + $0x78] sm:$0xf0]  ;;  %v11065_v50 = vld [vmem:[%s15153_s24 + $0x60] sm:$0xf]  ;;  %v11655_v39 = vld [vmem:[%s15153_s24 + $0xe4] sm:$0xf0] }
0x2861   :  { %8148 = vmatpush.bf16.msrb.mxu2 %v10934_v37  ;;  %v11637_v44 = vld [vmem:[%s15153_s24 + $0x54] sm:$0xf0]  ;;  %v11121_v53 = vld [vmem:[%s15153_s24 + $0xd0] sm:$0xf] }
0x28a2   :  { %v7647_v41 = vpop.permute.xlu2 %7646 }
0x28a3   :  { %v7658_v32 = vsel %vm523_vm1, %v14586_v18, %v7647_v41  ;;  %v10926_v41 = vor.u32 %v11602_v57, %v10923_v21  ;;  %v10963_v57 = vld [vmem:[%s15074_s6 + $0x98] sm:$0xf0] }
0x28a4   :  { %v7662_v20 = vsub.f32 0.0, %v7658_v32  ;;  %v10966_v21 = vor.u32 %v11612_v59, %v10963_v57  ;;  %v11638_v59 = vld [vmem:[%s15153_s24 + $0x64] sm:$0xf] }
0x28a5   :  { %8149 = vmatpush.bf16.msrb.mxu2 %v10926_v41 }
0x28a6   :  { %v7669_v43 = vmul.f32 1.442695, %v7662_v20  ;;  %v10985_v20 = vld [vmem:[%s15074_s6 + $0xc0] sm:$0xf] }
0x28a8   :  { %12548 = vpow2.f32 %v7669_v43  ;;  %v11618_v43 = vld [vmem:[%s15074_s6 + $0xc4] sm:$0xf] }
0x28a9   :  { %8150 = vmatpush.bf16.msrb.mxu2 %v10918_v16 }
0x28ae   :  { %v12549_v18 = vpop.eup %12548 }
0x28af   :  { %v7674_v49 = vadd.f32 1.0, %v12549_v18  ;;  %v11599_v18 = vld [vmem:[%s15074_s6 + $0x24] sm:$0xf0] }
0x28b2   :  { %v7645_v55 = vpop.permute.xlu1 %7644 }
0x28b3   :  { %v7657_v19 = vsel %vm523_vm1, %v14589_v47, %v7645_v55  ;;  %v10945_v47 = vld [vmem:[%s15074_s6 + $0x70] sm:$0xf]  ;;  %v10986_v55 = vor.u32 %v11619_v42, %v10985_v20  ;;  %vm8483_vm1 = vcmask 123904  }
0x28b4   :  { %v7660_v51 = vsub.f32 0.0, %v7657_v19  ;;  %v10946_v5 = vor.u32 %v11609_v0, %v10945_v47 }
0x28b5   :  { %8135 = vmatpush.bf16.msrb.mxu1 %v10986_v55 }
0x28b6   :  { %v7665_v28 = vmul.f32 1.442695, %v7660_v51  ;;  %8118 = vmatpush.bf16.msra.mxu3 %v10946_v5  ;;  %v10979_v5 = vld [vmem:[%s15074_s6 + $0xb8] sm:$0xf0] }
0x28b8   :  { %12550 = vpow2.f32 %v7665_v28  ;;  %v10905_v28 = vld [vmem:[%s15074_s6 + $0x20] sm:$0xf] }
0x28b9   :  { %12552 = vrcp.f32 %v7674_v49  ;;  %v11598_v49 = vld [vmem:[%s15074_s6 + $0x24] sm:$0xf] }
0x28ba   :  { %8119 = vmatpush.bf16.msra.mxu3 %v10938_v8  ;;  %v10899_v8 = vld [vmem:[%s15074_s6 + $0x18] sm:$0xf0] }
0x28bb   :  { %v10902_v7 = vor.u32 %v11596_v22, %v10899_v8 }
0x28be   :  { %v12551_v29 = vpop.eup %12550  ;;  %8120 = vmatpush.bf16.msra.mxu3 %v10930_v52 }
0x28bf   :  { %v7672_v46 = vadd.f32 1.0, %v12551_v29  ;;  %v12553_v6 = vpop.eup %12552  ;;  %v15121_v29 = vld [vmem:[%s15102_s20] sm:$0x3] }
0x28c0   :  { %v7682_v36 = vmul.f32 %v12553_v6, %v7658_v32  ;;  %v10913_v32 = vld [vmem:[%s15074_s6 + $0x30] sm:$0xf]  ;;  %v10907_v6 = vld [vmem:[%s15074_s6 + $0x28] sm:$0xf0]  ;;  %v7711_v47 = vperm.slane %v15121_v29, 0  ;;  %v7712_v52 = vperm.slane %v15121_v29, 1 }
0x28c1   :  { %12554 = vrcp.f32 %v7672_v46  ;;  %v10914_v24 = vor.u32 %v11601_v34, %v10913_v32  ;;  %v10906_v46 = vor.u32 %v11599_v18, %v10905_v28  ;;  %v11610_v32 = vld [vmem:[%s15074_s6 + $0x84] sm:$0xf]  ;;  %v10955_v34 = vld [vmem:[%s15074_s6 + $0x88] sm:$0xf0] }
0x28c2   :  { %8121 = vmatpush.bf16.msra.mxu3 %v10922_v60  ;;  %v10958_v45 = vor.u32 %v11610_v32, %v10955_v34  ;;  %v11636_v32 = vld [vmem:[%s15153_s24 + $0x54] sm:$0xf]  ;;  %v11059_v34 = vld [vmem:[%s15153_s24 + $0x58] sm:$0xf0] }
0x28c6   :  { %8122 = vmatpush.bf16.msra.mxu3 %v10914_v24 }
0x28c7   :  { %v12555_v35 = vpop.eup %12554 }
0x28c8   :  { %v7680_v17 = vmul.f32 %v12555_v35, %v7657_v19  ;;  %v10987_v19 = vld [vmem:[%s15074_s6 + $0xc8] sm:$0xf0]  ;;  %v10910_v35 = vor.u32 %v11598_v49, %v10907_v6 }
0x28c9   :  { %v10990_v51 = vor.u32 %v11618_v43, %v10987_v19 }
0x28ca   :  { %v7684_v11 = vpack.c.bf16 %v7682_v36, %v7680_v17  ;;  %v10977_v36 = vld [vmem:[%s15074_s6 + $0xb0] sm:$0xf]  ;;  %v11617_v17 = vld [vmem:[%s15074_s6 + $0xb4] sm:$0xf0]  ;;  %8123 = vmatpush.bf16.msra.mxu3 %v10906_v46  ;;  %8151 = vmatpush.bf16.msrb.mxu2 %v10910_v35 }
0x28cb   :  { %8163 = vmatpush.bf16.msra.mxu0 %v10990_v51  ;;  %v10978_v3 = vor.u32 %v11617_v17, %v10977_v36 }
0x28cc   :  { %10885 = vmatmul.msk.bf16.vlgmr.msra.gmra.mxu1 %vm504_vm15, %v7684_v11  ;;  %10886 = vmatmul.msk.bf16.vlgmr.msra.gmra.mxu2 %vm504_vm15, %v7684_v11  ;;  %v11616_v11 = vld [vmem:[%s15074_s6 + $0xb4] sm:$0xf] }
0x28cd   :  { %v10982_v4 = vor.u32 %v11616_v11, %v10979_v5  ;;  %8136 = vmatpush.bf16.msrb.mxu1 %v10978_v3 }
0x28ce   :  { %8124 = vmatpush.bf16.msra.mxu3 %v10898_v40  ;;  %8152 = vmatpush.bf16.msrb.mxu2 %v10902_v7 }
0x28cf   :  { %8164 = vmatpush.bf16.msra.mxu0 %v10982_v4 }
0x28d1   :  { %8137 = vmatpush.bf16.msrb.mxu1 %v10970_v9  ;;  %v11641_v9 = vld [vmem:[%s15153_s24 + $0x74] sm:$0xf0] }
0x28d2   :  { %8125 = vmatpush.bf16.msra.mxu3 %v10890_v25  ;;  %8153 = vmatpush.bf16.msrb.mxu2 %v10894_v48  ;;  %v11129_v48 = vld [vmem:[%s15153_s24 + $0xe0] sm:$0xf] }
0x28d3   :  { %8165 = vmatpush.bf16.msra.mxu0 %v10974_v31  ;;  %v11657_v31 = vld [vmem:[%s15153_s24 + $0xf4] sm:$0xf0]  ;;  %v11130_v57 = vor.u32 %v11655_v39, %v11129_v48  ;;  %v11628_v39 = vld [vmem:[%s15153_s24 + $0x14] sm:$0xf] }
0x28d4   :  { %v11138_v38 = vor.u32 %v11657_v31, %v11137_v26  ;;  %v11630_v26 = vld [vmem:[%s15153_s24 + $0x24] sm:$0xf] }
0x28d5   :  { %8138 = vmatpush.bf16.msrb.mxu1 %v10962_v30  ;;  %v11067_v30 = vld [vmem:[%s15153_s24 + $0x68] sm:$0xf0] }
0x28d7   :  { %8166 = vmatpush.bf16.msra.mxu0 %v10966_v21  ;;  %v11654_v21 = vld [vmem:[%s15153_s24 + $0xe4] sm:$0xf] }
0x28d9   :  { %8139 = vmatpush.bf16.msrb.mxu1 %v10954_v23  ;;  %v11653_v23 = vld [vmem:[%s15153_s24 + $0xd4] sm:$0xf0] }
0x28db   :  { %v7875_v2 = vpop.f32.mrf.mxu0  ;;  %8167 = vmatpush.bf16.msra.mxu0 %v10958_v45  ;;  %v11652_v45 = vld [vmem:[%s15153_s24 + $0xd4] sm:$0xf] }
0x28dc   :  { %v7876_v10 = vadd.f32 %v7875_v2, %v7712_v52  ;;  %v11656_v2 = vld [vmem:[%s15153_s24 + $0xf4] sm:$0xf] }
0x28dd   :  { %8412 = vmatpush.bf16.msra.mxu1 %v11138_v38  ;;  %v11099_v38 = vld [vmem:[%s15153_s24 + $0xa8] sm:$0xf0] }
0x28e1   :  { %v7847_v0 = vpop.f32.mrf.mxu3  ;;  %8413 = vmatpush.bf16.msra.mxu1 %v11130_v57 }
0x28e2   :  { %v7848_v56 = vadd.f32 %v7847_v0, %v7711_v47 }
0x28e3   :  { %v7877_v43 = vpop.f32.mrf.mxu0 }
0x28e4   :  { %v7878_v51 = vadd.f32 %v7877_v43, %v7712_v52  ;;  %v11078_v52 = vor.u32 %v11640_v63, %v11075_v27  ;;  %v11635_v43 = vld [vmem:[%s15153_s24 + $0x44] sm:$0xf0]  ;;  %v11646_v27 = vld [vmem:[%s15153_s24 + $0xa4] sm:$0xf] }
0x28e6   :  { %8426 = vmatpush.bf16.msra.mxu2 %v11078_v52 }
0x28e9   :  { %v7849_v41 = vpop.f32.mrf.mxu3 }
0x28ea   :  { %v7850_v12 = vadd.f32 %v7849_v41, %v7711_v47  ;;  %v11131_v41 = vld [vmem:[%s15153_s24 + $0xe8] sm:$0xf0] }
0x2949   :  { %v7861_v37 = vpop.f32.mrf.mxu1 }
0x294a   :  { %v7862_v33 = vadd.f32 %v7861_v37, %v7848_v56  ;;  %v11074_v56 = vor.u32 %v11641_v9, %v11073_v13  ;;  %v11139_v37 = vld [vmem:[%s15153_s24 + $0xf8] sm:$0xf0]  ;;  %v11647_v9 = vld [vmem:[%s15153_s24 + $0xa4] sm:$0xf0] }
0x294b   :  { %v11142_v25 = vor.u32 %v11656_v2, %v11139_v37  ;;  %v11102_v37 = vor.u32 %v11646_v27, %v11099_v38 }
0x294c   :  { %v7894_v60 = vsub.f32 0.0, %v7862_v33  ;;  %8398 = vmatpush.bf16.msrb.mxu3 %v11074_v56  ;;  %v11035_v56 = vld [vmem:[%s15153_s24 + $0x28] sm:$0xf0] }
0x294d   :  { %8440 = vmatpush.bf16.msrb.mxu0 %v11142_v25  ;;  %v11038_v63 = vor.u32 %v11630_v26, %v11035_v56  ;;  %v11025_v25 = vld [vmem:[%s15153_s24 + $0x10] sm:$0xf] }
0x294e   :  { %v7898_v1 = vmul.f32 1.442695, %v7894_v60  ;;  %v11070_v60 = vor.u32 %v11638_v59, %v11067_v30  ;;  %v11027_v59 = vld [vmem:[%s15153_s24 + $0x18] sm:$0xf0] }
0x294f   :  { %v7889_v58 = vpop.f32.mrf.mxu2 }
0x2950   :  { %v7890_v24 = vadd.f32 %v7889_v58, %v7876_v10  ;;  %12556 = vpow2.f32 %v7898_v1  ;;  %v11134_v10 = vor.u32 %v11654_v21, %v11131_v41  ;;  %8427 = vmatpush.bf16.msra.mxu2 %v11070_v60  ;;  %v11057_v1 = vld [vmem:[%s15153_s24 + $0x50] sm:$0xf]  ;;  %v11030_v21 = vor.u32 %v11628_v39, %v11027_v59  ;;  %v11644_v41 = vld [vmem:[%s15153_s24 + $0x94] sm:$0xf] }
0x2951   :  { %v7863_v16 = vpop.f32.mrf.mxu1  ;;  %v11058_v58 = vor.u32 %v11637_v44, %v11057_v1 }
0x2952   :  { %v7895_v20 = vsub.f32 0.0, %v7890_v24  ;;  %v7864_v42 = vadd.f32 %v7863_v16, %v7850_v12  ;;  %8441 = vmatpush.bf16.msrb.mxu0 %v11134_v10  ;;  %v11122_v12 = vor.u32 %v11653_v23, %v11121_v53  ;;  %v11123_v16 = vld [vmem:[%s15153_s24 + $0xd8] sm:$0xf0] }
0x2953   :  { %v11091_v10 = vld [vmem:[%s15153_s24 + $0x98] sm:$0xf0] }
0x2954   :  { %v7900_v55 = vmul.f32 1.442695, %v7895_v20  ;;  %v7896_v19 = vsub.f32 0.0, %v7864_v42  ;;  %v11126_v20 = vor.u32 %v11652_v45, %v11123_v16  ;;  %8414 = vmatpush.bf16.msra.mxu1 %v11122_v12  ;;  %v11081_v12 = vld [vmem:[%s15153_s24 + $0x80] sm:$0xf] }
0x2955   :  { %v11643_v16 = vld [vmem:[%s15153_s24 + $0x84] sm:$0xf0] }
0x2956   :  { %v7902_v28 = vmul.f32 1.442695, %v7896_v19  ;;  %12558 = vpow2.f32 %v7900_v55  ;;  %v12557_v49 = vpop.eup %12556  ;;  %v11113_v55 = vld [vmem:[%s15153_s24 + $0xc0] sm:$0xf]  ;;  %8442 = vmatpush.bf16.msrb.mxu0 %v11126_v20  ;;  %v11626_v20 = vld [vmem:[%s15153_s24 + $0x4] sm:$0xf] }
0x2957   :  { %v7891_v18 = vpop.f32.mrf.mxu2  ;;  %v7906_v6 = vadd.f32 1.0, %v12557_v49 }
0x2958   :  { %12560 = vpow2.f32 %v7902_v28  ;;  %v7892_v29 = vadd.f32 %v7891_v18, %v7878_v51  ;;  %v11651_v51 = vld [vmem:[%s15153_s24 + $0xc4] sm:$0xf0]  ;;  %v11634_v28 = vld [vmem:[%s15153_s24 + $0x44] sm:$0xf]  ;;  %v11051_v18 = vld [vmem:[%s15153_s24 + $0x48] sm:$0xf0] }
0x2959   :  { %v11114_v49 = vor.u32 %v11651_v51, %v11113_v55  ;;  %v11082_v55 = vor.u32 %v11643_v16, %v11081_v12  ;;  %v11642_v51 = vld [vmem:[%s15153_s24 + $0x84] sm:$0xf] }
0x295a   :  { %v7897_v46 = vsub.f32 0.0, %v7892_v29 }
0x295b   :  { %8415 = vmatpush.bf16.msra.mxu1 %v11114_v49 }
0x295c   :  { %v7904_v35 = vmul.f32 1.442695, %v7897_v46  ;;  %v12559_v36 = vpop.eup %12558  ;;  %v11650_v46 = vld [vmem:[%s15153_s24 + $0xc4] sm:$0xf] }
0x295d   :  { %v7907_v47 = vadd.f32 1.0, %v12559_v36  ;;  %v11041_v36 = vld [vmem:[%s15153_s24 + $0x30] sm:$0xf] }
0x295e   :  { %v12561_v17 = vpop.eup %12560  ;;  %12562 = vpow2.f32 %v7904_v35 }
0x295f   :  { %12564 = vrcp.f32 %v7906_v6  ;;  %v7908_v11 = vadd.f32 1.0, %v12561_v17  ;;  %v11115_v6 = vld [vmem:[%s15153_s24 + $0xc8] sm:$0xf0]  ;;  %v11633_v17 = vld [vmem:[%s15153_s24 + $0x34] sm:$0xf0] }
0x2960   :  { %v11118_v35 = vor.u32 %v11650_v46, %v11115_v6 }
0x2961   :  { %12566 = vrcp.f32 %v7908_v11  ;;  %v11105_v11 = vld [vmem:[%s15153_s24 + $0xb0] sm:$0xf] }
0x2962   :  { %12568 = vrcp.f32 %v7907_v47  ;;  %8443 = vmatpush.bf16.msrb.mxu0 %v11118_v35  ;;  %v11042_v47 = vor.u32 %v11633_v17, %v11041_v36 }
0x2964   :  { %v12563_v0 = vpop.eup %12562 }
0x2965   :  { %v12565_v3 = vpop.eup %12564  ;;  %v7909_v5 = vadd.f32 1.0, %v12563_v0  ;;  %v11649_v0 = vld [vmem:[%s15153_s24 + $0xb4] sm:$0xf0] }
0x2966   :  { %v7914_v61 = vmul.f32 %v12565_v3, %v7862_v33  ;;  %v11639_v33 = vld [vmem:[%s15153_s24 + $0x64] sm:$0xf0]  ;;  %v11632_v3 = vld [vmem:[%s15153_s24 + $0x34] sm:$0xf] }
0x2967   :  { %v12567_v4 = vpop.eup %12566  ;;  %12570 = vrcp.f32 %v7909_v5  ;;  %v11066_v62 = vor.u32 %v11639_v33, %v11065_v50  ;;  %v11043_v5 = vld [vmem:[%s15153_s24 + $0x38] sm:$0xf0]  ;;  %v11629_v50 = vld [vmem:[%s15153_s24 + $0x14] sm:$0xf0]  ;;  %v11089_v33 = vld [vmem:[%s15153_s24 + $0x90] sm:$0xf] }
0x2968   :  { %v7916_v54 = vmul.f32 %v12567_v4, %v7864_v42  ;;  %v12569_v40 = vpop.eup %12568  ;;  %v11049_v42 = vld [vmem:[%s15153_s24 + $0x40] sm:$0xf]  ;;  %v11106_v4 = vor.u32 %v11649_v0, %v11105_v11  ;;  %v11026_v48 = vor.u32 %v11629_v50, %v11025_v25 }
0x2969   :  { %v7915_v7 = vmul.f32 %v12569_v40, %v7890_v24  ;;  %8399 = vmatpush.bf16.msrb.mxu3 %v11066_v62  ;;  %v11062_v24 = vor.u32 %v11636_v32, %v11059_v34  ;;  %v11050_v19 = vor.u32 %v11635_v43, %v11049_v42  ;;  %v15201_v40 = vld [vmem:[%s15182_s1] sm:$0x3]  ;;  %v11645_v62 = vld [vmem:[%s15153_s24 + $0x94] sm:$0xf0]  ;;  %v11627_v34 = vld [vmem:[%s15153_s24 + $0x4] sm:$0xf0] }
0x296a   :  { %v7918_v22 = vpack.c.bf16 %v7916_v54, %v7914_v61  ;;  %v11046_v61 = vor.u32 %v11632_v3, %v11043_v5  ;;  %v11648_v54 = vld [vmem:[%s15153_s24 + $0xb4] sm:$0xf]  ;;  %8416 = vmatpush.bf16.msra.mxu1 %v11106_v4  ;;  %v7954_v52 = vperm.slane %v15201_v40, 0  ;;  %v7955_v2 = vperm.slane %v15201_v40, 1  ;;  %v11017_v32 = vld [vmem:[%s15153_s24] sm:$0xf] }
0x296b   :  { %8428 = vmatpush.bf16.msra.mxu2 %v11062_v24  ;;  %v11090_v60 = vor.u32 %v11645_v62, %v11089_v33  ;;  %v11018_v45 = vor.u32 %v11627_v34, %v11017_v32  ;;  %v11019_v42 = vld [vmem:[%s15153_s24 + $0x8] sm:$0xf0]  ;;  %v11892_v33 = vld [vmem:[%s8719_s8] ss:$0 sm:$0xff]  ;;  %v15304_v62 = vmov 0.0  }
0x296c   :  { %8126 = vmatmul.bf16.vlgmr.msra.gmra.mxu3 %v7918_v22  ;;  %8154 = vmatmul.bf16.vlgmr.msrb.gmra.mxu2 %v7918_v22  ;;  %v11107_v22 = vld [vmem:[%s15153_s24 + $0xb8] sm:$0xf0] }
0x296d   :  { %v12571_v8 = vpop.eup %12570  ;;  %8400 = vmatpush.bf16.msrb.mxu3 %v11058_v58  ;;  %v11094_v58 = vor.u32 %v11644_v41, %v11091_v10 }
0x296e   :  { %v7917_v14 = vmul.f32 %v12571_v8, %v7892_v29  ;;  %v11054_v29 = vor.u32 %v11634_v28, %v11051_v18  ;;  %v11110_v8 = vor.u32 %v11648_v54, %v11107_v22  ;;  %v11083_v28 = vld [vmem:[%s15153_s24 + $0x88] sm:$0xf0] }
0x296f   :  { %v11086_v49 = vor.u32 %v11642_v51, %v11083_v28 }
0x2970   :  { %v7919_v15 = vpack.c.bf16 %v7917_v14, %v7915_v7  ;;  %8429 = vmatpush.bf16.msra.mxu2 %v11054_v29  ;;  %v11033_v7 = vld [vmem:[%s15153_s24 + $0x20] sm:$0xf]  ;;  %v11631_v14 = vld [vmem:[%s15153_s24 + $0x24] sm:$0xf0]  ;;  %8444 = vmatpush.bf16.msrb.mxu0 %v11110_v8 }
0x2971   :  { %8401 = vmatpush.bf16.msrb.mxu3 %v11050_v19  ;;  %v11034_v13 = vor.u32 %v11631_v14, %v11033_v7  ;;  %v11022_v19 = vor.u32 %v11626_v20, %v11019_v42  ;;  %v11665_v42 = vld [vmem:[%s15243_s9 + $0x38] sm:$0xff] }
0x2972   :  { %8140 = vmatmul.bf16.vlgmr.msrb.gmra.mxu1 %v7919_v15  ;;  %8168 = vmatmul.bf16.vlgmr.msra.gmra.mxu0 %v7919_v15  ;;  %v11097_v15 = vld [vmem:[%s15153_s24 + $0xa0] sm:$0xf] }
0x2973   :  { %v11098_v31 = vor.u32 %v11647_v9, %v11097_v15 }
0x2974   :  { %8430 = vmatpush.bf16.msra.mxu2 %v11046_v61  ;;  %8445 = vmatpush.bf16.msrb.mxu0 %v11102_v37 }
0x2975   :  { %8402 = vmatpush.bf16.msrb.mxu3 %v11042_v47  ;;  %8417 = vmatpush.bf16.msra.mxu1 %v11098_v31 }
0x2978   :  { %8431 = vmatpush.bf16.msra.mxu2 %v11038_v63  ;;  %8446 = vmatpush.bf16.msrb.mxu0 %v11094_v58 }
0x2979   :  { %8403 = vmatpush.bf16.msrb.mxu3 %v11034_v13  ;;  %8418 = vmatpush.bf16.msra.mxu1 %v11090_v60 }
0x297c   :  { %8432 = vmatpush.bf16.msra.mxu2 %v11030_v21  ;;  %8447 = vmatpush.bf16.msrb.mxu0 %v11086_v49 }
0x297d   :  { %8404 = vmatpush.bf16.msrb.mxu3 %v11026_v48  ;;  %8419 = vmatpush.bf16.msra.mxu1 %v11082_v55  ;;  %v15303_v48 = vld [vmem:[#allocation5_spill] sm:$0xff] }
0x297e   :  { %vm8480_vm15 = vcmp.eq.s32.totalorder %v15303_v48, %v11892_v33  ;;  %v11666_v33 = vld [vmem:[%s15243_s9 + $0x40] sm:$0xff] }
0x297f   :  { %v15237_v39 = vsel %vm8480_vm15, 1.0, %v15304_v62  ;;  %v11658_v48 = vld [vmem:[%s15243_s9] sm:$0xff]  ;;  %v68_v62 = vstv %s8743_s25 }
0x2980   :  { %8433 = vmatpush.bf16.msra.mxu2 %v11022_v19  ;;  %v8484_v59 = vsel %vm8483_vm1, %v15237_v39, 0.0  ;;  %69 = vst [vmem:[#allocation2] sm:$0x1] %v68_v62 }
0x2981   :  { %8405 = vmatpush.bf16.msrb.mxu3 %v11018_v45  ;;  %8485 = vadd.xlane.f32.xlu0 %v8484_v59 }
0x2984   :  { %8682 = vmatpush.bf16.msrb.mxu2 %v11665_v42 }
0x29ef   :  { %v8127_v30 = vpop.f32.mrf.mxu3  ;;  %v8141_v57 = vpop.f32.mrf.mxu1 }
0x29f0   :  { %v8128_v1 = vadd.f32 %v8127_v30, %v7954_v52  ;;  %v8155_v44 = vpop.f32.mrf.mxu2  ;;  %v8169_v53 = vpop.f32.mrf.mxu0  ;;  %v8232_v30 = vld [vmem:[%s8741_s15] sm:$0x3] }
0x29f1   :  { %v8156_v23 = vadd.f32 %v8155_v44, %v7955_v2  ;;  %v8235_v60 = vperm.slane %v8232_v30, 1 }
0x29f2   :  { %v8142_v24 = vadd.f32 %v8141_v57, %v8128_v1  ;;  %v8234_v57 = vperm.slane %v8232_v30, 0 }
0x29f3   :  { %v8170_v43 = vadd.f32 %v8169_v53, %v8156_v23 }
0x29f4   :  { %v8174_v18 = vsub.f32 0.0, %v8142_v24 }
0x29f5   :  { %v8175_v29 = vsub.f32 0.0, %v8170_v43 }
0x29f6   :  { %v8178_v46 = vmul.f32 1.442695, %v8174_v18  ;;  %v11664_v18 = vld [vmem:[%s15243_s9 + $0x30] sm:$0xff] }
0x29f7   :  { %v8129_v6 = vpop.f32.mrf.mxu3  ;;  %v8180_v17 = vmul.f32 1.442695, %v8175_v29  ;;  %v8143_v11 = vpop.f32.mrf.mxu1  ;;  %8683 = vmatpush.bf16.msrb.mxu2 %v11664_v18 }
0x29f8   :  { %v8130_v35 = vadd.f32 %v8129_v6, %v7954_v52  ;;  %v8157_v36 = vpop.f32.mrf.mxu2  ;;  %12572 = vpow2.f32 %v8178_v46  ;;  %v8171_v3 = vpop.f32.mrf.mxu0 }
0x29f9   :  { %v8158_v47 = vadd.f32 %v8157_v36, %v7955_v2  ;;  %12574 = vpow2.f32 %v8180_v17 }
0x29fa   :  { %v8144_v0 = vadd.f32 %v8143_v11, %v8130_v35 }
0x29fb   :  { %v8172_v5 = vadd.f32 %v8171_v3, %v8158_v47 }
0x29fc   :  { %v8176_v4 = vsub.f32 0.0, %v8144_v0 }
0x29fd   :  { %v8177_v61 = vsub.f32 0.0, %v8172_v5 }
0x29fe   :  { %v8182_v54 = vmul.f32 1.442695, %v8176_v4  ;;  %v12573_v40 = vpop.eup %12572 }
0x29ff   :  { %v8184_v22 = vmul.f32 1.442695, %v8177_v61  ;;  %v12575_v8 = vpop.eup %12574  ;;  %v8186_v7 = vadd.f32 1.0, %v12573_v40 }
0x2a00   :  { %12576 = vpow2.f32 %v8182_v54  ;;  %v8187_v15 = vadd.f32 1.0, %v12575_v8 }
0x2a01   :  { %12578 = vpow2.f32 %v8184_v22 }
0x2a02   :  { %12580 = vrcp.f32 %v8186_v7  ;;  %v11673_v7 = vld [vmem:[%s15243_s9 + $0x78] sm:$0xff] }
0x2a06   :  { %v12577_v14 = vpop.eup %12576 }
0x2a07   :  { %v8188_v13 = vadd.f32 1.0, %v12577_v14  ;;  %v12579_v9 = vpop.eup %12578 }
0x2a08   :  { %v8189_v26 = vadd.f32 1.0, %v12579_v9  ;;  %v12581_v56 = vpop.eup %12580  ;;  %v11663_v9 = vld [vmem:[%s15243_s9 + $0x28] sm:$0xff] }
0x2a09   :  { %12582 = vrcp.f32 %v8188_v13  ;;  %v8194_v27 = vmul.f32 %v12581_v56, %v8142_v24  ;;  %v11672_v13 = vld [vmem:[%s15243_s9 + $0x70] sm:$0xff]  ;;  %8684 = vmatpush.bf16.msrb.mxu2 %v11663_v9  ;;  %v11662_v56 = vld [vmem:[%s15243_s9 + $0x20] sm:$0xff] }
0x2a0a   :  { %12584 = vrcp.f32 %v8187_v15 }
0x2a0b   :  { %12586 = vrcp.f32 %v8189_v26  ;;  %v11671_v26 = vld [vmem:[%s15243_s9 + $0x68] sm:$0xff] }
0x2a0d   :  { %8685 = vmatpush.bf16.msrb.mxu2 %v11662_v56 }
0x2a0f   :  { %v12583_v31 = vpop.eup %12582 }
0x2a10   :  { %v12585_v63 = vpop.eup %12584  ;;  %v8196_v38 = vmul.f32 %v12583_v31, %v8144_v0  ;;  %v11670_v31 = vld [vmem:[%s15243_s9 + $0x60] sm:$0xff] }
0x2a11   :  { %v12587_v52 = vpop.eup %12586  ;;  %v8195_v37 = vmul.f32 %v12585_v63, %v8170_v43  ;;  %v11661_v63 = vld [vmem:[%s15243_s9 + $0x18] sm:$0xff] }
0x2a12   :  { %v8198_v2 = vpack.c.bf16 %v8196_v38, %v8194_v27  ;;  %v8197_v25 = vmul.f32 %v12587_v52, %v8172_v5  ;;  %v11669_v27 = vld [vmem:[%s15243_s9 + $0x58] sm:$0xff]  ;;  %8686 = vmatpush.bf16.msrb.mxu2 %v11661_v63  ;;  %v11660_v38 = vld [vmem:[%s15243_s9 + $0x10] sm:$0xff] }
0x2a13   :  { %v11668_v52 = vld [vmem:[%s15243_s9 + $0x50] sm:$0xff] }
0x2a14   :  { %8406 = vmatmul.bf16.vlgmr.msrb.gmra.mxu3 %v8198_v2  ;;  %8434 = vmatmul.bf16.vlgmr.msra.gmra.mxu2 %v8198_v2  ;;  %v8199_v50 = vpack.c.bf16 %v8197_v25, %v8195_v37  ;;  %v11659_v2 = vld [vmem:[%s15243_s9 + $0x8] sm:$0xff]  ;;  %v8486_v25 = vpop.xlane.xlu0 %8485 }
0x2a15   :  { %v11667_v37 = vld [vmem:[%s15243_s9 + $0x48] sm:$0xff] }
0x2a16   :  { %8420 = vmatmul.bf16.vlgmr.msra.gmra.mxu1 %v8199_v50  ;;  %8448 = vmatmul.bf16.vlgmr.msrb.gmra.mxu0 %v8199_v50  ;;  %v8487_v50 = vmax.f32 %v8486_v25, 1.0 }
0x2a17   :  { %8687 = vmatpush.bf16.msrb.mxu2 %v11660_v38 }
0x2a1b   :  { %8688 = vmatpush.bf16.msrb.mxu2 %v11659_v2 }
0x2a1f   :  { %8689 = vmatpush.bf16.msrb.mxu2 %v11658_v48 }
0x2a93   :  { %v8421_v21 = vpop.f32.mrf.mxu1  ;;  %v8449_v41 = vpop.f32.mrf.mxu0 }
0x2a97   :  { %v8407_v10 = vpop.f32.mrf.mxu3  ;;  %v8435_v1 = vpop.f32.mrf.mxu2 }
0x2a98   :  { %v8408_v44 = vadd.f32 %v8407_v10, %v8234_v57  ;;  %v8436_v53 = vadd.f32 %v8435_v1, %v8235_v60 }
0x2a9a   :  { %v8422_v58 = vadd.f32 %v8421_v21, %v8408_v44  ;;  %v8450_v23 = vadd.f32 %v8449_v41, %v8436_v53  ;;  %v8497_v41 = vand.u32 2147483647, %v8487_v50 }
0x2a9b   :  { %v8423_v43 = vpop.f32.mrf.mxu1  ;;  %v8451_v55 = vpop.f32.mrf.mxu0 }
0x2a9c   :  { %v8454_v32 = vsub.f32 0.0, %v8422_v58  ;;  %v8455_v34 = vsub.f32 0.0, %v8450_v23  ;;  %vm8498_vm2 = vcmp.eq.f32.partialorder %v8497_v41, 8.507059e+37 }
0x2a9e   :  { %v8458_v12 = vmul.f32 1.442695, %v8454_v32  ;;  %v8460_v19 = vmul.f32 1.442695, %v8455_v34 }
0x2a9f   :  { %v8409_v24 = vpop.f32.mrf.mxu3  ;;  %v8437_v45 = vpop.f32.mrf.mxu2 }
0x2aa0   :  { %v8410_v16 = vadd.f32 %v8409_v24, %v8234_v57  ;;  %v8438_v20 = vadd.f32 %v8437_v45, %v8235_v60  ;;  %12588 = vpow2.f32 %v8458_v12  ;;  %v8499_v60 = vand.u32 2147483648, %v8487_v50  ;;  %v11893_v24 = vld [vmem:[#allocation2] ss:$0 sm:$0xff] }
0x2aa1   :  { %12590 = vpow2.f32 %v8460_v19 }
0x2aa2   :  { %v8424_v51 = vadd.f32 %v8423_v43, %v8410_v16  ;;  %v8452_v28 = vadd.f32 %v8451_v55, %v8438_v20  ;;  %v8500_v10 = vor.u32 1.1754944e-38, %v8499_v60 }
0x2aa4   :  { %v8456_v49 = vsub.f32 0.0, %v8424_v51  ;;  %v8457_v29 = vsub.f32 0.0, %v8452_v28 }
0x2aa6   :  { %v8462_v46 = vmul.f32 1.442695, %v8456_v49  ;;  %v8464_v6 = vmul.f32 1.442695, %v8457_v29  ;;  %v12589_v35 = vpop.eup %12588 }
0x2aa7   :  { %v12591_v36 = vpop.eup %12590  ;;  %v8466_v17 = vadd.f32 1.0, %v12589_v35 }
0x2aa8   :  { %12592 = vpow2.f32 %v8462_v46  ;;  %v8467_v47 = vadd.f32 1.0, %v12591_v36 }
0x2aa9   :  { %12594 = vpow2.f32 %v8464_v6 }
0x2aaa   :  { %12596 = vrcp.f32 %v8466_v17 }
0x2aae   :  { %v12593_v11 = vpop.eup %12592 }
0x2aaf   :  { %v8468_v0 = vadd.f32 1.0, %v12593_v11  ;;  %v12595_v3 = vpop.eup %12594 }
0x2ab0   :  { %v8469_v5 = vadd.f32 1.0, %v12595_v3  ;;  %v12597_v4 = vpop.eup %12596 }
0x2ab1   :  { %12598 = vrcp.f32 %v8468_v0  ;;  %v8474_v8 = vmul.f32 %v12597_v4, %v8422_v58 }
0x2ab2   :  { %12600 = vrcp.f32 %v8467_v47 }
0x2ab3   :  { %12602 = vrcp.f32 %v8469_v5 }
0x2ab4   :  { %12604 = vrcp.f32 %v8487_v50 }
0x2ab7   :  { %v12599_v61 = vpop.eup %12598 }
0x2ab8   :  { %v8476_v54 = vmul.f32 %v12599_v61, %v8424_v51  ;;  %v12601_v22 = vpop.eup %12600 }
0x2ab9   :  { %v12603_v40 = vpop.eup %12602  ;;  %v8475_v15 = vmul.f32 %v12601_v22, %v8450_v23 }
0x2aba   :  { %8520 = vmatpush.msra.mxu3 %v8476_v54  ;;  %v8477_v14 = vmul.f32 %v12603_v40, %v8452_v28 }
0x2abc   :  { %8521 = vmatpush.msra.mxu3 %v8474_v8  ;;  %8540 = vmatpush.msrb.mxu1 %v8477_v14 }
0x2abd   :  { %11144 = vmatmul.msk.f32.vlgmr.msra.gmra.mxu3 %vm337_vm4, %v15237_v39 }
0x2abe   :  { %8695 = vmatpush.bf16.msrb.mxu3 %v11673_v7  ;;  %8541 = vmatpush.msrb.mxu1 %v8475_v15 }
0x2abf   :  { %11145 = vmatmul.msk.f32.vlgmr.msrb.gmra.mxu1 %vm337_vm4, %v15237_v39  ;;  %v12605_v39 = vpop.eup %12604  ;;  %vm8493_vm4 = vweird.f32 %v8487_v50 }
0x2ac0   :  { %v8489_v59 = vmul.f32 %v12605_v39, %v8487_v50  ;;  %vm8494_vm9 = vweird.f32 %v12605_v39 }
0x2ac1   :  { %vm8495_vm0 = vmor %vm8493_vm4, %vm8494_vm9 }
0x2ac2   :  { %8696 = vmatpush.bf16.msrb.mxu3 %v11672_v13  ;;  %v8490_v30 = vsub.f32 1.0, %v8489_v59 }
0x2ac4   :  { %v8491_v57 = vmul.f32 %v12605_v39, %v8490_v30 }
0x2ac6   :  { %8697 = vmatpush.bf16.msrb.mxu3 %v11671_v26  ;;  %v8492_v21 = vadd.f32 %v12605_v39, %v8491_v57 }
0x2ac8   :  { %v8496_v1 = vsel %vm8495_vm0, %v12605_v39, %v8492_v21 }
0x2ac9   :  { %v8501_v44 = vsel %vm8498_vm2, %v8500_v10, %v8496_v1 }
0x2aca   :  { %8698 = vmatpush.bf16.msrb.mxu3 %v11670_v31 }
0x2ace   :  { %8699 = vmatpush.bf16.msrb.mxu3 %v11669_v27 }
0x2ad2   :  { %8700 = vmatpush.bf16.msrb.mxu3 %v11668_v52 }
0x2ad6   :  { %8701 = vmatpush.bf16.msrb.mxu3 %v11667_v37 }
0x2ada   :  { %8702 = vmatpush.bf16.msrb.mxu3 %v11666_v33 }
0x2b3c   :  { %v8543_v53 = vpop.f32.mrf.mxu1 }
0x2b3d   :  { %v8547_v58 = vmul.f32 %v8543_v53, %v8501_v44 }
0x2b3f   :  { %v8549_v32 = vpack.c.bf16 %v8547_v58, %v8547_v58 }
0x2b40   :  { %v8523_v23 = vpop.f32.mrf.mxu3 }
0x2b41   :  { %v8546_v34 = vmul.f32 %v8523_v23, %v8501_v44  ;;  %8703 = vmatmul.bf16.vlgmr.msrb.gmra.mxu3 %v8549_v32 }
0x2b43   :  { %v8548_v12 = vpack.c.bf16 %v8546_v34, %v8546_v34 }
0x2b45   :  { %8690 = vmatmul.bf16.vlgmr.msrb.gmra.mxu2 %v8548_v12 }
0x2bc4   :  { %v8704_v45 = vpop.f32.mrf.mxu3 }
0x2bc8   :  { %v8691_v16 = vpop.f32.mrf.mxu2 }
0x2bc9   :  { %v8692_v20 = vadd.f32 %v11893_v24, %v8691_v16 }
0x2bcb   :  { %v8705_v42 = vadd.f32 %v8704_v45, %v8692_v20 }
0x2bcc   :  { %v8706_v43 = vpop.f32.mrf.mxu3 }
0x2bcd   :  { %8709 = vst.msk [vmem:[%s8744_s16] sm:$0x3] %vm8708_vm10, %v8705_v42 }
0x2bd0   :  { %v8693_v55 = vpop.f32.mrf.mxu2 }

</bundles_post_ra>
